<compile_context>
chip_gen: v5e
topology: v5e:2x2
jax: 0.10.0
libtpu: 0.0.40
codegen_flags: <defaults>
</compile_context>

<pallas_src>
import jax
import jax.numpy as jnp
import numpy as np
from jax.experimental import pallas as pl
from jax.experimental.pallas import tpu as pltpu

# ---- module hyper-parameters (small, consistent with the nn.Module) ----
HIDDEN_SIZE   = 32          # self.hidden_size == self.input_size
VOCAB_SIZE    = 28
LATENT_DIM    = 16
N_TENSE_EMBED = 8

DZ = LATENT_DIM + N_TENSE_EMBED        # 24  latent_z width (input1 flattened)
DH = HIDDEN_SIZE                       # 32  word-embedding width
H  = HIDDEN_SIZE + N_TENSE_EMBED       # 40  LSTM hidden width
V  = VOCAB_SIZE                        # 28

# ---- lane-dense padded widths used inside the kernel ----
HP = 128                               # each gate / hidden padded to one lane tile
GP = 4 * HP                            # 512: gates [i, f, g, o] stacked along lanes
VP = 128                               # padded vocab width

MAX_CHUNK = 32                         # max timesteps folded into one grid step


def _make_chunk_kernel(tc):
    """Build the chunked decoder kernel for a static chunk length `tc` (multiple of 8)."""

    def kernel(tok_ref, nvalid_ref,                     # SMEM scalar prefetch: (T_pad,), (1,)
               lz_ref, h0_ref, c0_ref,                  # (1,DZ), (1,HP), (1,HP)
               embgate_ref,                             # (V,1,GP): relu(E) @ W_emb, precomputed
               wlz_ref, wh_ref, b_ref,                  # (DZ,GP), (HP,GP), (1,GP)
               wout_ref, bout_ref,                      # (HP,VP), (1,VP)
               logits_ref, hn_ref, cn_ref,              # (tc,VP), (1,HP), (1,HP)
               h_sc, c_sc, zb_sc, hs_sc):               # VMEM scratch
        chunk = pl.program_id(0)

        @pl.when(chunk == 0)
        def _init():
            h_sc[...] = h0_ref[...]
            c_sc[...] = c0_ref[...]
            # latent-z contribution + combined bias is constant over the decode
            # loop: compute once, keep resident in scratch across all chunks.
            zb_sc[...] = (jnp.dot(lz_ref[...], wlz_ref[...],
                                  preferred_element_type=jnp.float32)
                          + b_ref[...])

        nvalid = nvalid_ref[0]
        base = chunk * tc
        zb = zb_sc[...]                                  # (1, GP) — tiny, keep in vregs

        h = h_sc[...]                                    # (1, HP)
        c = c_sc[...]                                    # (1, HP)
        for step in range(tc):                           # static unroll (tc <= 32)
            tok = tok_ref[base + step]
            eg = embgate_ref[tok]                        # (1, GP)  relu(E[tok]) @ W_emb (pre-done)
            # single per-step matmul: recurrent part only
            gates = (zb + eg
                     + jnp.dot(h, wh_ref[...], preferred_element_type=jnp.float32))  # (1, GP)

            sg = jax.nn.sigmoid(gates)                   # one EUP pass over all gates
            i_g = sg[:, 0 * HP:1 * HP]
            f_g = sg[:, 1 * HP:2 * HP]
            o_g = sg[:, 3 * HP:4 * HP]
            g_g = jnp.tanh(gates[:, 2 * HP:3 * HP])

            c_new = f_g * c + i_g * g_g
            h_new = o_g * jnp.tanh(c_new)

            # mask steps past the real sequence length (state must not move)
            valid = (base + step) < nvalid
            h = jnp.where(valid, h_new, h)
            c = jnp.where(valid, c_new, c)
            hs_sc[pl.ds(step, 1), :] = h                 # stage for the chunked projection

        h_sc[...] = h
        c_sc[...] = c

        # deferred output projection: one (tc,HP)@(HP,VP) matmul per chunk,
        # written back as a single sublane/lane-dense (tc, 128) block.
        logits_ref[...] = (jnp.dot(hs_sc[...], wout_ref[...],
                                   preferred_element_type=jnp.float32)
                           + bout_ref[...])

        @pl.when(chunk == pl.num_programs(0) - 1)
        def _final():
            hn_ref[...] = h
            cn_ref[...] = c

    return kernel


def _decoder_sequence_call(kp, lz, token_pad, nvalid, h0p, c0p, tc):
    """One pallas_call running all decode chunks with VMEM-resident weights.

    h0p / c0p MUST be zero in the padded lanes [H:HP] (load-bearing invariant:
    padded weight columns / bias lanes are zero, so padded lanes stay 0)."""
    t_pad = int(token_pad.shape[0])
    n_chunks = t_pad // tc
    const2 = lambda c, tok, nv: (0, 0)
    const3 = lambda c, tok, nv: (0, 0, 0)

    grid_spec = pltpu.PrefetchScalarGridSpec(
        num_scalar_prefetch=2,
        grid=(n_chunks,),
        in_specs=[
            pl.BlockSpec((1, DZ), const2),         # latent z row
            pl.BlockSpec((1, HP), const2),         # h0 (padded)
            pl.BlockSpec((1, HP), const2),         # c0 (padded)
            pl.BlockSpec((V, 1, GP), const3),      # precomputed embedding-gate table
            pl.BlockSpec((DZ, GP), const2),        # W_ih (latent part), gates along lanes
            pl.BlockSpec((HP, GP), const2),        # W_hh
            pl.BlockSpec((1, GP),  const2),        # b_ih + b_hh
            pl.BlockSpec((HP, VP), const2),        # W_out
            pl.BlockSpec((1, VP),  const2),        # b_out
        ],
        out_specs=(
            pl.BlockSpec((tc, VP), lambda c, tok, nv: (c, 0)),   # per-chunk logits block
            pl.BlockSpec((1, HP), const2),                       # final hn
            pl.BlockSpec((1, HP), const2),                       # final cn
        ),
        scratch_shapes=[
            pltpu.VMEM((1, HP), jnp.float32),      # h state (recurrent, VMEM only)
            pltpu.VMEM((1, HP), jnp.float32),      # c state
            pltpu.VMEM((1, GP), jnp.float32),      # cached latent-z @ W_lz + bias
            pltpu.VMEM((tc, HP), jnp.float32),     # per-step h_new staging for projection
        ],
    )

    # advisory only
    flops = (t_pad * 2 * HP * GP               # recurrent matmul per step
             + n_chunks * 2 * tc * HP * VP     # chunked output projection
             + 2 * DZ * GP)                    # latent-z hoist (once)
    bytes_w = 4 * (V * GP + DZ * GP + HP * GP + GP + HP * VP + VP + DZ + 2 * HP)
    cost = pl.CostEstimate(flops=flops,
                           transcendentals=t_pad * (GP + 2 * HP),
                           bytes_accessed=bytes_w + 4 * (t_pad * VP + 2 * HP) + 4 * (t_pad + 1))

    return pl.pallas_call(
        _make_chunk_kernel(tc),
        grid_spec=grid_spec,
        out_shape=(jax.ShapeDtypeStruct((t_pad, VP), jnp.float32),
                   jax.ShapeDtypeStruct((1, HP), jnp.float32),
                   jax.ShapeDtypeStruct((1, HP), jnp.float32)),
        compiler_params=pltpu.CompilerParams(
            dimension_semantics=("arbitrary",)),   # recurrence over chunks, not parallel
        cost_estimate=cost,
    )(token_pad, nvalid, lz, h0p, c0p,
      kp["embgate"], kp["wlz"], kp["wh"], kp["b"], kp["wout"], kp["bout"])


def decoder_rnn_sequence_forward(params, input1, token_ids, hn, cn):
    """Apply DecoderRNN.forward over a whole token sequence in ONE pallas_call."""
    kp = params["kernel"]
    token_ids = jnp.asarray(token_ids, jnp.int32).reshape(-1)
    T = int(token_ids.shape[0])

    tc = min(MAX_CHUNK, ((T + 7) // 8) * 8)          # chunk length: multiple of 8, <= 32
    t_pad = ((T + tc - 1) // tc) * tc
    token_pad = jnp.zeros((t_pad,), jnp.int32).at[:T].set(token_ids)
    nvalid = jnp.array([T], jnp.int32)

    lz = input1.reshape(1, DZ).astype(jnp.float32)
    # zero-pad state beyond H: required so padded lanes stay exactly 0 in-kernel
    h0p = jnp.zeros((1, HP), jnp.float32).at[:, :H].set(hn.reshape(1, H).astype(jnp.float32))
    c0p = jnp.zeros((1, HP), jnp.float32).at[:, :H].set(cn.reshape(1, H).astype(jnp.float32))

    logits_p, hn_p, cn_p = _decoder_sequence_call(kp, lz, token_pad, nvalid, h0p, c0p, tc)

    logits = logits_p[:T, :V]                 # (T, vocab_size)
    hn_new = hn_p[:, :H].reshape(1, 1, H)
    cn_new = cn_p[:, :H].reshape(1, 1, H)
    return logits, (hn_new, cn_new)


def decoder_rnn_forward(params, input1, input2, hn, cn):
    """Single decoder step, mirroring DecoderRNN.forward(input1, input2, hn, cn).

    For autoregressive decoding prefer decoder_rnn_sequence_forward: a T=1 call
    re-pays kernel launch + weight staging per token."""
    tok = jnp.asarray(input2, jnp.int32).reshape(1)
    logits, (hn_new, cn_new) = decoder_rnn_sequence_forward(params, input1, tok, hn, cn)
    return logits, (hn_new, cn_new)             # logits: (1, vocab_size)


def make_params(key):
    """Deterministic PyTorch-style init + packing into the lane-dense kernel layout."""
    ks = jax.random.split(key, 8)
    bnd = 1.0 / np.sqrt(H)

    def u(k, shape):
        return jax.random.uniform(k, shape, jnp.float32, -bnd, bnd)

    logical = {
        "embedding": jax.random.normal(ks[0], (V, DH), jnp.float32),   # nn.Embedding ~ N(0,1)
        "wx_lz":  u(ks[1], (4, DZ, H)),      # W_ih (latent part), gate order [i,f,g,o]
        "wx_emb": u(ks[2], (4, DH, H)),      # W_ih (embedding part)
        "wh":     u(ks[3], (4, H,  H)),      # W_hh
        "b":      u(ks[4], (4, H)) + u(ks[5], (4, H)),   # b_ih + b_hh
        "wout":   u(ks[6], (H, V)),          # nn.Linear(H, vocab) transposed
        "bout":   u(ks[7], (V,)),
    }

    def pack_gates(w):   # (4, in, H) -> (in, GP) numpy; padded gate lanes are ZERO
        inp = w.shape[1]
        out = np.zeros((inp, GP), np.float32)
        for k in range(4):
            out[:, k * HP:k * HP + H] = np.asarray(w[k])
        return out

    # relu(E[tok]) @ W_emb == (relu(E) @ W_emb)[tok]  — exact, so precompute
    # the whole embedding-gate table offline; the kernel row-gathers it.
    wemb_pad = pack_gates(logical["wx_emb"])                              # (DH, GP)
    embgate = np.maximum(np.asarray(logical["embedding"]), 0.0) @ wemb_pad  # (V, GP)

    wh_pad = np.zeros((HP, GP), np.float32)          # padded h rows are ZERO
    for k in range(4):
        wh_pad[:H, k * HP:k * HP + H] = np.asarray(logical["wh"][k])

    b_pad = np.zeros((1, GP), np.float32)
    for k in range(4):
        b_pad[0, k * HP:k * HP + H] = np.asarray(logical["b"][k])

    wout_pad = np.zeros((HP, VP), np.float32)
    wout_pad[:H, :V] = np.asarray(logical["wout"])
    bout_pad = np.zeros((1, VP), np.float32)
    bout_pad[0, :V] = np.asarray(logical["bout"])

    kernel_params = {
        "embgate": jnp.asarray(embgate.reshape(V, 1, GP)),
        "wlz":  jnp.asarray(pack_gates(logical["wx_lz"])),
        "wh":   jnp.asarray(wh_pad),
        "b":    jnp.asarray(b_pad),
        "wout": jnp.asarray(wout_pad),
        "bout": jnp.asarray(bout_pad),
    }
    return {"logical": logical, "kernel": kernel_params}


def decoder_rnn_reference_step(logical, input1, input2, hn, cn):
    """Pure-JAX reference of one DecoderRNN.forward step (unpadded layout)."""
    lz  = input1.reshape(1, DZ)
    emb = jnp.maximum(logical["embedding"][input2].reshape(1, DH), 0.0)
    h, c = hn.reshape(1, H), cn.reshape(1, H)

    def gate(k):
        return (lz @ logical["wx_lz"][k] + emb @ logical["wx_emb"][k]
                + h @ logical["wh"][k] + logical["b"][k][None, :])

    i = jax.nn.sigmoid(gate(0))
    f = jax.nn.sigmoid(gate(1))
    g = jnp.tanh(gate(2))
    o = jax.nn.sigmoid(gate(3))
    c_new = f * c + i * g
    h_new = o * jnp.tanh(c_new)
    logits = h_new @ logical["wout"] + logical["bout"][None, :]
    return logits, (h_new.reshape(1, 1, H), c_new.reshape(1, 1, H))


if __name__ == "__main__":
    key = jax.random.PRNGKey(0)
    k_p, k_z, k_h, k_c, k_t = jax.random.split(key, 5)

    params = make_params(k_p)

    T = 40                                                           # exercises 2 chunks + tail masking
    input1    = jax.random.normal(k_z, (1, 1, DZ), jnp.float32)      # latent z (+ tense embed)
    token_ids = jax.random.randint(k_t, (T,), 0, V, jnp.int32)       # decode-step token ids
    hn = jax.random.normal(k_h, (1, 1, H), jnp.float32) * 0.1
    cn = jax.random.normal(k_c, (1, 1, H), jnp.float32) * 0.1

    # ---- fused-sequence kernel: one pallas_call for all T decoder steps ----
    logits_seq, (hn_new, cn_new) = decoder_rnn_sequence_forward(
        params, input1, token_ids, hn, cn)
    jax.block_until_ready((logits_seq, hn_new, cn_new))

    # ---- reference: apply the module's single-step forward T times ----
    ref_logits = []
    h_ref, c_ref = hn, cn
    for t in range(T):
        lg, (h_ref, c_ref) = decoder_rnn_reference_step(
            params["logical"], input1, token_ids[t], h_ref, c_ref)
        ref_logits.append(lg)
    ref_logits = jnp.concatenate(ref_logits, axis=0)

    assert logits_seq.shape == (T, V)
    assert hn_new.shape == (1, 1, H) and cn_new.shape == (1, 1, H)
    np.testing.assert_allclose(np.asarray(logits_seq), np.asarray(ref_logits),
                               rtol=2e-4, atol=2e-4)
    np.testing.assert_allclose(np.asarray(hn_new), np.asarray(h_ref), rtol=2e-4, atol=2e-4)
    np.testing.assert_allclose(np.asarray(cn_new), np.asarray(c_ref), rtol=2e-4, atol=2e-4)

    # ---- single-step wrapper (exact original forward signature) ----
    logits1, (h1, c1) = decoder_rnn_forward(params, input1, token_ids[0], hn, cn)
    jax.block_until_ready((logits1, h1, c1))
    ref1, (rh1, rc1) = decoder_rnn_reference_step(
        params["logical"], input1, token_ids[0], hn, cn)
    assert logits1.shape == (1, V)
    np.testing.assert_allclose(np.asarray(logits1), np.asarray(ref1), rtol=2e-4, atol=2e-4)
    np.testing.assert_allclose(np.asarray(h1), np.asarray(rh1), rtol=2e-4, atol=2e-4)
    np.testing.assert_allclose(np.asarray(c1), np.asarray(rc1), rtol=2e-4, atol=2e-4)

    print("KERNEL_OK")
</pallas_src>

<mosaic_0001>
module attributes {stable_mosaic.version = 11 : i64} {
  func.func @kernel(%arg0: i32, %arg1: memref<64xi32, #tpu.memory_space<smem>>, %arg2: memref<1xi32, #tpu.memory_space<smem>>, %arg3: memref<1x24xf32, #tpu.memory_space<vmem>>, %arg4: memref<1x128xf32, #tpu.memory_space<vmem>>, %arg5: memref<1x128xf32, #tpu.memory_space<vmem>>, %arg6: memref<28x1x512xf32, #tpu.memory_space<vmem>>, %arg7: memref<24x512xf32, #tpu.memory_space<vmem>>, %arg8: memref<128x512xf32, #tpu.memory_space<vmem>>, %arg9: memref<1x512xf32, #tpu.memory_space<vmem>>, %arg10: memref<128x128xf32, #tpu.memory_space<vmem>>, %arg11: memref<1x128xf32, #tpu.memory_space<vmem>>, %arg12: memref<32x128xf32, #tpu.memory_space<vmem>>, %arg13: memref<1x128xf32, #tpu.memory_space<vmem>>, %arg14: memref<1x128xf32, #tpu.memory_space<vmem>>, %arg15: memref<1x128xf32, #tpu.memory_space<vmem>>, %arg16: memref<1x128xf32, #tpu.memory_space<vmem>>, %arg17: memref<1x512xf32, #tpu.memory_space<vmem>>, %arg18: memref<32x128xf32, #tpu.memory_space<vmem>>) attributes {dimension_semantics = [#tpu.dimension_semantics<arbitrary>], iteration_bounds = array<i64: 2>, scalar_prefetch = 2 : i64, scratch_operands = 4 : i64, tpu.core_type = #tpu.core_type<tc>, window_params = [{pipeline_mode = #tpu.pipeline_mode<synchronous>, transform_indices = @transform_0, window_bounds = array<i64: 1, 24>}, {pipeline_mode = #tpu.pipeline_mode<synchronous>, transform_indices = @transform_1, window_bounds = array<i64: 1, 128>}, {pipeline_mode = #tpu.pipeline_mode<synchronous>, transform_indices = @transform_2, window_bounds = array<i64: 1, 128>}, {pipeline_mode = #tpu.pipeline_mode<synchronous>, transform_indices = @transform_3, window_bounds = array<i64: 28, 1, 512>}, {pipeline_mode = #tpu.pipeline_mode<synchronous>, transform_indices = @transform_4, window_bounds = array<i64: 24, 512>}, {pipeline_mode = #tpu.pipeline_mode<synchronous>, transform_indices = @transform_5, window_bounds = array<i64: 128, 512>}, {pipeline_mode = #tpu.pipeline_mode<synchronous>, transform_indices = @transform_6, window_bounds = array<i64: 1, 512>}, {pipeline_mode = #tpu.pipeline_mode<synchronous>, transform_indices = @transform_7, window_bounds = array<i64: 128, 128>}, {pipeline_mode = #tpu.pipeline_mode<synchronous>, transform_indices = @transform_8, window_bounds = array<i64: 1, 128>}, {transform_indices = @transform_9, window_bounds = array<i64: 32, 128>}, {pipeline_mode = #tpu.pipeline_mode<synchronous>, transform_indices = @transform_10, window_bounds = array<i64: 1, 128>}, {pipeline_mode = #tpu.pipeline_mode<synchronous>, transform_indices = @transform_11, window_bounds = array<i64: 1, 128>}]} {
    %c0_i32 = arith.constant 0 : i32
    %0 = arith.cmpi eq, %arg0, %c0_i32 : i32
    %1 = arith.extui %0 : i1 to i32
    %c0_i32_0 = arith.constant 0 : i32
    %2 = arith.cmpi ne, %1, %c0_i32_0 : i32
    scf.if %2 {
      %c0_279 = arith.constant 0 : index
      %c0_280 = arith.constant 0 : index
      %980 = vector.load %arg4[%c0_279, %c0_280] : memref<1x128xf32, #tpu.memory_space<vmem>>, vector<1x128xf32>
      %c0_281 = arith.constant 0 : index
      %c0_282 = arith.constant 0 : index
      %981 = vector.load %arg15[%c0_281, %c0_282] : memref<1x128xf32, #tpu.memory_space<vmem>>, vector<1x128xf32>
      tpu.vector_store %arg15[%c0_281, %c0_282], %980 {strides = array<i32>} : memref<1x128xf32, #tpu.memory_space<vmem>>, vector<1x128xf32>,
      %c0_283 = arith.constant 0 : index
      %c0_284 = arith.constant 0 : index
      %982 = vector.load %arg5[%c0_283, %c0_284] : memref<1x128xf32, #tpu.memory_space<vmem>>, vector<1x128xf32>
      %c0_285 = arith.constant 0 : index
      %c0_286 = arith.constant 0 : index
      %983 = vector.load %arg16[%c0_285, %c0_286] : memref<1x128xf32, #tpu.memory_space<vmem>>, vector<1x128xf32>
      tpu.vector_store %arg16[%c0_285, %c0_286], %982 {strides = array<i32>} : memref<1x128xf32, #tpu.memory_space<vmem>>, vector<1x128xf32>,
      %c0_287 = arith.constant 0 : index
      %c0_288 = arith.constant 0 : index
      %984 = vector.load %arg3[%c0_287, %c0_288] : memref<1x24xf32, #tpu.memory_space<vmem>>, vector<1x24xf32>
      %c0_289 = arith.constant 0 : index
      %c0_290 = arith.constant 0 : index
      %985 = vector.load %arg7[%c0_289, %c0_290] : memref<24x512xf32, #tpu.memory_space<vmem>>, vector<24x512xf32>
      %cst_291 = arith.constant dense<0.000000e+00> : vector<1x512xf32>
      %986 = tpu.matmul %984, %985, %cst_291 {dimension_numbers = #tpu.dot_dimension_numbers<[1], [0], [0], [1], [0, 0, 1, 1], [], []>} : vector<1x24xf32>, vector<24x512xf32>, vector<1x512xf32> -> vector<1x512xf32>
      %c0_292 = arith.constant 0 : index
      %c0_293 = arith.constant 0 : index
      %987 = vector.load %arg9[%c0_292, %c0_293] : memref<1x512xf32, #tpu.memory_space<vmem>>, vector<1x512xf32>
      %988 = arith.addf %986, %987 : vector<1x512xf32>
      %c0_294 = arith.constant 0 : index
      %c0_295 = arith.constant 0 : index
      %989 = vector.load %arg17[%c0_294, %c0_295] : memref<1x512xf32, #tpu.memory_space<vmem>>, vector<1x512xf32>
      tpu.vector_store %arg17[%c0_294, %c0_295], %988 {strides = array<i32>} : memref<1x512xf32, #tpu.memory_space<vmem>>, vector<1x512xf32>,
    } else {
    }
    %c0 = arith.constant 0 : index
    %3 = memref.load %arg2[%c0] : memref<1xi32, #tpu.memory_space<smem>>
    %c32_i32 = arith.constant 32 : i32
    %4 = arith.muli %arg0, %c32_i32 : i32
    %c0_1 = arith.constant 0 : index
    %c0_2 = arith.constant 0 : index
    %5 = vector.load %arg17[%c0_1, %c0_2] : memref<1x512xf32, #tpu.memory_space<vmem>>, vector<1x512xf32>
    %c0_3 = arith.constant 0 : index
    %c0_4 = arith.constant 0 : index
    %6 = vector.load %arg15[%c0_3, %c0_4] : memref<1x128xf32, #tpu.memory_space<vmem>>, vector<1x128xf32>
    %c0_5 = arith.constant 0 : index
    %c0_6 = arith.constant 0 : index
    %7 = vector.load %arg16[%c0_5, %c0_6] : memref<1x128xf32, #tpu.memory_space<vmem>>, vector<1x128xf32>
    %c0_i32_7 = arith.constant 0 : i32
    %8 = arith.addi %4, %c0_i32_7 : i32
    %9 = arith.index_cast %8 : i32 to index
    %10 = memref.load %arg1[%9] : memref<64xi32, #tpu.memory_space<smem>>
    %11 = arith.index_cast %10 : i32 to index
    %c0_8 = arith.constant 0 : index
    %c0_9 = arith.constant 0 : index
    %12 = vector.load %arg6[%11, %c0_8, %c0_9] : memref<28x1x512xf32, #tpu.memory_space<vmem>>, vector<1x1x512xf32>
    %13 = vector.shape_cast %12 : vector<1x1x512xf32> to vector<1x512xf32>
    %14 = arith.addf %5, %13 : vector<1x512xf32>
    %c0_10 = arith.constant 0 : index
    %c0_11 = arith.constant 0 : index
    %15 = vector.load %arg8[%c0_10, %c0_11] : memref<128x512xf32, #tpu.memory_space<vmem>>, vector<128x512xf32>
    %cst = arith.constant dense<0.000000e+00> : vector<1x512xf32>
    %16 = tpu.matmul %6, %15, %cst {dimension_numbers = #tpu.dot_dimension_numbers<[1], [0], [0], [1], [0, 0, 1, 1], [], []>} : vector<1x128xf32>, vector<128x512xf32>, vector<1x512xf32> -> vector<1x512xf32>
    %17 = arith.addf %14, %16 : vector<1x512xf32>
    %18 = arith.negf %17 : vector<1x512xf32>
    %19 = math.exp %18 : vector<1x512xf32>
    %cst_12 = arith.constant 1.000000e+00 : f32
    %20 = vector.broadcast %cst_12 : f32 to vector<1x512xf32>
    %21 = arith.addf %20, %19 : vector<1x512xf32>
    %22 = arith.divf %20, %21 : vector<1x512xf32>
    %23 = vector.extract_strided_slice %22 {offsets = [0, 0], sizes = [1, 128], strides = [1, 1]} : vector<1x512xf32> to vector<1x128xf32>
    %24 = vector.extract_strided_slice %22 {offsets = [0, 128], sizes = [1, 128], strides = [1, 1]} : vector<1x512xf32> to vector<1x128xf32>
    %25 = vector.extract_strided_slice %22 {offsets = [0, 384], sizes = [1, 128], strides = [1, 1]} : vector<1x512xf32> to vector<1x128xf32>
    %26 = vector.extract_strided_slice %17 {offsets = [0, 256], sizes = [1, 128], strides = [1, 1]} : vector<1x512xf32> to vector<1x128xf32>
    %27 = math.tanh %26 : vector<1x128xf32>
    %28 = arith.mulf %24, %7 : vector<1x128xf32>
    %29 = arith.mulf %23, %27 : vector<1x128xf32>
    %30 = arith.addf %28, %29 : vector<1x128xf32>
    %31 = math.tanh %30 : vector<1x128xf32>
    %32 = arith.mulf %25, %31 : vector<1x128xf32>
    %c0_i32_13 = arith.constant 0 : i32
    %33 = arith.addi %4, %c0_i32_13 : i32
    %34 = arith.cmpi slt, %33, %3 : i32
    %35 = arith.select %34, %32, %6 : vector<1x128xf32>
    %36 = arith.select %34, %30, %7 : vector<1x128xf32>
    %c0_14 = arith.constant 0 : index
    %c0_15 = arith.constant 0 : index
    %37 = vector.load %arg18[%c0_14, %c0_15] : memref<32x128xf32, #tpu.memory_space<vmem>>, vector<1x128xf32>
    tpu.vector_store %arg18[%c0_14, %c0_15], %35 {strides = array<i32>} : memref<32x128xf32, #tpu.memory_space<vmem>>, vector<1x128xf32>,
    %c1_i32 = arith.constant 1 : i32
    %38 = arith.addi %4, %c1_i32 : i32
    %39 = arith.index_cast %38 : i32 to index
    %40 = memref.load %arg1[%39] : memref<64xi32, #tpu.memory_space<smem>>
    %41 = arith.index_cast %40 : i32 to index
    %c0_16 = arith.constant 0 : index
    %c0_17 = arith.constant 0 : index
    %42 = vector.load %arg6[%41, %c0_16, %c0_17] : memref<28x1x512xf32, #tpu.memory_space<vmem>>, vector<1x1x512xf32>
    %43 = vector.shape_cast %42 : vector<1x1x512xf32> to vector<1x512xf32>
    %44 = arith.addf %5, %43 : vector<1x512xf32>
    %c0_18 = arith.constant 0 : index
    %c0_19 = arith.constant 0 : index
    %45 = vector.load %arg8[%c0_18, %c0_19] : memref<128x512xf32, #tpu.memory_space<vmem>>, vector<128x512xf32>
    %cst_20 = arith.constant dense<0.000000e+00> : vector<1x512xf32>
    %46 = tpu.matmul %35, %45, %cst_20 {dimension_numbers = #tpu.dot_dimension_numbers<[1], [0], [0], [1], [0, 0, 1, 1], [], []>} : vector<1x128xf32>, vector<128x512xf32>, vector<1x512xf32> -> vector<1x512xf32>
    %47 = arith.addf %44, %46 : vector<1x512xf32>
    %48 = arith.negf %47 : vector<1x512xf32>
    %49 = math.exp %48 : vector<1x512xf32>
    %cst_21 = arith.constant 1.000000e+00 : f32
    %50 = vector.broadcast %cst_21 : f32 to vector<1x512xf32>
    %51 = arith.addf %50, %49 : vector<1x512xf32>
    %52 = arith.divf %50, %51 : vector<1x512xf32>
    %53 = vector.extract_strided_slice %52 {offsets = [0, 0], sizes = [1, 128], strides = [1, 1]} : vector<1x512xf32> to vector<1x128xf32>
    %54 = vector.extract_strided_slice %52 {offsets = [0, 128], sizes = [1, 128], strides = [1, 1]} : vector<1x512xf32> to vector<1x128xf32>
    %55 = vector.extract_strided_slice %52 {offsets = [0, 384], sizes = [1, 128], strides = [1, 1]} : vector<1x512xf32> to vector<1x128xf32>
    %56 = vector.extract_strided_slice %47 {offsets = [0, 256], sizes = [1, 128], strides = [1, 1]} : vector<1x512xf32> to vector<1x128xf32>
    %57 = math.tanh %56 : vector<1x128xf32>
    %58 = arith.mulf %54, %36 : vector<1x128xf32>
    %59 = arith.mulf %53, %57 : vector<1x128xf32>
    %60 = arith.addf %58, %59 : vector<1x128xf32>
    %61 = math.tanh %60 : vector<1x128xf32>
    %62 = arith.mulf %55, %61 : vector<1x128xf32>
    %c1_i32_22 = arith.constant 1 : i32
    %63 = arith.addi %4, %c1_i32_22 : i32
    %64 = arith.cmpi slt, %63, %3 : i32
    %65 = arith.select %64, %62, %35 : vector<1x128xf32>
    %66 = arith.select %64, %60, %36 : vector<1x128xf32>
    %c1 = arith.constant 1 : index
    %c0_23 = arith.constant 0 : index
    %67 = vector.load %arg18[%c1, %c0_23] : memref<32x128xf32, #tpu.memory_space<vmem>>, vector<1x128xf32>
    tpu.vector_store %arg18[%c1, %c0_23], %65 {strides = array<i32>} : memref<32x128xf32, #tpu.memory_space<vmem>>, vector<1x128xf32>,
    %c2_i32 = arith.constant 2 : i32
    %68 = arith.addi %4, %c2_i32 : i32
    %69 = arith.index_cast %68 : i32 to index
    %70 = memref.load %arg1[%69] : memref<64xi32, #tpu.memory_space<smem>>
    %71 = arith.index_cast %70 : i32 to index
    %c0_24 = arith.constant 0 : index
    %c0_25 = arith.constant 0 : index
    %72 = vector.load %arg6[%71, %c0_24, %c0_25] : memref<28x1x512xf32, #tpu.memory_space<vmem>>, vector<1x1x512xf32>
    %73 = vector.shape_cast %72 : vector<1x1x512xf32> to vector<1x512xf32>
    %74 = arith.addf %5, %73 : vector<1x512xf32>
    %c0_26 = arith.constant 0 : index
    %c0_27 = arith.constant 0 : index
    %75 = vector.load %arg8[%c0_26, %c0_27] : memref<128x512xf32, #tpu.memory_space<vmem>>, vector<128x512xf32>
    %cst_28 = arith.constant dense<0.000000e+00> : vector<1x512xf32>
    %76 = tpu.matmul %65, %75, %cst_28 {dimension_numbers = #tpu.dot_dimension_numbers<[1], [0], [0], [1], [0, 0, 1, 1], [], []>} : vector<1x128xf32>, vector<128x512xf32>, vector<1x512xf32> -> vector<1x512xf32>
    %77 = arith.addf %74, %76 : vector<1x512xf32>
    %78 = arith.negf %77 : vector<1x512xf32>
    %79 = math.exp %78 : vector<1x512xf32>
    %cst_29 = arith.constant 1.000000e+00 : f32
    %80 = vector.broadcast %cst_29 : f32 to vector<1x512xf32>
    %81 = arith.addf %80, %79 : vector<1x512xf32>
    %82 = arith.divf %80, %81 : vector<1x512xf32>
    %83 = vector.extract_strided_slice %82 {offsets = [0, 0], sizes = [1, 128], strides = [1, 1]} : vector<1x512xf32> to vector<1x128xf32>
    %84 = vector.extract_strided_slice %82 {offsets = [0, 128], sizes = [1, 128], strides = [1, 1]} : vector<1x512xf32> to vector<1x128xf32>
    %85 = vector.extract_strided_slice %82 {offsets = [0, 384], sizes = [1, 128], strides = [1, 1]} : vector<1x512xf32> to vector<1x128xf32>
    %86 = vector.extract_strided_slice %77 {offsets = [0, 256], sizes = [1, 128], strides = [1, 1]} : vector<1x512xf32> to vector<1x128xf32>
    %87 = math.tanh %86 : vector<1x128xf32>
    %88 = arith.mulf %84, %66 : vector<1x128xf32>
    %89 = arith.mulf %83, %87 : vector<1x128xf32>
    %90 = arith.addf %88, %89 : vector<1x128xf32>
    %91 = math.tanh %90 : vector<1x128xf32>
    %92 = arith.mulf %85, %91 : vector<1x128xf32>
    %c2_i32_30 = arith.constant 2 : i32
    %93 = arith.addi %4, %c2_i32_30 : i32
    %94 = arith.cmpi slt, %93, %3 : i32
    %95 = arith.select %94, %92, %65 : vector<1x128xf32>
    %96 = arith.select %94, %90, %66 : vector<1x128xf32>
    %c2 = arith.constant 2 : index
    %c0_31 = arith.constant 0 : index
    %97 = vector.load %arg18[%c2, %c0_31] : memref<32x128xf32, #tpu.memory_space<vmem>>, vector<1x128xf32>
    tpu.vector_store %arg18[%c2, %c0_31], %95 {strides = array<i32>} : memref<32x128xf32, #tpu.memory_space<vmem>>, vector<1x128xf32>,
    %c3_i32 = arith.constant 3 : i32
    %98 = arith.addi %4, %c3_i32 : i32
    %99 = arith.index_cast %98 : i32 to index
    %100 = memref.load %arg1[%99] : memref<64xi32, #tpu.memory_space<smem>>
    %101 = arith.index_cast %100 : i32 to index
    %c0_32 = arith.constant 0 : index
    %c0_33 = arith.constant 0 : index
    %102 = vector.load %arg6[%101, %c0_32, %c0_33] : memref<28x1x512xf32, #tpu.memory_space<vmem>>, vector<1x1x512xf32>
    %103 = vector.shape_cast %102 : vector<1x1x512xf32> to vector<1x512xf32>
    %104 = arith.addf %5, %103 : vector<1x512xf32>
    %c0_34 = arith.constant 0 : index
    %c0_35 = arith.constant 0 : index
    %105 = vector.load %arg8[%c0_34, %c0_35] : memref<128x512xf32, #tpu.memory_space<vmem>>, vector<128x512xf32>
    %cst_36 = arith.constant dense<0.000000e+00> : vector<1x512xf32>
    %106 = tpu.matmul %95, %105, %cst_36 {dimension_numbers = #tpu.dot_dimension_numbers<[1], [0], [0], [1], [0, 0, 1, 1], [], []>} : vector<1x128xf32>, vector<128x512xf32>, vector<1x512xf32> -> vector<1x512xf32>
    %107 = arith.addf %104, %106 : vector<1x512xf32>
    %108 = arith.negf %107 : vector<1x512xf32>
    %109 = math.exp %108 : vector<1x512xf32>
    %cst_37 = arith.constant 1.000000e+00 : f32
    %110 = vector.broadcast %cst_37 : f32 to vector<1x512xf32>
    %111 = arith.addf %110, %109 : vector<1x512xf32>
    %112 = arith.divf %110, %111 : vector<1x512xf32>
    %113 = vector.extract_strided_slice %112 {offsets = [0, 0], sizes = [1, 128], strides = [1, 1]} : vector<1x512xf32> to vector<1x128xf32>
    %114 = vector.extract_strided_slice %112 {offsets = [0, 128], sizes = [1, 128], strides = [1, 1]} : vector<1x512xf32> to vector<1x128xf32>
    %115 = vector.extract_strided_slice %112 {offsets = [0, 384], sizes = [1, 128], strides = [1, 1]} : vector<1x512xf32> to vector<1x128xf32>
    %116 = vector.extract_strided_slice %107 {offsets = [0, 256], sizes = [1, 128], strides = [1, 1]} : vector<1x512xf32> to vector<1x128xf32>
    %117 = math.tanh %116 : vector<1x128xf32>
    %118 = arith.mulf %114, %96 : vector<1x128xf32>
    %119 = arith.mulf %113, %117 : vector<1x128xf32>
    %120 = arith.addf %118, %119 : vector<1x128xf32>
    %121 = math.tanh %120 : vector<1x128xf32>
    %122 = arith.mulf %115, %121 : vector<1x128xf32>
    %c3_i32_38 = arith.constant 3 : i32
    %123 = arith.addi %4, %c3_i32_38 : i32
    %124 = arith.cmpi slt, %123, %3 : i32
    %125 = arith.select %124, %122, %95 : vector<1x128xf32>
    %126 = arith.select %124, %120, %96 : vector<1x128xf32>
    %c3 = arith.constant 3 : index
    %c0_39 = arith.constant 0 : index
    %127 = vector.load %arg18[%c3, %c0_39] : memref<32x128xf32, #tpu.memory_space<vmem>>, vector<1x128xf32>
    tpu.vector_store %arg18[%c3, %c0_39], %125 {strides = array<i32>} : memref<32x128xf32, #tpu.memory_space<vmem>>, vector<1x128xf32>,
    %c4_i32 = arith.constant 4 : i32
    %128 = arith.addi %4, %c4_i32 : i32
    %129 = arith.index_cast %128 : i32 to index
    %130 = memref.load %arg1[%129] : memref<64xi32, #tpu.memory_space<smem>>
    %131 = arith.index_cast %130 : i32 to index
    %c0_40 = arith.constant 0 : index
    %c0_41 = arith.constant 0 : index
    %132 = vector.load %arg6[%131, %c0_40, %c0_41] : memref<28x1x512xf32, #tpu.memory_space<vmem>>, vector<1x1x512xf32>
    %133 = vector.shape_cast %132 : vector<1x1x512xf32> to vector<1x512xf32>
    %134 = arith.addf %5, %133 : vector<1x512xf32>
    %c0_42 = arith.constant 0 : index
    %c0_43 = arith.constant 0 : index
    %135 = vector.load %arg8[%c0_42, %c0_43] : memref<128x512xf32, #tpu.memory_space<vmem>>, vector<128x512xf32>
    %cst_44 = arith.constant dense<0.000000e+00> : vector<1x512xf32>
    %136 = tpu.matmul %125, %135, %cst_44 {dimension_numbers = #tpu.dot_dimension_numbers<[1], [0], [0], [1], [0, 0, 1, 1], [], []>} : vector<1x128xf32>, vector<128x512xf32>, vector<1x512xf32> -> vector<1x512xf32>
    %137 = arith.addf %134, %136 : vector<1x512xf32>
    %138 = arith.negf %137 : vector<1x512xf32>
    %139 = math.exp %138 : vector<1x512xf32>
    %cst_45 = arith.constant 1.000000e+00 : f32
    %140 = vector.broadcast %cst_45 : f32 to vector<1x512xf32>
    %141 = arith.addf %140, %139 : vector<1x512xf32>
    %142 = arith.divf %140, %141 : vector<1x512xf32>
    %143 = vector.extract_strided_slice %142 {offsets = [0, 0], sizes = [1, 128], strides = [1, 1]} : vector<1x512xf32> to vector<1x128xf32>
    %144 = vector.extract_strided_slice %142 {offsets = [0, 128], sizes = [1, 128], strides = [1, 1]} : vector<1x512xf32> to vector<1x128xf32>
    %145 = vector.extract_strided_slice %142 {offsets = [0, 384], sizes = [1, 128], strides = [1, 1]} : vector<1x512xf32> to vector<1x128xf32>
    %146 = vector.extract_strided_slice %137 {offsets = [0, 256], sizes = [1, 128], strides = [1, 1]} : vector<1x512xf32> to vector<1x128xf32>
    %147 = math.tanh %146 : vector<1x128xf32>
    %148 = arith.mulf %144, %126 : vector<1x128xf32>
    %149 = arith.mulf %143, %147 : vector<1x128xf32>
    %150 = arith.addf %148, %149 : vector<1x128xf32>
    %151 = math.tanh %150 : vector<1x128xf32>
    %152 = arith.mulf %145, %151 : vector<1x128xf32>
    %c4_i32_46 = arith.constant 4 : i32
    %153 = arith.addi %4, %c4_i32_46 : i32
    %154 = arith.cmpi slt, %153, %3 : i32
    %155 = arith.select %154, %152, %125 : vector<1x128xf32>
    %156 = arith.select %154, %150, %126 : vector<1x128xf32>
    %c4 = arith.constant 4 : index
    %c0_47 = arith.constant 0 : index
    %157 = vector.load %arg18[%c4, %c0_47] : memref<32x128xf32, #tpu.memory_space<vmem>>, vector<1x128xf32>
    tpu.vector_store %arg18[%c4, %c0_47], %155 {strides = array<i32>} : memref<32x128xf32, #tpu.memory_space<vmem>>, vector<1x128xf32>,
    %c5_i32 = arith.constant 5 : i32
    %158 = arith.addi %4, %c5_i32 : i32
    %159 = arith.index_cast %158 : i32 to index
    %160 = memref.load %arg1[%159] : memref<64xi32, #tpu.memory_space<smem>>
    %161 = arith.index_cast %160 : i32 to index
    %c0_48 = arith.constant 0 : index
    %c0_49 = arith.constant 0 : index
    %162 = vector.load %arg6[%161, %c0_48, %c0_49] : memref<28x1x512xf32, #tpu.memory_space<vmem>>, vector<1x1x512xf32>
    %163 = vector.shape_cast %162 : vector<1x1x512xf32> to vector<1x512xf32>
    %164 = arith.addf %5, %163 : vector<1x512xf32>
    %c0_50 = arith.constant 0 : index
    %c0_51 = arith.constant 0 : index
    %165 = vector.load %arg8[%c0_50, %c0_51] : memref<128x512xf32, #tpu.memory_space<vmem>>, vector<128x512xf32>
    %cst_52 = arith.constant dense<0.000000e+00> : vector<1x512xf32>
    %166 = tpu.matmul %155, %165, %cst_52 {dimension_numbers = #tpu.dot_dimension_numbers<[1], [0], [0], [1], [0, 0, 1, 1], [], []>} : vector<1x128xf32>, vector<128x512xf32>, vector<1x512xf32> -> vector<1x512xf32>
    %167 = arith.addf %164, %166 : vector<1x512xf32>
    %168 = arith.negf %167 : vector<1x512xf32>
    %169 = math.exp %168 : vector<1x512xf32>
    %cst_53 = arith.constant 1.000000e+00 : f32
    %170 = vector.broadcast %cst_53 : f32 to vector<1x512xf32>
    %171 = arith.addf %170, %169 : vector<1x512xf32>
    %172 = arith.divf %170, %171 : vector<1x512xf32>
    %173 = vector.extract_strided_slice %172 {offsets = [0, 0], sizes = [1, 128], strides = [1, 1]} : vector<1x512xf32> to vector<1x128xf32>
    %174 = vector.extract_strided_slice %172 {offsets = [0, 128], sizes = [1, 128], strides = [1, 1]} : vector<1x512xf32> to vector<1x128xf32>
    %175 = vector.extract_strided_slice %172 {offsets = [0, 384], sizes = [1, 128], strides = [1, 1]} : vector<1x512xf32> to vector<1x128xf32>
    %176 = vector.extract_strided_slice %167 {offsets = [0, 256], sizes = [1, 128], strides = [1, 1]} : vector<1x512xf32> to vector<1x128xf32>
    %177 = math.tanh %176 : vector<1x128xf32>
    %178 = arith.mulf %174, %156 : vector<1x128xf32>
    %179 = arith.mulf %173, %177 : vector<1x128xf32>
    %180 = arith.addf %178, %179 : vector<1x128xf32>
    %181 = math.tanh %180 : vector<1x128xf32>
    %182 = arith.mulf %175, %181 : vector<1x128xf32>
    %c5_i32_54 = arith.constant 5 : i32
    %183 = arith.addi %4, %c5_i32_54 : i32
    %184 = arith.cmpi slt, %183, %3 : i32
    %185 = arith.select %184, %182, %155 : vector<1x128xf32>
    %186 = arith.select %184, %180, %156 : vector<1x128xf32>
    %c5 = arith.constant 5 : index
    %c0_55 = arith.constant 0 : index
    %187 = vector.load %arg18[%c5, %c0_55] : memref<32x128xf32, #tpu.memory_space<vmem>>, vector<1x128xf32>
    tpu.vector_store %arg18[%c5, %c0_55], %185 {strides = array<i32>} : memref<32x128xf32, #tpu.memory_space<vmem>>, vector<1x128xf32>,
    %c6_i32 = arith.constant 6 : i32
    %188 = arith.addi %4, %c6_i32 : i32
    %189 = arith.index_cast %188 : i32 to index
    %190 = memref.load %arg1[%189] : memref<64xi32, #tpu.memory_space<smem>>
    %191 = arith.index_cast %190 : i32 to index
    %c0_56 = arith.constant 0 : index
    %c0_57 = arith.constant 0 : index
    %192 = vector.load %arg6[%191, %c0_56, %c0_57] : memref<28x1x512xf32, #tpu.memory_space<vmem>>, vector<1x1x512xf32>
    %193 = vector.shape_cast %192 : vector<1x1x512xf32> to vector<1x512xf32>
    %194 = arith.addf %5, %193 : vector<1x512xf32>
    %c0_58 = arith.constant 0 : index
    %c0_59 = arith.constant 0 : index
    %195 = vector.load %arg8[%c0_58, %c0_59] : memref<128x512xf32, #tpu.memory_space<vmem>>, vector<128x512xf32>
    %cst_60 = arith.constant dense<0.000000e+00> : vector<1x512xf32>
    %196 = tpu.matmul %185, %195, %cst_60 {dimension_numbers = #tpu.dot_dimension_numbers<[1], [0], [0], [1], [0, 0, 1, 1], [], []>} : vector<1x128xf32>, vector<128x512xf32>, vector<1x512xf32> -> vector<1x512xf32>
    %197 = arith.addf %194, %196 : vector<1x512xf32>
    %198 = arith.negf %197 : vector<1x512xf32>
    %199 = math.exp %198 : vector<1x512xf32>
    %cst_61 = arith.constant 1.000000e+00 : f32
    %200 = vector.broadcast %cst_61 : f32 to vector<1x512xf32>
    %201 = arith.addf %200, %199 : vector<1x512xf32>
    %202 = arith.divf %200, %201 : vector<1x512xf32>
    %203 = vector.extract_strided_slice %202 {offsets = [0, 0], sizes = [1, 128], strides = [1, 1]} : vector<1x512xf32> to vector<1x128xf32>
    %204 = vector.extract_strided_slice %202 {offsets = [0, 128], sizes = [1, 128], strides = [1, 1]} : vector<1x512xf32> to vector<1x128xf32>
    %205 = vector.extract_strided_slice %202 {offsets = [0, 384], sizes = [1, 128], strides = [1, 1]} : vector<1x512xf32> to vector<1x128xf32>
    %206 = vector.extract_strided_slice %197 {offsets = [0, 256], sizes = [1, 128], strides = [1, 1]} : vector<1x512xf32> to vector<1x128xf32>
    %207 = math.tanh %206 : vector<1x128xf32>
    %208 = arith.mulf %204, %186 : vector<1x128xf32>
    %209 = arith.mulf %203, %207 : vector<1x128xf32>
    %210 = arith.addf %208, %209 : vector<1x128xf32>
    %211 = math.tanh %210 : vector<1x128xf32>
    %212 = arith.mulf %205, %211 : vector<1x128xf32>
    %c6_i32_62 = arith.constant 6 : i32
    %213 = arith.addi %4, %c6_i32_62 : i32
    %214 = arith.cmpi slt, %213, %3 : i32
    %215 = arith.select %214, %212, %185 : vector<1x128xf32>
    %216 = arith.select %214, %210, %186 : vector<1x128xf32>
    %c6 = arith.constant 6 : index
    %c0_63 = arith.constant 0 : index
    %217 = vector.load %arg18[%c6, %c0_63] : memref<32x128xf32, #tpu.memory_space<vmem>>, vector<1x128xf32>
    tpu.vector_store %arg18[%c6, %c0_63], %215 {strides = array<i32>} : memref<32x128xf32, #tpu.memory_space<vmem>>, vector<1x128xf32>,
    %c7_i32 = arith.constant 7 : i32
    %218 = arith.addi %4, %c7_i32 : i32
    %219 = arith.index_cast %218 : i32 to index
    %220 = memref.load %arg1[%219] : memref<64xi32, #tpu.memory_space<smem>>
    %221 = arith.index_cast %220 : i32 to index
    %c0_64 = arith.constant 0 : index
    %c0_65 = arith.constant 0 : index
    %222 = vector.load %arg6[%221, %c0_64, %c0_65] : memref<28x1x512xf32, #tpu.memory_space<vmem>>, vector<1x1x512xf32>
    %223 = vector.shape_cast %222 : vector<1x1x512xf32> to vector<1x512xf32>
    %224 = arith.addf %5, %223 : vector<1x512xf32>
    %c0_66 = arith.constant 0 : index
    %c0_67 = arith.constant 0 : index
    %225 = vector.load %arg8[%c0_66, %c0_67] : memref<128x512xf32, #tpu.memory_space<vmem>>, vector<128x512xf32>
    %cst_68 = arith.constant dense<0.000000e+00> : vector<1x512xf32>
    %226 = tpu.matmul %215, %225, %cst_68 {dimension_numbers = #tpu.dot_dimension_numbers<[1], [0], [0], [1], [0, 0, 1, 1], [], []>} : vector<1x128xf32>, vector<128x512xf32>, vector<1x512xf32> -> vector<1x512xf32>
    %227 = arith.addf %224, %226 : vector<1x512xf32>
    %228 = arith.negf %227 : vector<1x512xf32>
    %229 = math.exp %228 : vector<1x512xf32>
    %cst_69 = arith.constant 1.000000e+00 : f32
    %230 = vector.broadcast %cst_69 : f32 to vector<1x512xf32>
    %231 = arith.addf %230, %229 : vector<1x512xf32>
    %232 = arith.divf %230, %231 : vector<1x512xf32>
    %233 = vector.extract_strided_slice %232 {offsets = [0, 0], sizes = [1, 128], strides = [1, 1]} : vector<1x512xf32> to vector<1x128xf32>
    %234 = vector.extract_strided_slice %232 {offsets = [0, 128], sizes = [1, 128], strides = [1, 1]} : vector<1x512xf32> to vector<1x128xf32>
    %235 = vector.extract_strided_slice %232 {offsets = [0, 384], sizes = [1, 128], strides = [1, 1]} : vector<1x512xf32> to vector<1x128xf32>
    %236 = vector.extract_strided_slice %227 {offsets = [0, 256], sizes = [1, 128], strides = [1, 1]} : vector<1x512xf32> to vector<1x128xf32>
    %237 = math.tanh %236 : vector<1x128xf32>
    %238 = arith.mulf %234, %216 : vector<1x128xf32>
    %239 = arith.mulf %233, %237 : vector<1x128xf32>
    %240 = arith.addf %238, %239 : vector<1x128xf32>
    %241 = math.tanh %240 : vector<1x128xf32>
    %242 = arith.mulf %235, %241 : vector<1x128xf32>
    %c7_i32_70 = arith.constant 7 : i32
    %243 = arith.addi %4, %c7_i32_70 : i32
    %244 = arith.cmpi slt, %243, %3 : i32
    %245 = arith.select %244, %242, %215 : vector<1x128xf32>
    %246 = arith.select %244, %240, %216 : vector<1x128xf32>
    %c7 = arith.constant 7 : index
    %c0_71 = arith.constant 0 : index
    %247 = vector.load %arg18[%c7, %c0_71] : memref<32x128xf32, #tpu.memory_space<vmem>>, vector<1x128xf32>
    tpu.vector_store %arg18[%c7, %c0_71], %245 {strides = array<i32>} : memref<32x128xf32, #tpu.memory_space<vmem>>, vector<1x128xf32>,
    %c8_i32 = arith.constant 8 : i32
    %248 = arith.addi %4, %c8_i32 : i32
    %249 = arith.index_cast %248 : i32 to index
    %250 = memref.load %arg1[%249] : memref<64xi32, #tpu.memory_space<smem>>
    %251 = arith.index_cast %250 : i32 to index
    %c0_72 = arith.constant 0 : index
    %c0_73 = arith.constant 0 : index
    %252 = vector.load %arg6[%251, %c0_72, %c0_73] : memref<28x1x512xf32, #tpu.memory_space<vmem>>, vector<1x1x512xf32>
    %253 = vector.shape_cast %252 : vector<1x1x512xf32> to vector<1x512xf32>
    %254 = arith.addf %5, %253 : vector<1x512xf32>
    %c0_74 = arith.constant 0 : index
    %c0_75 = arith.constant 0 : index
    %255 = vector.load %arg8[%c0_74, %c0_75] : memref<128x512xf32, #tpu.memory_space<vmem>>, vector<128x512xf32>
    %cst_76 = arith.constant dense<0.000000e+00> : vector<1x512xf32>
    %256 = tpu.matmul %245, %255, %cst_76 {dimension_numbers = #tpu.dot_dimension_numbers<[1], [0], [0], [1], [0, 0, 1, 1], [], []>} : vector<1x128xf32>, vector<128x512xf32>, vector<1x512xf32> -> vector<1x512xf32>
    %257 = arith.addf %254, %256 : vector<1x512xf32>
    %258 = arith.negf %257 : vector<1x512xf32>
    %259 = math.exp %258 : vector<1x512xf32>
    %cst_77 = arith.constant 1.000000e+00 : f32
    %260 = vector.broadcast %cst_77 : f32 to vector<1x512xf32>
    %261 = arith.addf %260, %259 : vector<1x512xf32>
    %262 = arith.divf %260, %261 : vector<1x512xf32>
    %263 = vector.extract_strided_slice %262 {offsets = [0, 0], sizes = [1, 128], strides = [1, 1]} : vector<1x512xf32> to vector<1x128xf32>
    %264 = vector.extract_strided_slice %262 {offsets = [0, 128], sizes = [1, 128], strides = [1, 1]} : vector<1x512xf32> to vector<1x128xf32>
    %265 = vector.extract_strided_slice %262 {offsets = [0, 384], sizes = [1, 128], strides = [1, 1]} : vector<1x512xf32> to vector<1x128xf32>
    %266 = vector.extract_strided_slice %257 {offsets = [0, 256], sizes = [1, 128], strides = [1, 1]} : vector<1x512xf32> to vector<1x128xf32>
    %267 = math.tanh %266 : vector<1x128xf32>
    %268 = arith.mulf %264, %246 : vector<1x128xf32>
    %269 = arith.mulf %263, %267 : vector<1x128xf32>
    %270 = arith.addf %268, %269 : vector<1x128xf32>
    %271 = math.tanh %270 : vector<1x128xf32>
    %272 = arith.mulf %265, %271 : vector<1x128xf32>
    %c8_i32_78 = arith.constant 8 : i32
    %273 = arith.addi %4, %c8_i32_78 : i32
    %274 = arith.cmpi slt, %273, %3 : i32
    %275 = arith.select %274, %272, %245 : vector<1x128xf32>
    %276 = arith.select %274, %270, %246 : vector<1x128xf32>
    %c8 = arith.constant 8 : index
    %c0_79 = arith.constant 0 : index
    %277 = vector.load %arg18[%c8, %c0_79] : memref<32x128xf32, #tpu.memory_space<vmem>>, vector<1x128xf32>
    tpu.vector_store %arg18[%c8, %c0_79], %275 {strides = array<i32>} : memref<32x128xf32, #tpu.memory_space<vmem>>, vector<1x128xf32>,
    %c9_i32 = arith.constant 9 : i32
    %278 = arith.addi %4, %c9_i32 : i32
    %279 = arith.index_cast %278 : i32 to index
    %280 = memref.load %arg1[%279] : memref<64xi32, #tpu.memory_space<smem>>
    %281 = arith.index_cast %280 : i32 to index
    %c0_80 = arith.constant 0 : index
    %c0_81 = arith.constant 0 : index
    %282 = vector.load %arg6[%281, %c0_80, %c0_81] : memref<28x1x512xf32, #tpu.memory_space<vmem>>, vector<1x1x512xf32>
    %283 = vector.shape_cast %282 : vector<1x1x512xf32> to vector<1x512xf32>
    %284 = arith.addf %5, %283 : vector<1x512xf32>
    %c0_82 = arith.constant 0 : index
    %c0_83 = arith.constant 0 : index
    %285 = vector.load %arg8[%c0_82, %c0_83] : memref<128x512xf32, #tpu.memory_space<vmem>>, vector<128x512xf32>
    %cst_84 = arith.constant dense<0.000000e+00> : vector<1x512xf32>
    %286 = tpu.matmul %275, %285, %cst_84 {dimension_numbers = #tpu.dot_dimension_numbers<[1], [0], [0], [1], [0, 0, 1, 1], [], []>} : vector<1x128xf32>, vector<128x512xf32>, vector<1x512xf32> -> vector<1x512xf32>
    %287 = arith.addf %284, %286 : vector<1x512xf32>
    %288 = arith.negf %287 : vector<1x512xf32>
    %289 = math.exp %288 : vector<1x512xf32>
    %cst_85 = arith.constant 1.000000e+00 : f32
    %290 = vector.broadcast %cst_85 : f32 to vector<1x512xf32>
    %291 = arith.addf %290, %289 : vector<1x512xf32>
    %292 = arith.divf %290, %291 : vector<1x512xf32>
    %293 = vector.extract_strided_slice %292 {offsets = [0, 0], sizes = [1, 128], strides = [1, 1]} : vector<1x512xf32> to vector<1x128xf32>
    %294 = vector.extract_strided_slice %292 {offsets = [0, 128], sizes = [1, 128], strides = [1, 1]} : vector<1x512xf32> to vector<1x128xf32>
    %295 = vector.extract_strided_slice %292 {offsets = [0, 384], sizes = [1, 128], strides = [1, 1]} : vector<1x512xf32> to vector<1x128xf32>
    %296 = vector.extract_strided_slice %287 {offsets = [0, 256], sizes = [1, 128], strides = [1, 1]} : vector<1x512xf32> to vector<1x128xf32>
    %297 = math.tanh %296 : vector<1x128xf32>
    %298 = arith.mulf %294, %276 : vector<1x128xf32>
    %299 = arith.mulf %293, %297 : vector<1x128xf32>
    %300 = arith.addf %298, %299 : vector<1x128xf32>
    %301 = math.tanh %300 : vector<1x128xf32>
    %302 = arith.mulf %295, %301 : vector<1x128xf32>
    %c9_i32_86 = arith.constant 9 : i32
    %303 = arith.addi %4, %c9_i32_86 : i32
    %304 = arith.cmpi slt, %303, %3 : i32
    %305 = arith.select %304, %302, %275 : vector<1x128xf32>
    %306 = arith.select %304, %300, %276 : vector<1x128xf32>
    %c9 = arith.constant 9 : index
    %c0_87 = arith.constant 0 : index
    %307 = vector.load %arg18[%c9, %c0_87] : memref<32x128xf32, #tpu.memory_space<vmem>>, vector<1x128xf32>
    tpu.vector_store %arg18[%c9, %c0_87], %305 {strides = array<i32>} : memref<32x128xf32, #tpu.memory_space<vmem>>, vector<1x128xf32>,
    %c10_i32 = arith.constant 10 : i32
    %308 = arith.addi %4, %c10_i32 : i32
    %309 = arith.index_cast %308 : i32 to index
    %310 = memref.load %arg1[%309] : memref<64xi32, #tpu.memory_space<smem>>
    %311 = arith.index_cast %310 : i32 to index
    %c0_88 = arith.constant 0 : index
    %c0_89 = arith.constant 0 : index
    %312 = vector.load %arg6[%311, %c0_88, %c0_89] : memref<28x1x512xf32, #tpu.memory_space<vmem>>, vector<1x1x512xf32>
    %313 = vector.shape_cast %312 : vector<1x1x512xf32> to vector<1x512xf32>
    %314 = arith.addf %5, %313 : vector<1x512xf32>
    %c0_90 = arith.constant 0 : index
    %c0_91 = arith.constant 0 : index
    %315 = vector.load %arg8[%c0_90, %c0_91] : memref<128x512xf32, #tpu.memory_space<vmem>>, vector<128x512xf32>
    %cst_92 = arith.constant dense<0.000000e+00> : vector<1x512xf32>
    %316 = tpu.matmul %305, %315, %cst_92 {dimension_numbers = #tpu.dot_dimension_numbers<[1], [0], [0], [1], [0, 0, 1, 1], [], []>} : vector<1x128xf32>, vector<128x512xf32>, vector<1x512xf32> -> vector<1x512xf32>
    %317 = arith.addf %314, %316 : vector<1x512xf32>
    %318 = arith.negf %317 : vector<1x512xf32>
    %319 = math.exp %318 : vector<1x512xf32>
    %cst_93 = arith.constant 1.000000e+00 : f32
    %320 = vector.broadcast %cst_93 : f32 to vector<1x512xf32>
    %321 = arith.addf %320, %319 : vector<1x512xf32>
    %322 = arith.divf %320, %321 : vector<1x512xf32>
    %323 = vector.extract_strided_slice %322 {offsets = [0, 0], sizes = [1, 128], strides = [1, 1]} : vector<1x512xf32> to vector<1x128xf32>
    %324 = vector.extract_strided_slice %322 {offsets = [0, 128], sizes = [1, 128], strides = [1, 1]} : vector<1x512xf32> to vector<1x128xf32>
    %325 = vector.extract_strided_slice %322 {offsets = [0, 384], sizes = [1, 128], strides = [1, 1]} : vector<1x512xf32> to vector<1x128xf32>
    %326 = vector.extract_strided_slice %317 {offsets = [0, 256], sizes = [1, 128], strides = [1, 1]} : vector<1x512xf32> to vector<1x128xf32>
    %327 = math.tanh %326 : vector<1x128xf32>
    %328 = arith.mulf %324, %306 : vector<1x128xf32>
    %329 = arith.mulf %323, %327 : vector<1x128xf32>
    %330 = arith.addf %328, %329 : vector<1x128xf32>
    %331 = math.tanh %330 : vector<1x128xf32>
    %332 = arith.mulf %325, %331 : vector<1x128xf32>
    %c10_i32_94 = arith.constant 10 : i32
    %333 = arith.addi %4, %c10_i32_94 : i32
    %334 = arith.cmpi slt, %333, %3 : i32
    %335 = arith.select %334, %332, %305 : vector<1x128xf32>
    %336 = arith.select %334, %330, %306 : vector<1x128xf32>
    %c10 = arith.constant 10 : index
    %c0_95 = arith.constant 0 : index
    %337 = vector.load %arg18[%c10, %c0_95] : memref<32x128xf32, #tpu.memory_space<vmem>>, vector<1x128xf32>
    tpu.vector_store %arg18[%c10, %c0_95], %335 {strides = array<i32>} : memref<32x128xf32, #tpu.memory_space<vmem>>, vector<1x128xf32>,
    %c11_i32 = arith.constant 11 : i32
    %338 = arith.addi %4, %c11_i32 : i32
    %339 = arith.index_cast %338 : i32 to index
    %340 = memref.load %arg1[%339] : memref<64xi32, #tpu.memory_space<smem>>
    %341 = arith.index_cast %340 : i32 to index
    %c0_96 = arith.constant 0 : index
    %c0_97 = arith.constant 0 : index
    %342 = vector.load %arg6[%341, %c0_96, %c0_97] : memref<28x1x512xf32, #tpu.memory_space<vmem>>, vector<1x1x512xf32>
    %343 = vector.shape_cast %342 : vector<1x1x512xf32> to vector<1x512xf32>
    %344 = arith.addf %5, %343 : vector<1x512xf32>
    %c0_98 = arith.constant 0 : index
    %c0_99 = arith.constant 0 : index
    %345 = vector.load %arg8[%c0_98, %c0_99] : memref<128x512xf32, #tpu.memory_space<vmem>>, vector<128x512xf32>
    %cst_100 = arith.constant dense<0.000000e+00> : vector<1x512xf32>
    %346 = tpu.matmul %335, %345, %cst_100 {dimension_numbers = #tpu.dot_dimension_numbers<[1], [0], [0], [1], [0, 0, 1, 1], [], []>} : vector<1x128xf32>, vector<128x512xf32>, vector<1x512xf32> -> vector<1x512xf32>
    %347 = arith.addf %344, %346 : vector<1x512xf32>
    %348 = arith.negf %347 : vector<1x512xf32>
    %349 = math.exp %348 : vector<1x512xf32>
    %cst_101 = arith.constant 1.000000e+00 : f32
    %350 = vector.broadcast %cst_101 : f32 to vector<1x512xf32>
    %351 = arith.addf %350, %349 : vector<1x512xf32>
    %352 = arith.divf %350, %351 : vector<1x512xf32>
    %353 = vector.extract_strided_slice %352 {offsets = [0, 0], sizes = [1, 128], strides = [1, 1]} : vector<1x512xf32> to vector<1x128xf32>
    %354 = vector.extract_strided_slice %352 {offsets = [0, 128], sizes = [1, 128], strides = [1, 1]} : vector<1x512xf32> to vector<1x128xf32>
    %355 = vector.extract_strided_slice %352 {offsets = [0, 384], sizes = [1, 128], strides = [1, 1]} : vector<1x512xf32> to vector<1x128xf32>
    %356 = vector.extract_strided_slice %347 {offsets = [0, 256], sizes = [1, 128], strides = [1, 1]} : vector<1x512xf32> to vector<1x128xf32>
    %357 = math.tanh %356 : vector<1x128xf32>
    %358 = arith.mulf %354, %336 : vector<1x128xf32>
    %359 = arith.mulf %353, %357 : vector<1x128xf32>
    %360 = arith.addf %358, %359 : vector<1x128xf32>
    %361 = math.tanh %360 : vector<1x128xf32>
    %362 = arith.mulf %355, %361 : vector<1x128xf32>
    %c11_i32_102 = arith.constant 11 : i32
    %363 = arith.addi %4, %c11_i32_102 : i32
    %364 = arith.cmpi slt, %363, %3 : i32
    %365 = arith.select %364, %362, %335 : vector<1x128xf32>
    %366 = arith.select %364, %360, %336 : vector<1x128xf32>
    %c11 = arith.constant 11 : index
    %c0_103 = arith.constant 0 : index
    %367 = vector.load %arg18[%c11, %c0_103] : memref<32x128xf32, #tpu.memory_space<vmem>>, vector<1x128xf32>
    tpu.vector_store %arg18[%c11, %c0_103], %365 {strides = array<i32>} : memref<32x128xf32, #tpu.memory_space<vmem>>, vector<1x128xf32>,
    %c12_i32 = arith.constant 12 : i32
    %368 = arith.addi %4, %c12_i32 : i32
    %369 = arith.index_cast %368 : i32 to index
    %370 = memref.load %arg1[%369] : memref<64xi32, #tpu.memory_space<smem>>
    %371 = arith.index_cast %370 : i32 to index
    %c0_104 = arith.constant 0 : index
    %c0_105 = arith.constant 0 : index
    %372 = vector.load %arg6[%371, %c0_104, %c0_105] : memref<28x1x512xf32, #tpu.memory_space<vmem>>, vector<1x1x512xf32>
    %373 = vector.shape_cast %372 : vector<1x1x512xf32> to vector<1x512xf32>
    %374 = arith.addf %5, %373 : vector<1x512xf32>
    %c0_106 = arith.constant 0 : index
    %c0_107 = arith.constant 0 : index
    %375 = vector.load %arg8[%c0_106, %c0_107] : memref<128x512xf32, #tpu.memory_space<vmem>>, vector<128x512xf32>
    %cst_108 = arith.constant dense<0.000000e+00> : vector<1x512xf32>
    %376 = tpu.matmul %365, %375, %cst_108 {dimension_numbers = #tpu.dot_dimension_numbers<[1], [0], [0], [1], [0, 0, 1, 1], [], []>} : vector<1x128xf32>, vector<128x512xf32>, vector<1x512xf32> -> vector<1x512xf32>
    %377 = arith.addf %374, %376 : vector<1x512xf32>
    %378 = arith.negf %377 : vector<1x512xf32>
    %379 = math.exp %378 : vector<1x512xf32>
    %cst_109 = arith.constant 1.000000e+00 : f32
    %380 = vector.broadcast %cst_109 : f32 to vector<1x512xf32>
    %381 = arith.addf %380, %379 : vector<1x512xf32>
    %382 = arith.divf %380, %381 : vector<1x512xf32>
    %383 = vector.extract_strided_slice %382 {offsets = [0, 0], sizes = [1, 128], strides = [1, 1]} : vector<1x512xf32> to vector<1x128xf32>
    %384 = vector.extract_strided_slice %382 {offsets = [0, 128], sizes = [1, 128], strides = [1, 1]} : vector<1x512xf32> to vector<1x128xf32>
    %385 = vector.extract_strided_slice %382 {offsets = [0, 384], sizes = [1, 128], strides = [1, 1]} : vector<1x512xf32> to vector<1x128xf32>
    %386 = vector.extract_strided_slice %377 {offsets = [0, 256], sizes = [1, 128], strides = [1, 1]} : vector<1x512xf32> to vector<1x128xf32>
    %387 = math.tanh %386 : vector<1x128xf32>
    %388 = arith.mulf %384, %366 : vector<1x128xf32>
    %389 = arith.mulf %383, %387 : vector<1x128xf32>
    %390 = arith.addf %388, %389 : vector<1x128xf32>
    %391 = math.tanh %390 : vector<1x128xf32>
    %392 = arith.mulf %385, %391 : vector<1x128xf32>
    %c12_i32_110 = arith.constant 12 : i32
    %393 = arith.addi %4, %c12_i32_110 : i32
    %394 = arith.cmpi slt, %393, %3 : i32
    %395 = arith.select %394, %392, %365 : vector<1x128xf32>
    %396 = arith.select %394, %390, %366 : vector<1x128xf32>
    %c12 = arith.constant 12 : index
    %c0_111 = arith.constant 0 : index
    %397 = vector.load %arg18[%c12, %c0_111] : memref<32x128xf32, #tpu.memory_space<vmem>>, vector<1x128xf32>
    tpu.vector_store %arg18[%c12, %c0_111], %395 {strides = array<i32>} : memref<32x128xf32, #tpu.memory_space<vmem>>, vector<1x128xf32>,
    %c13_i32 = arith.constant 13 : i32
    %398 = arith.addi %4, %c13_i32 : i32
    %399 = arith.index_cast %398 : i32 to index
    %400 = memref.load %arg1[%399] : memref<64xi32, #tpu.memory_space<smem>>
    %401 = arith.index_cast %400 : i32 to index
    %c0_112 = arith.constant 0 : index
    %c0_113 = arith.constant 0 : index
    %402 = vector.load %arg6[%401, %c0_112, %c0_113] : memref<28x1x512xf32, #tpu.memory_space<vmem>>, vector<1x1x512xf32>
    %403 = vector.shape_cast %402 : vector<1x1x512xf32> to vector<1x512xf32>
    %404 = arith.addf %5, %403 : vector<1x512xf32>
    %c0_114 = arith.constant 0 : index
    %c0_115 = arith.constant 0 : index
    %405 = vector.load %arg8[%c0_114, %c0_115] : memref<128x512xf32, #tpu.memory_space<vmem>>, vector<128x512xf32>
    %cst_116 = arith.constant dense<0.000000e+00> : vector<1x512xf32>
    %406 = tpu.matmul %395, %405, %cst_116 {dimension_numbers = #tpu.dot_dimension_numbers<[1], [0], [0], [1], [0, 0, 1, 1], [], []>} : vector<1x128xf32>, vector<128x512xf32>, vector<1x512xf32> -> vector<1x512xf32>
    %407 = arith.addf %404, %406 : vector<1x512xf32>
    %408 = arith.negf %407 : vector<1x512xf32>
    %409 = math.exp %408 : vector<1x512xf32>
    %cst_117 = arith.constant 1.000000e+00 : f32
    %410 = vector.broadcast %cst_117 : f32 to vector<1x512xf32>
    %411 = arith.addf %410, %409 : vector<1x512xf32>
    %412 = arith.divf %410, %411 : vector<1x512xf32>
    %413 = vector.extract_strided_slice %412 {offsets = [0, 0], sizes = [1, 128], strides = [1, 1]} : vector<1x512xf32> to vector<1x128xf32>
    %414 = vector.extract_strided_slice %412 {offsets = [0, 128], sizes = [1, 128], strides = [1, 1]} : vector<1x512xf32> to vector<1x128xf32>
    %415 = vector.extract_strided_slice %412 {offsets = [0, 384], sizes = [1, 128], strides = [1, 1]} : vector<1x512xf32> to vector<1x128xf32>
    %416 = vector.extract_strided_slice %407 {offsets = [0, 256], sizes = [1, 128], strides = [1, 1]} : vector<1x512xf32> to vector<1x128xf32>
    %417 = math.tanh %416 : vector<1x128xf32>
    %418 = arith.mulf %414, %396 : vector<1x128xf32>
    %419 = arith.mulf %413, %417 : vector<1x128xf32>
    %420 = arith.addf %418, %419 : vector<1x128xf32>
    %421 = math.tanh %420 : vector<1x128xf32>
    %422 = arith.mulf %415, %421 : vector<1x128xf32>
    %c13_i32_118 = arith.constant 13 : i32
    %423 = arith.addi %4, %c13_i32_118 : i32
    %424 = arith.cmpi slt, %423, %3 : i32
    %425 = arith.select %424, %422, %395 : vector<1x128xf32>
    %426 = arith.select %424, %420, %396 : vector<1x128xf32>
    %c13 = arith.constant 13 : index
    %c0_119 = arith.constant 0 : index
    %427 = vector.load %arg18[%c13, %c0_119] : memref<32x128xf32, #tpu.memory_space<vmem>>, vector<1x128xf32>
    tpu.vector_store %arg18[%c13, %c0_119], %425 {strides = array<i32>} : memref<32x128xf32, #tpu.memory_space<vmem>>, vector<1x128xf32>,
    %c14_i32 = arith.constant 14 : i32
    %428 = arith.addi %4, %c14_i32 : i32
    %429 = arith.index_cast %428 : i32 to index
    %430 = memref.load %arg1[%429] : memref<64xi32, #tpu.memory_space<smem>>
    %431 = arith.index_cast %430 : i32 to index
    %c0_120 = arith.constant 0 : index
    %c0_121 = arith.constant 0 : index
    %432 = vector.load %arg6[%431, %c0_120, %c0_121] : memref<28x1x512xf32, #tpu.memory_space<vmem>>, vector<1x1x512xf32>
    %433 = vector.shape_cast %432 : vector<1x1x512xf32> to vector<1x512xf32>
    %434 = arith.addf %5, %433 : vector<1x512xf32>
    %c0_122 = arith.constant 0 : index
    %c0_123 = arith.constant 0 : index
    %435 = vector.load %arg8[%c0_122, %c0_123] : memref<128x512xf32, #tpu.memory_space<vmem>>, vector<128x512xf32>
    %cst_124 = arith.constant dense<0.000000e+00> : vector<1x512xf32>
    %436 = tpu.matmul %425, %435, %cst_124 {dimension_numbers = #tpu.dot_dimension_numbers<[1], [0], [0], [1], [0, 0, 1, 1], [], []>} : vector<1x128xf32>, vector<128x512xf32>, vector<1x512xf32> -> vector<1x512xf32>
    %437 = arith.addf %434, %436 : vector<1x512xf32>
    %438 = arith.negf %437 : vector<1x512xf32>
    %439 = math.exp %438 : vector<1x512xf32>
    %cst_125 = arith.constant 1.000000e+00 : f32
    %440 = vector.broadcast %cst_125 : f32 to vector<1x512xf32>
    %441 = arith.addf %440, %439 : vector<1x512xf32>
    %442 = arith.divf %440, %441 : vector<1x512xf32>
    %443 = vector.extract_strided_slice %442 {offsets = [0, 0], sizes = [1, 128], strides = [1, 1]} : vector<1x512xf32> to vector<1x128xf32>
    %444 = vector.extract_strided_slice %442 {offsets = [0, 128], sizes = [1, 128], strides = [1, 1]} : vector<1x512xf32> to vector<1x128xf32>
    %445 = vector.extract_strided_slice %442 {offsets = [0, 384], sizes = [1, 128], strides = [1, 1]} : vector<1x512xf32> to vector<1x128xf32>
    %446 = vector.extract_strided_slice %437 {offsets = [0, 256], sizes = [1, 128], strides = [1, 1]} : vector<1x512xf32> to vector<1x128xf32>
    %447 = math.tanh %446 : vector<1x128xf32>
    %448 = arith.mulf %444, %426 : vector<1x128xf32>
    %449 = arith.mulf %443, %447 : vector<1x128xf32>
    %450 = arith.addf %448, %449 : vector<1x128xf32>
    %451 = math.tanh %450 : vector<1x128xf32>
    %452 = arith.mulf %445, %451 : vector<1x128xf32>
    %c14_i32_126 = arith.constant 14 : i32
    %453 = arith.addi %4, %c14_i32_126 : i32
    %454 = arith.cmpi slt, %453, %3 : i32
    %455 = arith.select %454, %452, %425 : vector<1x128xf32>
    %456 = arith.select %454, %450, %426 : vector<1x128xf32>
    %c14 = arith.constant 14 : index
    %c0_127 = arith.constant 0 : index
    %457 = vector.load %arg18[%c14, %c0_127] : memref<32x128xf32, #tpu.memory_space<vmem>>, vector<1x128xf32>
    tpu.vector_store %arg18[%c14, %c0_127], %455 {strides = array<i32>} : memref<32x128xf32, #tpu.memory_space<vmem>>, vector<1x128xf32>,
    %c15_i32 = arith.constant 15 : i32
    %458 = arith.addi %4, %c15_i32 : i32
    %459 = arith.index_cast %458 : i32 to index
    %460 = memref.load %arg1[%459] : memref<64xi32, #tpu.memory_space<smem>>
    %461 = arith.index_cast %460 : i32 to index
    %c0_128 = arith.constant 0 : index
    %c0_129 = arith.constant 0 : index
    %462 = vector.load %arg6[%461, %c0_128, %c0_129] : memref<28x1x512xf32, #tpu.memory_space<vmem>>, vector<1x1x512xf32>
    %463 = vector.shape_cast %462 : vector<1x1x512xf32> to vector<1x512xf32>
    %464 = arith.addf %5, %463 : vector<1x512xf32>
    %c0_130 = arith.constant 0 : index
    %c0_131 = arith.constant 0 : index
    %465 = vector.load %arg8[%c0_130, %c0_131] : memref<128x512xf32, #tpu.memory_space<vmem>>, vector<128x512xf32>
    %cst_132 = arith.constant dense<0.000000e+00> : vector<1x512xf32>
    %466 = tpu.matmul %455, %465, %cst_132 {dimension_numbers = #tpu.dot_dimension_numbers<[1], [0], [0], [1], [0, 0, 1, 1], [], []>} : vector<1x128xf32>, vector<128x512xf32>, vector<1x512xf32> -> vector<1x512xf32>
    %467 = arith.addf %464, %466 : vector<1x512xf32>
    %468 = arith.negf %467 : vector<1x512xf32>
    %469 = math.exp %468 : vector<1x512xf32>
    %cst_133 = arith.constant 1.000000e+00 : f32
    %470 = vector.broadcast %cst_133 : f32 to vector<1x512xf32>
    %471 = arith.addf %470, %469 : vector<1x512xf32>
    %472 = arith.divf %470, %471 : vector<1x512xf32>
    %473 = vector.extract_strided_slice %472 {offsets = [0, 0], sizes = [1, 128], strides = [1, 1]} : vector<1x512xf32> to vector<1x128xf32>
    %474 = vector.extract_strided_slice %472 {offsets = [0, 128], sizes = [1, 128], strides = [1, 1]} : vector<1x512xf32> to vector<1x128xf32>
    %475 = vector.extract_strided_slice %472 {offsets = [0, 384], sizes = [1, 128], strides = [1, 1]} : vector<1x512xf32> to vector<1x128xf32>
    %476 = vector.extract_strided_slice %467 {offsets = [0, 256], sizes = [1, 128], strides = [1, 1]} : vector<1x512xf32> to vector<1x128xf32>
    %477 = math.tanh %476 : vector<1x128xf32>
    %478 = arith.mulf %474, %456 : vector<1x128xf32>
    %479 = arith.mulf %473, %477 : vector<1x128xf32>
    %480 = arith.addf %478, %479 : vector<1x128xf32>
    %481 = math.tanh %480 : vector<1x128xf32>
    %482 = arith.mulf %475, %481 : vector<1x128xf32>
    %c15_i32_134 = arith.constant 15 : i32
    %483 = arith.addi %4, %c15_i32_134 : i32
    %484 = arith.cmpi slt, %483, %3 : i32
    %485 = arith.select %484, %482, %455 : vector<1x128xf32>
    %486 = arith.select %484, %480, %456 : vector<1x128xf32>
    %c15 = arith.constant 15 : index
    %c0_135 = arith.constant 0 : index
    %487 = vector.load %arg18[%c15, %c0_135] : memref<32x128xf32, #tpu.memory_space<vmem>>, vector<1x128xf32>
    tpu.vector_store %arg18[%c15, %c0_135], %485 {strides = array<i32>} : memref<32x128xf32, #tpu.memory_space<vmem>>, vector<1x128xf32>,
    %c16_i32 = arith.constant 16 : i32
    %488 = arith.addi %4, %c16_i32 : i32
    %489 = arith.index_cast %488 : i32 to index
    %490 = memref.load %arg1[%489] : memref<64xi32, #tpu.memory_space<smem>>
    %491 = arith.index_cast %490 : i32 to index
    %c0_136 = arith.constant 0 : index
    %c0_137 = arith.constant 0 : index
    %492 = vector.load %arg6[%491, %c0_136, %c0_137] : memref<28x1x512xf32, #tpu.memory_space<vmem>>, vector<1x1x512xf32>
    %493 = vector.shape_cast %492 : vector<1x1x512xf32> to vector<1x512xf32>
    %494 = arith.addf %5, %493 : vector<1x512xf32>
    %c0_138 = arith.constant 0 : index
    %c0_139 = arith.constant 0 : index
    %495 = vector.load %arg8[%c0_138, %c0_139] : memref<128x512xf32, #tpu.memory_space<vmem>>, vector<128x512xf32>
    %cst_140 = arith.constant dense<0.000000e+00> : vector<1x512xf32>
    %496 = tpu.matmul %485, %495, %cst_140 {dimension_numbers = #tpu.dot_dimension_numbers<[1], [0], [0], [1], [0, 0, 1, 1], [], []>} : vector<1x128xf32>, vector<128x512xf32>, vector<1x512xf32> -> vector<1x512xf32>
    %497 = arith.addf %494, %496 : vector<1x512xf32>
    %498 = arith.negf %497 : vector<1x512xf32>
    %499 = math.exp %498 : vector<1x512xf32>
    %cst_141 = arith.constant 1.000000e+00 : f32
    %500 = vector.broadcast %cst_141 : f32 to vector<1x512xf32>
    %501 = arith.addf %500, %499 : vector<1x512xf32>
    %502 = arith.divf %500, %501 : vector<1x512xf32>
    %503 = vector.extract_strided_slice %502 {offsets = [0, 0], sizes = [1, 128], strides = [1, 1]} : vector<1x512xf32> to vector<1x128xf32>
    %504 = vector.extract_strided_slice %502 {offsets = [0, 128], sizes = [1, 128], strides = [1, 1]} : vector<1x512xf32> to vector<1x128xf32>
    %505 = vector.extract_strided_slice %502 {offsets = [0, 384], sizes = [1, 128], strides = [1, 1]} : vector<1x512xf32> to vector<1x128xf32>
    %506 = vector.extract_strided_slice %497 {offsets = [0, 256], sizes = [1, 128], strides = [1, 1]} : vector<1x512xf32> to vector<1x128xf32>
    %507 = math.tanh %506 : vector<1x128xf32>
    %508 = arith.mulf %504, %486 : vector<1x128xf32>
    %509 = arith.mulf %503, %507 : vector<1x128xf32>
    %510 = arith.addf %508, %509 : vector<1x128xf32>
    %511 = math.tanh %510 : vector<1x128xf32>
    %512 = arith.mulf %505, %511 : vector<1x128xf32>
    %c16_i32_142 = arith.constant 16 : i32
    %513 = arith.addi %4, %c16_i32_142 : i32
    %514 = arith.cmpi slt, %513, %3 : i32
    %515 = arith.select %514, %512, %485 : vector<1x128xf32>
    %516 = arith.select %514, %510, %486 : vector<1x128xf32>
    %c16 = arith.constant 16 : index
    %c0_143 = arith.constant 0 : index
    %517 = vector.load %arg18[%c16, %c0_143] : memref<32x128xf32, #tpu.memory_space<vmem>>, vector<1x128xf32>
    tpu.vector_store %arg18[%c16, %c0_143], %515 {strides = array<i32>} : memref<32x128xf32, #tpu.memory_space<vmem>>, vector<1x128xf32>,
    %c17_i32 = arith.constant 17 : i32
    %518 = arith.addi %4, %c17_i32 : i32
    %519 = arith.index_cast %518 : i32 to index
    %520 = memref.load %arg1[%519] : memref<64xi32, #tpu.memory_space<smem>>
    %521 = arith.index_cast %520 : i32 to index
    %c0_144 = arith.constant 0 : index
    %c0_145 = arith.constant 0 : index
    %522 = vector.load %arg6[%521, %c0_144, %c0_145] : memref<28x1x512xf32, #tpu.memory_space<vmem>>, vector<1x1x512xf32>
    %523 = vector.shape_cast %522 : vector<1x1x512xf32> to vector<1x512xf32>
    %524 = arith.addf %5, %523 : vector<1x512xf32>
    %c0_146 = arith.constant 0 : index
    %c0_147 = arith.constant 0 : index
    %525 = vector.load %arg8[%c0_146, %c0_147] : memref<128x512xf32, #tpu.memory_space<vmem>>, vector<128x512xf32>
    %cst_148 = arith.constant dense<0.000000e+00> : vector<1x512xf32>
    %526 = tpu.matmul %515, %525, %cst_148 {dimension_numbers = #tpu.dot_dimension_numbers<[1], [0], [0], [1], [0, 0, 1, 1], [], []>} : vector<1x128xf32>, vector<128x512xf32>, vector<1x512xf32> -> vector<1x512xf32>
    %527 = arith.addf %524, %526 : vector<1x512xf32>
    %528 = arith.negf %527 : vector<1x512xf32>
    %529 = math.exp %528 : vector<1x512xf32>
    %cst_149 = arith.constant 1.000000e+00 : f32
    %530 = vector.broadcast %cst_149 : f32 to vector<1x512xf32>
    %531 = arith.addf %530, %529 : vector<1x512xf32>
    %532 = arith.divf %530, %531 : vector<1x512xf32>
    %533 = vector.extract_strided_slice %532 {offsets = [0, 0], sizes = [1, 128], strides = [1, 1]} : vector<1x512xf32> to vector<1x128xf32>
    %534 = vector.extract_strided_slice %532 {offsets = [0, 128], sizes = [1, 128], strides = [1, 1]} : vector<1x512xf32> to vector<1x128xf32>
    %535 = vector.extract_strided_slice %532 {offsets = [0, 384], sizes = [1, 128], strides = [1, 1]} : vector<1x512xf32> to vector<1x128xf32>
    %536 = vector.extract_strided_slice %527 {offsets = [0, 256], sizes = [1, 128], strides = [1, 1]} : vector<1x512xf32> to vector<1x128xf32>
    %537 = math.tanh %536 : vector<1x128xf32>
    %538 = arith.mulf %534, %516 : vector<1x128xf32>
    %539 = arith.mulf %533, %537 : vector<1x128xf32>
    %540 = arith.addf %538, %539 : vector<1x128xf32>
    %541 = math.tanh %540 : vector<1x128xf32>
    %542 = arith.mulf %535, %541 : vector<1x128xf32>
    %c17_i32_150 = arith.constant 17 : i32
    %543 = arith.addi %4, %c17_i32_150 : i32
    %544 = arith.cmpi slt, %543, %3 : i32
    %545 = arith.select %544, %542, %515 : vector<1x128xf32>
    %546 = arith.select %544, %540, %516 : vector<1x128xf32>
    %c17 = arith.constant 17 : index
    %c0_151 = arith.constant 0 : index
    %547 = vector.load %arg18[%c17, %c0_151] : memref<32x128xf32, #tpu.memory_space<vmem>>, vector<1x128xf32>
    tpu.vector_store %arg18[%c17, %c0_151], %545 {strides = array<i32>} : memref<32x128xf32, #tpu.memory_space<vmem>>, vector<1x128xf32>,
    %c18_i32 = arith.constant 18 : i32
    %548 = arith.addi %4, %c18_i32 : i32
    %549 = arith.index_cast %548 : i32 to index
    %550 = memref.load %arg1[%549] : memref<64xi32, #tpu.memory_space<smem>>
    %551 = arith.index_cast %550 : i32 to index
    %c0_152 = arith.constant 0 : index
    %c0_153 = arith.constant 0 : index
    %552 = vector.load %arg6[%551, %c0_152, %c0_153] : memref<28x1x512xf32, #tpu.memory_space<vmem>>, vector<1x1x512xf32>
    %553 = vector.shape_cast %552 : vector<1x1x512xf32> to vector<1x512xf32>
    %554 = arith.addf %5, %553 : vector<1x512xf32>
    %c0_154 = arith.constant 0 : index
    %c0_155 = arith.constant 0 : index
    %555 = vector.load %arg8[%c0_154, %c0_155] : memref<128x512xf32, #tpu.memory_space<vmem>>, vector<128x512xf32>
    %cst_156 = arith.constant dense<0.000000e+00> : vector<1x512xf32>
    %556 = tpu.matmul %545, %555, %cst_156 {dimension_numbers = #tpu.dot_dimension_numbers<[1], [0], [0], [1], [0, 0, 1, 1], [], []>} : vector<1x128xf32>, vector<128x512xf32>, vector<1x512xf32> -> vector<1x512xf32>
    %557 = arith.addf %554, %556 : vector<1x512xf32>
    %558 = arith.negf %557 : vector<1x512xf32>
    %559 = math.exp %558 : vector<1x512xf32>
    %cst_157 = arith.constant 1.000000e+00 : f32
    %560 = vector.broadcast %cst_157 : f32 to vector<1x512xf32>
    %561 = arith.addf %560, %559 : vector<1x512xf32>
    %562 = arith.divf %560, %561 : vector<1x512xf32>
    %563 = vector.extract_strided_slice %562 {offsets = [0, 0], sizes = [1, 128], strides = [1, 1]} : vector<1x512xf32> to vector<1x128xf32>
    %564 = vector.extract_strided_slice %562 {offsets = [0, 128], sizes = [1, 128], strides = [1, 1]} : vector<1x512xf32> to vector<1x128xf32>
    %565 = vector.extract_strided_slice %562 {offsets = [0, 384], sizes = [1, 128], strides = [1, 1]} : vector<1x512xf32> to vector<1x128xf32>
    %566 = vector.extract_strided_slice %557 {offsets = [0, 256], sizes = [1, 128], strides = [1, 1]} : vector<1x512xf32> to vector<1x128xf32>
    %567 = math.tanh %566 : vector<1x128xf32>
    %568 = arith.mulf %564, %546 : vector<1x128xf32>
    %569 = arith.mulf %563, %567 : vector<1x128xf32>
    %570 = arith.addf %568, %569 : vector<1x128xf32>
    %571 = math.tanh %570 : vector<1x128xf32>
    %572 = arith.mulf %565, %571 : vector<1x128xf32>
    %c18_i32_158 = arith.constant 18 : i32
    %573 = arith.addi %4, %c18_i32_158 : i32
    %574 = arith.cmpi slt, %573, %3 : i32
    %575 = arith.select %574, %572, %545 : vector<1x128xf32>
    %576 = arith.select %574, %570, %546 : vector<1x128xf32>
    %c18 = arith.constant 18 : index
    %c0_159 = arith.constant 0 : index
    %577 = vector.load %arg18[%c18, %c0_159] : memref<32x128xf32, #tpu.memory_space<vmem>>, vector<1x128xf32>
    tpu.vector_store %arg18[%c18, %c0_159], %575 {strides = array<i32>} : memref<32x128xf32, #tpu.memory_space<vmem>>, vector<1x128xf32>,
    %c19_i32 = arith.constant 19 : i32
    %578 = arith.addi %4, %c19_i32 : i32
    %579 = arith.index_cast %578 : i32 to index
    %580 = memref.load %arg1[%579] : memref<64xi32, #tpu.memory_space<smem>>
    %581 = arith.index_cast %580 : i32 to index
    %c0_160 = arith.constant 0 : index
    %c0_161 = arith.constant 0 : index
    %582 = vector.load %arg6[%581, %c0_160, %c0_161] : memref<28x1x512xf32, #tpu.memory_space<vmem>>, vector<1x1x512xf32>
    %583 = vector.shape_cast %582 : vector<1x1x512xf32> to vector<1x512xf32>
    %584 = arith.addf %5, %583 : vector<1x512xf32>
    %c0_162 = arith.constant 0 : index
    %c0_163 = arith.constant 0 : index
    %585 = vector.load %arg8[%c0_162, %c0_163] : memref<128x512xf32, #tpu.memory_space<vmem>>, vector<128x512xf32>
    %cst_164 = arith.constant dense<0.000000e+00> : vector<1x512xf32>
    %586 = tpu.matmul %575, %585, %cst_164 {dimension_numbers = #tpu.dot_dimension_numbers<[1], [0], [0], [1], [0, 0, 1, 1], [], []>} : vector<1x128xf32>, vector<128x512xf32>, vector<1x512xf32> -> vector<1x512xf32>
    %587 = arith.addf %584, %586 : vector<1x512xf32>
    %588 = arith.negf %587 : vector<1x512xf32>
    %589 = math.exp %588 : vector<1x512xf32>
    %cst_165 = arith.constant 1.000000e+00 : f32
    %590 = vector.broadcast %cst_165 : f32 to vector<1x512xf32>
    %591 = arith.addf %590, %589 : vector<1x512xf32>
    %592 = arith.divf %590, %591 : vector<1x512xf32>
    %593 = vector.extract_strided_slice %592 {offsets = [0, 0], sizes = [1, 128], strides = [1, 1]} : vector<1x512xf32> to vector<1x128xf32>
    %594 = vector.extract_strided_slice %592 {offsets = [0, 128], sizes = [1, 128], strides = [1, 1]} : vector<1x512xf32> to vector<1x128xf32>
    %595 = vector.extract_strided_slice %592 {offsets = [0, 384], sizes = [1, 128], strides = [1, 1]} : vector<1x512xf32> to vector<1x128xf32>
    %596 = vector.extract_strided_slice %587 {offsets = [0, 256], sizes = [1, 128], strides = [1, 1]} : vector<1x512xf32> to vector<1x128xf32>
    %597 = math.tanh %596 : vector<1x128xf32>
    %598 = arith.mulf %594, %576 : vector<1x128xf32>
    %599 = arith.mulf %593, %597 : vector<1x128xf32>
    %600 = arith.addf %598, %599 : vector<1x128xf32>
    %601 = math.tanh %600 : vector<1x128xf32>
    %602 = arith.mulf %595, %601 : vector<1x128xf32>
    %c19_i32_166 = arith.constant 19 : i32
    %603 = arith.addi %4, %c19_i32_166 : i32
    %604 = arith.cmpi slt, %603, %3 : i32
    %605 = arith.select %604, %602, %575 : vector<1x128xf32>
    %606 = arith.select %604, %600, %576 : vector<1x128xf32>
    %c19 = arith.constant 19 : index
    %c0_167 = arith.constant 0 : index
    %607 = vector.load %arg18[%c19, %c0_167] : memref<32x128xf32, #tpu.memory_space<vmem>>, vector<1x128xf32>
    tpu.vector_store %arg18[%c19, %c0_167], %605 {strides = array<i32>} : memref<32x128xf32, #tpu.memory_space<vmem>>, vector<1x128xf32>,
    %c20_i32 = arith.constant 20 : i32
    %608 = arith.addi %4, %c20_i32 : i32
    %609 = arith.index_cast %608 : i32 to index
    %610 = memref.load %arg1[%609] : memref<64xi32, #tpu.memory_space<smem>>
    %611 = arith.index_cast %610 : i32 to index
    %c0_168 = arith.constant 0 : index
    %c0_169 = arith.constant 0 : index
    %612 = vector.load %arg6[%611, %c0_168, %c0_169] : memref<28x1x512xf32, #tpu.memory_space<vmem>>, vector<1x1x512xf32>
    %613 = vector.shape_cast %612 : vector<1x1x512xf32> to vector<1x512xf32>
    %614 = arith.addf %5, %613 : vector<1x512xf32>
    %c0_170 = arith.constant 0 : index
    %c0_171 = arith.constant 0 : index
    %615 = vector.load %arg8[%c0_170, %c0_171] : memref<128x512xf32, #tpu.memory_space<vmem>>, vector<128x512xf32>
    %cst_172 = arith.constant dense<0.000000e+00> : vector<1x512xf32>
    %616 = tpu.matmul %605, %615, %cst_172 {dimension_numbers = #tpu.dot_dimension_numbers<[1], [0], [0], [1], [0, 0, 1, 1], [], []>} : vector<1x128xf32>, vector<128x512xf32>, vector<1x512xf32> -> vector<1x512xf32>
    %617 = arith.addf %614, %616 : vector<1x512xf32>
    %618 = arith.negf %617 : vector<1x512xf32>
    %619 = math.exp %618 : vector<1x512xf32>
    %cst_173 = arith.constant 1.000000e+00 : f32
    %620 = vector.broadcast %cst_173 : f32 to vector<1x512xf32>
    %621 = arith.addf %620, %619 : vector<1x512xf32>
    %622 = arith.divf %620, %621 : vector<1x512xf32>
    %623 = vector.extract_strided_slice %622 {offsets = [0, 0], sizes = [1, 128], strides = [1, 1]} : vector<1x512xf32> to vector<1x128xf32>
    %624 = vector.extract_strided_slice %622 {offsets = [0, 128], sizes = [1, 128], strides = [1, 1]} : vector<1x512xf32> to vector<1x128xf32>
    %625 = vector.extract_strided_slice %622 {offsets = [0, 384], sizes = [1, 128], strides = [1, 1]} : vector<1x512xf32> to vector<1x128xf32>
    %626 = vector.extract_strided_slice %617 {offsets = [0, 256], sizes = [1, 128], strides = [1, 1]} : vector<1x512xf32> to vector<1x128xf32>
    %627 = math.tanh %626 : vector<1x128xf32>
    %628 = arith.mulf %624, %606 : vector<1x128xf32>
    %629 = arith.mulf %623, %627 : vector<1x128xf32>
    %630 = arith.addf %628, %629 : vector<1x128xf32>
    %631 = math.tanh %630 : vector<1x128xf32>
    %632 = arith.mulf %625, %631 : vector<1x128xf32>
    %c20_i32_174 = arith.constant 20 : i32
    %633 = arith.addi %4, %c20_i32_174 : i32
    %634 = arith.cmpi slt, %633, %3 : i32
    %635 = arith.select %634, %632, %605 : vector<1x128xf32>
    %636 = arith.select %634, %630, %606 : vector<1x128xf32>
    %c20 = arith.constant 20 : index
    %c0_175 = arith.constant 0 : index
    %637 = vector.load %arg18[%c20, %c0_175] : memref<32x128xf32, #tpu.memory_space<vmem>>, vector<1x128xf32>
    tpu.vector_store %arg18[%c20, %c0_175], %635 {strides = array<i32>} : memref<32x128xf32, #tpu.memory_space<vmem>>, vector<1x128xf32>,
    %c21_i32 = arith.constant 21 : i32
    %638 = arith.addi %4, %c21_i32 : i32
    %639 = arith.index_cast %638 : i32 to index
    %640 = memref.load %arg1[%639] : memref<64xi32, #tpu.memory_space<smem>>
    %641 = arith.index_cast %640 : i32 to index
    %c0_176 = arith.constant 0 : index
    %c0_177 = arith.constant 0 : index
    %642 = vector.load %arg6[%641, %c0_176, %c0_177] : memref<28x1x512xf32, #tpu.memory_space<vmem>>, vector<1x1x512xf32>
    %643 = vector.shape_cast %642 : vector<1x1x512xf32> to vector<1x512xf32>
    %644 = arith.addf %5, %643 : vector<1x512xf32>
    %c0_178 = arith.constant 0 : index
    %c0_179 = arith.constant 0 : index
    %645 = vector.load %arg8[%c0_178, %c0_179] : memref<128x512xf32, #tpu.memory_space<vmem>>, vector<128x512xf32>
    %cst_180 = arith.constant dense<0.000000e+00> : vector<1x512xf32>
    %646 = tpu.matmul %635, %645, %cst_180 {dimension_numbers = #tpu.dot_dimension_numbers<[1], [0], [0], [1], [0, 0, 1, 1], [], []>} : vector<1x128xf32>, vector<128x512xf32>, vector<1x512xf32> -> vector<1x512xf32>
    %647 = arith.addf %644, %646 : vector<1x512xf32>
    %648 = arith.negf %647 : vector<1x512xf32>
    %649 = math.exp %648 : vector<1x512xf32>
    %cst_181 = arith.constant 1.000000e+00 : f32
    %650 = vector.broadcast %cst_181 : f32 to vector<1x512xf32>
    %651 = arith.addf %650, %649 : vector<1x512xf32>
    %652 = arith.divf %650, %651 : vector<1x512xf32>
    %653 = vector.extract_strided_slice %652 {offsets = [0, 0], sizes = [1, 128], strides = [1, 1]} : vector<1x512xf32> to vector<1x128xf32>
    %654 = vector.extract_strided_slice %652 {offsets = [0, 128], sizes = [1, 128], strides = [1, 1]} : vector<1x512xf32> to vector<1x128xf32>
    %655 = vector.extract_strided_slice %652 {offsets = [0, 384], sizes = [1, 128], strides = [1, 1]} : vector<1x512xf32> to vector<1x128xf32>
    %656 = vector.extract_strided_slice %647 {offsets = [0, 256], sizes = [1, 128], strides = [1, 1]} : vector<1x512xf32> to vector<1x128xf32>
    %657 = math.tanh %656 : vector<1x128xf32>
    %658 = arith.mulf %654, %636 : vector<1x128xf32>
    %659 = arith.mulf %653, %657 : vector<1x128xf32>
    %660 = arith.addf %658, %659 : vector<1x128xf32>
    %661 = math.tanh %660 : vector<1x128xf32>
    %662 = arith.mulf %655, %661 : vector<1x128xf32>
    %c21_i32_182 = arith.constant 21 : i32
    %663 = arith.addi %4, %c21_i32_182 : i32
    %664 = arith.cmpi slt, %663, %3 : i32
    %665 = arith.select %664, %662, %635 : vector<1x128xf32>
    %666 = arith.select %664, %660, %636 : vector<1x128xf32>
    %c21 = arith.constant 21 : index
    %c0_183 = arith.constant 0 : index
    %667 = vector.load %arg18[%c21, %c0_183] : memref<32x128xf32, #tpu.memory_space<vmem>>, vector<1x128xf32>
    tpu.vector_store %arg18[%c21, %c0_183], %665 {strides = array<i32>} : memref<32x128xf32, #tpu.memory_space<vmem>>, vector<1x128xf32>,
    %c22_i32 = arith.constant 22 : i32
    %668 = arith.addi %4, %c22_i32 : i32
    %669 = arith.index_cast %668 : i32 to index
    %670 = memref.load %arg1[%669] : memref<64xi32, #tpu.memory_space<smem>>
    %671 = arith.index_cast %670 : i32 to index
    %c0_184 = arith.constant 0 : index
    %c0_185 = arith.constant 0 : index
    %672 = vector.load %arg6[%671, %c0_184, %c0_185] : memref<28x1x512xf32, #tpu.memory_space<vmem>>, vector<1x1x512xf32>
    %673 = vector.shape_cast %672 : vector<1x1x512xf32> to vector<1x512xf32>
    %674 = arith.addf %5, %673 : vector<1x512xf32>
    %c0_186 = arith.constant 0 : index
    %c0_187 = arith.constant 0 : index
    %675 = vector.load %arg8[%c0_186, %c0_187] : memref<128x512xf32, #tpu.memory_space<vmem>>, vector<128x512xf32>
    %cst_188 = arith.constant dense<0.000000e+00> : vector<1x512xf32>
    %676 = tpu.matmul %665, %675, %cst_188 {dimension_numbers = #tpu.dot_dimension_numbers<[1], [0], [0], [1], [0, 0, 1, 1], [], []>} : vector<1x128xf32>, vector<128x512xf32>, vector<1x512xf32> -> vector<1x512xf32>
    %677 = arith.addf %674, %676 : vector<1x512xf32>
    %678 = arith.negf %677 : vector<1x512xf32>
    %679 = math.exp %678 : vector<1x512xf32>
    %cst_189 = arith.constant 1.000000e+00 : f32
    %680 = vector.broadcast %cst_189 : f32 to vector<1x512xf32>
    %681 = arith.addf %680, %679 : vector<1x512xf32>
    %682 = arith.divf %680, %681 : vector<1x512xf32>
    %683 = vector.extract_strided_slice %682 {offsets = [0, 0], sizes = [1, 128], strides = [1, 1]} : vector<1x512xf32> to vector<1x128xf32>
    %684 = vector.extract_strided_slice %682 {offsets = [0, 128], sizes = [1, 128], strides = [1, 1]} : vector<1x512xf32> to vector<1x128xf32>
    %685 = vector.extract_strided_slice %682 {offsets = [0, 384], sizes = [1, 128], strides = [1, 1]} : vector<1x512xf32> to vector<1x128xf32>
    %686 = vector.extract_strided_slice %677 {offsets = [0, 256], sizes = [1, 128], strides = [1, 1]} : vector<1x512xf32> to vector<1x128xf32>
    %687 = math.tanh %686 : vector<1x128xf32>
    %688 = arith.mulf %684, %666 : vector<1x128xf32>
    %689 = arith.mulf %683, %687 : vector<1x128xf32>
    %690 = arith.addf %688, %689 : vector<1x128xf32>
    %691 = math.tanh %690 : vector<1x128xf32>
    %692 = arith.mulf %685, %691 : vector<1x128xf32>
    %c22_i32_190 = arith.constant 22 : i32
    %693 = arith.addi %4, %c22_i32_190 : i32
    %694 = arith.cmpi slt, %693, %3 : i32
    %695 = arith.select %694, %692, %665 : vector<1x128xf32>
    %696 = arith.select %694, %690, %666 : vector<1x128xf32>
    %c22 = arith.constant 22 : index
    %c0_191 = arith.constant 0 : index
    %697 = vector.load %arg18[%c22, %c0_191] : memref<32x128xf32, #tpu.memory_space<vmem>>, vector<1x128xf32>
    tpu.vector_store %arg18[%c22, %c0_191], %695 {strides = array<i32>} : memref<32x128xf32, #tpu.memory_space<vmem>>, vector<1x128xf32>,
    %c23_i32 = arith.constant 23 : i32
    %698 = arith.addi %4, %c23_i32 : i32
    %699 = arith.index_cast %698 : i32 to index
    %700 = memref.load %arg1[%699] : memref<64xi32, #tpu.memory_space<smem>>
    %701 = arith.index_cast %700 : i32 to index
    %c0_192 = arith.constant 0 : index
    %c0_193 = arith.constant 0 : index
    %702 = vector.load %arg6[%701, %c0_192, %c0_193] : memref<28x1x512xf32, #tpu.memory_space<vmem>>, vector<1x1x512xf32>
    %703 = vector.shape_cast %702 : vector<1x1x512xf32> to vector<1x512xf32>
    %704 = arith.addf %5, %703 : vector<1x512xf32>
    %c0_194 = arith.constant 0 : index
    %c0_195 = arith.constant 0 : index
    %705 = vector.load %arg8[%c0_194, %c0_195] : memref<128x512xf32, #tpu.memory_space<vmem>>, vector<128x512xf32>
    %cst_196 = arith.constant dense<0.000000e+00> : vector<1x512xf32>
    %706 = tpu.matmul %695, %705, %cst_196 {dimension_numbers = #tpu.dot_dimension_numbers<[1], [0], [0], [1], [0, 0, 1, 1], [], []>} : vector<1x128xf32>, vector<128x512xf32>, vector<1x512xf32> -> vector<1x512xf32>
    %707 = arith.addf %704, %706 : vector<1x512xf32>
    %708 = arith.negf %707 : vector<1x512xf32>
    %709 = math.exp %708 : vector<1x512xf32>
    %cst_197 = arith.constant 1.000000e+00 : f32
    %710 = vector.broadcast %cst_197 : f32 to vector<1x512xf32>
    %711 = arith.addf %710, %709 : vector<1x512xf32>
    %712 = arith.divf %710, %711 : vector<1x512xf32>
    %713 = vector.extract_strided_slice %712 {offsets = [0, 0], sizes = [1, 128], strides = [1, 1]} : vector<1x512xf32> to vector<1x128xf32>
    %714 = vector.extract_strided_slice %712 {offsets = [0, 128], sizes = [1, 128], strides = [1, 1]} : vector<1x512xf32> to vector<1x128xf32>
    %715 = vector.extract_strided_slice %712 {offsets = [0, 384], sizes = [1, 128], strides = [1, 1]} : vector<1x512xf32> to vector<1x128xf32>
    %716 = vector.extract_strided_slice %707 {offsets = [0, 256], sizes = [1, 128], strides = [1, 1]} : vector<1x512xf32> to vector<1x128xf32>
    %717 = math.tanh %716 : vector<1x128xf32>
    %718 = arith.mulf %714, %696 : vector<1x128xf32>
    %719 = arith.mulf %713, %717 : vector<1x128xf32>
    %720 = arith.addf %718, %719 : vector<1x128xf32>
    %721 = math.tanh %720 : vector<1x128xf32>
    %722 = arith.mulf %715, %721 : vector<1x128xf32>
    %c23_i32_198 = arith.constant 23 : i32
    %723 = arith.addi %4, %c23_i32_198 : i32
    %724 = arith.cmpi slt, %723, %3 : i32
    %725 = arith.select %724, %722, %695 : vector<1x128xf32>
    %726 = arith.select %724, %720, %696 : vector<1x128xf32>
    %c23 = arith.constant 23 : index
    %c0_199 = arith.constant 0 : index
    %727 = vector.load %arg18[%c23, %c0_199] : memref<32x128xf32, #tpu.memory_space<vmem>>, vector<1x128xf32>
    tpu.vector_store %arg18[%c23, %c0_199], %725 {strides = array<i32>} : memref<32x128xf32, #tpu.memory_space<vmem>>, vector<1x128xf32>,
    %c24_i32 = arith.constant 24 : i32
    %728 = arith.addi %4, %c24_i32 : i32
    %729 = arith.index_cast %728 : i32 to index
    %730 = memref.load %arg1[%729] : memref<64xi32, #tpu.memory_space<smem>>
    %731 = arith.index_cast %730 : i32 to index
    %c0_200 = arith.constant 0 : index
    %c0_201 = arith.constant 0 : index
    %732 = vector.load %arg6[%731, %c0_200, %c0_201] : memref<28x1x512xf32, #tpu.memory_space<vmem>>, vector<1x1x512xf32>
    %733 = vector.shape_cast %732 : vector<1x1x512xf32> to vector<1x512xf32>
    %734 = arith.addf %5, %733 : vector<1x512xf32>
    %c0_202 = arith.constant 0 : index
    %c0_203 = arith.constant 0 : index
    %735 = vector.load %arg8[%c0_202, %c0_203] : memref<128x512xf32, #tpu.memory_space<vmem>>, vector<128x512xf32>
    %cst_204 = arith.constant dense<0.000000e+00> : vector<1x512xf32>
    %736 = tpu.matmul %725, %735, %cst_204 {dimension_numbers = #tpu.dot_dimension_numbers<[1], [0], [0], [1], [0, 0, 1, 1], [], []>} : vector<1x128xf32>, vector<128x512xf32>, vector<1x512xf32> -> vector<1x512xf32>
    %737 = arith.addf %734, %736 : vector<1x512xf32>
    %738 = arith.negf %737 : vector<1x512xf32>
    %739 = math.exp %738 : vector<1x512xf32>
    %cst_205 = arith.constant 1.000000e+00 : f32
    %740 = vector.broadcast %cst_205 : f32 to vector<1x512xf32>
    %741 = arith.addf %740, %739 : vector<1x512xf32>
    %742 = arith.divf %740, %741 : vector<1x512xf32>
    %743 = vector.extract_strided_slice %742 {offsets = [0, 0], sizes = [1, 128], strides = [1, 1]} : vector<1x512xf32> to vector<1x128xf32>
    %744 = vector.extract_strided_slice %742 {offsets = [0, 128], sizes = [1, 128], strides = [1, 1]} : vector<1x512xf32> to vector<1x128xf32>
    %745 = vector.extract_strided_slice %742 {offsets = [0, 384], sizes = [1, 128], strides = [1, 1]} : vector<1x512xf32> to vector<1x128xf32>
    %746 = vector.extract_strided_slice %737 {offsets = [0, 256], sizes = [1, 128], strides = [1, 1]} : vector<1x512xf32> to vector<1x128xf32>
    %747 = math.tanh %746 : vector<1x128xf32>
    %748 = arith.mulf %744, %726 : vector<1x128xf32>
    %749 = arith.mulf %743, %747 : vector<1x128xf32>
    %750 = arith.addf %748, %749 : vector<1x128xf32>
    %751 = math.tanh %750 : vector<1x128xf32>
    %752 = arith.mulf %745, %751 : vector<1x128xf32>
    %c24_i32_206 = arith.constant 24 : i32
    %753 = arith.addi %4, %c24_i32_206 : i32
    %754 = arith.cmpi slt, %753, %3 : i32
    %755 = arith.select %754, %752, %725 : vector<1x128xf32>
    %756 = arith.select %754, %750, %726 : vector<1x128xf32>
    %c24 = arith.constant 24 : index
    %c0_207 = arith.constant 0 : index
    %757 = vector.load %arg18[%c24, %c0_207] : memref<32x128xf32, #tpu.memory_space<vmem>>, vector<1x128xf32>
    tpu.vector_store %arg18[%c24, %c0_207], %755 {strides = array<i32>} : memref<32x128xf32, #tpu.memory_space<vmem>>, vector<1x128xf32>,
    %c25_i32 = arith.constant 25 : i32
    %758 = arith.addi %4, %c25_i32 : i32
    %759 = arith.index_cast %758 : i32 to index
    %760 = memref.load %arg1[%759] : memref<64xi32, #tpu.memory_space<smem>>
    %761 = arith.index_cast %760 : i32 to index
    %c0_208 = arith.constant 0 : index
    %c0_209 = arith.constant 0 : index
    %762 = vector.load %arg6[%761, %c0_208, %c0_209] : memref<28x1x512xf32, #tpu.memory_space<vmem>>, vector<1x1x512xf32>
    %763 = vector.shape_cast %762 : vector<1x1x512xf32> to vector<1x512xf32>
    %764 = arith.addf %5, %763 : vector<1x512xf32>
    %c0_210 = arith.constant 0 : index
    %c0_211 = arith.constant 0 : index
    %765 = vector.load %arg8[%c0_210, %c0_211] : memref<128x512xf32, #tpu.memory_space<vmem>>, vector<128x512xf32>
    %cst_212 = arith.constant dense<0.000000e+00> : vector<1x512xf32>
    %766 = tpu.matmul %755, %765, %cst_212 {dimension_numbers = #tpu.dot_dimension_numbers<[1], [0], [0], [1], [0, 0, 1, 1], [], []>} : vector<1x128xf32>, vector<128x512xf32>, vector<1x512xf32> -> vector<1x512xf32>
    %767 = arith.addf %764, %766 : vector<1x512xf32>
    %768 = arith.negf %767 : vector<1x512xf32>
    %769 = math.exp %768 : vector<1x512xf32>
    %cst_213 = arith.constant 1.000000e+00 : f32
    %770 = vector.broadcast %cst_213 : f32 to vector<1x512xf32>
    %771 = arith.addf %770, %769 : vector<1x512xf32>
    %772 = arith.divf %770, %771 : vector<1x512xf32>
    %773 = vector.extract_strided_slice %772 {offsets = [0, 0], sizes = [1, 128], strides = [1, 1]} : vector<1x512xf32> to vector<1x128xf32>
    %774 = vector.extract_strided_slice %772 {offsets = [0, 128], sizes = [1, 128], strides = [1, 1]} : vector<1x512xf32> to vector<1x128xf32>
    %775 = vector.extract_strided_slice %772 {offsets = [0, 384], sizes = [1, 128], strides = [1, 1]} : vector<1x512xf32> to vector<1x128xf32>
    %776 = vector.extract_strided_slice %767 {offsets = [0, 256], sizes = [1, 128], strides = [1, 1]} : vector<1x512xf32> to vector<1x128xf32>
    %777 = math.tanh %776 : vector<1x128xf32>
    %778 = arith.mulf %774, %756 : vector<1x128xf32>
    %779 = arith.mulf %773, %777 : vector<1x128xf32>
    %780 = arith.addf %778, %779 : vector<1x128xf32>
    %781 = math.tanh %780 : vector<1x128xf32>
    %782 = arith.mulf %775, %781 : vector<1x128xf32>
    %c25_i32_214 = arith.constant 25 : i32
    %783 = arith.addi %4, %c25_i32_214 : i32
    %784 = arith.cmpi slt, %783, %3 : i32
    %785 = arith.select %784, %782, %755 : vector<1x128xf32>
    %786 = arith.select %784, %780, %756 : vector<1x128xf32>
    %c25 = arith.constant 25 : index
    %c0_215 = arith.constant 0 : index
    %787 = vector.load %arg18[%c25, %c0_215] : memref<32x128xf32, #tpu.memory_space<vmem>>, vector<1x128xf32>
    tpu.vector_store %arg18[%c25, %c0_215], %785 {strides = array<i32>} : memref<32x128xf32, #tpu.memory_space<vmem>>, vector<1x128xf32>,
    %c26_i32 = arith.constant 26 : i32
    %788 = arith.addi %4, %c26_i32 : i32
    %789 = arith.index_cast %788 : i32 to index
    %790 = memref.load %arg1[%789] : memref<64xi32, #tpu.memory_space<smem>>
    %791 = arith.index_cast %790 : i32 to index
    %c0_216 = arith.constant 0 : index
    %c0_217 = arith.constant 0 : index
    %792 = vector.load %arg6[%791, %c0_216, %c0_217] : memref<28x1x512xf32, #tpu.memory_space<vmem>>, vector<1x1x512xf32>
    %793 = vector.shape_cast %792 : vector<1x1x512xf32> to vector<1x512xf32>
    %794 = arith.addf %5, %793 : vector<1x512xf32>
    %c0_218 = arith.constant 0 : index
    %c0_219 = arith.constant 0 : index
    %795 = vector.load %arg8[%c0_218, %c0_219] : memref<128x512xf32, #tpu.memory_space<vmem>>, vector<128x512xf32>
    %cst_220 = arith.constant dense<0.000000e+00> : vector<1x512xf32>
    %796 = tpu.matmul %785, %795, %cst_220 {dimension_numbers = #tpu.dot_dimension_numbers<[1], [0], [0], [1], [0, 0, 1, 1], [], []>} : vector<1x128xf32>, vector<128x512xf32>, vector<1x512xf32> -> vector<1x512xf32>
    %797 = arith.addf %794, %796 : vector<1x512xf32>
    %798 = arith.negf %797 : vector<1x512xf32>
    %799 = math.exp %798 : vector<1x512xf32>
    %cst_221 = arith.constant 1.000000e+00 : f32
    %800 = vector.broadcast %cst_221 : f32 to vector<1x512xf32>
    %801 = arith.addf %800, %799 : vector<1x512xf32>
    %802 = arith.divf %800, %801 : vector<1x512xf32>
    %803 = vector.extract_strided_slice %802 {offsets = [0, 0], sizes = [1, 128], strides = [1, 1]} : vector<1x512xf32> to vector<1x128xf32>
    %804 = vector.extract_strided_slice %802 {offsets = [0, 128], sizes = [1, 128], strides = [1, 1]} : vector<1x512xf32> to vector<1x128xf32>
    %805 = vector.extract_strided_slice %802 {offsets = [0, 384], sizes = [1, 128], strides = [1, 1]} : vector<1x512xf32> to vector<1x128xf32>
    %806 = vector.extract_strided_slice %797 {offsets = [0, 256], sizes = [1, 128], strides = [1, 1]} : vector<1x512xf32> to vector<1x128xf32>
    %807 = math.tanh %806 : vector<1x128xf32>
    %808 = arith.mulf %804, %786 : vector<1x128xf32>
    %809 = arith.mulf %803, %807 : vector<1x128xf32>
    %810 = arith.addf %808, %809 : vector<1x128xf32>
    %811 = math.tanh %810 : vector<1x128xf32>
    %812 = arith.mulf %805, %811 : vector<1x128xf32>
    %c26_i32_222 = arith.constant 26 : i32
    %813 = arith.addi %4, %c26_i32_222 : i32
    %814 = arith.cmpi slt, %813, %3 : i32
    %815 = arith.select %814, %812, %785 : vector<1x128xf32>
    %816 = arith.select %814, %810, %786 : vector<1x128xf32>
    %c26 = arith.constant 26 : index
    %c0_223 = arith.constant 0 : index
    %817 = vector.load %arg18[%c26, %c0_223] : memref<32x128xf32, #tpu.memory_space<vmem>>, vector<1x128xf32>
    tpu.vector_store %arg18[%c26, %c0_223], %815 {strides = array<i32>} : memref<32x128xf32, #tpu.memory_space<vmem>>, vector<1x128xf32>,
    %c27_i32 = arith.constant 27 : i32
    %818 = arith.addi %4, %c27_i32 : i32
    %819 = arith.index_cast %818 : i32 to index
    %820 = memref.load %arg1[%819] : memref<64xi32, #tpu.memory_space<smem>>
    %821 = arith.index_cast %820 : i32 to index
    %c0_224 = arith.constant 0 : index
    %c0_225 = arith.constant 0 : index
    %822 = vector.load %arg6[%821, %c0_224, %c0_225] : memref<28x1x512xf32, #tpu.memory_space<vmem>>, vector<1x1x512xf32>
    %823 = vector.shape_cast %822 : vector<1x1x512xf32> to vector<1x512xf32>
    %824 = arith.addf %5, %823 : vector<1x512xf32>
    %c0_226 = arith.constant 0 : index
    %c0_227 = arith.constant 0 : index
    %825 = vector.load %arg8[%c0_226, %c0_227] : memref<128x512xf32, #tpu.memory_space<vmem>>, vector<128x512xf32>
    %cst_228 = arith.constant dense<0.000000e+00> : vector<1x512xf32>
    %826 = tpu.matmul %815, %825, %cst_228 {dimension_numbers = #tpu.dot_dimension_numbers<[1], [0], [0], [1], [0, 0, 1, 1], [], []>} : vector<1x128xf32>, vector<128x512xf32>, vector<1x512xf32> -> vector<1x512xf32>
    %827 = arith.addf %824, %826 : vector<1x512xf32>
    %828 = arith.negf %827 : vector<1x512xf32>
    %829 = math.exp %828 : vector<1x512xf32>
    %cst_229 = arith.constant 1.000000e+00 : f32
    %830 = vector.broadcast %cst_229 : f32 to vector<1x512xf32>
    %831 = arith.addf %830, %829 : vector<1x512xf32>
    %832 = arith.divf %830, %831 : vector<1x512xf32>
    %833 = vector.extract_strided_slice %832 {offsets = [0, 0], sizes = [1, 128], strides = [1, 1]} : vector<1x512xf32> to vector<1x128xf32>
    %834 = vector.extract_strided_slice %832 {offsets = [0, 128], sizes = [1, 128], strides = [1, 1]} : vector<1x512xf32> to vector<1x128xf32>
    %835 = vector.extract_strided_slice %832 {offsets = [0, 384], sizes = [1, 128], strides = [1, 1]} : vector<1x512xf32> to vector<1x128xf32>
    %836 = vector.extract_strided_slice %827 {offsets = [0, 256], sizes = [1, 128], strides = [1, 1]} : vector<1x512xf32> to vector<1x128xf32>
    %837 = math.tanh %836 : vector<1x128xf32>
    %838 = arith.mulf %834, %816 : vector<1x128xf32>
    %839 = arith.mulf %833, %837 : vector<1x128xf32>
    %840 = arith.addf %838, %839 : vector<1x128xf32>
    %841 = math.tanh %840 : vector<1x128xf32>
    %842 = arith.mulf %835, %841 : vector<1x128xf32>
    %c27_i32_230 = arith.constant 27 : i32
    %843 = arith.addi %4, %c27_i32_230 : i32
    %844 = arith.cmpi slt, %843, %3 : i32
    %845 = arith.select %844, %842, %815 : vector<1x128xf32>
    %846 = arith.select %844, %840, %816 : vector<1x128xf32>
    %c27 = arith.constant 27 : index
    %c0_231 = arith.constant 0 : index
    %847 = vector.load %arg18[%c27, %c0_231] : memref<32x128xf32, #tpu.memory_space<vmem>>, vector<1x128xf32>
    tpu.vector_store %arg18[%c27, %c0_231], %845 {strides = array<i32>} : memref<32x128xf32, #tpu.memory_space<vmem>>, vector<1x128xf32>,
    %c28_i32 = arith.constant 28 : i32
    %848 = arith.addi %4, %c28_i32 : i32
    %849 = arith.index_cast %848 : i32 to index
    %850 = memref.load %arg1[%849] : memref<64xi32, #tpu.memory_space<smem>>
    %851 = arith.index_cast %850 : i32 to index
    %c0_232 = arith.constant 0 : index
    %c0_233 = arith.constant 0 : index
    %852 = vector.load %arg6[%851, %c0_232, %c0_233] : memref<28x1x512xf32, #tpu.memory_space<vmem>>, vector<1x1x512xf32>
    %853 = vector.shape_cast %852 : vector<1x1x512xf32> to vector<1x512xf32>
    %854 = arith.addf %5, %853 : vector<1x512xf32>
    %c0_234 = arith.constant 0 : index
    %c0_235 = arith.constant 0 : index
    %855 = vector.load %arg8[%c0_234, %c0_235] : memref<128x512xf32, #tpu.memory_space<vmem>>, vector<128x512xf32>
    %cst_236 = arith.constant dense<0.000000e+00> : vector<1x512xf32>
    %856 = tpu.matmul %845, %855, %cst_236 {dimension_numbers = #tpu.dot_dimension_numbers<[1], [0], [0], [1], [0, 0, 1, 1], [], []>} : vector<1x128xf32>, vector<128x512xf32>, vector<1x512xf32> -> vector<1x512xf32>
    %857 = arith.addf %854, %856 : vector<1x512xf32>
    %858 = arith.negf %857 : vector<1x512xf32>
    %859 = math.exp %858 : vector<1x512xf32>
    %cst_237 = arith.constant 1.000000e+00 : f32
    %860 = vector.broadcast %cst_237 : f32 to vector<1x512xf32>
    %861 = arith.addf %860, %859 : vector<1x512xf32>
    %862 = arith.divf %860, %861 : vector<1x512xf32>
    %863 = vector.extract_strided_slice %862 {offsets = [0, 0], sizes = [1, 128], strides = [1, 1]} : vector<1x512xf32> to vector<1x128xf32>
    %864 = vector.extract_strided_slice %862 {offsets = [0, 128], sizes = [1, 128], strides = [1, 1]} : vector<1x512xf32> to vector<1x128xf32>
    %865 = vector.extract_strided_slice %862 {offsets = [0, 384], sizes = [1, 128], strides = [1, 1]} : vector<1x512xf32> to vector<1x128xf32>
    %866 = vector.extract_strided_slice %857 {offsets = [0, 256], sizes = [1, 128], strides = [1, 1]} : vector<1x512xf32> to vector<1x128xf32>
    %867 = math.tanh %866 : vector<1x128xf32>
    %868 = arith.mulf %864, %846 : vector<1x128xf32>
    %869 = arith.mulf %863, %867 : vector<1x128xf32>
    %870 = arith.addf %868, %869 : vector<1x128xf32>
    %871 = math.tanh %870 : vector<1x128xf32>
    %872 = arith.mulf %865, %871 : vector<1x128xf32>
    %c28_i32_238 = arith.constant 28 : i32
    %873 = arith.addi %4, %c28_i32_238 : i32
    %874 = arith.cmpi slt, %873, %3 : i32
    %875 = arith.select %874, %872, %845 : vector<1x128xf32>
    %876 = arith.select %874, %870, %846 : vector<1x128xf32>
    %c28 = arith.constant 28 : index
    %c0_239 = arith.constant 0 : index
    %877 = vector.load %arg18[%c28, %c0_239] : memref<32x128xf32, #tpu.memory_space<vmem>>, vector<1x128xf32>
    tpu.vector_store %arg18[%c28, %c0_239], %875 {strides = array<i32>} : memref<32x128xf32, #tpu.memory_space<vmem>>, vector<1x128xf32>,
    %c29_i32 = arith.constant 29 : i32
    %878 = arith.addi %4, %c29_i32 : i32
    %879 = arith.index_cast %878 : i32 to index
    %880 = memref.load %arg1[%879] : memref<64xi32, #tpu.memory_space<smem>>
    %881 = arith.index_cast %880 : i32 to index
    %c0_240 = arith.constant 0 : index
    %c0_241 = arith.constant 0 : index
    %882 = vector.load %arg6[%881, %c0_240, %c0_241] : memref<28x1x512xf32, #tpu.memory_space<vmem>>, vector<1x1x512xf32>
    %883 = vector.shape_cast %882 : vector<1x1x512xf32> to vector<1x512xf32>
    %884 = arith.addf %5, %883 : vector<1x512xf32>
    %c0_242 = arith.constant 0 : index
    %c0_243 = arith.constant 0 : index
    %885 = vector.load %arg8[%c0_242, %c0_243] : memref<128x512xf32, #tpu.memory_space<vmem>>, vector<128x512xf32>
    %cst_244 = arith.constant dense<0.000000e+00> : vector<1x512xf32>
    %886 = tpu.matmul %875, %885, %cst_244 {dimension_numbers = #tpu.dot_dimension_numbers<[1], [0], [0], [1], [0, 0, 1, 1], [], []>} : vector<1x128xf32>, vector<128x512xf32>, vector<1x512xf32> -> vector<1x512xf32>
    %887 = arith.addf %884, %886 : vector<1x512xf32>
    %888 = arith.negf %887 : vector<1x512xf32>
    %889 = math.exp %888 : vector<1x512xf32>
    %cst_245 = arith.constant 1.000000e+00 : f32
    %890 = vector.broadcast %cst_245 : f32 to vector<1x512xf32>
    %891 = arith.addf %890, %889 : vector<1x512xf32>
    %892 = arith.divf %890, %891 : vector<1x512xf32>
    %893 = vector.extract_strided_slice %892 {offsets = [0, 0], sizes = [1, 128], strides = [1, 1]} : vector<1x512xf32> to vector<1x128xf32>
    %894 = vector.extract_strided_slice %892 {offsets = [0, 128], sizes = [1, 128], strides = [1, 1]} : vector<1x512xf32> to vector<1x128xf32>
    %895 = vector.extract_strided_slice %892 {offsets = [0, 384], sizes = [1, 128], strides = [1, 1]} : vector<1x512xf32> to vector<1x128xf32>
    %896 = vector.extract_strided_slice %887 {offsets = [0, 256], sizes = [1, 128], strides = [1, 1]} : vector<1x512xf32> to vector<1x128xf32>
    %897 = math.tanh %896 : vector<1x128xf32>
    %898 = arith.mulf %894, %876 : vector<1x128xf32>
    %899 = arith.mulf %893, %897 : vector<1x128xf32>
    %900 = arith.addf %898, %899 : vector<1x128xf32>
    %901 = math.tanh %900 : vector<1x128xf32>
    %902 = arith.mulf %895, %901 : vector<1x128xf32>
    %c29_i32_246 = arith.constant 29 : i32
    %903 = arith.addi %4, %c29_i32_246 : i32
    %904 = arith.cmpi slt, %903, %3 : i32
    %905 = arith.select %904, %902, %875 : vector<1x128xf32>
    %906 = arith.select %904, %900, %876 : vector<1x128xf32>
    %c29 = arith.constant 29 : index
    %c0_247 = arith.constant 0 : index
    %907 = vector.load %arg18[%c29, %c0_247] : memref<32x128xf32, #tpu.memory_space<vmem>>, vector<1x128xf32>
    tpu.vector_store %arg18[%c29, %c0_247], %905 {strides = array<i32>} : memref<32x128xf32, #tpu.memory_space<vmem>>, vector<1x128xf32>,
    %c30_i32 = arith.constant 30 : i32
    %908 = arith.addi %4, %c30_i32 : i32
    %909 = arith.index_cast %908 : i32 to index
    %910 = memref.load %arg1[%909] : memref<64xi32, #tpu.memory_space<smem>>
    %911 = arith.index_cast %910 : i32 to index
    %c0_248 = arith.constant 0 : index
    %c0_249 = arith.constant 0 : index
    %912 = vector.load %arg6[%911, %c0_248, %c0_249] : memref<28x1x512xf32, #tpu.memory_space<vmem>>, vector<1x1x512xf32>
    %913 = vector.shape_cast %912 : vector<1x1x512xf32> to vector<1x512xf32>
    %914 = arith.addf %5, %913 : vector<1x512xf32>
    %c0_250 = arith.constant 0 : index
    %c0_251 = arith.constant 0 : index
    %915 = vector.load %arg8[%c0_250, %c0_251] : memref<128x512xf32, #tpu.memory_space<vmem>>, vector<128x512xf32>
    %cst_252 = arith.constant dense<0.000000e+00> : vector<1x512xf32>
    %916 = tpu.matmul %905, %915, %cst_252 {dimension_numbers = #tpu.dot_dimension_numbers<[1], [0], [0], [1], [0, 0, 1, 1], [], []>} : vector<1x128xf32>, vector<128x512xf32>, vector<1x512xf32> -> vector<1x512xf32>
    %917 = arith.addf %914, %916 : vector<1x512xf32>
    %918 = arith.negf %917 : vector<1x512xf32>
    %919 = math.exp %918 : vector<1x512xf32>
    %cst_253 = arith.constant 1.000000e+00 : f32
    %920 = vector.broadcast %cst_253 : f32 to vector<1x512xf32>
    %921 = arith.addf %920, %919 : vector<1x512xf32>
    %922 = arith.divf %920, %921 : vector<1x512xf32>
    %923 = vector.extract_strided_slice %922 {offsets = [0, 0], sizes = [1, 128], strides = [1, 1]} : vector<1x512xf32> to vector<1x128xf32>
    %924 = vector.extract_strided_slice %922 {offsets = [0, 128], sizes = [1, 128], strides = [1, 1]} : vector<1x512xf32> to vector<1x128xf32>
    %925 = vector.extract_strided_slice %922 {offsets = [0, 384], sizes = [1, 128], strides = [1, 1]} : vector<1x512xf32> to vector<1x128xf32>
    %926 = vector.extract_strided_slice %917 {offsets = [0, 256], sizes = [1, 128], strides = [1, 1]} : vector<1x512xf32> to vector<1x128xf32>
    %927 = math.tanh %926 : vector<1x128xf32>
    %928 = arith.mulf %924, %906 : vector<1x128xf32>
    %929 = arith.mulf %923, %927 : vector<1x128xf32>
    %930 = arith.addf %928, %929 : vector<1x128xf32>
    %931 = math.tanh %930 : vector<1x128xf32>
    %932 = arith.mulf %925, %931 : vector<1x128xf32>
    %c30_i32_254 = arith.constant 30 : i32
    %933 = arith.addi %4, %c30_i32_254 : i32
    %934 = arith.cmpi slt, %933, %3 : i32
    %935 = arith.select %934, %932, %905 : vector<1x128xf32>
    %936 = arith.select %934, %930, %906 : vector<1x128xf32>
    %c30 = arith.constant 30 : index
    %c0_255 = arith.constant 0 : index
    %937 = vector.load %arg18[%c30, %c0_255] : memref<32x128xf32, #tpu.memory_space<vmem>>, vector<1x128xf32>
    tpu.vector_store %arg18[%c30, %c0_255], %935 {strides = array<i32>} : memref<32x128xf32, #tpu.memory_space<vmem>>, vector<1x128xf32>,
    %c31_i32 = arith.constant 31 : i32
    %938 = arith.addi %4, %c31_i32 : i32
    %939 = arith.index_cast %938 : i32 to index
    %940 = memref.load %arg1[%939] : memref<64xi32, #tpu.memory_space<smem>>
    %941 = arith.index_cast %940 : i32 to index
    %c0_256 = arith.constant 0 : index
    %c0_257 = arith.constant 0 : index
    %942 = vector.load %arg6[%941, %c0_256, %c0_257] : memref<28x1x512xf32, #tpu.memory_space<vmem>>, vector<1x1x512xf32>
    %943 = vector.shape_cast %942 : vector<1x1x512xf32> to vector<1x512xf32>
    %944 = arith.addf %5, %943 : vector<1x512xf32>
    %c0_258 = arith.constant 0 : index
    %c0_259 = arith.constant 0 : index
    %945 = vector.load %arg8[%c0_258, %c0_259] : memref<128x512xf32, #tpu.memory_space<vmem>>, vector<128x512xf32>
    %cst_260 = arith.constant dense<0.000000e+00> : vector<1x512xf32>
    %946 = tpu.matmul %935, %945, %cst_260 {dimension_numbers = #tpu.dot_dimension_numbers<[1], [0], [0], [1], [0, 0, 1, 1], [], []>} : vector<1x128xf32>, vector<128x512xf32>, vector<1x512xf32> -> vector<1x512xf32>
    %947 = arith.addf %944, %946 : vector<1x512xf32>
    %948 = arith.negf %947 : vector<1x512xf32>
    %949 = math.exp %948 : vector<1x512xf32>
    %cst_261 = arith.constant 1.000000e+00 : f32
    %950 = vector.broadcast %cst_261 : f32 to vector<1x512xf32>
    %951 = arith.addf %950, %949 : vector<1x512xf32>
    %952 = arith.divf %950, %951 : vector<1x512xf32>
    %953 = vector.extract_strided_slice %952 {offsets = [0, 0], sizes = [1, 128], strides = [1, 1]} : vector<1x512xf32> to vector<1x128xf32>
    %954 = vector.extract_strided_slice %952 {offsets = [0, 128], sizes = [1, 128], strides = [1, 1]} : vector<1x512xf32> to vector<1x128xf32>
    %955 = vector.extract_strided_slice %952 {offsets = [0, 384], sizes = [1, 128], strides = [1, 1]} : vector<1x512xf32> to vector<1x128xf32>
    %956 = vector.extract_strided_slice %947 {offsets = [0, 256], sizes = [1, 128], strides = [1, 1]} : vector<1x512xf32> to vector<1x128xf32>
    %957 = math.tanh %956 : vector<1x128xf32>
    %958 = arith.mulf %954, %936 : vector<1x128xf32>
    %959 = arith.mulf %953, %957 : vector<1x128xf32>
    %960 = arith.addf %958, %959 : vector<1x128xf32>
    %961 = math.tanh %960 : vector<1x128xf32>
    %962 = arith.mulf %955, %961 : vector<1x128xf32>
    %c31_i32_262 = arith.constant 31 : i32
    %963 = arith.addi %4, %c31_i32_262 : i32
    %964 = arith.cmpi slt, %963, %3 : i32
    %965 = arith.select %964, %962, %935 : vector<1x128xf32>
    %966 = arith.select %964, %960, %936 : vector<1x128xf32>
    %c31 = arith.constant 31 : index
    %c0_263 = arith.constant 0 : index
    %967 = vector.load %arg18[%c31, %c0_263] : memref<32x128xf32, #tpu.memory_space<vmem>>, vector<1x128xf32>
    tpu.vector_store %arg18[%c31, %c0_263], %965 {strides = array<i32>} : memref<32x128xf32, #tpu.memory_space<vmem>>, vector<1x128xf32>,
    %c0_264 = arith.constant 0 : index
    %c0_265 = arith.constant 0 : index
    %968 = vector.load %arg15[%c0_264, %c0_265] : memref<1x128xf32, #tpu.memory_space<vmem>>, vector<1x128xf32>
    tpu.vector_store %arg15[%c0_264, %c0_265], %965 {strides = array<i32>} : memref<1x128xf32, #tpu.memory_space<vmem>>, vector<1x128xf32>,
    %c0_266 = arith.constant 0 : index
    %c0_267 = arith.constant 0 : index
    %969 = vector.load %arg16[%c0_266, %c0_267] : memref<1x128xf32, #tpu.memory_space<vmem>>, vector<1x128xf32>
    tpu.vector_store %arg16[%c0_266, %c0_267], %966 {strides = array<i32>} : memref<1x128xf32, #tpu.memory_space<vmem>>, vector<1x128xf32>,
    %c0_268 = arith.constant 0 : index
    %c0_269 = arith.constant 0 : index
    %970 = vector.load %arg18[%c0_268, %c0_269] : memref<32x128xf32, #tpu.memory_space<vmem>>, vector<32x128xf32>
    %c0_270 = arith.constant 0 : index
    %c0_271 = arith.constant 0 : index
    %971 = vector.load %arg10[%c0_270, %c0_271] : memref<128x128xf32, #tpu.memory_space<vmem>>, vector<128x128xf32>
    %cst_272 = arith.constant dense<0.000000e+00> : vector<32x128xf32>
    %972 = tpu.matmul %970, %971, %cst_272 {dimension_numbers = #tpu.dot_dimension_numbers<[1], [0], [0], [1], [0, 0, 1, 1], [], []>} : vector<32x128xf32>, vector<128x128xf32>, vector<32x128xf32> -> vector<32x128xf32>
    %c0_273 = arith.constant 0 : index
    %c0_274 = arith.constant 0 : index
    %973 = vector.load %arg11[%c0_273, %c0_274] : memref<1x128xf32, #tpu.memory_space<vmem>>, vector<1x128xf32>
    %974 = vector.broadcast %973 : vector<1x128xf32> to vector<32x128xf32>
    %975 = arith.addf %972, %974 : vector<32x128xf32>
    %c0_275 = arith.constant 0 : index
    %c0_276 = arith.constant 0 : index
    %976 = vector.load %arg12[%c0_275, %c0_276] : memref<32x128xf32, #tpu.memory_space<vmem>>, vector<32x128xf32>
    tpu.vector_store %arg12[%c0_275, %c0_276], %975 {strides = array<i32>} : memref<32x128xf32, #tpu.memory_space<vmem>>, vector<32x128xf32>,
    %c1_i32_277 = arith.constant 1 : i32
    %977 = arith.cmpi eq, %arg0, %c1_i32_277 : i32
    %978 = arith.extui %977 : i1 to i32
    %c0_i32_278 = arith.constant 0 : i32
    %979 = arith.cmpi ne, %978, %c0_i32_278 : i32
    scf.if %979 {
      %c0_279 = arith.constant 0 : index
      %c0_280 = arith.constant 0 : index
      %980 = vector.load %arg13[%c0_279, %c0_280] : memref<1x128xf32, #tpu.memory_space<vmem>>, vector<1x128xf32>
      tpu.vector_store %arg13[%c0_279, %c0_280], %965 {strides = array<i32>} : memref<1x128xf32, #tpu.memory_space<vmem>>, vector<1x128xf32>,
      %c0_281 = arith.constant 0 : index
      %c0_282 = arith.constant 0 : index
      %981 = vector.load %arg14[%c0_281, %c0_282] : memref<1x128xf32, #tpu.memory_space<vmem>>, vector<1x128xf32>
      tpu.vector_store %arg14[%c0_281, %c0_282], %966 {strides = array<i32>} : memref<1x128xf32, #tpu.memory_space<vmem>>, vector<1x128xf32>,
    } else {
    }
    return
  }
  func.func @transform_0(%arg0: i32, %arg1: memref<64xi32, #tpu.memory_space<smem>>, %arg2: memref<1xi32, #tpu.memory_space<smem>>) -> (i32, i32) {
    %c0_i32 = arith.constant 0 : i32
    %c0_i32_0 = arith.constant 0 : i32
    %c0_i32_1 = arith.constant 0 : i32
    return %c0_i32, %c0_i32_0 : i32, i32
  }
  func.func @transform_1(%arg0: i32, %arg1: memref<64xi32, #tpu.memory_space<smem>>, %arg2: memref<1xi32, #tpu.memory_space<smem>>) -> (i32, i32) {
    %c0_i32 = arith.constant 0 : i32
    %c0_i32_0 = arith.constant 0 : i32
    %c0_i32_1 = arith.constant 0 : i32
    return %c0_i32, %c0_i32_0 : i32, i32
  }
  func.func @transform_2(%arg0: i32, %arg1: memref<64xi32, #tpu.memory_space<smem>>, %arg2: memref<1xi32, #tpu.memory_space<smem>>) -> (i32, i32) {
    %c0_i32 = arith.constant 0 : i32
    %c0_i32_0 = arith.constant 0 : i32
    %c0_i32_1 = arith.constant 0 : i32
    return %c0_i32, %c0_i32_0 : i32, i32
  }
  func.func @transform_3(%arg0: i32, %arg1: memref<64xi32, #tpu.memory_space<smem>>, %arg2: memref<1xi32, #tpu.memory_space<smem>>) -> (i32, i32, i32) {
    %c0_i32 = arith.constant 0 : i32
    %c0_i32_0 = arith.constant 0 : i32
    %c0_i32_1 = arith.constant 0 : i32
    %c0_i32_2 = arith.constant 0 : i32
    return %c0_i32, %c0_i32_0, %c0_i32_1 : i32, i32, i32
  }
  func.func @transform_4(%arg0: i32, %arg1: memref<64xi32, #tpu.memory_space<smem>>, %arg2: memref<1xi32, #tpu.memory_space<smem>>) -> (i32, i32) {
    %c0_i32 = arith.constant 0 : i32
    %c0_i32_0 = arith.constant 0 : i32
    %c0_i32_1 = arith.constant 0 : i32
    return %c0_i32, %c0_i32_0 : i32, i32
  }
  func.func @transform_5(%arg0: i32, %arg1: memref<64xi32, #tpu.memory_space<smem>>, %arg2: memref<1xi32, #tpu.memory_space<smem>>) -> (i32, i32) {
    %c0_i32 = arith.constant 0 : i32
    %c0_i32_0 = arith.constant 0 : i32
    %c0_i32_1 = arith.constant 0 : i32
    return %c0_i32, %c0_i32_0 : i32, i32
  }
  func.func @transform_6(%arg0: i32, %arg1: memref<64xi32, #tpu.memory_space<smem>>, %arg2: memref<1xi32, #tpu.memory_space<smem>>) -> (i32, i32) {
    %c0_i32 = arith.constant 0 : i32
    %c0_i32_0 = arith.constant 0 : i32
    %c0_i32_1 = arith.constant 0 : i32
    return %c0_i32, %c0_i32_0 : i32, i32
  }
  func.func @transform_7(%arg0: i32, %arg1: memref<64xi32, #tpu.memory_space<smem>>, %arg2: memref<1xi32, #tpu.memory_space<smem>>) -> (i32, i32) {
    %c0_i32 = arith.constant 0 : i32
    %c0_i32_0 = arith.constant 0 : i32
    %c0_i32_1 = arith.constant 0 : i32
    return %c0_i32, %c0_i32_0 : i32, i32
  }
  func.func @transform_8(%arg0: i32, %arg1: memref<64xi32, #tpu.memory_space<smem>>, %arg2: memref<1xi32, #tpu.memory_space<smem>>) -> (i32, i32) {
    %c0_i32 = arith.constant 0 : i32
    %c0_i32_0 = arith.constant 0 : i32
    %c0_i32_1 = arith.constant 0 : i32
    return %c0_i32, %c0_i32_0 : i32, i32
  }
  func.func @transform_9(%arg0: i32, %arg1: memref<64xi32, #tpu.memory_space<smem>>, %arg2: memref<1xi32, #tpu.memory_space<smem>>) -> (i32, i32) {
    %c0_i32 = arith.constant 0 : i32
    %c0_i32_0 = arith.constant 0 : i32
    return %arg0, %c0_i32 : i32, i32
  }
  func.func @transform_10(%arg0: i32, %arg1: memref<64xi32, #tpu.memory_space<smem>>, %arg2: memref<1xi32, #tpu.memory_space<smem>>) -> (i32, i32) {
    %c0_i32 = arith.constant 0 : i32
    %c0_i32_0 = arith.constant 0 : i32
    %c0_i32_1 = arith.constant 0 : i32
    return %c0_i32, %c0_i32_0 : i32, i32
  }
  func.func @transform_11(%arg0: i32, %arg1: memref<64xi32, #tpu.memory_space<smem>>, %arg2: memref<1xi32, #tpu.memory_space<smem>>) -> (i32, i32) {
    %c0_i32 = arith.constant 0 : i32
    %c0_i32_0 = arith.constant 0 : i32
    %c0_i32_1 = arith.constant 0 : i32
    return %c0_i32, %c0_i32_0 : i32, i32
  }
}

</mosaic_0001>

<bundles_post_ra>
// kernel: tpu_custom_call.1
= control target key start
LH: loop header
LB: loop body
LE: loop exit
PB: predicated region body
PF: predicated region fallthrough
CT: control target
= control target key end

     0   :  { %s8123_s30 = smov [#allocation7]   ;;  %s12681_s0 = inlined_call_operand.vmem [shape: s32[64], index: 0, kind: input, shape index: {}]   ;;  %s12682_s1 = inlined_call_operand.<no memory space> [shape: s32[1], index: 1, kind: input, shape index: {}]   ;;  %s12683_s2 = inlined_call_operand.vmem [shape: f32[1,24], index: 2, kind: input, shape index: {}]   ;;  %s12684_s3 = inlined_call_operand.vmem [shape: f32[1,128], index: 3, kind: input, shape index: {}]   ;;  %s12685_s4 = inlined_call_operand.hbm [shape: f32[1,128], index: 4, kind: input, shape index: {}]   ;;  %s12686_s5 = inlined_call_operand.hbm [shape: f32[28,1,512], index: 5, kind: input, shape index: {}]   ;;  %s12687_s6 = inlined_call_operand.hbm [shape: f32[24,512], index: 6, kind: input, shape index: {}]   ;;  %s12688_s7 = inlined_call_operand.hbm [shape: f32[128,512], index: 7, kind: input, shape index: {}]   ;;  %s12689_s8 = inlined_call_operand.vmem [shape: f32[1,512], index: 8, kind: input, shape index: {}]   ;;  %s12690_s9 = inlined_call_operand.hbm [shape: f32[128,128], index: 9, kind: input, shape index: {}]   ;;  %s12691_s10 = inlined_call_operand.vmem [shape: f32[1,128], index: 10, kind: input, shape index: {}]   ;;  %s12692_s11 = inlined_call_operand.hbm [shape: f32[64,128], index: 11, kind: output, shape index: {0}]   ;;  %s12693_s12 = inlined_call_operand.hbm [shape: f32[1,128], index: 12, kind: output, shape index: {1}]   ;;  %s12694_s13 = inlined_call_operand.hbm [shape: f32[1,128], index: 13, kind: output, shape index: {2}]  }
   0x1   :  { %12701 = sst [smem:[#allocation34_spill]] %s12686_s5  ;;  %s20_s27 = sshll.u32 %s12681_s0, 4  ;;  %s21_s27 = int_to_ptr.vmem [resolvable:$true] %s20_s27 }
   0x2   :  { %12702 = sst [smem:[#allocation35_spill]] %s12688_s7 }
   0x3   :  { %24 = sst [smem:[#allocation8]] %s12682_s1 }
   0x4   :  { %23 = dma.vmem_to_smem %s21_s27, 16, %s8123_s30, [#allocation6] }
   0x5   :  { %8085 = dma.done.wait [#allocation6], 16 }
   0x6   :  { %8086 = vsyncadd [#allocation6], 4294967280 }
   0x7   :  { %27 = sfence }
   0x8   :  { %28 = vsyncpa [#allocation10], 0 }
   0x9   :  { %29 = vsyncpa [#allocation13], 0 }
   0xa   :  { %30 = vsyncpa [#allocation16], 0 }
   0xb   :  { %31 = vsyncpa [#allocation11], 0 }
   0xc   :  { %33 = vsyncpa [#allocation11 + $0x1], 0 }
   0xd   :  { %34 = vsyncpa [#allocation20], 0  ;;  %s8215_s14 = smov 0   ;;  %s8217_s15 = smov 0  }
   0xe   :  { %s8219_s0 = smov 0   ;;  %s8221_s16 = smov 0  }
   0xf LB: > { %12703 = sst [smem:[#allocation28_spill]] %s8109_s14  ;;  %s8236_s1 = sadd.s32 4294967295, %s8121_s16   ;;  %s8121_s16 = sphi %s8221_s16, %s12749_s16   ;;  %s8117_s0 = sphi %s8219_s0, %s12751_s0   ;;  %s8113_s15 = sphi %s8217_s15, %s12753_s15   ;;  %s8109_s14 = sphi %s8215_s14, %s12752_s14  }
  0x10   : > { %12704 = sst [smem:[#allocation29_spill]] %s8117_s0  ;;  %s7351_s17 = sadd.s32 4294967294, %s8121_s16  }
  0x11   : > { %12705 = sst [smem:[#allocation30_spill]] %s8121_s16  ;;  %s8240_s18 = sadd.s32 1, %s8121_s16  }
  0x12   : > { %12706 = sst [smem:[#allocation31_spill]] %s8240_s18  ;;  %s236_s19 = sadd.s32 1, %s8117_s0 }
  0x13   : > { %s233_s20 = ssub.s32 %s8121_s16, %s8240_s18  ;;  %p246_p0 = scmp.ne.s32.totalorder %s8117_s0, %s8113_s15 }
  0x14   : > { %p234_p1 = scmp.eq.s32.totalorder %s233_s20, 0  ;;  %p247_p2 = scmp.eq.s32.totalorder %s8236_s1, 1 }
  0x15   : > { %p252_p3 = scmp.ne.s32.totalorder %s8113_s15, %s8109_s14  ;;  %p253_p4 = scmp.eq.s32.totalorder %s7351_s17, 1 }
  0x16   : > { %s8251_s21 = scalar_select %p234_p1, %s8117_s0, %s236_s19  }
  0x17   : > { %p8255_p5 = por %p247_p2, %p246_p0  ;;  %p8259_p6 = por %p253_p4, %p252_p3 }
  0x18   : > { %12707 = sst [smem:[#allocation32_spill]] %s8251_s21  ;;  %p7352_p7 = scmp.ge.s32.totalorder %s8121_s16, 1 }
  0x19   : > { %s12709_s23 = scalar_select %p8259_p6, 1, 0 }
  0x1a   : > { %p302_p8 = scmp.lt.s32.totalorder %s8121_s16, 3  ;;  %p7353_p9 = scmp.ne.s32.totalorder %s8236_s1, 0 }
  0x1b   : > { %12710 = sst [smem:[#allocation33_spill]] %s12709_s23  ;;  %p7496_p10 = scmp.eq.s32.totalorder %s8236_s1, 0 }
  0x1c   : > { %p8267_p11 = pnand %p7352_p7, %p302_p8  ;;  %s12712_s5 = sld [smem:[#allocation34_spill]] }
  0x1d   : > { %s8124_s28 = smov [#allocation12]   ;;  %s12714_s7 = sld [smem:[#allocation35_spill]] }
  0x1e   : > { %p7476_p12 = pneg %p8267_p11  ;;  %s333_s29 = sshll.u32 %s8124_s28, 4  ;;  %s334_s29 = int_to_ptr.vmem [resolvable:$true] %s333_s29 }
  0x1f   : > { %s8125_s25 = smov 64   ;;  %s8126_s26 = smov 4  }
  0x20   : > { %p8278_p13 = pnand %p7496_p10, %p7476_p12  ;;  %s320_s18 = sshll.u32 %s12685_s4, 4  ;;  %s321_s18 = int_to_ptr.hbm [resolvable:$true] %s320_s18 }
  0x21   : > { %s8128_s23 = smov 512   ;;  %s8129_s17 = smov 32  }
  0x22   : > { %s331_s27 = sshll.u32 %s12712_s5, 4  ;;  %s8127_s5 = smov [#allocation15]   ;;  %s332_s27 = int_to_ptr.hbm [resolvable:$true] %s331_s27 }
  0x23   : > { %s359_s20 = sshll.u32 %s12714_s7, 4  ;;  %s361_s28 = sshll.u32 %s8127_s5, 4  ;;  %s360_s20 = int_to_ptr.hbm [resolvable:$true] %s359_s20  ;;  %s362_s28 = int_to_ptr.vmem [resolvable:$true] %s361_s28 }
  0x24   : > { %7482 = dma.hbm_to_vmem [thread:$0]  (!%p8278_p13), %s332_s27, 1792, %s334_s29, [#allocation13], %s8125_s25, %s8125_s25, %s8126_s26  }
  0x25   : > { %7488 = dma.hbm_to_vmem [thread:$0]  (!%p8278_p13), %s360_s20, 8192, %s362_s28, [#allocation16], %s8128_s23, %s8128_s23, %s8129_s17  }
  0x26   : > { %s345_s14 = sshll.u32 %s12687_s6, 4  ;;  %s8130_s16 = smov [#allocation9]   ;;  %s346_s14 = int_to_ptr.hbm [resolvable:$true] %s345_s14 }
  0x27   : > { %s322_s27 = sshll.u32 %s8130_s16, 4  ;;  %s8131_s5 = smov [#allocation14]   ;;  %s323_s27 = int_to_ptr.vmem [resolvable:$true] %s322_s27 }
  0x28   : > { %7479 = dma.hbm_to_vmem [thread:$0]  (!%p8278_p13), %s321_s18, 16, %s323_s27, [#allocation10]  }
  0x29   : > { %s347_s0 = sshll.u32 %s8131_s5, 4  ;;  %s376_s25 = sshll.u32 %s12690_s9, 4  ;;  %s348_s0 = int_to_ptr.vmem [resolvable:$true] %s347_s0  ;;  %s377_s25 = int_to_ptr.hbm [resolvable:$true] %s376_s25 }
  0x2a   : > { %7485 = dma.hbm_to_vmem [thread:$0]  (!%p8278_p13), %s346_s14, 1536, %s348_s0, [#allocation13], %s8128_s23, %s8128_s23, %s8129_s17  }
  0x2b   : > { %s8132_s20 = smov [#allocation17]   ;;  %s8133_s26 = smov 128  }
  0x2c   : > { %s378_s7 = sshll.u32 %s8132_s20, 4  ;;  %s8134_s28 = smov 8   ;;  %s379_s7 = int_to_ptr.vmem [resolvable:$true] %s378_s7 }
  0x2d   : > { %7491 = dma.hbm_to_vmem [thread:$0]  (!%p8278_p13), %s377_s25, 2048, %s379_s7, [#allocation16], %s8133_s26, %s8133_s26, %s8134_s28  }
  0x2e   : > { %397 = sbr.rel (%p8267_p11) target bundleno = 6280 (0x1888), region = 56 }
  0x33   : > { %8088 = dma.done.wait (%p7496_p10), [#allocation10], 16  }
  0x34   : > { %8090 = vsyncadd (%p7496_p10), [#allocation10], 4294967280 }
  0x35   : > { %8092 = dma.done.wait (%p7496_p10), [#allocation13], 3328  }
  0x36   : > { %8094 = vsyncadd (%p7496_p10), [#allocation13], 4294963968 }
  0x37   : > { %8096 = dma.done.wait (%p7496_p10), [#allocation16], 10240  }
  0x38   : > { %8098 = vsyncadd (%p7496_p10), [#allocation16], 4294957056  ;;  %s446_s14 = sand.u32 1, %s8113_s15   ;;  %457 = sbr.rel (%p7353_p9) target bundleno = 206 (0xce), region = 80 }
  0x39   : > { %s7364_s16 = sshll.u32 %s446_s14, 5 }
  0x3a   : > { %s8321_s18 = scalar_lea.vmem [#allocation18], %s7364_s16 }
  0x3d   : > { %v473_v0 = vld [vmem:[#allocation14 + $0x50] sm:$0xff]  ;;  %v474_v1 = vld [vmem:[#allocation14 + $0x58] sm:$0xff]  ;;  %v462_v6 = vld [vmem:[%s12683_s2] sm:$0x1]  ;;  %vm485_vm0 = vcmask 195584   ;;  %vm576_vm1 = vcmask 1040384   ;;  %v583_v26 = vlaneseq }
  0x3e   : > { %v469_v2 = vld [vmem:[#allocation14 + $0x30] sm:$0xff]  ;;  %542 = vmatpush.msra.mxu2 %v473_v0  ;;  %562 = vmatpush.msra.mxu3 %v474_v1  ;;  %v470_v3 = vld [vmem:[#allocation14 + $0x38] sm:$0xff]  ;;  %v472_v7 = vld [vmem:[#allocation14 + $0x48] sm:$0xff]  ;;  %vm578_vm2 = vcmask 1042434   ;;  %vm580_vm3 = vcmask 1041408  }
  0x3f   : > { %v465_v4 = vld [vmem:[#allocation14 + $0x10] sm:$0xff]  ;;  %v466_v5 = vld [vmem:[#allocation14 + $0x18] sm:$0xff]  ;;  %v458_v8 = vld [vmem:[%s12684_s3] sm:$0x1]  ;;  %522 = vmatpush.msra.mxu1 %v472_v7  ;;  %vm585_vm4 = vcmp.lt.s32.totalorder %v583_v26, 512 }
  0x40   : > { %543 = vmatpush.msra.mxu2 %v469_v2  ;;  %563 = vmatpush.msra.mxu3 %v470_v3  ;;  %459 = vst [vmem:[#allocation2] sm:$0x1] %v458_v8  ;;  %v460_v9 = vld [vmem:[#allocation9] sm:$0x1]  ;;  %v471_v10 = vld [vmem:[#allocation14 + $0x40] sm:$0xff] }
  0x41   : > { %461 = vst [vmem:[#allocation3] sm:$0x1] %v460_v9  ;;  %502 = vmatpush.msra.mxu0 %v471_v10  ;;  %v468_v11 = vld [vmem:[#allocation14 + $0x28] sm:$0xff]  ;;  %v467_v12 = vld [vmem:[#allocation14 + $0x20] sm:$0xff] }
  0x42   : > { %544 = vmatpush.msra.mxu2 %v465_v4  ;;  %564 = vmatpush.msra.mxu3 %v466_v5  ;;  %v464_v13 = vld [vmem:[#allocation14 + $0x8] sm:$0xff]  ;;  %v463_v14 = vld [vmem:[#allocation14] sm:$0xff] }
  0x43   : > { %7368 = vmatmul.msk.f32.vlgmr.msra.gmra.mxu2 %vm485_vm0, %v462_v6  ;;  %7369 = vmatmul.msk.f32.vlgmr.msra.gmra.mxu3 %vm485_vm0, %v462_v6  ;;  %v475_v15 = vld [vmem:[%s12689_s8] sm:$0xf] }
  0x44   : > { %523 = vmatpush.msra.mxu1 %v468_v11  ;;  %503 = vmatpush.msra.mxu0 %v467_v12  ;;  %v478_v16 = vperm.slane %v475_v15, 1  ;;  %v477_v17 = vperm.slane %v475_v15, 0  ;;  %v479_v18 = vperm.slane %v475_v15, 2  ;;  %v480_v19 = vperm.slane %v475_v15, 3 }
  0x46   : > { %524 = vmatpush.msra.mxu1 %v464_v13  ;;  %504 = vmatpush.msra.mxu0 %v463_v14 }
  0x47   : > { %7367 = vmatmul.msk.f32.vlgmr.msra.gmra.mxu1 %vm485_vm0, %v462_v6  ;;  %7366 = vmatmul.msk.f32.vlgmr.msra.gmra.mxu0 %vm485_vm0, %v462_v6 }
  0xc4   : > { %v526_v20 = vpop.f32.mrf.mxu1  ;;  %v506_v21 = vpop.f32.mrf.mxu0 }
  0xc5   : > { %v527_v22 = vadd.f32 %v526_v20, %v478_v16  ;;  %v507_v23 = vadd.f32 %v506_v21, %v477_v17 }
  0xc6   : > { %v546_v24 = vpop.f32.mrf.mxu2  ;;  %v566_v25 = vpop.f32.mrf.mxu3 }
  0xc7   : > { %v573_v27 = vrot.slane %v527_v22, 7  ;;  %v547_v28 = vadd.f32 %v546_v24, %v479_v18  ;;  %v567_v29 = vadd.f32 %v566_v25, %v480_v19 }
  0xc9   : > { %v574_v30 = vrot.slane %v547_v28, 6  ;;  %v575_v31 = vrot.slane %v567_v29, 5  ;;  %v577_v32 = vsel %vm576_vm1, %v507_v23, %v573_v27 }
  0xcb   : > { %v579_v33 = vsel %vm578_vm2, %v574_v30, %v575_v31 }
  0xcc   : > { %v581_v34 = vsel %vm580_vm3, %v577_v32, %v579_v33 }
  0xcd   : > { %587 = vst.msk [vmem:[#allocation4] sm:$0xf] %vm585_vm4, %v581_v34 }
  0xce PF: > { %v8338_v35 = vld [vmem:[#allocation15 + $0x1e0] sm:$0xff]  ;;  %v8350_v39 = vld [vmem:[#allocation15 + $0x1f0] sm:$0xff]  ;;  %v8352_v40 = vld [vmem:[#allocation15 + $0x1f8] sm:$0xff]  ;;  %s8665_s5 = sshll.u32 %s8236_s1, 5  ;;  %vm751_vm5 = vcmask 1042434   ;;  %vm749_vm6 = vcmask 1040384  }
  0xcf   : > { %v8340_v36 = vld [vmem:[#allocation15 + $0x1c0] sm:$0xff]  ;;  %662 = vmatpush.msra.mxu1 %v8338_v35  ;;  %867 = vmatpush.msra.mxu0 %v8338_v35  ;;  %v8356_v41 = vld [vmem:[#allocation15 + $0x1d0] sm:$0xff]  ;;  %v8358_v42 = vld [vmem:[#allocation15 + $0x1d8] sm:$0xff]  ;;  %s593_s0 = sld [smem:[#allocation7 + %s8665_s5]]  ;;  %vm753_vm7 = vcmask 1041408   ;;  %s797_s7 = sadd.s32 1, %s8665_s5 }
  0xd0   : > { %v8344_v37 = vld [vmem:[#allocation15 + $0x1a0] sm:$0xff]  ;;  %702 = vmatpush.msra.mxu2 %v8350_v39  ;;  %722 = vmatpush.msra.mxu3 %v8352_v40  ;;  %v8363_v44 = vld [vmem:[#allocation15 + $0x1b0] sm:$0xff]  ;;  %v8368_v45 = vld [vmem:[#allocation15 + $0x1b8] sm:$0xff]  ;;  %s8674_s25 = sld [smem:[#allocation8]]  ;;  %s999_s30 = sadd.s32 2, %s8665_s5 }
  0xd1   : > { %663 = vmatpush.msra.mxu1 %v8340_v36  ;;  %868 = vmatpush.msra.mxu0 %v8340_v36  ;;  %v8348_v38 = vld [vmem:[#allocation15 + $0x180] sm:$0xff]  ;;  %v8373_v47 = vld [vmem:[#allocation15 + $0x190] sm:$0xff]  ;;  %v8378_v48 = vld [vmem:[#allocation15 + $0x198] sm:$0xff]  ;;  %s798_s26 = sld [smem:[#allocation7 + %s797_s7]]  ;;  %s1403_s23 = sadd.s32 4, %s8665_s5 }
  0xd2   : > { %v8360_v43 = vld [vmem:[#allocation15 + $0x160] sm:$0xff]  ;;  %703 = vmatpush.msra.mxu2 %v8356_v41  ;;  %723 = vmatpush.msra.mxu3 %v8358_v42  ;;  %v8383_v50 = vld [vmem:[#allocation15 + $0x170] sm:$0xff]  ;;  %v8388_v51 = vld [vmem:[#allocation15 + $0x178] sm:$0xff]  ;;  %s1000_s17 = sld [smem:[#allocation7 + %s999_s30]] }
  0xd3   : > { %664 = vmatpush.msra.mxu1 %v8344_v37  ;;  %869 = vmatpush.msra.mxu0 %v8344_v37  ;;  %v8370_v46 = vld [vmem:[#allocation15 + $0x140] sm:$0xff]  ;;  %v8393_v53 = vld [vmem:[#allocation15 + $0x150] sm:$0xff]  ;;  %v8398_v54 = vld [vmem:[#allocation15 + $0x158] sm:$0xff] }
  0xd4   : > { %704 = vmatpush.msra.mxu2 %v8363_v44  ;;  %v8380_v49 = vld [vmem:[#allocation15 + $0x120] sm:$0xff]  ;;  %724 = vmatpush.msra.mxu3 %v8368_v45  ;;  %v8403_v56 = vld [vmem:[#allocation15 + $0x130] sm:$0xff]  ;;  %v8408_v57 = vld [vmem:[#allocation15 + $0x138] sm:$0xff] }
  0xd5   : > { %665 = vmatpush.msra.mxu1 %v8348_v38  ;;  %870 = vmatpush.msra.mxu0 %v8348_v38  ;;  %v8390_v52 = vld [vmem:[#allocation15 + $0x100] sm:$0xff]  ;;  %v8413_v59 = vld [vmem:[#allocation15 + $0x110] sm:$0xff]  ;;  %v8418_v60 = vld [vmem:[#allocation15 + $0x118] sm:$0xff]  ;;  %s7371_s21 = sshll.u32 %s593_s0, 2  ;;  %s1605_s0 = sadd.s32 5, %s8665_s5 }
  0xd6   : > { %705 = vmatpush.msra.mxu2 %v8373_v47  ;;  %725 = vmatpush.msra.mxu3 %v8378_v48  ;;  %v8400_v55 = vld [vmem:[#allocation15 + $0xe0] sm:$0xff]  ;;  %v8423_v62 = vld [vmem:[#allocation15 + $0xf0] sm:$0xff]  ;;  %v8428_v63 = vld [vmem:[#allocation15 + $0xf8] sm:$0xff]  ;;  %s595_s29 = scalar_lea.vmem [#allocation12], %s7371_s21  ;;  %p790_p0 = scmp.lt.s32.totalorder %s8665_s5, %s8674_s25 }
  0xd7   : > { %666 = vmatpush.msra.mxu1 %v8360_v43  ;;  %871 = vmatpush.msra.mxu0 %v8360_v43  ;;  %v8410_v58 = vld [vmem:[#allocation15 + $0xc0] sm:$0xff]  ;;  %v8433_v1 = vld [vmem:[#allocation15 + $0xd0] sm:$0xff]  ;;  %v8438_v2 = vld [vmem:[#allocation15 + $0xd8] sm:$0xff]  ;;  %s7373_s28 = sshll.u32 %s798_s26, 2  ;;  %p8718_p1 = scmp.lt.s32.totalorder %s797_s7, %s8674_s25 }
  0xd8   : > { %706 = vmatpush.msra.mxu2 %v8383_v50  ;;  %726 = vmatpush.msra.mxu3 %v8388_v51  ;;  %v8420_v61 = vld [vmem:[#allocation15 + $0xa0] sm:$0xff]  ;;  %v8443_v4 = vld [vmem:[#allocation15 + $0xb0] sm:$0xff]  ;;  %v8448_v5 = vld [vmem:[#allocation15 + $0xb8] sm:$0xff]  ;;  %s791_s20 = scalar_select %p790_p0, 1, 0 }
  0xd9   : > { %667 = vmatpush.msra.mxu1 %v8370_v46  ;;  %872 = vmatpush.msra.mxu0 %v8370_v46  ;;  %v8430_v0 = vld [vmem:[#allocation15 + $0x80] sm:$0xff]  ;;  %v8453_v7 = vld [vmem:[#allocation15 + $0x90] sm:$0xff]  ;;  %v8458_v8 = vld [vmem:[#allocation15 + $0x98] sm:$0xff]  ;;  %s800_s16 = scalar_lea.vmem [#allocation12], %s7373_s28  ;;  %s7375_s19 = sshll.u32 %s1000_s17, 2 }
  0xda   : > { %707 = vmatpush.msra.mxu2 %v8393_v53  ;;  %727 = vmatpush.msra.mxu3 %v8398_v54  ;;  %v8440_v3 = vld [vmem:[#allocation15 + $0x60] sm:$0xff]  ;;  %v8463_v10 = vld [vmem:[#allocation15 + $0x70] sm:$0xff]  ;;  %v8468_v11 = vld [vmem:[#allocation15 + $0x78] sm:$0xff]  ;;  %s993_s24 = scalar_select %p8718_p1, 1, 0 }
  0xdb   : > { %668 = vmatpush.msra.mxu1 %v8380_v49  ;;  %873 = vmatpush.msra.mxu0 %v8380_v49  ;;  %v8450_v6 = vld [vmem:[#allocation15 + $0x40] sm:$0xff]  ;;  %v8473_v13 = vld [vmem:[#allocation15 + $0x50] sm:$0xff]  ;;  %v8477_v14 = vld [vmem:[#allocation15 + $0x1e8] sm:$0xff]  ;;  %s1002_s27 = scalar_lea.vmem [#allocation12], %s7375_s19  ;;  %p8870_p3 = scmp.lt.s32.totalorder %s999_s30, %s8674_s25 }
  0xdc   : > { %708 = vmatpush.msra.mxu2 %v8403_v56  ;;  %728 = vmatpush.msra.mxu3 %v8408_v57  ;;  %v8460_v9 = vld [vmem:[#allocation15 + $0x20] sm:$0xff]  ;;  %v8480_v15 = vld [vmem:[#allocation15 + $0x58] sm:$0xff]  ;;  %v8483_v16 = vld [vmem:[#allocation15 + $0x30] sm:$0xff]  ;;  %p9125_p7 = scmp.lt.s32.totalorder %s1403_s23, %s8674_s25  ;;  %p9277_p8 = scmp.lt.s32.totalorder %s1605_s0, %s8674_s25 }
  0xdd   : > { %669 = vmatpush.msra.mxu1 %v8390_v52  ;;  %874 = vmatpush.msra.mxu0 %v8390_v52  ;;  %v8470_v12 = vld [vmem:[#allocation15] sm:$0xff]  ;;  %v8485_v17 = vld [vmem:[#allocation2] sm:$0x1]  ;;  %v8492_v19 = vld [vmem:[#allocation15 + $0x38] sm:$0xff]  ;;  %s1195_s21 = scalar_select %p8870_p3, 1, 0 }
  0xde   : > { %709 = vmatpush.msra.mxu2 %v8413_v59  ;;  %729 = vmatpush.msra.mxu3 %v8418_v60  ;;  %v8489_v18 = vld [vmem:[#allocation15 + $0x1c8] sm:$0xff]  ;;  %v8496_v20 = vld [vmem:[#allocation15 + $0x10] sm:$0xff]  ;;  %v8502_v22 = vld [vmem:[#allocation15 + $0x18] sm:$0xff]  ;;  %s1807_s28 = sadd.s32 6, %s8665_s5  ;;  %s2009_s19 = sadd.s32 7, %s8665_s5 }
  0xdf   : > { %670 = vmatpush.msra.mxu1 %v8400_v55  ;;  %875 = vmatpush.msra.mxu0 %v8400_v55  ;;  %v8498_v21 = vld [vmem:[#allocation15 + $0x1a8] sm:$0xff]  ;;  %p9442_p9 = scmp.lt.s32.totalorder %s1807_s28, %s8674_s25  ;;  %p9530_p10 = scmp.lt.s32.totalorder %s2009_s19, %s8674_s25 }
  0xe0   : > { %710 = vmatpush.msra.mxu2 %v8423_v62  ;;  %730 = vmatpush.msra.mxu3 %v8428_v63  ;;  %v8506_v23 = vld [vmem:[#allocation15 + $0x188] sm:$0xff] }
  0xe1   : > { %671 = vmatpush.msra.mxu1 %v8410_v58  ;;  %876 = vmatpush.msra.mxu0 %v8410_v58  ;;  %v8512_v24 = vld [vmem:[#allocation15 + $0x168] sm:$0xff] }
  0xe2   : > { %711 = vmatpush.msra.mxu2 %v8433_v1  ;;  %731 = vmatpush.msra.mxu3 %v8438_v2  ;;  %v8518_v25 = vld [vmem:[#allocation15 + $0x148] sm:$0xff] }
  0xe3   : > { %672 = vmatpush.msra.mxu1 %v8420_v61  ;;  %877 = vmatpush.msra.mxu0 %v8420_v61  ;;  %v8524_v26 = vld [vmem:[#allocation15 + $0x128] sm:$0xff] }
  0xe4   : > { %712 = vmatpush.msra.mxu2 %v8443_v4  ;;  %732 = vmatpush.msra.mxu3 %v8448_v5  ;;  %v8530_v27 = vld [vmem:[#allocation15 + $0x108] sm:$0xff] }
  0xe5   : > { %673 = vmatpush.msra.mxu1 %v8430_v0  ;;  %878 = vmatpush.msra.mxu0 %v8430_v0  ;;  %v8536_v28 = vld [vmem:[#allocation15 + $0xe8] sm:$0xff] }
  0xe6   : > { %713 = vmatpush.msra.mxu2 %v8453_v7  ;;  %733 = vmatpush.msra.mxu3 %v8458_v8  ;;  %v8542_v29 = vld [vmem:[#allocation15 + $0xc8] sm:$0xff] }
  0xe7   : > { %674 = vmatpush.msra.mxu1 %v8440_v3  ;;  %879 = vmatpush.msra.mxu0 %v8440_v3  ;;  %v8548_v30 = vld [vmem:[#allocation15 + $0xa8] sm:$0xff] }
  0xe8   : > { %714 = vmatpush.msra.mxu2 %v8463_v10  ;;  %734 = vmatpush.msra.mxu3 %v8468_v11  ;;  %v8554_v31 = vld [vmem:[#allocation15 + $0x88] sm:$0xff] }
  0xe9   : > { %675 = vmatpush.msra.mxu1 %v8450_v6  ;;  %880 = vmatpush.msra.mxu0 %v8450_v6  ;;  %v8560_v32 = vld [vmem:[#allocation15 + $0x68] sm:$0xff] }
  0xea   : > { %715 = vmatpush.msra.mxu2 %v8473_v13  ;;  %735 = vmatpush.msra.mxu3 %v8480_v15  ;;  %v8566_v33 = vld [vmem:[#allocation15 + $0x48] sm:$0xff] }
  0xeb   : > { %676 = vmatpush.msra.mxu1 %v8460_v9  ;;  %881 = vmatpush.msra.mxu0 %v8460_v9  ;;  %v8572_v34 = vld [vmem:[#allocation15 + $0x28] sm:$0xff] }
  0xec   : > { %716 = vmatpush.msra.mxu2 %v8483_v16  ;;  %736 = vmatpush.msra.mxu3 %v8492_v19 }
  0xed   : > { %677 = vmatpush.msra.mxu1 %v8470_v12  ;;  %882 = vmatpush.msra.mxu0 %v8470_v12 }
  0xee   : > { %678 = vmatmul.f32.vlgmr.msra.gmra.mxu1 %v8485_v17  ;;  %717 = vmatpush.msra.mxu2 %v8496_v20 }
  0xef   : > { %682 = vmatpush.msrb.mxu1 %v8477_v14  ;;  %737 = vmatpush.msra.mxu3 %v8502_v22 }
  0xf0   : > { %718 = vmatmul.f32.vlgmr.msra.gmra.mxu2 %v8485_v17  ;;  %738 = vmatmul.f32.vlgmr.msra.gmra.mxu3 %v8485_v17 }
  0xf1   : > { %683 = vmatpush.msrb.mxu1 %v8489_v18  ;;  %907 = vmatpush.msrb.mxu2 %v8350_v39 }
  0xf2   : > { %927 = vmatpush.msrb.mxu3 %v8352_v40  ;;  %1069 = vmatpush.msrb.mxu0 %v8338_v35  ;;  %v8578_v35 = vld [vmem:[#allocation15 + $0x8] sm:$0xff] }
  0xf3   : > { %684 = vmatpush.msrb.mxu1 %v8498_v21  ;;  %908 = vmatpush.msrb.mxu2 %v8356_v41 }
  0xf4   : > { %928 = vmatpush.msrb.mxu3 %v8358_v42  ;;  %1070 = vmatpush.msrb.mxu0 %v8340_v36 }
  0xf5   : > { %685 = vmatpush.msrb.mxu1 %v8506_v23  ;;  %909 = vmatpush.msrb.mxu2 %v8363_v44 }
  0xf6   : > { %929 = vmatpush.msrb.mxu3 %v8368_v45  ;;  %1071 = vmatpush.msrb.mxu0 %v8344_v37 }
  0xf7   : > { %686 = vmatpush.msrb.mxu1 %v8512_v24  ;;  %910 = vmatpush.msrb.mxu2 %v8373_v47 }
  0xf8   : > { %930 = vmatpush.msrb.mxu3 %v8378_v48  ;;  %1072 = vmatpush.msrb.mxu0 %v8348_v38 }
  0xf9   : > { %687 = vmatpush.msrb.mxu1 %v8518_v25  ;;  %911 = vmatpush.msrb.mxu2 %v8383_v50 }
  0xfa   : > { %931 = vmatpush.msrb.mxu3 %v8388_v51  ;;  %1073 = vmatpush.msrb.mxu0 %v8360_v43 }
  0xfb   : > { %688 = vmatpush.msrb.mxu1 %v8524_v26  ;;  %912 = vmatpush.msrb.mxu2 %v8393_v53 }
  0xfc   : > { %932 = vmatpush.msrb.mxu3 %v8398_v54  ;;  %1074 = vmatpush.msrb.mxu0 %v8370_v46 }
  0xfd   : > { %689 = vmatpush.msrb.mxu1 %v8530_v27  ;;  %913 = vmatpush.msrb.mxu2 %v8403_v56 }
  0xfe   : > { %933 = vmatpush.msrb.mxu3 %v8408_v57  ;;  %1075 = vmatpush.msrb.mxu0 %v8380_v49  ;;  %v8668_v49 = vld [vmem:[#allocation4] sm:$0xf] }
  0xff   : > { %690 = vmatpush.msrb.mxu1 %v8536_v28  ;;  %914 = vmatpush.msrb.mxu2 %v8413_v59 }
 0x100   : > { %934 = vmatpush.msrb.mxu3 %v8418_v60  ;;  %1076 = vmatpush.msrb.mxu0 %v8390_v52  ;;  %v596_v52 = vld [vmem:[%s595_s29] sm:$0xf]  ;;  %s1201_s29 = sadd.s32 3, %s8665_s5 }
 0x101   : > { %691 = vmatpush.msrb.mxu1 %v8542_v29  ;;  %915 = vmatpush.msrb.mxu2 %v8423_v62  ;;  %p9035_p4 = scmp.lt.s32.totalorder %s1201_s29, %s8674_s25 }
 0x102   : > { %935 = vmatpush.msrb.mxu3 %v8428_v63  ;;  %1077 = vmatpush.msrb.mxu0 %v8400_v55  ;;  %v597_v55 = vadd.f32 %v596_v52, %v8668_v49 }
 0x103   : > { %692 = vmatpush.msrb.mxu1 %v8548_v30  ;;  %916 = vmatpush.msrb.mxu2 %v8433_v1 }
 0x104   : > { %936 = vmatpush.msrb.mxu3 %v8438_v2  ;;  %1078 = vmatpush.msrb.mxu0 %v8410_v58 }
 0x105   : > { %693 = vmatpush.msrb.mxu1 %v8554_v31  ;;  %917 = vmatpush.msrb.mxu2 %v8443_v4 }
 0x106   : > { %937 = vmatpush.msrb.mxu3 %v8448_v5  ;;  %1079 = vmatpush.msrb.mxu0 %v8420_v61 }
 0x107   : > { %694 = vmatpush.msrb.mxu1 %v8560_v32  ;;  %918 = vmatpush.msrb.mxu2 %v8453_v7 }
 0x108   : > { %938 = vmatpush.msrb.mxu3 %v8458_v8  ;;  %1080 = vmatpush.msrb.mxu0 %v8430_v0 }
 0x109   : > { %695 = vmatpush.msrb.mxu1 %v8566_v33  ;;  %919 = vmatpush.msrb.mxu2 %v8463_v10 }
 0x10a   : > { %939 = vmatpush.msrb.mxu3 %v8468_v11  ;;  %1081 = vmatpush.msrb.mxu0 %v8440_v3 }
 0x10b   : > { %696 = vmatpush.msrb.mxu1 %v8572_v34  ;;  %920 = vmatpush.msrb.mxu2 %v8473_v13 }
 0x10c   : > { %940 = vmatpush.msrb.mxu3 %v8480_v15  ;;  %1082 = vmatpush.msrb.mxu0 %v8450_v6 }
 0x10d   : > { %697 = vmatpush.msrb.mxu1 %v8578_v35  ;;  %921 = vmatpush.msrb.mxu2 %v8483_v16 }
 0x10e   : > { %698 = vmatmul.f32.vlgmr.msrb.gmra.mxu1 %v8485_v17  ;;  %941 = vmatpush.msrb.mxu3 %v8492_v19 }
 0x10f   : > { %887 = vmatpush.msra.mxu1 %v8477_v14  ;;  %922 = vmatpush.msrb.mxu2 %v8496_v20 }
 0x110   : > { %942 = vmatpush.msrb.mxu3 %v8502_v22  ;;  %1083 = vmatpush.msrb.mxu0 %v8460_v9  ;;  %v592_v9 = vld [vmem:[#allocation3] sm:$0x1] }
 0x111   : > { %888 = vmatpush.msra.mxu1 %v8489_v18  ;;  %1109 = vmatpush.msra.mxu2 %v8350_v39 }
 0x112   : > { %1129 = vmatpush.msra.mxu3 %v8352_v40  ;;  %1084 = vmatpush.msrb.mxu0 %v8470_v12  ;;  %v792_v12 = vstv %s791_s20  ;;  %s8919_s20 = sld [smem:[#allocation7 + %s1201_s29]] }
 0x113   : > { %889 = vmatpush.msra.mxu1 %v8498_v21  ;;  %1110 = vmatpush.msra.mxu2 %v8356_v41  ;;  %vm793_vm12 = vcmp.eq.s32.totalorder %v792_v12, 1 }
 0x114   : > { %1130 = vmatpush.msra.mxu3 %v8358_v42 }
 0x115   : > { %890 = vmatpush.msra.mxu1 %v8506_v23  ;;  %1111 = vmatpush.msra.mxu2 %v8363_v44 }
 0x116   : > { %1131 = vmatpush.msra.mxu3 %v8368_v45 }
 0x117   : > { %891 = vmatpush.msra.mxu1 %v8512_v24  ;;  %1112 = vmatpush.msra.mxu2 %v8373_v47 }
 0x118   : > { %1132 = vmatpush.msra.mxu3 %v8378_v48  ;;  %s7377_s7 = sshll.u32 %s8919_s20, 2 }
 0x119   : > { %892 = vmatpush.msra.mxu1 %v8518_v25  ;;  %1113 = vmatpush.msra.mxu2 %v8383_v50  ;;  %s1204_s26 = scalar_lea.vmem [#allocation12], %s7377_s7  ;;  %s2211_s7 = sadd.s32 8, %s8665_s5 }
 0x11a   : > { %1133 = vmatpush.msra.mxu3 %v8388_v51  ;;  %p9684_p11 = scmp.lt.s32.totalorder %s2211_s7, %s8674_s25 }
 0x11b   : > { %893 = vmatpush.msra.mxu1 %v8524_v26  ;;  %1114 = vmatpush.msra.mxu2 %v8393_v53 }
 0x11c   : > { %1134 = vmatpush.msra.mxu3 %v8398_v54 }
 0x11d   : > { %894 = vmatpush.msra.mxu1 %v8530_v27  ;;  %1115 = vmatpush.msra.mxu2 %v8403_v56 }
 0x11e   : > { %1135 = vmatpush.msra.mxu3 %v8408_v57 }
 0x11f   : > { %895 = vmatpush.msra.mxu1 %v8536_v28  ;;  %1116 = vmatpush.msra.mxu2 %v8413_v59 }
 0x120   : > { %1136 = vmatpush.msra.mxu3 %v8418_v60 }
 0x121   : > { %896 = vmatpush.msra.mxu1 %v8542_v29  ;;  %1117 = vmatpush.msra.mxu2 %v8423_v62 }
 0x122   : > { %1137 = vmatpush.msra.mxu3 %v8428_v63 }
 0x123   : > { %897 = vmatpush.msra.mxu1 %v8548_v30  ;;  %1118 = vmatpush.msra.mxu2 %v8433_v1 }
 0x124   : > { %1138 = vmatpush.msra.mxu3 %v8438_v2 }
 0x125   : > { %898 = vmatpush.msra.mxu1 %v8554_v31  ;;  %1119 = vmatpush.msra.mxu2 %v8443_v4 }
 0x126   : > { %1139 = vmatpush.msra.mxu3 %v8448_v5 }
 0x127   : > { %899 = vmatpush.msra.mxu1 %v8560_v32  ;;  %1120 = vmatpush.msra.mxu2 %v8453_v7 }
 0x128   : > { %1140 = vmatpush.msra.mxu3 %v8458_v8 }
 0x129   : > { %900 = vmatpush.msra.mxu1 %v8566_v33  ;;  %1121 = vmatpush.msra.mxu2 %v8463_v10 }
 0x12a   : > { %1141 = vmatpush.msra.mxu3 %v8468_v11 }
 0x12b   : > { %901 = vmatpush.msra.mxu1 %v8572_v34  ;;  %1122 = vmatpush.msra.mxu2 %v8473_v13 }
 0x12c   : > { %1142 = vmatpush.msra.mxu3 %v8480_v15 }
 0x12d   : > { %902 = vmatpush.msra.mxu1 %v8578_v35  ;;  %1123 = vmatpush.msra.mxu2 %v8483_v16 }
 0x12e   : > { %1143 = vmatpush.msra.mxu3 %v8492_v19 }
 0x12f   : > { %1089 = vmatpush.msrb.mxu1 %v8477_v14  ;;  %1124 = vmatpush.msra.mxu2 %v8496_v20 }
 0x130   : > { %1144 = vmatpush.msra.mxu3 %v8502_v22 }
 0x131   : > { %1090 = vmatpush.msrb.mxu1 %v8489_v18 }
 0x133   : > { %1091 = vmatpush.msrb.mxu1 %v8498_v21 }
 0x135   : > { %1092 = vmatpush.msrb.mxu1 %v8506_v23 }
 0x137   : > { %1093 = vmatpush.msrb.mxu1 %v8512_v24 }
 0x139   : > { %1094 = vmatpush.msrb.mxu1 %v8518_v25 }
 0x13b   : > { %1095 = vmatpush.msrb.mxu1 %v8524_v26 }
 0x13d   : > { %1096 = vmatpush.msrb.mxu1 %v8530_v27 }
 0x13f   : > { %1097 = vmatpush.msrb.mxu1 %v8536_v28 }
 0x141   : > { %1098 = vmatpush.msrb.mxu1 %v8542_v29 }
 0x143   : > { %1099 = vmatpush.msrb.mxu1 %v8548_v30 }
 0x145   : > { %1100 = vmatpush.msrb.mxu1 %v8554_v31 }
 0x147   : > { %1101 = vmatpush.msrb.mxu1 %v8560_v32 }
 0x149   : > { %1102 = vmatpush.msrb.mxu1 %v8566_v33 }
 0x14b   : > { %1103 = vmatpush.msrb.mxu1 %v8572_v34 }
 0x14d   : > { %1104 = vmatpush.msrb.mxu1 %v8578_v35 }
 0x16b   : > { %v679_v36 = vpop.f32.mrf.mxu1 }
 0x173   : > { %v719_v37 = vpop.f32.mrf.mxu2  ;;  %v739_v38 = vpop.f32.mrf.mxu3 }
 0x174   : > { %v747_v43 = vrot.slane %v719_v37, 6  ;;  %v748_v46 = vrot.slane %v739_v38, 5 }
 0x176   : > { %v752_v56 = vsel %vm751_vm5, %v747_v43, %v748_v46  ;;  %v994_v46 = vstv %s993_s24  ;;  %s1404_s24 = sld [smem:[#allocation7 + %s1403_s23]] }
 0x177   : > { %vm995_vm1 = vcmp.eq.s32.totalorder %v994_v46, 1 }
 0x17c   : > { %s7379_s30 = sshll.u32 %s1404_s24, 2 }
 0x17d   : > { %s1406_s17 = scalar_lea.vmem [#allocation12], %s7379_s30  ;;  %s2413_s30 = sadd.s32 9, %s8665_s5 }
 0x17e   : > { %p9849_p12 = scmp.lt.s32.totalorder %s2413_s30, %s8674_s25 }
 0x18b   : > { %v699_v53 = vpop.f32.mrf.mxu1 }
 0x18c   : > { %v746_v54 = vrot.slane %v699_v53, 7 }
 0x18e   : > { %v750_v57 = vsel %vm749_vm6, %v679_v36, %v746_v54 }
 0x18f   : > { %v754_v58 = vsel %vm753_vm7, %v750_v57, %v752_v56 }
 0x190   : > { %v756_v59 = vadd.f32 %v754_v58, %v597_v55 }
 0x192   : > { %v7372_v60 = vmul.f32 -1.442695, %v756_v59  ;;  %v777_v1 = vrot.slane %v756_v59, 2 }
 0x194   : > { %7560 = vpow2.f32 %v7372_v60 }
 0x19a   : > { %v7561_v61 = vpop.eup %7560 }
 0x19b   : > { %v760_v62 = vadd.f32 1.0, %v7561_v61  ;;  %v8739_v61 = vld [vmem:[#allocation15 + $0x1e0] sm:$0xff] }
 0x19d   : > { %7562 = vrcp.f32 %v760_v62  ;;  %v772_v3 = vand.u32 2147483648, %v760_v62  ;;  %v770_v5 = vand.u32 2147483647, %v760_v62  ;;  %vm766_vm9 = vweird.f32 %v760_v62 }
 0x19e   : > { %7564 = vtanh.f32 %v777_v1  ;;  %v8751_v1 = vld [vmem:[#allocation15 + $0x160] sm:$0xff] }
 0x19f   : > { %v773_v7 = vor.u32 1.1754944e-38, %v772_v3  ;;  %vm771_vm11 = vcmp.eq.f32.partialorder %v770_v5, 8.507059e+37  ;;  %v8758_v5 = vld [vmem:[#allocation15 + $0x158] sm:$0xff] }
 0x1a3   : > { %v7563_v63 = vpop.eup %7562 }
 0x1a4   : > { %v762_v0 = vmul.f32 %v7563_v63, %v760_v62  ;;  %vm767_vm8 = vweird.f32 %v7563_v63  ;;  %v7565_v13 = vpop.eup %7564  ;;  %v8742_v62 = vld [vmem:[#allocation15 + $0x1c0] sm:$0xff] }
 0x1a5   : > { %vm768_vm10 = vmor %vm766_vm9, %vm767_vm8 }
 0x1a6   : > { %v763_v2 = vsub.f32 1.0, %v762_v0  ;;  %v8748_v0 = vld [vmem:[#allocation15 + $0x180] sm:$0xff] }
 0x1a8   : > { %v764_v4 = vmul.f32 %v7563_v63, %v763_v2  ;;  %v8753_v2 = vld [vmem:[#allocation15 + $0x150] sm:$0xff] }
 0x1aa   : > { %v765_v6 = vadd.f32 %v7563_v63, %v764_v4  ;;  %v8755_v4 = vld [vmem:[#allocation15 + $0x140] sm:$0xff] }
 0x1ac   : > { %v769_v8 = vsel %vm768_vm10, %v7563_v63, %v765_v6  ;;  %v8745_v63 = vld [vmem:[#allocation15 + $0x1a0] sm:$0xff]  ;;  %v8760_v6 = vld [vmem:[#allocation15 + $0x130] sm:$0xff] }
 0x1ad   : > { %v774_v10 = vsel %vm771_vm11, %v773_v7, %v769_v8  ;;  %v8764_v7 = vld [vmem:[#allocation15 + $0x138] sm:$0xff]  ;;  %v8766_v8 = vld [vmem:[#allocation15 + $0x110] sm:$0xff] }
 0x1ae   : > { %v781_v11 = vrot.slane %v774_v10, 1  ;;  %v784_v16 = vmul.f32 %v7565_v13, %v774_v10  ;;  %v787_v22 = vrot.slane %v774_v10, 3  ;;  %v8768_v10 = vld [vmem:[#allocation15 + $0x120] sm:$0xff]  ;;  %v8775_v13 = vld [vmem:[#allocation15 + $0xf0] sm:$0xff] }
 0x1b0   : > { %v783_v15 = vmul.f32 %v781_v11, %v592_v9  ;;  %v8771_v11 = vld [vmem:[#allocation15 + $0x118] sm:$0xff] }
 0x1b2   : > { %v785_v19 = vadd.f32 %v784_v16, %v783_v15 }
 0x1b4   : > { %7566 = vtanh.f32 %v785_v19  ;;  %v8678_v20 = vsel %vm793_vm12, %v785_v19, %v592_v9  ;;  %v1003_v9 = vld [vmem:[%s1002_s27] sm:$0xf]  ;;  %v8777_v19 = vld [vmem:[#allocation15 + $0x100] sm:$0xff]  ;;  %s1599_s27 = scalar_select %p9125_p7, 1, 0 }
 0x1ba   : > { %v7567_v34 = vpop.eup %7566 }
 0x1bb   : > { %v789_v35 = vmul.f32 %v7567_v34, %v787_v22  ;;  %v1004_v34 = vadd.f32 %v1003_v9, %v8668_v49 }
 0x1bd   : > { %v8681_v36 = vsel %vm793_vm12, %v789_v35, %v8485_v17 }
 0x1be   : > { %796 = vst [vmem:[#allocation5] sm:$0x1] %v8681_v36  ;;  %883 = vmatmul.f32.vlgmr.msra.gmra.mxu0 %v8681_v36  ;;  %903 = vmatmul.f32.vlgmr.msra.gmra.mxu1 %v8681_v36 }
 0x1bf   : > { %923 = vmatmul.f32.vlgmr.msrb.gmra.mxu2 %v8681_v36  ;;  %943 = vmatmul.f32.vlgmr.msrb.gmra.mxu3 %v8681_v36 }
 0x1c0   : > { %1291 = vmatpush.msra.mxu1 %v8477_v14  ;;  %1311 = vmatpush.msrb.mxu2 %v8350_v39 }
 0x1c1   : > { %1331 = vmatpush.msrb.mxu3 %v8352_v40  ;;  %v801_v40 = vld [vmem:[%s800_s16] sm:$0xf]  ;;  %1271 = vmatpush.msra.mxu0 %v8739_v61  ;;  %s1397_s16 = scalar_select %p9035_p4, 1, 0 }
 0x1c2   : > { %1292 = vmatpush.msra.mxu1 %v8489_v18  ;;  %1312 = vmatpush.msrb.mxu2 %v8356_v41 }
 0x1c3   : > { %1332 = vmatpush.msrb.mxu3 %v8358_v42  ;;  %1272 = vmatpush.msra.mxu0 %v8742_v62 }
 0x1c4   : > { %1293 = vmatpush.msra.mxu1 %v8498_v21  ;;  %1313 = vmatpush.msrb.mxu2 %v8363_v44 }
 0x1c5   : > { %1333 = vmatpush.msrb.mxu3 %v8368_v45  ;;  %1273 = vmatpush.msra.mxu0 %v8745_v63 }
 0x1c6   : > { %1294 = vmatpush.msra.mxu1 %v8506_v23  ;;  %1314 = vmatpush.msrb.mxu2 %v8373_v47  ;;  %v802_v47 = vadd.f32 %v801_v40, %v8668_v49  ;;  %v8787_v40 = vld [vmem:[#allocation15 + $0xe0] sm:$0xff] }
 0x1c7   : > { %1334 = vmatpush.msrb.mxu3 %v8378_v48  ;;  %1274 = vmatpush.msra.mxu0 %v8748_v0 }
 0x1c8   : > { %1295 = vmatpush.msra.mxu1 %v8512_v24  ;;  %1315 = vmatpush.msrb.mxu2 %v8383_v50 }
 0x1c9   : > { %1335 = vmatpush.msrb.mxu3 %v8388_v51  ;;  %1275 = vmatpush.msra.mxu0 %v8751_v1 }
 0x1ca   : > { %1296 = vmatpush.msra.mxu1 %v8518_v25  ;;  %1316 = vmatpush.msrb.mxu2 %v8753_v2 }
 0x1cb   : > { %1336 = vmatpush.msrb.mxu3 %v8758_v5  ;;  %1276 = vmatpush.msra.mxu0 %v8755_v4 }
 0x1cc   : > { %1297 = vmatpush.msra.mxu1 %v8524_v26  ;;  %1317 = vmatpush.msrb.mxu2 %v8760_v6 }
 0x1cd   : > { %1337 = vmatpush.msrb.mxu3 %v8764_v7  ;;  %1277 = vmatpush.msra.mxu0 %v8768_v10 }
 0x1ce   : > { %1298 = vmatpush.msra.mxu1 %v8530_v27  ;;  %1318 = vmatpush.msrb.mxu2 %v8766_v8 }
 0x1cf   : > { %1338 = vmatpush.msrb.mxu3 %v8771_v11  ;;  %1278 = vmatpush.msra.mxu0 %v8777_v19 }
 0x1d0   : > { %1299 = vmatpush.msra.mxu1 %v8536_v28  ;;  %1319 = vmatpush.msrb.mxu2 %v8775_v13 }
 0x1d1   : > { %1279 = vmatpush.msra.mxu0 %v8787_v40 }
 0x1d2   : > { %1300 = vmatpush.msra.mxu1 %v8542_v29 }
 0x1d4   : > { %1301 = vmatpush.msra.mxu1 %v8548_v30 }
 0x1d6   : > { %1302 = vmatpush.msra.mxu1 %v8554_v31 }
 0x1d8   : > { %1303 = vmatpush.msra.mxu1 %v8560_v32 }
 0x1da   : > { %1304 = vmatpush.msra.mxu1 %v8566_v33 }
 0x23b   : > { %v904_v39 = vpop.f32.mrf.mxu1  ;;  %v884_v50 = vpop.f32.mrf.mxu0 }
 0x23c   : > { %v951_v41 = vrot.slane %v904_v39, 7 }
 0x23e   : > { %v954_v51 = vsel %vm749_vm6, %v884_v50, %v951_v41  ;;  %v8790_v41 = vld [vmem:[#allocation15 + $0xd8] sm:$0xff] }
 0x23f   : > { %v8802_v50 = vld [vmem:[#allocation15 + $0xb8] sm:$0xff] }
 0x242   : > { %v924_v42 = vpop.f32.mrf.mxu2  ;;  %v944_v44 = vpop.f32.mrf.mxu3 }
 0x243   : > { %v952_v45 = vrot.slane %v924_v42, 6  ;;  %v953_v48 = vrot.slane %v944_v44, 5 }
 0x245   : > { %v955_v14 = vsel %vm751_vm5, %v952_v45, %v953_v48  ;;  %v8796_v45 = vld [vmem:[#allocation15 + $0xb0] sm:$0xff]  ;;  %v8799_v48 = vld [vmem:[#allocation15 + $0xc0] sm:$0xff] }
 0x246   : > { %v956_v17 = vsel %vm753_vm7, %v954_v51, %v955_v14  ;;  %v8804_v51 = vld [vmem:[#allocation15 + $0x28] sm:$0xff]  ;;  %1280 = vmatpush.msra.mxu0 %v8799_v48 }
 0x247   : > { %v958_v18 = vadd.f32 %v956_v17, %v802_v47  ;;  %v8808_v17 = vld [vmem:[#allocation15 + $0x90] sm:$0xff]  ;;  %1305 = vmatpush.msra.mxu1 %v8804_v51 }
 0x249   : > { %v7374_v21 = vmul.f32 -1.442695, %v958_v18  ;;  %v979_v27 = vrot.slane %v958_v18, 2  ;;  %v8810_v18 = vld [vmem:[#allocation15 + $0xa0] sm:$0xff] }
 0x24a   : > { %1281 = vmatpush.msra.mxu0 %v8810_v18 }
 0x24b   : > { %7568 = vpow2.f32 %v7374_v21  ;;  %v8813_v21 = vld [vmem:[#allocation15 + $0x98] sm:$0xff] }
 0x251   : > { %v7569_v23 = vpop.eup %7568 }
 0x252   : > { %v962_v24 = vadd.f32 1.0, %v7569_v23  ;;  %v8816_v23 = vld [vmem:[#allocation15 + $0x8] sm:$0xff] }
 0x253   : > { %1306 = vmatpush.msra.mxu1 %v8816_v23 }
 0x254   : > { %7570 = vrcp.f32 %v962_v24  ;;  %v974_v29 = vand.u32 2147483648, %v962_v24  ;;  %v972_v31 = vand.u32 2147483647, %v962_v24  ;;  %vm968_vm14 = vweird.f32 %v962_v24 }
 0x255   : > { %7572 = vtanh.f32 %v979_v27  ;;  %v8825_v27 = vld [vmem:[#allocation15 + $0x78] sm:$0xff] }
 0x256   : > { %v975_v33 = vor.u32 1.1754944e-38, %v974_v29  ;;  %vm973_vm0 = vcmp.eq.f32.partialorder %v972_v31, 8.507059e+37  ;;  %v8832_v29 = vld [vmem:[#allocation15 + $0x60] sm:$0xff]  ;;  %v8839_v31 = vld [vmem:[#allocation15 + $0x30] sm:$0xff] }
 0x25a   : > { %v7571_v25 = vpop.eup %7570 }
 0x25b   : > { %v964_v26 = vmul.f32 %v7571_v25, %v962_v24  ;;  %vm969_vm13 = vweird.f32 %v7571_v25  ;;  %v7573_v52 = vpop.eup %7572 }
 0x25c   : > { %vm970_vm15 = vmor %vm968_vm14, %vm969_vm13 }
 0x25d   : > { %v965_v28 = vsub.f32 1.0, %v964_v26  ;;  %v8822_v26 = vld [vmem:[#allocation15 + $0x80] sm:$0xff] }
 0x25e   : > { %1282 = vmatpush.msra.mxu0 %v8822_v26 }
 0x25f   : > { %v966_v30 = vmul.f32 %v7571_v25, %v965_v28  ;;  %v8830_v28 = vld [vmem:[#allocation15 + $0x50] sm:$0xff] }
 0x260   : > { %1283 = vmatpush.msra.mxu0 %v8832_v29 }
 0x261   : > { %v967_v32 = vadd.f32 %v7571_v25, %v966_v30  ;;  %v8835_v30 = vld [vmem:[#allocation15 + $0x58] sm:$0xff] }
 0x263   : > { %v971_v37 = vsel %vm970_vm15, %v7571_v25, %v967_v32  ;;  %v8820_v25 = vld [vmem:[#allocation15 + $0x70] sm:$0xff]  ;;  %v8841_v32 = vld [vmem:[#allocation15 + $0x40] sm:$0xff] }
 0x264   : > { %v976_v38 = vsel %vm973_vm0, %v975_v33, %v971_v37  ;;  %v8844_v33 = vld [vmem:[#allocation15 + $0x38] sm:$0xff]  ;;  %v8848_v37 = vld [vmem:[#allocation15 + $0x10] sm:$0xff]  ;;  %1284 = vmatpush.msra.mxu0 %v8841_v32 }
 0x265   : > { %v983_v43 = vrot.slane %v976_v38, 1  ;;  %v986_v54 = vmul.f32 %v7573_v52, %v976_v38  ;;  %v989_v57 = vrot.slane %v976_v38, 3  ;;  %v8850_v38 = vld [vmem:[#allocation15 + $0x20] sm:$0xff] }
 0x266   : > { %1285 = vmatpush.msra.mxu0 %v8850_v38 }
 0x267   : > { %v985_v53 = vmul.f32 %v983_v43, %v8678_v20  ;;  %v8853_v43 = vld [vmem:[#allocation15 + $0x18] sm:$0xff] }
 0x269   : > { %v987_v55 = vadd.f32 %v986_v54, %v985_v53  ;;  %v8857_v53 = vld [vmem:[#allocation15] sm:$0xff] }
 0x26a   : > { %1286 = vmatpush.msra.mxu0 %v8857_v53 }
 0x26b   : > { %7574 = vtanh.f32 %v987_v55  ;;  %v8726_v56 = vsel %vm995_vm1, %v987_v55, %v8678_v20  ;;  %v8780_v20 = vld [vmem:[#allocation15 + $0xf8] sm:$0xff] }
 0x26c   : > { %1339 = vmatpush.msrb.mxu3 %v8780_v20 }
 0x26e   : > { %1340 = vmatpush.msrb.mxu3 %v8790_v41 }
 0x270   : > { %1341 = vmatpush.msrb.mxu3 %v8802_v50 }
 0x271   : > { %v7575_v58 = vpop.eup %7574 }
 0x272   : > { %v991_v59 = vmul.f32 %v7575_v58, %v989_v57  ;;  %1342 = vmatpush.msrb.mxu3 %v8813_v21 }
 0x274   : > { %v8729_v60 = vsel %vm995_vm1, %v991_v59, %v8681_v36  ;;  %v8785_v36 = vld [vmem:[#allocation15 + $0xd0] sm:$0xff]  ;;  %1343 = vmatpush.msrb.mxu3 %v8825_v27 }
 0x275   : > { %998 = vst [vmem:[#allocation5 + $0x1] sm:$0x1] %v8729_v60  ;;  %1085 = vmatmul.f32.vlgmr.msrb.gmra.mxu0 %v8729_v60  ;;  %1105 = vmatmul.f32.vlgmr.msrb.gmra.mxu1 %v8729_v60 }
 0x276   : > { %1125 = vmatmul.f32.vlgmr.msra.gmra.mxu2 %v8729_v60  ;;  %1145 = vmatmul.f32.vlgmr.msra.gmra.mxu3 %v8729_v60 }
 0x277   : > { %1320 = vmatpush.msrb.mxu2 %v8785_v36  ;;  %1344 = vmatpush.msrb.mxu3 %v8835_v30 }
 0x278   : > { %1473 = vmatpush.msrb.mxu0 %v8739_v61 }
 0x279   : > { %1321 = vmatpush.msrb.mxu2 %v8796_v45  ;;  %1345 = vmatpush.msrb.mxu3 %v8844_v33 }
 0x27a   : > { %1474 = vmatpush.msrb.mxu0 %v8742_v62 }
 0x27b   : > { %1322 = vmatpush.msrb.mxu2 %v8808_v17  ;;  %1346 = vmatpush.msrb.mxu3 %v8853_v43 }
 0x27c   : > { %1475 = vmatpush.msrb.mxu0 %v8745_v63 }
 0x27d   : > { %1323 = vmatpush.msrb.mxu2 %v8820_v25 }
 0x27e   : > { %1476 = vmatpush.msrb.mxu0 %v8748_v0 }
 0x27f   : > { %1324 = vmatpush.msrb.mxu2 %v8830_v28 }
 0x280   : > { %1477 = vmatpush.msrb.mxu0 %v8751_v1 }
 0x281   : > { %1325 = vmatpush.msrb.mxu2 %v8839_v31 }
 0x282   : > { %1478 = vmatpush.msrb.mxu0 %v8755_v4 }
 0x283   : > { %1326 = vmatpush.msrb.mxu2 %v8848_v37 }
 0x284   : > { %1479 = vmatpush.msrb.mxu0 %v8768_v10 }
 0x286   : > { %1480 = vmatpush.msrb.mxu0 %v8777_v19 }
 0x288   : > { %1481 = vmatpush.msrb.mxu0 %v8787_v40 }
 0x28a   : > { %1482 = vmatpush.msrb.mxu0 %v8799_v48 }
 0x28c   : > { %1483 = vmatpush.msrb.mxu0 %v8810_v18 }
 0x28e   : > { %1484 = vmatpush.msrb.mxu0 %v8822_v26 }
 0x290   : > { %1485 = vmatpush.msrb.mxu0 %v8832_v29 }
 0x292   : > { %1486 = vmatpush.msrb.mxu0 %v8841_v32 }
 0x294   : > { %1487 = vmatpush.msrb.mxu0 %v8850_v38 }
 0x296   : > { %1488 = vmatpush.msrb.mxu0 %v8857_v53 }
 0x2f2   : > { %v1106_v3 = vpop.f32.mrf.mxu1  ;;  %v1086_v39 = vpop.f32.mrf.mxu0 }
 0x2f3   : > { %v1153_v12 = vrot.slane %v1106_v3, 7 }
 0x2f5   : > { %v1156_v42 = vsel %vm749_vm6, %v1086_v39, %v1153_v12 }
 0x2f9   : > { %v1126_v15 = vpop.f32.mrf.mxu2  ;;  %v1146_v16 = vpop.f32.mrf.mxu3 }
 0x2fa   : > { %v1154_v22 = vrot.slane %v1126_v15, 6  ;;  %v1155_v35 = vrot.slane %v1146_v16, 5 }
 0x2fc   : > { %v1157_v44 = vsel %vm751_vm5, %v1154_v22, %v1155_v35  ;;  %v1196_v35 = vstv %s1195_s21  ;;  %s1606_s21 = sld [smem:[#allocation7 + %s1605_s0]] }
 0x2fd   : > { %v1158_v47 = vsel %vm753_vm7, %v1156_v42, %v1157_v44  ;;  %vm1197_vm9 = vcmp.eq.s32.totalorder %v1196_v35, 1 }
 0x2fe   : > { %v1160_v14 = vadd.f32 %v1158_v47, %v1004_v34 }
 0x300   : > { %v7376_v24 = vmul.f32 -1.442695, %v1160_v14  ;;  %v1181_v57 = vrot.slane %v1160_v14, 2 }
 0x302   : > { %7576 = vpow2.f32 %v7376_v24  ;;  %s7381_s29 = sshll.u32 %s1606_s21, 2 }
 0x303   : > { %s1608_s20 = scalar_lea.vmem [#allocation12], %s7381_s29  ;;  %s2615_s29 = sadd.s32 10, %s8665_s5 }
 0x304   : > { %p9937_p13 = scmp.lt.s32.totalorder %s2615_s29, %s8674_s25 }
 0x308   : > { %v7577_v46 = vpop.eup %7576 }
 0x309   : > { %v1164_v52 = vadd.f32 1.0, %v7577_v46 }
 0x30b   : > { %7578 = vrcp.f32 %v1164_v52  ;;  %v1176_v59 = vand.u32 2147483648, %v1164_v52  ;;  %v1174_v9 = vand.u32 2147483647, %v1164_v52  ;;  %vm1170_vm3 = vweird.f32 %v1164_v52 }
 0x30c   : > { %7580 = vtanh.f32 %v1181_v57 }
 0x30d   : > { %v1177_v15 = vor.u32 1.1754944e-38, %v1176_v59  ;;  %vm1175_vm8 = vcmp.eq.f32.partialorder %v1174_v9, 8.507059e+37 }
 0x311   : > { %v7579_v54 = vpop.eup %7578 }
 0x312   : > { %v1166_v55 = vmul.f32 %v7579_v54, %v1164_v52  ;;  %vm1171_vm2 = vweird.f32 %v7579_v54  ;;  %v7581_v39 = vpop.eup %7580 }
 0x313   : > { %vm1172_vm4 = vmor %vm1170_vm3, %vm1171_vm2 }
 0x314   : > { %v1167_v58 = vsub.f32 1.0, %v1166_v55  ;;  %v8969_v55 = vld [vmem:[#allocation15 + $0x128] sm:$0xff] }
 0x316   : > { %v1168_v3 = vmul.f32 %v7579_v54, %v1167_v58 }
 0x318   : > { %v1169_v12 = vadd.f32 %v7579_v54, %v1168_v3  ;;  %v8974_v3 = vld [vmem:[#allocation15 + $0x108] sm:$0xff] }
 0x31a   : > { %v1173_v16 = vsel %vm1172_vm4, %v7579_v54, %v1169_v12 }
 0x31b   : > { %v1178_v22 = vsel %vm1175_vm8, %v1177_v15, %v1173_v16 }
 0x31c   : > { %v1185_v34 = vrot.slane %v1178_v22, 1  ;;  %v1188_v44 = vmul.f32 %v7581_v39, %v1178_v22  ;;  %v1191_v24 = vrot.slane %v1178_v22, 3  ;;  %v8980_v22 = vld [vmem:[#allocation15 + $0xe8] sm:$0xff] }
 0x31d   : > { %v8988_v39 = vld [vmem:[#allocation15 + $0xc8] sm:$0xff] }
 0x31e   : > { %v1187_v42 = vmul.f32 %v1185_v34, %v8726_v56 }
 0x320   : > { %v1189_v47 = vadd.f32 %v1188_v44, %v1187_v42  ;;  %v8993_v44 = vld [vmem:[#allocation15 + $0xa8] sm:$0xff] }
 0x322   : > { %7582 = vtanh.f32 %v1189_v47  ;;  %v8885_v14 = vsel %vm1197_vm9, %v1189_v47, %v8726_v56  ;;  %v8921_v56 = vld [vmem:[#allocation15 + $0x1e8] sm:$0xff] }
 0x323   : > { %1493 = vmatpush.msrb.mxu1 %v8921_v56 }
 0x328   : > { %v7583_v46 = vpop.eup %7582 }
 0x329   : > { %v1193_v52 = vmul.f32 %v7583_v46, %v1191_v24  ;;  %v8998_v24 = vld [vmem:[#allocation15 + $0x88] sm:$0xff] }
 0x32a   : > { %v9003_v46 = vld [vmem:[#allocation15 + $0x68] sm:$0xff] }
 0x32b   : > { %v8892_v54 = vsel %vm1197_vm9, %v1193_v52, %v8729_v60  ;;  %v8923_v60 = vld [vmem:[#allocation15 + $0x1f0] sm:$0xff]  ;;  %v9008_v52 = vld [vmem:[#allocation15 + $0x48] sm:$0xff] }
 0x32c   : > { %1200 = vst [vmem:[#allocation5 + $0x2] sm:$0x1] %v8892_v54  ;;  %1287 = vmatmul.f32.vlgmr.msra.gmra.mxu0 %v8892_v54  ;;  %1307 = vmatmul.f32.vlgmr.msra.gmra.mxu1 %v8892_v54 }
 0x32d   : > { %1327 = vmatmul.f32.vlgmr.msrb.gmra.mxu2 %v8892_v54  ;;  %1347 = vmatmul.f32.vlgmr.msrb.gmra.mxu3 %v8892_v54 }
 0x32e   : > { %1675 = vmatpush.msra.mxu0 %v8739_v61  ;;  %v8925_v61 = vld [vmem:[#allocation15 + $0x1f8] sm:$0xff]  ;;  %1513 = vmatpush.msra.mxu2 %v8923_v60 }
 0x32f   : > { %1533 = vmatpush.msra.mxu3 %v8925_v61 }
 0x330   : > { %1676 = vmatpush.msra.mxu0 %v8742_v62  ;;  %v8930_v62 = vld [vmem:[#allocation15 + $0x1c8] sm:$0xff] }
 0x331   : > { %1494 = vmatpush.msrb.mxu1 %v8930_v62 }
 0x332   : > { %1677 = vmatpush.msra.mxu0 %v8745_v63  ;;  %v8932_v63 = vld [vmem:[#allocation15 + $0x1d0] sm:$0xff] }
 0x333   : > { %1514 = vmatpush.msra.mxu2 %v8932_v63 }
 0x334   : > { %1678 = vmatpush.msra.mxu0 %v8748_v0  ;;  %v8934_v0 = vld [vmem:[#allocation15 + $0x1d8] sm:$0xff] }
 0x335   : > { %1534 = vmatpush.msra.mxu3 %v8934_v0 }
 0x336   : > { %1679 = vmatpush.msra.mxu0 %v8751_v1  ;;  %v8940_v1 = vld [vmem:[#allocation15 + $0x1a8] sm:$0xff] }
 0x337   : > { %1495 = vmatpush.msrb.mxu1 %v8940_v1 }
 0x338   : > { %1680 = vmatpush.msra.mxu0 %v8755_v4  ;;  %v8942_v4 = vld [vmem:[#allocation15 + $0x1b0] sm:$0xff] }
 0x339   : > { %1515 = vmatpush.msra.mxu2 %v8942_v4 }
 0x33a   : > { %1681 = vmatpush.msra.mxu0 %v8768_v10  ;;  %v8944_v10 = vld [vmem:[#allocation15 + $0x1b8] sm:$0xff] }
 0x33b   : > { %1535 = vmatpush.msra.mxu3 %v8944_v10 }
 0x33c   : > { %1682 = vmatpush.msra.mxu0 %v8777_v19  ;;  %v8949_v19 = vld [vmem:[#allocation15 + $0x188] sm:$0xff] }
 0x33d   : > { %1496 = vmatpush.msrb.mxu1 %v8949_v19 }
 0x33e   : > { %1683 = vmatpush.msra.mxu0 %v8787_v40  ;;  %v8951_v40 = vld [vmem:[#allocation15 + $0x190] sm:$0xff] }
 0x33f   : > { %1516 = vmatpush.msra.mxu2 %v8951_v40 }
 0x340   : > { %1684 = vmatpush.msra.mxu0 %v8799_v48  ;;  %v8953_v48 = vld [vmem:[#allocation15 + $0x198] sm:$0xff] }
 0x341   : > { %1536 = vmatpush.msra.mxu3 %v8953_v48 }
 0x342   : > { %1685 = vmatpush.msra.mxu0 %v8810_v18  ;;  %v8957_v18 = vld [vmem:[#allocation15 + $0x168] sm:$0xff] }
 0x343   : > { %1497 = vmatpush.msrb.mxu1 %v8957_v18 }
 0x344   : > { %1686 = vmatpush.msra.mxu0 %v8822_v26  ;;  %v8959_v26 = vld [vmem:[#allocation15 + $0x170] sm:$0xff] }
 0x345   : > { %1517 = vmatpush.msra.mxu2 %v8959_v26 }
 0x346   : > { %1687 = vmatpush.msra.mxu0 %v8832_v29  ;;  %v8961_v29 = vld [vmem:[#allocation15 + $0x178] sm:$0xff] }
 0x347   : > { %1537 = vmatpush.msra.mxu3 %v8961_v29  ;;  %1518 = vmatpush.msra.mxu2 %v8753_v2 }
 0x348   : > { %1688 = vmatpush.msra.mxu0 %v8841_v32 }
 0x349   : > { %1538 = vmatpush.msra.mxu3 %v8758_v5  ;;  %1519 = vmatpush.msra.mxu2 %v8760_v6 }
 0x34a   : > { %1689 = vmatpush.msra.mxu0 %v8850_v38  ;;  %v8964_v38 = vld [vmem:[#allocation15 + $0x148] sm:$0xff] }
 0x34b   : > { %1498 = vmatpush.msrb.mxu1 %v8964_v38  ;;  %1539 = vmatpush.msra.mxu3 %v8764_v7 }
 0x34c   : > { %1690 = vmatpush.msra.mxu0 %v8857_v53  ;;  %v1205_v53 = vld [vmem:[%s1204_s26] sm:$0xf]  ;;  %1520 = vmatpush.msra.mxu2 %v8766_v8  ;;  %s1801_s26 = scalar_select %p9277_p8, 1, 0 }
 0x34d   : > { %v1206_v12 = vadd.f32 %v1205_v53, %v8668_v49  ;;  %1499 = vmatpush.msrb.mxu1 %v8969_v55  ;;  %1540 = vmatpush.msra.mxu3 %v8771_v11 }
 0x34e   : > { %1521 = vmatpush.msra.mxu2 %v8775_v13 }
 0x34f   : > { %1500 = vmatpush.msrb.mxu1 %v8974_v3  ;;  %1541 = vmatpush.msra.mxu3 %v8780_v20 }
 0x350   : > { %1522 = vmatpush.msra.mxu2 %v8785_v36 }
 0x351   : > { %1501 = vmatpush.msrb.mxu1 %v8980_v22  ;;  %1542 = vmatpush.msra.mxu3 %v8790_v41 }
 0x352   : > { %1523 = vmatpush.msra.mxu2 %v8796_v45 }
 0x353   : > { %1502 = vmatpush.msrb.mxu1 %v8988_v39  ;;  %1543 = vmatpush.msra.mxu3 %v8802_v50 }
 0x354   : > { %1524 = vmatpush.msra.mxu2 %v8808_v17 }
 0x355   : > { %1503 = vmatpush.msrb.mxu1 %v8993_v44  ;;  %1544 = vmatpush.msra.mxu3 %v8813_v21 }
 0x356   : > { %1525 = vmatpush.msra.mxu2 %v8820_v25 }
 0x357   : > { %1504 = vmatpush.msrb.mxu1 %v8998_v24  ;;  %1545 = vmatpush.msra.mxu3 %v8825_v27 }
 0x358   : > { %1526 = vmatpush.msra.mxu2 %v8830_v28 }
 0x359   : > { %1505 = vmatpush.msrb.mxu1 %v9003_v46  ;;  %1546 = vmatpush.msra.mxu3 %v8835_v30 }
 0x35a   : > { %1527 = vmatpush.msra.mxu2 %v8839_v31 }
 0x35b   : > { %1506 = vmatpush.msrb.mxu1 %v9008_v52  ;;  %1547 = vmatpush.msra.mxu3 %v8844_v33 }
 0x35c   : > { %1528 = vmatpush.msra.mxu2 %v8848_v37 }
 0x35d   : > { %1507 = vmatpush.msrb.mxu1 %v8804_v51  ;;  %1548 = vmatpush.msra.mxu3 %v8853_v43 }
 0x35e   : > { %1715 = vmatpush.msrb.mxu2 %v8923_v60 }
 0x35f   : > { %1508 = vmatpush.msrb.mxu1 %v8816_v23  ;;  %1735 = vmatpush.msrb.mxu3 %v8925_v61 }
 0x360   : > { %1716 = vmatpush.msrb.mxu2 %v8932_v63 }
 0x361   : > { %1695 = vmatpush.msra.mxu1 %v8921_v56  ;;  %1736 = vmatpush.msrb.mxu3 %v8934_v0 }
 0x362   : > { %1717 = vmatpush.msrb.mxu2 %v8942_v4 }
 0x363   : > { %1696 = vmatpush.msra.mxu1 %v8930_v62  ;;  %1737 = vmatpush.msrb.mxu3 %v8944_v10 }
 0x364   : > { %1718 = vmatpush.msrb.mxu2 %v8951_v40 }
 0x365   : > { %1697 = vmatpush.msra.mxu1 %v8940_v1  ;;  %1738 = vmatpush.msrb.mxu3 %v8953_v48 }
 0x366   : > { %1719 = vmatpush.msrb.mxu2 %v8959_v26 }
 0x367   : > { %1698 = vmatpush.msra.mxu1 %v8949_v19  ;;  %1739 = vmatpush.msrb.mxu3 %v8961_v29 }
 0x368   : > { %1720 = vmatpush.msrb.mxu2 %v8753_v2 }
 0x369   : > { %1699 = vmatpush.msra.mxu1 %v8957_v18  ;;  %1740 = vmatpush.msrb.mxu3 %v8758_v5 }
 0x36a   : > { %1721 = vmatpush.msrb.mxu2 %v8760_v6 }
 0x36b   : > { %1700 = vmatpush.msra.mxu1 %v8964_v38  ;;  %1741 = vmatpush.msrb.mxu3 %v8764_v7 }
 0x36c   : > { %1722 = vmatpush.msrb.mxu2 %v8766_v8 }
 0x36d   : > { %1701 = vmatpush.msra.mxu1 %v8969_v55  ;;  %1742 = vmatpush.msrb.mxu3 %v8771_v11 }
 0x36e   : > { %1723 = vmatpush.msrb.mxu2 %v8775_v13 }
 0x36f   : > { %1702 = vmatpush.msra.mxu1 %v8974_v3  ;;  %1743 = vmatpush.msrb.mxu3 %v8780_v20 }
 0x370   : > { %1724 = vmatpush.msrb.mxu2 %v8785_v36 }
 0x371   : > { %1703 = vmatpush.msra.mxu1 %v8980_v22  ;;  %1744 = vmatpush.msrb.mxu3 %v8790_v41  ;;  %v1407_v41 = vld [vmem:[%s1406_s17] sm:$0xf]  ;;  %s2003_s17 = scalar_select %p9442_p9, 1, 0 }
 0x372   : > { %1725 = vmatpush.msrb.mxu2 %v8796_v45 }
 0x373   : > { %1704 = vmatpush.msra.mxu1 %v8988_v39  ;;  %1745 = vmatpush.msrb.mxu3 %v8802_v50 }
 0x374   : > { %1726 = vmatpush.msrb.mxu2 %v8808_v17 }
 0x375   : > { %1705 = vmatpush.msra.mxu1 %v8993_v44  ;;  %1746 = vmatpush.msrb.mxu3 %v8813_v21  ;;  %v9118_v21 = vld [vmem:[#allocation4] sm:$0xf] }
 0x376   : > { %1727 = vmatpush.msrb.mxu2 %v8820_v25 }
 0x377   : > { %1706 = vmatpush.msra.mxu1 %v8998_v24  ;;  %1747 = vmatpush.msrb.mxu3 %v8825_v27 }
 0x378   : > { %1728 = vmatpush.msrb.mxu2 %v8830_v28 }
 0x379   : > { %1707 = vmatpush.msra.mxu1 %v9003_v46  ;;  %1748 = vmatpush.msrb.mxu3 %v8835_v30 }
 0x37a   : > { %1729 = vmatpush.msrb.mxu2 %v8839_v31 }
 0x37b   : > { %1708 = vmatpush.msra.mxu1 %v9008_v52  ;;  %1749 = vmatpush.msrb.mxu3 %v8844_v33 }
 0x37c   : > { %1730 = vmatpush.msrb.mxu2 %v8848_v37 }
 0x37d   : > { %1709 = vmatpush.msra.mxu1 %v8804_v51  ;;  %1750 = vmatpush.msrb.mxu3 %v8853_v43 }
 0x37f   : > { %1710 = vmatpush.msra.mxu1 %v8816_v23  ;;  %v1408_v23 = vadd.f32 %v9118_v21, %v1407_v41  ;;  %v9194_v41 = vld [vmem:[#allocation15 + $0xe0] sm:$0xff] }
 0x3a9   : > { %v1308_v32 = vpop.f32.mrf.mxu1  ;;  %v1288_v16 = vpop.f32.mrf.mxu0 }
 0x3aa   : > { %v1355_v57 = vrot.slane %v1308_v32, 7 }
 0x3ac   : > { %v1358_v34 = vsel %vm749_vm6, %v1288_v16, %v1355_v57 }
 0x3b0   : > { %v1328_v58 = vpop.f32.mrf.mxu2  ;;  %v1348_v59 = vpop.f32.mrf.mxu3 }
 0x3b1   : > { %v1356_v9 = vrot.slane %v1328_v58, 6  ;;  %v1357_v15 = vrot.slane %v1348_v59, 5 }
 0x3b3   : > { %v1359_v35 = vsel %vm751_vm5, %v1356_v9, %v1357_v15 }
 0x3b4   : > { %v1360_v49 = vsel %vm753_vm7, %v1358_v34, %v1359_v35 }
 0x3b5   : > { %v1362_v42 = vadd.f32 %v1360_v49, %v1206_v12 }
 0x3b7   : > { %v7378_v47 = vmul.f32 -1.442695, %v1362_v42  ;;  %v1383_v59 = vrot.slane %v1362_v42, 2 }
 0x3b9   : > { %7584 = vpow2.f32 %v7378_v47 }
 0x3bf   : > { %v7585_v32 = vpop.eup %7584 }
 0x3c0   : > { %v1366_v53 = vadd.f32 1.0, %v7585_v32  ;;  %v1398_v32 = vstv %s1397_s16  ;;  %s9326_s16 = sld [smem:[#allocation7 + %s1807_s28]] }
 0x3c1   : > { %vm1399_vm14 = vcmp.eq.s32.totalorder %v1398_v32, 1 }
 0x3c2   : > { %7586 = vrcp.f32 %v1366_v53  ;;  %v1378_v12 = vand.u32 2147483648, %v1366_v53  ;;  %v1376_v16 = vand.u32 2147483647, %v1366_v53  ;;  %vm1372_vm11 = vweird.f32 %v1366_v53 }
 0x3c3   : > { %7588 = vtanh.f32 %v1383_v59  ;;  %v9160_v59 = vld [vmem:[#allocation15 + $0x150] sm:$0xff] }
 0x3c4   : > { %v1379_v35 = vor.u32 1.1754944e-38, %v1378_v12  ;;  %vm1377_vm13 = vcmp.eq.f32.partialorder %v1376_v16, 8.507059e+37  ;;  %v9162_v12 = vld [vmem:[#allocation15 + $0x140] sm:$0xff]  ;;  %v9167_v16 = vld [vmem:[#allocation15 + $0x130] sm:$0xff] }
 0x3c6   : > { %s7383_s23 = sshll.u32 %s9326_s16, 2 }
 0x3c7   : > { %s1810_s24 = scalar_lea.vmem [#allocation12], %s7383_s23  ;;  %s2817_s23 = sadd.s32 11, %s8665_s5 }
 0x3c8   : > { %v7587_v57 = vpop.eup %7586  ;;  %p10089_p0 = scmp.lt.s32.totalorder %s2817_s23, %s8674_s25 }
 0x3c9   : > { %v1368_v58 = vmul.f32 %v7587_v57, %v1366_v53  ;;  %vm1373_vm10 = vweird.f32 %v7587_v57  ;;  %v7589_v2 = vpop.eup %7588 }
 0x3ca   : > { %vm1374_vm12 = vmor %vm1372_vm11, %vm1373_vm10 }
 0x3cb   : > { %v1369_v9 = vsub.f32 1.0, %v1368_v58  ;;  %v9158_v58 = vld [vmem:[#allocation15 + $0x160] sm:$0xff] }
 0x3cd   : > { %v1370_v15 = vmul.f32 %v7587_v57, %v1369_v9 }
 0x3cf   : > { %v1371_v34 = vadd.f32 %v7587_v57, %v1370_v15  ;;  %v9165_v15 = vld [vmem:[#allocation15 + $0x158] sm:$0xff] }
 0x3d1   : > { %v1375_v49 = vsel %vm1374_vm12, %v7587_v57, %v1371_v34  ;;  %v9155_v57 = vld [vmem:[#allocation15 + $0x180] sm:$0xff]  ;;  %v9171_v34 = vld [vmem:[#allocation15 + $0x138] sm:$0xff] }
 0x3d2   : > { %v1380_v42 = vsel %vm1377_vm13, %v1379_v35, %v1375_v49  ;;  %v9173_v35 = vld [vmem:[#allocation15 + $0x110] sm:$0xff]  ;;  %v1609_v49 = vld [vmem:[%s1608_s20] sm:$0xf]  ;;  %s2205_s20 = scalar_select %p9530_p10, 1, 0 }
 0x3d3   : > { %v1387_v47 = vrot.slane %v1380_v42, 1  ;;  %v1390_v53 = vmul.f32 %v7589_v2, %v1380_v42  ;;  %v1393_v8 = vrot.slane %v1380_v42, 3  ;;  %v9175_v42 = vld [vmem:[#allocation15 + $0x120] sm:$0xff]  ;;  %v9182_v2 = vld [vmem:[#allocation15 + $0xf0] sm:$0xff] }
 0x3d5   : > { %v1389_v5 = vmul.f32 %v1387_v47, %v8885_v14  ;;  %v9178_v47 = vld [vmem:[#allocation15 + $0x118] sm:$0xff] }
 0x3d7   : > { %v1391_v6 = vadd.f32 %v1390_v53, %v1389_v5 }
 0x3d9   : > { %7590 = vtanh.f32 %v1391_v6  ;;  %v9065_v7 = vsel %vm1399_vm14, %v1391_v6, %v8885_v14  ;;  %v9184_v6 = vld [vmem:[#allocation15 + $0x100] sm:$0xff] }
 0x3df   : > { %v7591_v11 = vpop.eup %7590 }
 0x3e0   : > { %v1395_v13 = vmul.f32 %v7591_v11, %v1393_v8  ;;  %v1610_v11 = vadd.f32 %v9118_v21, %v1609_v49 }
 0x3e2   : > { %v9083_v20 = vsel %vm1399_vm14, %v1395_v13, %v8892_v54 }
 0x3e3   : > { %1402 = vst [vmem:[#allocation5 + $0x3] sm:$0x1] %v9083_v20  ;;  %1489 = vmatmul.f32.vlgmr.msrb.gmra.mxu0 %v9083_v20  ;;  %1509 = vmatmul.f32.vlgmr.msrb.gmra.mxu1 %v9083_v20 }
 0x3e4   : > { %1529 = vmatmul.f32.vlgmr.msra.gmra.mxu2 %v9083_v20  ;;  %1549 = vmatmul.f32.vlgmr.msra.gmra.mxu3 %v9083_v20 }
 0x3e5   : > { %1897 = vmatpush.msrb.mxu1 %v8921_v56  ;;  %1917 = vmatpush.msra.mxu2 %v8923_v60 }
 0x3e6   : > { %1937 = vmatpush.msra.mxu3 %v8925_v61 }
 0x3e7   : > { %1898 = vmatpush.msrb.mxu1 %v8930_v62  ;;  %1918 = vmatpush.msra.mxu2 %v8932_v63 }
 0x3e8   : > { %1938 = vmatpush.msra.mxu3 %v8934_v0 }
 0x3e9   : > { %1899 = vmatpush.msrb.mxu1 %v8940_v1  ;;  %1919 = vmatpush.msra.mxu2 %v8942_v4 }
 0x3ea   : > { %1939 = vmatpush.msra.mxu3 %v8944_v10 }
 0x3eb   : > { %1900 = vmatpush.msrb.mxu1 %v8949_v19  ;;  %1920 = vmatpush.msra.mxu2 %v8951_v40 }
 0x3ec   : > { %1940 = vmatpush.msra.mxu3 %v8953_v48  ;;  %v1600_v48 = vstv %s1599_s27  ;;  %s2010_s27 = sld [smem:[#allocation7 + %s2009_s19]] }
 0x3ed   : > { %1901 = vmatpush.msrb.mxu1 %v8957_v18  ;;  %1921 = vmatpush.msra.mxu2 %v8959_v26  ;;  %vm1601_vm3 = vcmp.eq.s32.totalorder %v1600_v48, 1 }
 0x3ee   : > { %1941 = vmatpush.msra.mxu3 %v8961_v29 }
 0x3ef   : > { %1902 = vmatpush.msrb.mxu1 %v8964_v38  ;;  %1922 = vmatpush.msra.mxu2 %v9160_v59 }
 0x3f0   : > { %1942 = vmatpush.msra.mxu3 %v9165_v15 }
 0x3f1   : > { %1903 = vmatpush.msrb.mxu1 %v8969_v55  ;;  %1923 = vmatpush.msra.mxu2 %v9167_v16 }
 0x3f2   : > { %1943 = vmatpush.msra.mxu3 %v9171_v34  ;;  %s7385_s0 = sshll.u32 %s2010_s27, 2 }
 0x3f3   : > { %1904 = vmatpush.msrb.mxu1 %v8974_v3  ;;  %1924 = vmatpush.msra.mxu2 %v9173_v35  ;;  %s2012_s21 = scalar_lea.vmem [#allocation12], %s7385_s0  ;;  %s3019_s0 = sadd.s32 12, %s8665_s5 }
 0x3f4   : > { %1944 = vmatpush.msra.mxu3 %v9178_v47  ;;  %p10256_p1 = scmp.lt.s32.totalorder %s3019_s0, %s8674_s25 }
 0x3f5   : > { %1905 = vmatpush.msrb.mxu1 %v8980_v22  ;;  %1925 = vmatpush.msra.mxu2 %v9182_v2 }
 0x3f7   : > { %1906 = vmatpush.msrb.mxu1 %v8988_v39 }
 0x3f9   : > { %1907 = vmatpush.msrb.mxu1 %v8993_v44 }
 0x3fb   : > { %1908 = vmatpush.msrb.mxu1 %v8998_v24  ;;  %v9146_v24 = vld [vmem:[#allocation15 + $0x1e0] sm:$0xff] }
 0x3fc   : > { %1877 = vmatpush.msrb.mxu0 %v9146_v24 }
 0x3fd   : > { %1909 = vmatpush.msrb.mxu1 %v9003_v46  ;;  %v9149_v46 = vld [vmem:[#allocation15 + $0x1c0] sm:$0xff] }
 0x3fe   : > { %1878 = vmatpush.msrb.mxu0 %v9149_v46 }
 0x3ff   : > { %1910 = vmatpush.msrb.mxu1 %v9008_v52  ;;  %v9152_v52 = vld [vmem:[#allocation15 + $0x1a0] sm:$0xff] }
 0x400   : > { %1879 = vmatpush.msrb.mxu0 %v9152_v52 }
 0x402   : > { %1880 = vmatpush.msrb.mxu0 %v9155_v57 }
 0x404   : > { %1881 = vmatpush.msrb.mxu0 %v9158_v58 }
 0x406   : > { %1882 = vmatpush.msrb.mxu0 %v9162_v12 }
 0x408   : > { %1883 = vmatpush.msrb.mxu0 %v9175_v42 }
 0x40a   : > { %1884 = vmatpush.msrb.mxu0 %v9184_v6 }
 0x40c   : > { %1885 = vmatpush.msrb.mxu0 %v9194_v41 }
 0x460   : > { %v1510_v36 = vpop.f32.mrf.mxu1  ;;  %v1490_v27 = vpop.f32.mrf.mxu0 }
 0x461   : > { %v1557_v45 = vrot.slane %v1510_v36, 7 }
 0x463   : > { %v1560_v28 = vsel %vm749_vm6, %v1490_v27, %v1557_v45  ;;  %v9197_v45 = vld [vmem:[#allocation15 + $0xd8] sm:$0xff] }
 0x464   : > { %v9209_v27 = vld [vmem:[#allocation15 + $0xb8] sm:$0xff] }
 0x467   : > { %v1530_v50 = vpop.f32.mrf.mxu2  ;;  %v1550_v51 = vpop.f32.mrf.mxu3 }
 0x468   : > { %v1558_v17 = vrot.slane %v1530_v50, 6  ;;  %v1559_v25 = vrot.slane %v1550_v51, 5 }
 0x46a   : > { %v1561_v30 = vsel %vm751_vm5, %v1558_v17, %v1559_v25  ;;  %v9203_v17 = vld [vmem:[#allocation15 + $0xb0] sm:$0xff]  ;;  %v9206_v25 = vld [vmem:[#allocation15 + $0xc0] sm:$0xff] }
 0x46b   : > { %v1562_v31 = vsel %vm753_vm7, %v1560_v28, %v1561_v30  ;;  %v9211_v28 = vld [vmem:[#allocation15 + $0x28] sm:$0xff]  ;;  %1886 = vmatpush.msrb.mxu0 %v9206_v25 }
 0x46c   : > { %v1564_v33 = vadd.f32 %v1562_v31, %v1408_v23  ;;  %v9215_v31 = vld [vmem:[#allocation15 + $0x90] sm:$0xff]  ;;  %1911 = vmatpush.msrb.mxu1 %v9211_v28 }
 0x46e   : > { %v7380_v37 = vmul.f32 -1.442695, %v1564_v33  ;;  %v1585_v60 = vrot.slane %v1564_v33, 2  ;;  %v9217_v33 = vld [vmem:[#allocation15 + $0xa0] sm:$0xff] }
 0x46f   : > { %1887 = vmatpush.msrb.mxu0 %v9217_v33 }
 0x470   : > { %7592 = vpow2.f32 %v7380_v37  ;;  %v9220_v37 = vld [vmem:[#allocation15 + $0x98] sm:$0xff] }
 0x476   : > { %v7593_v43 = vpop.eup %7592 }
 0x477   : > { %v1568_v14 = vadd.f32 1.0, %v7593_v43  ;;  %v9223_v43 = vld [vmem:[#allocation15 + $0x8] sm:$0xff] }
 0x478   : > { %1912 = vmatpush.msrb.mxu1 %v9223_v43 }
 0x479   : > { %7594 = vrcp.f32 %v1568_v14  ;;  %v1580_v62 = vand.u32 2147483648, %v1568_v14  ;;  %v1578_v0 = vand.u32 2147483647, %v1568_v14  ;;  %vm1574_vm0 = vweird.f32 %v1568_v14 }
 0x47a   : > { %7596 = vtanh.f32 %v1585_v60  ;;  %v9232_v60 = vld [vmem:[#allocation15 + $0x78] sm:$0xff] }
 0x47b   : > { %v1581_v4 = vor.u32 1.1754944e-38, %v1580_v62  ;;  %vm1579_vm2 = vcmp.eq.f32.partialorder %v1578_v0, 8.507059e+37  ;;  %v9239_v62 = vld [vmem:[#allocation15 + $0x60] sm:$0xff]  ;;  %v9246_v0 = vld [vmem:[#allocation15 + $0x30] sm:$0xff] }
 0x47f   : > { %v7595_v54 = vpop.eup %7594 }
 0x480   : > { %v1570_v56 = vmul.f32 %v7595_v54, %v1568_v14  ;;  %vm1575_vm15 = vweird.f32 %v7595_v54  ;;  %v7597_v18 = vpop.eup %7596 }
 0x481   : > { %vm1576_vm1 = vmor %vm1574_vm0, %vm1575_vm15 }
 0x482   : > { %v1571_v61 = vsub.f32 1.0, %v1570_v56  ;;  %v9229_v56 = vld [vmem:[#allocation15 + $0x80] sm:$0xff] }
 0x483   : > { %1888 = vmatpush.msrb.mxu0 %v9229_v56 }
 0x484   : > { %v1572_v63 = vmul.f32 %v7595_v54, %v1571_v61  ;;  %v9237_v61 = vld [vmem:[#allocation15 + $0x50] sm:$0xff] }
 0x485   : > { %1889 = vmatpush.msrb.mxu0 %v9239_v62 }
 0x486   : > { %v1573_v1 = vadd.f32 %v7595_v54, %v1572_v63  ;;  %v9242_v63 = vld [vmem:[#allocation15 + $0x58] sm:$0xff] }
 0x488   : > { %v1577_v10 = vsel %vm1576_vm1, %v7595_v54, %v1573_v1  ;;  %v9227_v54 = vld [vmem:[#allocation15 + $0x70] sm:$0xff]  ;;  %v9248_v1 = vld [vmem:[#allocation15 + $0x40] sm:$0xff] }
 0x489   : > { %v1582_v19 = vsel %vm1579_vm2, %v1581_v4, %v1577_v10  ;;  %v9251_v4 = vld [vmem:[#allocation15 + $0x38] sm:$0xff]  ;;  %v9255_v10 = vld [vmem:[#allocation15 + $0x10] sm:$0xff]  ;;  %1890 = vmatpush.msrb.mxu0 %v9248_v1 }
 0x48a   : > { %v1589_v40 = vrot.slane %v1582_v19, 1  ;;  %v1592_v29 = vmul.f32 %v7597_v18, %v1582_v19  ;;  %v1595_v3 = vrot.slane %v1582_v19, 3  ;;  %v9257_v19 = vld [vmem:[#allocation15 + $0x20] sm:$0xff] }
 0x48b   : > { %1891 = vmatpush.msrb.mxu0 %v9257_v19 }
 0x48c   : > { %v1591_v26 = vmul.f32 %v1589_v40, %v9065_v7  ;;  %v9260_v40 = vld [vmem:[#allocation15 + $0x18] sm:$0xff] }
 0x48e   : > { %v1593_v38 = vadd.f32 %v1592_v29, %v1591_v26  ;;  %v9264_v26 = vld [vmem:[#allocation15] sm:$0xff] }
 0x48f   : > { %1892 = vmatpush.msrb.mxu0 %v9264_v26 }
 0x490   : > { %7598 = vtanh.f32 %v1593_v38  ;;  %v9133_v55 = vsel %vm1601_vm3, %v1593_v38, %v9065_v7  ;;  %v9187_v7 = vld [vmem:[#allocation15 + $0xf8] sm:$0xff] }
 0x491   : > { %1945 = vmatpush.msra.mxu3 %v9187_v7 }
 0x493   : > { %1946 = vmatpush.msra.mxu3 %v9197_v45 }
 0x495   : > { %1947 = vmatpush.msra.mxu3 %v9209_v27 }
 0x496   : > { %v7599_v22 = vpop.eup %7598 }
 0x497   : > { %v1597_v39 = vmul.f32 %v7599_v22, %v1595_v3  ;;  %1948 = vmatpush.msra.mxu3 %v9220_v37 }
 0x499   : > { %v9136_v44 = vsel %vm1601_vm3, %v1597_v39, %v9083_v20  ;;  %v9192_v20 = vld [vmem:[#allocation15 + $0xd0] sm:$0xff]  ;;  %1949 = vmatpush.msra.mxu3 %v9232_v60 }
 0x49a   : > { %1604 = vst [vmem:[#allocation5 + $0x4] sm:$0x1] %v9136_v44  ;;  %1691 = vmatmul.f32.vlgmr.msra.gmra.mxu0 %v9136_v44  ;;  %1711 = vmatmul.f32.vlgmr.msra.gmra.mxu1 %v9136_v44 }
 0x49b   : > { %1731 = vmatmul.f32.vlgmr.msrb.gmra.mxu2 %v9136_v44  ;;  %1751 = vmatmul.f32.vlgmr.msrb.gmra.mxu3 %v9136_v44 }
 0x49c   : > { %1926 = vmatpush.msra.mxu2 %v9192_v20  ;;  %1950 = vmatpush.msra.mxu3 %v9242_v63 }
 0x49d   : > { %2079 = vmatpush.msra.mxu0 %v9146_v24 }
 0x49e   : > { %1927 = vmatpush.msra.mxu2 %v9203_v17  ;;  %1951 = vmatpush.msra.mxu3 %v9251_v4 }
 0x49f   : > { %2080 = vmatpush.msra.mxu0 %v9149_v46 }
 0x4a0   : > { %1928 = vmatpush.msra.mxu2 %v9215_v31  ;;  %1952 = vmatpush.msra.mxu3 %v9260_v40 }
 0x4a1   : > { %2081 = vmatpush.msra.mxu0 %v9152_v52 }
 0x4a2   : > { %1929 = vmatpush.msra.mxu2 %v9227_v54 }
 0x4a3   : > { %2082 = vmatpush.msra.mxu0 %v9155_v57 }
 0x4a4   : > { %1930 = vmatpush.msra.mxu2 %v9237_v61 }
 0x4a5   : > { %2083 = vmatpush.msra.mxu0 %v9158_v58 }
 0x4a6   : > { %1931 = vmatpush.msra.mxu2 %v9246_v0 }
 0x4a7   : > { %2084 = vmatpush.msra.mxu0 %v9162_v12 }
 0x4a8   : > { %1932 = vmatpush.msra.mxu2 %v9255_v10 }
 0x4a9   : > { %2085 = vmatpush.msra.mxu0 %v9175_v42 }
 0x4ab   : > { %2086 = vmatpush.msra.mxu0 %v9184_v6 }
 0x4ad   : > { %2087 = vmatpush.msra.mxu0 %v9194_v41 }
 0x4af   : > { %2088 = vmatpush.msra.mxu0 %v9206_v25 }
 0x4b1   : > { %2089 = vmatpush.msra.mxu0 %v9217_v33 }
 0x4b3   : > { %2090 = vmatpush.msra.mxu0 %v9229_v56 }
 0x4b5   : > { %2091 = vmatpush.msra.mxu0 %v9239_v62 }
 0x4b7   : > { %2092 = vmatpush.msra.mxu0 %v9248_v1 }
 0x4b9   : > { %2093 = vmatpush.msra.mxu0 %v9257_v19 }
 0x4bb   : > { %2094 = vmatpush.msra.mxu0 %v9264_v26 }
 0x517   : > { %v1712_v9 = vpop.f32.mrf.mxu1  ;;  %v1692_v36 = vpop.f32.mrf.mxu0 }
 0x518   : > { %v1759_v32 = vrot.slane %v1712_v9, 7 }
 0x51a   : > { %v1762_v50 = vsel %vm749_vm6, %v1692_v36, %v1759_v32 }
 0x51e   : > { %v1732_v5 = vpop.f32.mrf.mxu2  ;;  %v1752_v53 = vpop.f32.mrf.mxu3 }
 0x51f   : > { %v1760_v8 = vrot.slane %v1732_v5, 6  ;;  %v1761_v13 = vrot.slane %v1752_v53, 5 }
 0x521   : > { %v1763_v51 = vsel %vm751_vm5, %v1760_v8, %v1761_v13  ;;  %v1802_v13 = vstv %s1801_s26  ;;  %s2212_s26 = sld [smem:[#allocation7 + %s2211_s7]] }
 0x522   : > { %v1764_v23 = vsel %vm753_vm7, %v1762_v50, %v1763_v51  ;;  %vm1803_vm11 = vcmp.eq.s32.totalorder %v1802_v13, 1 }
 0x523   : > { %v1766_v30 = vadd.f32 %v1764_v23, %v1610_v11 }
 0x525   : > { %v7382_v14 = vmul.f32 -1.442695, %v1766_v30  ;;  %v1787_v3 = vrot.slane %v1766_v30, 2 }
 0x527   : > { %7600 = vpow2.f32 %v7382_v14  ;;  %s7387_s28 = sshll.u32 %s2212_s26, 2 }
 0x528   : > { %s2214_s16 = scalar_lea.vmem [#allocation12], %s7387_s28  ;;  %s3221_s28 = sadd.s32 13, %s8665_s5 }
 0x529   : > { %p10344_p3 = scmp.lt.s32.totalorder %s3221_s28, %s8674_s25 }
 0x52d   : > { %v7601_v48 = vpop.eup %7600 }
 0x52e   : > { %v1770_v18 = vadd.f32 1.0, %v7601_v48 }
 0x530   : > { %7602 = vrcp.f32 %v1770_v18  ;;  %v1782_v39 = vand.u32 2147483648, %v1770_v18  ;;  %v1780_v49 = vand.u32 2147483647, %v1770_v18  ;;  %vm1776_vm8 = vweird.f32 %v1770_v18 }
 0x531   : > { %7604 = vtanh.f32 %v1787_v3 }
 0x532   : > { %v1783_v5 = vor.u32 1.1754944e-38, %v1782_v39  ;;  %vm1781_vm10 = vcmp.eq.f32.partialorder %v1780_v49, 8.507059e+37 }
 0x536   : > { %v7603_v29 = vpop.eup %7602 }
 0x537   : > { %v1772_v38 = vmul.f32 %v7603_v29, %v1770_v18  ;;  %vm1777_vm4 = vweird.f32 %v7603_v29  ;;  %v7605_v36 = vpop.eup %7604 }
 0x538   : > { %vm1778_vm9 = vmor %vm1776_vm8, %vm1777_vm4 }
 0x539   : > { %v1773_v22 = vsub.f32 1.0, %v1772_v38  ;;  %v9376_v38 = vld [vmem:[#allocation15 + $0x128] sm:$0xff] }
 0x53b   : > { %v1774_v9 = vmul.f32 %v7603_v29, %v1773_v22 }
 0x53d   : > { %v1775_v32 = vadd.f32 %v7603_v29, %v1774_v9  ;;  %v9381_v9 = vld [vmem:[#allocation15 + $0x108] sm:$0xff] }
 0x53f   : > { %v1779_v53 = vsel %vm1778_vm9, %v7603_v29, %v1775_v32 }
 0x540   : > { %v1784_v8 = vsel %vm1781_vm10, %v1783_v5, %v1779_v53 }
 0x541   : > { %v1791_v11 = vrot.slane %v1784_v8, 1  ;;  %v1794_v51 = vmul.f32 %v7605_v36, %v1784_v8  ;;  %v1797_v14 = vrot.slane %v1784_v8, 3  ;;  %v9387_v8 = vld [vmem:[#allocation15 + $0xe8] sm:$0xff] }
 0x543   : > { %v1793_v50 = vmul.f32 %v1791_v11, %v9133_v55 }
 0x545   : > { %v1795_v23 = vadd.f32 %v1794_v51, %v1793_v50  ;;  %v9395_v50 = vld [vmem:[#allocation15 + $0xc8] sm:$0xff] }
 0x547   : > { %7606 = vtanh.f32 %v1795_v23  ;;  %v9292_v30 = vsel %vm1803_vm11, %v1795_v23, %v9133_v55  ;;  %v9328_v55 = vld [vmem:[#allocation15 + $0x1e8] sm:$0xff] }
 0x548   : > { %2099 = vmatpush.msra.mxu1 %v9328_v55  ;;  %v9400_v23 = vld [vmem:[#allocation15 + $0xa8] sm:$0xff] }
 0x54d   : > { %v7607_v48 = vpop.eup %7606 }
 0x54e   : > { %v1799_v18 = vmul.f32 %v7607_v48, %v1797_v14  ;;  %v9405_v48 = vld [vmem:[#allocation15 + $0x88] sm:$0xff] }
 0x550   : > { %v9299_v29 = vsel %vm1803_vm11, %v1799_v18, %v9136_v44  ;;  %v9330_v44 = vld [vmem:[#allocation15 + $0x1f0] sm:$0xff]  ;;  %v9410_v18 = vld [vmem:[#allocation15 + $0x68] sm:$0xff] }
 0x551   : > { %1806 = vst [vmem:[#allocation5 + $0x5] sm:$0x1] %v9299_v29  ;;  %1893 = vmatmul.f32.vlgmr.msrb.gmra.mxu0 %v9299_v29  ;;  %1913 = vmatmul.f32.vlgmr.msrb.gmra.mxu1 %v9299_v29 }
 0x552   : > { %1933 = vmatmul.f32.vlgmr.msra.gmra.mxu2 %v9299_v29  ;;  %1953 = vmatmul.f32.vlgmr.msra.gmra.mxu3 %v9299_v29 }
 0x553   : > { %2281 = vmatpush.msrb.mxu0 %v9146_v24  ;;  %v9332_v24 = vld [vmem:[#allocation15 + $0x1f8] sm:$0xff]  ;;  %2119 = vmatpush.msrb.mxu2 %v9330_v44 }
 0x554   : > { %2139 = vmatpush.msrb.mxu3 %v9332_v24 }
 0x555   : > { %2282 = vmatpush.msrb.mxu0 %v9149_v46  ;;  %v9337_v46 = vld [vmem:[#allocation15 + $0x1c8] sm:$0xff] }
 0x556   : > { %2100 = vmatpush.msra.mxu1 %v9337_v46 }
 0x557   : > { %2283 = vmatpush.msrb.mxu0 %v9152_v52  ;;  %v9339_v52 = vld [vmem:[#allocation15 + $0x1d0] sm:$0xff] }
 0x558   : > { %2120 = vmatpush.msrb.mxu2 %v9339_v52 }
 0x559   : > { %2284 = vmatpush.msrb.mxu0 %v9155_v57  ;;  %v9341_v57 = vld [vmem:[#allocation15 + $0x1d8] sm:$0xff] }
 0x55a   : > { %2140 = vmatpush.msrb.mxu3 %v9341_v57 }
 0x55b   : > { %2285 = vmatpush.msrb.mxu0 %v9158_v58  ;;  %v9347_v58 = vld [vmem:[#allocation15 + $0x1a8] sm:$0xff] }
 0x55c   : > { %2101 = vmatpush.msra.mxu1 %v9347_v58 }
 0x55d   : > { %2286 = vmatpush.msrb.mxu0 %v9162_v12  ;;  %v9349_v12 = vld [vmem:[#allocation15 + $0x1b0] sm:$0xff] }
 0x55e   : > { %2121 = vmatpush.msrb.mxu2 %v9349_v12 }
 0x55f   : > { %2287 = vmatpush.msrb.mxu0 %v9175_v42  ;;  %v9351_v42 = vld [vmem:[#allocation15 + $0x1b8] sm:$0xff] }
 0x560   : > { %2141 = vmatpush.msrb.mxu3 %v9351_v42 }
 0x561   : > { %2288 = vmatpush.msrb.mxu0 %v9184_v6  ;;  %v9356_v6 = vld [vmem:[#allocation15 + $0x188] sm:$0xff] }
 0x562   : > { %2102 = vmatpush.msra.mxu1 %v9356_v6 }
 0x563   : > { %2289 = vmatpush.msrb.mxu0 %v9194_v41  ;;  %v9358_v41 = vld [vmem:[#allocation15 + $0x190] sm:$0xff] }
 0x564   : > { %2122 = vmatpush.msrb.mxu2 %v9358_v41 }
 0x565   : > { %2290 = vmatpush.msrb.mxu0 %v9206_v25  ;;  %v9360_v25 = vld [vmem:[#allocation15 + $0x198] sm:$0xff] }
 0x566   : > { %2142 = vmatpush.msrb.mxu3 %v9360_v25 }
 0x567   : > { %2291 = vmatpush.msrb.mxu0 %v9217_v33  ;;  %v9364_v33 = vld [vmem:[#allocation15 + $0x168] sm:$0xff] }
 0x568   : > { %2103 = vmatpush.msra.mxu1 %v9364_v33 }
 0x569   : > { %2292 = vmatpush.msrb.mxu0 %v9229_v56  ;;  %v9366_v56 = vld [vmem:[#allocation15 + $0x170] sm:$0xff] }
 0x56a   : > { %2123 = vmatpush.msrb.mxu2 %v9366_v56 }
 0x56b   : > { %2293 = vmatpush.msrb.mxu0 %v9239_v62  ;;  %v9368_v62 = vld [vmem:[#allocation15 + $0x178] sm:$0xff] }
 0x56c   : > { %2143 = vmatpush.msrb.mxu3 %v9368_v62  ;;  %2124 = vmatpush.msrb.mxu2 %v9160_v59 }
 0x56d   : > { %2294 = vmatpush.msrb.mxu0 %v9248_v1 }
 0x56e   : > { %2144 = vmatpush.msrb.mxu3 %v9165_v15  ;;  %2125 = vmatpush.msrb.mxu2 %v9167_v16 }
 0x56f   : > { %2295 = vmatpush.msrb.mxu0 %v9257_v19  ;;  %v9371_v19 = vld [vmem:[#allocation15 + $0x148] sm:$0xff] }
 0x570   : > { %2104 = vmatpush.msra.mxu1 %v9371_v19  ;;  %2145 = vmatpush.msrb.mxu3 %v9171_v34 }
 0x571   : > { %2296 = vmatpush.msrb.mxu0 %v9264_v26  ;;  %v1811_v26 = vld [vmem:[%s1810_s24] sm:$0xf]  ;;  %2126 = vmatpush.msrb.mxu2 %v9173_v35  ;;  %s2407_s24 = scalar_select %p9684_p11, 1, 0 }
 0x572   : > { %v1812_v32 = vadd.f32 %v9118_v21, %v1811_v26  ;;  %2105 = vmatpush.msra.mxu1 %v9376_v38  ;;  %2146 = vmatpush.msrb.mxu3 %v9178_v47 }
 0x573   : > { %2127 = vmatpush.msrb.mxu2 %v9182_v2 }
 0x574   : > { %2106 = vmatpush.msra.mxu1 %v9381_v9  ;;  %2147 = vmatpush.msrb.mxu3 %v9187_v7 }
 0x575   : > { %2128 = vmatpush.msrb.mxu2 %v9192_v20 }
 0x576   : > { %2107 = vmatpush.msra.mxu1 %v9387_v8  ;;  %2148 = vmatpush.msrb.mxu3 %v9197_v45 }
 0x577   : > { %2129 = vmatpush.msrb.mxu2 %v9203_v17 }
 0x578   : > { %2108 = vmatpush.msra.mxu1 %v9395_v50  ;;  %2149 = vmatpush.msrb.mxu3 %v9209_v27 }
 0x579   : > { %2130 = vmatpush.msrb.mxu2 %v9215_v31 }
 0x57a   : > { %2109 = vmatpush.msra.mxu1 %v9400_v23  ;;  %2150 = vmatpush.msrb.mxu3 %v9220_v37 }
 0x57b   : > { %2131 = vmatpush.msrb.mxu2 %v9227_v54 }
 0x57c   : > { %2110 = vmatpush.msra.mxu1 %v9405_v48  ;;  %2151 = vmatpush.msrb.mxu3 %v9232_v60 }
 0x57d   : > { %2132 = vmatpush.msrb.mxu2 %v9237_v61 }
 0x57e   : > { %2111 = vmatpush.msra.mxu1 %v9410_v18  ;;  %2152 = vmatpush.msrb.mxu3 %v9242_v63 }
 0x57f   : > { %2133 = vmatpush.msrb.mxu2 %v9246_v0 }
 0x580   : > { %2153 = vmatpush.msrb.mxu3 %v9251_v4 }
 0x581   : > { %2134 = vmatpush.msrb.mxu2 %v9255_v10 }
 0x582   : > { %2154 = vmatpush.msrb.mxu3 %v9260_v40 }
 0x583   : > { %2321 = vmatpush.msra.mxu2 %v9330_v44 }
 0x584   : > { %2341 = vmatpush.msra.mxu3 %v9332_v24 }
 0x585   : > { %2322 = vmatpush.msra.mxu2 %v9339_v52 }
 0x586   : > { %2342 = vmatpush.msra.mxu3 %v9341_v57 }
 0x587   : > { %2323 = vmatpush.msra.mxu2 %v9349_v12 }
 0x588   : > { %2343 = vmatpush.msra.mxu3 %v9351_v42 }
 0x589   : > { %2324 = vmatpush.msra.mxu2 %v9358_v41 }
 0x58a   : > { %2344 = vmatpush.msra.mxu3 %v9360_v25 }
 0x58b   : > { %2325 = vmatpush.msra.mxu2 %v9366_v56 }
 0x58c   : > { %2345 = vmatpush.msra.mxu3 %v9368_v62 }
 0x58d   : > { %2326 = vmatpush.msra.mxu2 %v9160_v59 }
 0x58e   : > { %2346 = vmatpush.msra.mxu3 %v9165_v15 }
 0x58f   : > { %2327 = vmatpush.msra.mxu2 %v9167_v16 }
 0x590   : > { %2347 = vmatpush.msra.mxu3 %v9171_v34 }
 0x591   : > { %2328 = vmatpush.msra.mxu2 %v9173_v35 }
 0x592   : > { %2348 = vmatpush.msra.mxu3 %v9178_v47 }
 0x593   : > { %2329 = vmatpush.msra.mxu2 %v9182_v2 }
 0x594   : > { %2349 = vmatpush.msra.mxu3 %v9187_v7 }
 0x595   : > { %2330 = vmatpush.msra.mxu2 %v9192_v20 }
 0x596   : > { %2350 = vmatpush.msra.mxu3 %v9197_v45  ;;  %v2013_v45 = vld [vmem:[%s2012_s21] sm:$0xf]  ;;  %s2609_s21 = scalar_select %p9849_p12, 1, 0 }
 0x597   : > { %2331 = vmatpush.msra.mxu2 %v9203_v17 }
 0x598   : > { %2351 = vmatpush.msra.mxu3 %v9209_v27 }
 0x599   : > { %2332 = vmatpush.msra.mxu2 %v9215_v31 }
 0x59a   : > { %2352 = vmatpush.msra.mxu3 %v9220_v37  ;;  %v2014_v37 = vadd.f32 %v9118_v21, %v2013_v45  ;;  %v9601_v45 = vld [vmem:[#allocation15 + $0xe0] sm:$0xff] }
 0x59b   : > { %2333 = vmatpush.msra.mxu2 %v9227_v54 }
 0x59c   : > { %2353 = vmatpush.msra.mxu3 %v9232_v60 }
 0x59d   : > { %2334 = vmatpush.msra.mxu2 %v9237_v61 }
 0x59e   : > { %2354 = vmatpush.msra.mxu3 %v9242_v63 }
 0x59f   : > { %2335 = vmatpush.msra.mxu2 %v9246_v0 }
 0x5a0   : > { %2355 = vmatpush.msra.mxu3 %v9251_v4 }
 0x5a1   : > { %2336 = vmatpush.msra.mxu2 %v9255_v10 }
 0x5a2   : > { %2356 = vmatpush.msra.mxu3 %v9260_v40 }
 0x5ce   : > { %v1914_v1 = vpop.f32.mrf.mxu1  ;;  %v1894_v53 = vpop.f32.mrf.mxu0 }
 0x5cf   : > { %v1961_v3 = vrot.slane %v1914_v1, 7  ;;  %v9415_v1 = vld [vmem:[#allocation15 + $0x48] sm:$0xff] }
 0x5d0   : > { %2112 = vmatpush.msra.mxu1 %v9415_v1 }
 0x5d1   : > { %v1964_v11 = vsel %vm749_vm6, %v1894_v53, %v1961_v3 }
 0x5d2   : > { %2113 = vmatpush.msra.mxu1 %v9211_v28 }
 0x5d4   : > { %2114 = vmatpush.msra.mxu1 %v9223_v43 }
 0x5d5   : > { %v1934_v22 = vpop.f32.mrf.mxu2  ;;  %v1954_v39 = vpop.f32.mrf.mxu3 }
 0x5d6   : > { %v1962_v49 = vrot.slane %v1934_v22, 6  ;;  %v1963_v5 = vrot.slane %v1954_v39, 5  ;;  %2301 = vmatpush.msrb.mxu1 %v9328_v55 }
 0x5d8   : > { %v1965_v13 = vsel %vm751_vm5, %v1962_v49, %v1963_v5  ;;  %2302 = vmatpush.msrb.mxu1 %v9337_v46 }
 0x5d9   : > { %v1966_v36 = vsel %vm753_vm7, %v1964_v11, %v1965_v13 }
 0x5da   : > { %v1968_v51 = vadd.f32 %v1966_v36, %v1812_v32  ;;  %2303 = vmatpush.msrb.mxu1 %v9347_v58 }
 0x5dc   : > { %v7384_v14 = vmul.f32 -1.442695, %v1968_v51  ;;  %v1989_v49 = vrot.slane %v1968_v51, 2  ;;  %2304 = vmatpush.msrb.mxu1 %v9356_v6 }
 0x5de   : > { %7608 = vpow2.f32 %v7384_v14  ;;  %2305 = vmatpush.msrb.mxu1 %v9364_v33 }
 0x5e0   : > { %2306 = vmatpush.msrb.mxu1 %v9371_v19 }
 0x5e2   : > { %2307 = vmatpush.msrb.mxu1 %v9376_v38 }
 0x5e4   : > { %v7609_v26 = vpop.eup %7608  ;;  %2308 = vmatpush.msrb.mxu1 %v9381_v9 }
 0x5e5   : > { %v1972_v3 = vadd.f32 1.0, %v7609_v26 }
 0x5e6   : > { %2309 = vmatpush.msrb.mxu1 %v9387_v8 }
 0x5e7   : > { %7610 = vrcp.f32 %v1972_v3  ;;  %v1984_v5 = vand.u32 2147483648, %v1972_v3  ;;  %v1982_v11 = vand.u32 2147483647, %v1972_v3  ;;  %vm1978_vm13 = vweird.f32 %v1972_v3 }
 0x5e8   : > { %7612 = vtanh.f32 %v1989_v49  ;;  %2310 = vmatpush.msrb.mxu1 %v9395_v50 }
 0x5e9   : > { %v1985_v36 = vor.u32 1.1754944e-38, %v1984_v5  ;;  %vm1983_vm15 = vcmp.eq.f32.partialorder %v1982_v11, 8.507059e+37  ;;  %v9570_v5 = vld [vmem:[#allocation15 + $0x158] sm:$0xff] }
 0x5ea   : > { %2311 = vmatpush.msrb.mxu1 %v9400_v23  ;;  %v9576_v11 = vld [vmem:[#allocation15 + $0x138] sm:$0xff] }
 0x5ec   : > { %2312 = vmatpush.msrb.mxu1 %v9405_v48 }
 0x5ed   : > { %v7611_v22 = vpop.eup %7610 }
 0x5ee   : > { %v1974_v39 = vmul.f32 %v7611_v22, %v1972_v3  ;;  %vm1979_vm12 = vweird.f32 %v7611_v22  ;;  %v2004_v3 = vstv %s2003_s17  ;;  %v7613_v59 = vpop.eup %7612  ;;  %2313 = vmatpush.msrb.mxu1 %v9410_v18  ;;  %s9733_s17 = sld [smem:[#allocation7 + %s2413_s30]] }
 0x5ef   : > { %vm1980_vm14 = vmor %vm1978_vm13, %vm1979_vm12  ;;  %vm2005_vm0 = vcmp.eq.s32.totalorder %v2004_v3, 1  ;;  %v9587_v3 = vld [vmem:[#allocation15 + $0xf0] sm:$0xff] }
 0x5f0   : > { %v1975_v32 = vsub.f32 1.0, %v1974_v39  ;;  %2314 = vmatpush.msrb.mxu1 %v9415_v1  ;;  %v9565_v39 = vld [vmem:[#allocation15 + $0x150] sm:$0xff] }
 0x5f2   : > { %v1976_v53 = vmul.f32 %v7611_v22, %v1975_v32  ;;  %2315 = vmatpush.msrb.mxu1 %v9211_v28  ;;  %v9567_v32 = vld [vmem:[#allocation15 + $0x140] sm:$0xff] }
 0x5f4   : > { %v1977_v13 = vadd.f32 %v7611_v22, %v1976_v53  ;;  %2316 = vmatpush.msrb.mxu1 %v9223_v43  ;;  %v9572_v53 = vld [vmem:[#allocation15 + $0x130] sm:$0xff]  ;;  %s7389_s19 = sshll.u32 %s9733_s17, 2 }
 0x5f5   : > { %s2416_s27 = scalar_lea.vmem [#allocation12], %s7389_s19  ;;  %s3423_s19 = sadd.s32 14, %s8665_s5 }
 0x5f6   : > { %v1981_v51 = vsel %vm1980_vm14, %v7611_v22, %v1977_v13  ;;  %v9578_v13 = vld [vmem:[#allocation15 + $0x110] sm:$0xff]  ;;  %p10496_p4 = scmp.lt.s32.totalorder %s3423_s19, %s8674_s25 }
 0x5f7   : > { %v1986_v14 = vsel %vm1983_vm15, %v1985_v36, %v1981_v51  ;;  %v2215_v36 = vld [vmem:[%s2214_s16] sm:$0xf]  ;;  %v9580_v51 = vld [vmem:[#allocation15 + $0x120] sm:$0xff]  ;;  %s2811_s16 = scalar_select %p9937_p13, 1, 0 }
 0x5f8   : > { %v1993_v26 = vrot.slane %v1986_v14, 1  ;;  %v1996_v22 = vmul.f32 %v7613_v59, %v1986_v14  ;;  %v1999_v35 = vrot.slane %v1986_v14, 3  ;;  %v9583_v14 = vld [vmem:[#allocation15 + $0x118] sm:$0xff] }
 0x5fa   : > { %v1995_v15 = vmul.f32 %v1993_v26, %v9292_v30 }
 0x5fc   : > { %v1997_v16 = vadd.f32 %v1996_v22, %v1995_v15  ;;  %v9589_v22 = vld [vmem:[#allocation15 + $0x100] sm:$0xff] }
 0x5fe   : > { %7614 = vtanh.f32 %v1997_v16  ;;  %v9472_v34 = vsel %vm2005_vm0, %v1997_v16, %v9292_v30  ;;  %v9592_v16 = vld [vmem:[#allocation15 + $0xf8] sm:$0xff] }
 0x604   : > { %v7615_v47 = vpop.eup %7614 }
 0x605   : > { %v2001_v2 = vmul.f32 %v7615_v47, %v1999_v35  ;;  %v9594_v35 = vld [vmem:[#allocation4] sm:$0xf] }
 0x606   : > { %v2216_v47 = vadd.f32 %v9594_v35, %v2215_v36 }
 0x607   : > { %v9490_v7 = vsel %vm2005_vm0, %v2001_v2, %v9299_v29 }
 0x608   : > { %2008 = vst [vmem:[#allocation5 + $0x6] sm:$0x1] %v9490_v7  ;;  %2095 = vmatmul.f32.vlgmr.msra.gmra.mxu0 %v9490_v7  ;;  %2115 = vmatmul.f32.vlgmr.msra.gmra.mxu1 %v9490_v7 }
 0x609   : > { %2135 = vmatmul.f32.vlgmr.msrb.gmra.mxu2 %v9490_v7  ;;  %2155 = vmatmul.f32.vlgmr.msrb.gmra.mxu3 %v9490_v7 }
 0x60a   : > { %2503 = vmatpush.msra.mxu1 %v9328_v55  ;;  %2523 = vmatpush.msrb.mxu2 %v9330_v44 }
 0x60b   : > { %2543 = vmatpush.msrb.mxu3 %v9332_v24 }
 0x60c   : > { %2504 = vmatpush.msra.mxu1 %v9337_v46  ;;  %2524 = vmatpush.msrb.mxu2 %v9339_v52 }
 0x60d   : > { %2544 = vmatpush.msrb.mxu3 %v9341_v57 }
 0x60e   : > { %2505 = vmatpush.msra.mxu1 %v9347_v58  ;;  %2525 = vmatpush.msrb.mxu2 %v9349_v12 }
 0x60f   : > { %2545 = vmatpush.msrb.mxu3 %v9351_v42 }
 0x610   : > { %2506 = vmatpush.msra.mxu1 %v9356_v6  ;;  %2526 = vmatpush.msrb.mxu2 %v9358_v41  ;;  %v2206_v6 = vstv %s2205_s20  ;;  %s2616_s20 = sld [smem:[#allocation7 + %s2615_s29]] }
 0x611   : > { %2546 = vmatpush.msrb.mxu3 %v9360_v25  ;;  %vm2207_vm8 = vcmp.eq.s32.totalorder %v2206_v6, 1 }
 0x612   : > { %2507 = vmatpush.msra.mxu1 %v9364_v33  ;;  %2527 = vmatpush.msrb.mxu2 %v9366_v56 }
 0x613   : > { %2547 = vmatpush.msrb.mxu3 %v9368_v62 }
 0x614   : > { %2508 = vmatpush.msra.mxu1 %v9371_v19  ;;  %2528 = vmatpush.msrb.mxu2 %v9565_v39 }
 0x615   : > { %2548 = vmatpush.msrb.mxu3 %v9570_v5 }
 0x616   : > { %2509 = vmatpush.msra.mxu1 %v9376_v38  ;;  %2529 = vmatpush.msrb.mxu2 %v9572_v53  ;;  %s7391_s7 = sshll.u32 %s2616_s20, 2 }
 0x617   : > { %2549 = vmatpush.msrb.mxu3 %v9576_v11  ;;  %s2618_s26 = scalar_lea.vmem [#allocation12], %s7391_s7  ;;  %s3625_s7 = sadd.s32 15, %s8665_s5 }
 0x618   : > { %2510 = vmatpush.msra.mxu1 %v9381_v9  ;;  %2530 = vmatpush.msrb.mxu2 %v9578_v13  ;;  %p10661_p7 = scmp.lt.s32.totalorder %s3625_s7, %s8674_s25 }
 0x619   : > { %2550 = vmatpush.msrb.mxu3 %v9583_v14 }
 0x61a   : > { %2511 = vmatpush.msra.mxu1 %v9387_v8  ;;  %2531 = vmatpush.msrb.mxu2 %v9587_v3 }
 0x61b   : > { %2551 = vmatpush.msrb.mxu3 %v9592_v16 }
 0x61c   : > { %2512 = vmatpush.msra.mxu1 %v9395_v50  ;;  %v9551_v50 = vld [vmem:[#allocation15 + $0x1e0] sm:$0xff] }
 0x61d   : > { %2483 = vmatpush.msra.mxu0 %v9551_v50 }
 0x61e   : > { %2513 = vmatpush.msra.mxu1 %v9400_v23  ;;  %v9554_v23 = vld [vmem:[#allocation15 + $0x1c0] sm:$0xff] }
 0x61f   : > { %2484 = vmatpush.msra.mxu0 %v9554_v23 }
 0x620   : > { %2514 = vmatpush.msra.mxu1 %v9405_v48  ;;  %v9557_v48 = vld [vmem:[#allocation15 + $0x1a0] sm:$0xff] }
 0x621   : > { %2485 = vmatpush.msra.mxu0 %v9557_v48 }
 0x622   : > { %2515 = vmatpush.msra.mxu1 %v9410_v18  ;;  %v9560_v18 = vld [vmem:[#allocation15 + $0x180] sm:$0xff] }
 0x623   : > { %2486 = vmatpush.msra.mxu0 %v9560_v18 }
 0x624   : > { %2516 = vmatpush.msra.mxu1 %v9415_v1  ;;  %v9563_v1 = vld [vmem:[#allocation15 + $0x160] sm:$0xff] }
 0x625   : > { %2487 = vmatpush.msra.mxu0 %v9563_v1 }
 0x627   : > { %2488 = vmatpush.msra.mxu0 %v9567_v32 }
 0x629   : > { %2489 = vmatpush.msra.mxu0 %v9580_v51 }
 0x62b   : > { %2490 = vmatpush.msra.mxu0 %v9589_v22 }
 0x62d   : > { %2491 = vmatpush.msra.mxu0 %v9601_v45 }
 0x685   : > { %v2116_v20 = vpop.f32.mrf.mxu1  ;;  %v2096_v54 = vpop.f32.mrf.mxu0 }
 0x686   : > { %v2163_v17 = vrot.slane %v2116_v20, 7 }
 0x688   : > { %v2166_v60 = vsel %vm749_vm6, %v2096_v54, %v2163_v17  ;;  %v9604_v17 = vld [vmem:[#allocation15 + $0xd8] sm:$0xff] }
 0x689   : > { %v9616_v54 = vld [vmem:[#allocation15 + $0xb8] sm:$0xff]  ;;  %2552 = vmatpush.msrb.mxu3 %v9604_v17 }
 0x68b   : > { %2553 = vmatpush.msrb.mxu3 %v9616_v54 }
 0x68c   : > { %v2136_v27 = vpop.f32.mrf.mxu2  ;;  %v2156_v28 = vpop.f32.mrf.mxu3 }
 0x68d   : > { %v2164_v31 = vrot.slane %v2136_v27, 6  ;;  %v2165_v43 = vrot.slane %v2156_v28, 5 }
 0x68f   : > { %v2167_v61 = vsel %vm751_vm5, %v2164_v31, %v2165_v43  ;;  %v9610_v31 = vld [vmem:[#allocation15 + $0xb0] sm:$0xff]  ;;  %v9613_v43 = vld [vmem:[#allocation15 + $0xc0] sm:$0xff] }
 0x690   : > { %v2168_v63 = vsel %vm753_vm7, %v2166_v60, %v2167_v61  ;;  %v9618_v60 = vld [vmem:[#allocation15 + $0x28] sm:$0xff]  ;;  %2492 = vmatpush.msra.mxu0 %v9613_v43 }
 0x691   : > { %v2170_v0 = vadd.f32 %v2168_v63, %v2014_v37  ;;  %v9622_v63 = vld [vmem:[#allocation15 + $0x90] sm:$0xff]  ;;  %2517 = vmatpush.msra.mxu1 %v9618_v60 }
 0x693   : > { %v7386_v4 = vmul.f32 -1.442695, %v2170_v0  ;;  %v2191_v55 = vrot.slane %v2170_v0, 2  ;;  %v9624_v0 = vld [vmem:[#allocation15 + $0xa0] sm:$0xff] }
 0x694   : > { %2493 = vmatpush.msra.mxu0 %v9624_v0 }
 0x695   : > { %7616 = vpow2.f32 %v7386_v4  ;;  %v9627_v4 = vld [vmem:[#allocation15 + $0x98] sm:$0xff] }
 0x696   : > { %2554 = vmatpush.msrb.mxu3 %v9627_v4 }
 0x69b   : > { %v7617_v10 = vpop.eup %7616 }
 0x69c   : > { %v2174_v40 = vadd.f32 1.0, %v7617_v10  ;;  %v9630_v10 = vld [vmem:[#allocation15 + $0x8] sm:$0xff] }
 0x69d   : > { %2518 = vmatpush.msra.mxu1 %v9630_v10 }
 0x69e   : > { %7618 = vrcp.f32 %v2174_v40  ;;  %v2186_v21 = vand.u32 2147483648, %v2174_v40  ;;  %v2184_v46 = vand.u32 2147483647, %v2174_v40  ;;  %vm2180_vm2 = vweird.f32 %v2174_v40 }
 0x69f   : > { %7620 = vtanh.f32 %v2191_v55  ;;  %v9639_v55 = vld [vmem:[#allocation15 + $0x78] sm:$0xff] }
 0x6a0   : > { %v2187_v57 = vor.u32 1.1754944e-38, %v2186_v21  ;;  %vm2185_vm4 = vcmp.eq.f32.partialorder %v2184_v46, 8.507059e+37  ;;  %v9646_v21 = vld [vmem:[#allocation15 + $0x60] sm:$0xff]  ;;  %2555 = vmatpush.msrb.mxu3 %v9639_v55  ;;  %v9653_v46 = vld [vmem:[#allocation15 + $0x30] sm:$0xff] }
 0x6a4   : > { %v7619_v30 = vpop.eup %7618 }
 0x6a5   : > { %v2176_v29 = vmul.f32 %v7619_v30, %v2174_v40  ;;  %vm2181_vm1 = vweird.f32 %v7619_v30  ;;  %v7621_v41 = vpop.eup %7620 }
 0x6a6   : > { %vm2182_vm3 = vmor %vm2180_vm2, %vm2181_vm1 }
 0x6a7   : > { %v2177_v44 = vsub.f32 1.0, %v2176_v29  ;;  %v9636_v29 = vld [vmem:[#allocation15 + $0x80] sm:$0xff] }
 0x6a8   : > { %2494 = vmatpush.msra.mxu0 %v9636_v29 }
 0x6a9   : > { %v2178_v24 = vmul.f32 %v7619_v30, %v2177_v44  ;;  %v9644_v44 = vld [vmem:[#allocation15 + $0x50] sm:$0xff] }
 0x6aa   : > { %2495 = vmatpush.msra.mxu0 %v9646_v21 }
 0x6ab   : > { %v2179_v52 = vadd.f32 %v7619_v30, %v2178_v24  ;;  %v9649_v24 = vld [vmem:[#allocation15 + $0x58] sm:$0xff] }
 0x6ac   : > { %2556 = vmatpush.msrb.mxu3 %v9649_v24 }
 0x6ad   : > { %v2183_v58 = vsel %vm2182_vm3, %v7619_v30, %v2179_v52  ;;  %v9634_v30 = vld [vmem:[#allocation15 + $0x70] sm:$0xff]  ;;  %v9655_v52 = vld [vmem:[#allocation15 + $0x40] sm:$0xff] }
 0x6ae   : > { %v2188_v12 = vsel %vm2185_vm4, %v2187_v57, %v2183_v58  ;;  %v9658_v57 = vld [vmem:[#allocation15 + $0x38] sm:$0xff]  ;;  %v9662_v58 = vld [vmem:[#allocation15 + $0x10] sm:$0xff]  ;;  %2496 = vmatpush.msra.mxu0 %v9655_v52 }
 0x6af   : > { %v2195_v42 = vrot.slane %v2188_v12, 1  ;;  %v2198_v33 = vmul.f32 %v7621_v41, %v2188_v12  ;;  %v2201_v19 = vrot.slane %v2188_v12, 3  ;;  %v9664_v12 = vld [vmem:[#allocation15 + $0x20] sm:$0xff]  ;;  %2557 = vmatpush.msrb.mxu3 %v9658_v57 }
 0x6b0   : > { %2497 = vmatpush.msra.mxu0 %v9664_v12 }
 0x6b1   : > { %v2197_v25 = vmul.f32 %v2195_v42, %v9472_v34  ;;  %v9667_v42 = vld [vmem:[#allocation15 + $0x18] sm:$0xff] }
 0x6b2   : > { %2558 = vmatpush.msrb.mxu3 %v9667_v42 }
 0x6b3   : > { %v2199_v56 = vadd.f32 %v2198_v33, %v2197_v25  ;;  %v9671_v25 = vld [vmem:[#allocation15] sm:$0xff] }
 0x6b4   : > { %2498 = vmatpush.msra.mxu0 %v9671_v25 }
 0x6b5   : > { %7622 = vtanh.f32 %v2199_v56  ;;  %v9538_v62 = vsel %vm2207_vm8, %v2199_v56, %v9472_v34 }
 0x6bb   : > { %v7623_v38 = vpop.eup %7622 }
 0x6bc   : > { %v2203_v9 = vmul.f32 %v7623_v38, %v2201_v19 }
 0x6be   : > { %v9541_v8 = vsel %vm2207_vm8, %v2203_v9, %v9490_v7  ;;  %v9599_v7 = vld [vmem:[#allocation15 + $0xd0] sm:$0xff] }
 0x6bf   : > { %2210 = vst [vmem:[#allocation5 + $0x7] sm:$0x1] %v9541_v8  ;;  %2297 = vmatmul.f32.vlgmr.msrb.gmra.mxu0 %v9541_v8  ;;  %2317 = vmatmul.f32.vlgmr.msrb.gmra.mxu1 %v9541_v8 }
 0x6c0   : > { %2337 = vmatmul.f32.vlgmr.msra.gmra.mxu2 %v9541_v8  ;;  %2357 = vmatmul.f32.vlgmr.msra.gmra.mxu3 %v9541_v8 }
 0x6c1   : > { %2532 = vmatpush.msrb.mxu2 %v9599_v7  ;;  %2685 = vmatpush.msrb.mxu0 %v9551_v50 }
 0x6c3   : > { %2533 = vmatpush.msrb.mxu2 %v9610_v31  ;;  %2686 = vmatpush.msrb.mxu0 %v9554_v23 }
 0x6c5   : > { %2534 = vmatpush.msrb.mxu2 %v9622_v63  ;;  %2687 = vmatpush.msrb.mxu0 %v9557_v48 }
 0x6c7   : > { %2535 = vmatpush.msrb.mxu2 %v9634_v30  ;;  %2688 = vmatpush.msrb.mxu0 %v9560_v18 }
 0x6c9   : > { %2536 = vmatpush.msrb.mxu2 %v9644_v44  ;;  %2689 = vmatpush.msrb.mxu0 %v9563_v1 }
 0x6cb   : > { %2537 = vmatpush.msrb.mxu2 %v9653_v46  ;;  %2690 = vmatpush.msrb.mxu0 %v9567_v32 }
 0x6cd   : > { %2538 = vmatpush.msrb.mxu2 %v9662_v58  ;;  %2691 = vmatpush.msrb.mxu0 %v9580_v51 }
 0x6cf   : > { %2692 = vmatpush.msrb.mxu0 %v9589_v22 }
 0x6d1   : > { %2693 = vmatpush.msrb.mxu0 %v9601_v45 }
 0x6d3   : > { %2694 = vmatpush.msrb.mxu0 %v9613_v43 }
 0x6d5   : > { %2695 = vmatpush.msrb.mxu0 %v9624_v0 }
 0x6d7   : > { %2696 = vmatpush.msrb.mxu0 %v9636_v29 }
 0x6d9   : > { %2697 = vmatpush.msrb.mxu0 %v9646_v21 }
 0x6db   : > { %2698 = vmatpush.msrb.mxu0 %v9655_v52 }
 0x6dd   : > { %2699 = vmatpush.msrb.mxu0 %v9664_v12 }
 0x6df   : > { %2700 = vmatpush.msrb.mxu0 %v9671_v25 }
 0x73c   : > { %v2318_v49 = vpop.f32.mrf.mxu1  ;;  %v2298_v20 = vpop.f32.mrf.mxu0 }
 0x73d   : > { %v2365_v26 = vrot.slane %v2318_v49, 7 }
 0x73f   : > { %v2368_v27 = vsel %vm749_vm6, %v2298_v20, %v2365_v26 }
 0x743   : > { %v2338_v59 = vpop.f32.mrf.mxu2  ;;  %v2358_v15 = vpop.f32.mrf.mxu3 }
 0x744   : > { %v2366_v34 = vrot.slane %v2338_v59, 6  ;;  %v2367_v2 = vrot.slane %v2358_v15, 5 }
 0x746   : > { %v2369_v28 = vsel %vm751_vm5, %v2366_v34, %v2367_v2  ;;  %v2408_v2 = vstv %s2407_s24  ;;  %s2818_s24 = sld [smem:[#allocation7 + %s2817_s23]] }
 0x747   : > { %v2370_v37 = vsel %vm753_vm7, %v2368_v27, %v2369_v28  ;;  %vm2409_vm13 = vcmp.eq.s32.totalorder %v2408_v2, 1 }
 0x748   : > { %v2372_v61 = vadd.f32 %v2370_v37, %v2216_v47 }
 0x74a   : > { %v7388_v40 = vmul.f32 -1.442695, %v2372_v61  ;;  %v2393_v19 = vrot.slane %v2372_v61, 2 }
 0x74c   : > { %7624 = vpow2.f32 %v7388_v40  ;;  %s7393_s30 = sshll.u32 %s2818_s24, 2 }
 0x74d   : > { %s2820_s17 = scalar_lea.vmem [#allocation12], %s7393_s30  ;;  %s3827_s30 = sadd.s32 16, %s8665_s5 }
 0x74e   : > { %p10751_p8 = scmp.lt.s32.totalorder %s3827_s30, %s8674_s25 }
 0x752   : > { %v7625_v6 = vpop.eup %7624 }
 0x753   : > { %v2376_v41 = vadd.f32 1.0, %v7625_v6 }
 0x755   : > { %7626 = vrcp.f32 %v2376_v41  ;;  %v2388_v9 = vand.u32 2147483648, %v2376_v41  ;;  %v2386_v36 = vand.u32 2147483647, %v2376_v41  ;;  %vm2382_vm10 = vweird.f32 %v2376_v41 }
 0x756   : > { %7628 = vtanh.f32 %v2393_v19 }
 0x757   : > { %v2389_v59 = vor.u32 1.1754944e-38, %v2388_v9  ;;  %vm2387_vm12 = vcmp.eq.f32.partialorder %v2386_v36, 8.507059e+37 }
 0x75b   : > { %v7627_v33 = vpop.eup %7626 }
 0x75c   : > { %v2378_v56 = vmul.f32 %v7627_v33, %v2376_v41  ;;  %vm2383_vm9 = vweird.f32 %v7627_v33  ;;  %v7629_v20 = vpop.eup %7628 }
 0x75d   : > { %vm2384_vm11 = vmor %vm2382_vm10, %vm2383_vm9 }
 0x75e   : > { %v2379_v38 = vsub.f32 1.0, %v2378_v56  ;;  %v9783_v56 = vld [vmem:[#allocation15 + $0x128] sm:$0xff] }
 0x760   : > { %v2380_v49 = vmul.f32 %v7627_v33, %v2379_v38 }
 0x762   : > { %v2381_v26 = vadd.f32 %v7627_v33, %v2380_v49  ;;  %v9788_v49 = vld [vmem:[#allocation15 + $0x108] sm:$0xff] }
 0x764   : > { %v2385_v15 = vsel %vm2384_vm11, %v7627_v33, %v2381_v26 }
 0x765   : > { %v2390_v34 = vsel %vm2387_vm12, %v2389_v59, %v2385_v15 }
 0x766   : > { %v2397_v47 = vrot.slane %v2390_v34, 1  ;;  %v2400_v28 = vmul.f32 %v7629_v20, %v2390_v34  ;;  %v2403_v40 = vrot.slane %v2390_v34, 3  ;;  %v9794_v34 = vld [vmem:[#allocation15 + $0xe8] sm:$0xff] }
 0x768   : > { %v2399_v27 = vmul.f32 %v2397_v47, %v9538_v62 }
 0x76a   : > { %v2401_v37 = vadd.f32 %v2400_v28, %v2399_v27  ;;  %v9802_v27 = vld [vmem:[#allocation15 + $0xc8] sm:$0xff] }
 0x76c   : > { %7630 = vtanh.f32 %v2401_v37  ;;  %v9699_v61 = vsel %vm2409_vm13, %v2401_v37, %v9538_v62  ;;  %v9735_v62 = vld [vmem:[#allocation15 + $0x1e8] sm:$0xff] }
 0x76d   : > { %2705 = vmatpush.msrb.mxu1 %v9735_v62  ;;  %v9807_v37 = vld [vmem:[#allocation15 + $0xa8] sm:$0xff] }
 0x772   : > { %v7631_v6 = vpop.eup %7630 }
 0x773   : > { %v2405_v41 = vmul.f32 %v7631_v6, %v2403_v40  ;;  %v9812_v6 = vld [vmem:[#allocation15 + $0x88] sm:$0xff] }
 0x775   : > { %v9706_v33 = vsel %vm2409_vm13, %v2405_v41, %v9541_v8  ;;  %v9737_v8 = vld [vmem:[#allocation15 + $0x1f0] sm:$0xff]  ;;  %v9817_v41 = vld [vmem:[#allocation15 + $0x68] sm:$0xff] }
 0x776   : > { %2412 = vst [vmem:[#allocation5 + $0x8] sm:$0x1] %v9706_v33  ;;  %2499 = vmatmul.f32.vlgmr.msra.gmra.mxu0 %v9706_v33  ;;  %2519 = vmatmul.f32.vlgmr.msra.gmra.mxu1 %v9706_v33 }
 0x777   : > { %2539 = vmatmul.f32.vlgmr.msrb.gmra.mxu2 %v9706_v33  ;;  %2559 = vmatmul.f32.vlgmr.msrb.gmra.mxu3 %v9706_v33 }
 0x778   : > { %2887 = vmatpush.msra.mxu0 %v9551_v50  ;;  %v9739_v50 = vld [vmem:[#allocation15 + $0x1f8] sm:$0xff]  ;;  %2725 = vmatpush.msra.mxu2 %v9737_v8 }
 0x779   : > { %2745 = vmatpush.msra.mxu3 %v9739_v50 }
 0x77a   : > { %2888 = vmatpush.msra.mxu0 %v9554_v23  ;;  %v9744_v23 = vld [vmem:[#allocation15 + $0x1c8] sm:$0xff] }
 0x77b   : > { %2706 = vmatpush.msrb.mxu1 %v9744_v23 }
 0x77c   : > { %2889 = vmatpush.msra.mxu0 %v9557_v48  ;;  %v9746_v48 = vld [vmem:[#allocation15 + $0x1d0] sm:$0xff] }
 0x77d   : > { %2726 = vmatpush.msra.mxu2 %v9746_v48 }
 0x77e   : > { %2890 = vmatpush.msra.mxu0 %v9560_v18  ;;  %v9748_v18 = vld [vmem:[#allocation15 + $0x1d8] sm:$0xff] }
 0x77f   : > { %2746 = vmatpush.msra.mxu3 %v9748_v18 }
 0x780   : > { %2891 = vmatpush.msra.mxu0 %v9563_v1  ;;  %v9754_v1 = vld [vmem:[#allocation15 + $0x1a8] sm:$0xff] }
 0x781   : > { %2707 = vmatpush.msrb.mxu1 %v9754_v1 }
 0x782   : > { %2892 = vmatpush.msra.mxu0 %v9567_v32  ;;  %v9756_v32 = vld [vmem:[#allocation15 + $0x1b0] sm:$0xff] }
 0x783   : > { %2727 = vmatpush.msra.mxu2 %v9756_v32 }
 0x784   : > { %2893 = vmatpush.msra.mxu0 %v9580_v51  ;;  %v9758_v51 = vld [vmem:[#allocation15 + $0x1b8] sm:$0xff] }
 0x785   : > { %2747 = vmatpush.msra.mxu3 %v9758_v51 }
 0x786   : > { %2894 = vmatpush.msra.mxu0 %v9589_v22  ;;  %v9763_v22 = vld [vmem:[#allocation15 + $0x188] sm:$0xff] }
 0x787   : > { %2708 = vmatpush.msrb.mxu1 %v9763_v22 }
 0x788   : > { %2895 = vmatpush.msra.mxu0 %v9601_v45  ;;  %v9765_v45 = vld [vmem:[#allocation15 + $0x190] sm:$0xff] }
 0x789   : > { %2728 = vmatpush.msra.mxu2 %v9765_v45 }
 0x78a   : > { %2896 = vmatpush.msra.mxu0 %v9613_v43  ;;  %v9767_v43 = vld [vmem:[#allocation15 + $0x198] sm:$0xff] }
 0x78b   : > { %2748 = vmatpush.msra.mxu3 %v9767_v43 }
 0x78c   : > { %2897 = vmatpush.msra.mxu0 %v9624_v0  ;;  %v9771_v0 = vld [vmem:[#allocation15 + $0x168] sm:$0xff] }
 0x78d   : > { %2709 = vmatpush.msrb.mxu1 %v9771_v0 }
 0x78e   : > { %2898 = vmatpush.msra.mxu0 %v9636_v29  ;;  %v9773_v29 = vld [vmem:[#allocation15 + $0x170] sm:$0xff] }
 0x78f   : > { %2729 = vmatpush.msra.mxu2 %v9773_v29 }
 0x790   : > { %2899 = vmatpush.msra.mxu0 %v9646_v21  ;;  %v9775_v21 = vld [vmem:[#allocation15 + $0x178] sm:$0xff] }
 0x791   : > { %2749 = vmatpush.msra.mxu3 %v9775_v21  ;;  %2730 = vmatpush.msra.mxu2 %v9565_v39 }
 0x792   : > { %2900 = vmatpush.msra.mxu0 %v9655_v52 }
 0x793   : > { %2750 = vmatpush.msra.mxu3 %v9570_v5  ;;  %2731 = vmatpush.msra.mxu2 %v9572_v53 }
 0x794   : > { %2901 = vmatpush.msra.mxu0 %v9664_v12  ;;  %v9778_v12 = vld [vmem:[#allocation15 + $0x148] sm:$0xff] }
 0x795   : > { %2710 = vmatpush.msrb.mxu1 %v9778_v12  ;;  %2751 = vmatpush.msra.mxu3 %v9576_v11 }
 0x796   : > { %2902 = vmatpush.msra.mxu0 %v9671_v25  ;;  %v2417_v25 = vld [vmem:[%s2416_s27] sm:$0xf]  ;;  %2732 = vmatpush.msra.mxu2 %v9578_v13  ;;  %s3013_s27 = scalar_select %p10089_p0, 1, 0 }
 0x797   : > { %v2418_v26 = vadd.f32 %v9594_v35, %v2417_v25  ;;  %2711 = vmatpush.msrb.mxu1 %v9783_v56  ;;  %2752 = vmatpush.msra.mxu3 %v9583_v14 }
 0x798   : > { %2733 = vmatpush.msra.mxu2 %v9587_v3 }
 0x799   : > { %2712 = vmatpush.msrb.mxu1 %v9788_v49  ;;  %2753 = vmatpush.msra.mxu3 %v9592_v16 }
 0x79a   : > { %2734 = vmatpush.msra.mxu2 %v9599_v7 }
 0x79b   : > { %2713 = vmatpush.msrb.mxu1 %v9794_v34  ;;  %2754 = vmatpush.msra.mxu3 %v9604_v17 }
 0x79c   : > { %2735 = vmatpush.msra.mxu2 %v9610_v31 }
 0x79d   : > { %2714 = vmatpush.msrb.mxu1 %v9802_v27  ;;  %2755 = vmatpush.msra.mxu3 %v9616_v54 }
 0x79e   : > { %2736 = vmatpush.msra.mxu2 %v9622_v63 }
 0x79f   : > { %2715 = vmatpush.msrb.mxu1 %v9807_v37  ;;  %2756 = vmatpush.msra.mxu3 %v9627_v4 }
 0x7a0   : > { %2737 = vmatpush.msra.mxu2 %v9634_v30 }
 0x7a1   : > { %2716 = vmatpush.msrb.mxu1 %v9812_v6  ;;  %2757 = vmatpush.msra.mxu3 %v9639_v55 }
 0x7a2   : > { %2738 = vmatpush.msra.mxu2 %v9644_v44 }
 0x7a3   : > { %2717 = vmatpush.msrb.mxu1 %v9817_v41  ;;  %2758 = vmatpush.msra.mxu3 %v9649_v24 }
 0x7a4   : > { %2739 = vmatpush.msra.mxu2 %v9653_v46 }
 0x7a5   : > { %2759 = vmatpush.msra.mxu3 %v9658_v57 }
 0x7a6   : > { %2740 = vmatpush.msra.mxu2 %v9662_v58 }
 0x7a7   : > { %2760 = vmatpush.msra.mxu3 %v9667_v42 }
 0x7a8   : > { %2927 = vmatpush.msrb.mxu2 %v9737_v8 }
 0x7a9   : > { %2947 = vmatpush.msrb.mxu3 %v9739_v50 }
 0x7aa   : > { %2928 = vmatpush.msrb.mxu2 %v9746_v48 }
 0x7ab   : > { %2948 = vmatpush.msrb.mxu3 %v9748_v18 }
 0x7ac   : > { %2929 = vmatpush.msrb.mxu2 %v9756_v32 }
 0x7ad   : > { %2949 = vmatpush.msrb.mxu3 %v9758_v51 }
 0x7ae   : > { %2930 = vmatpush.msrb.mxu2 %v9765_v45 }
 0x7af   : > { %2950 = vmatpush.msrb.mxu3 %v9767_v43 }
 0x7b0   : > { %2931 = vmatpush.msrb.mxu2 %v9773_v29 }
 0x7b1   : > { %2951 = vmatpush.msrb.mxu3 %v9775_v21 }
 0x7b2   : > { %2932 = vmatpush.msrb.mxu2 %v9565_v39 }
 0x7b3   : > { %2952 = vmatpush.msrb.mxu3 %v9570_v5 }
 0x7b4   : > { %2933 = vmatpush.msrb.mxu2 %v9572_v53 }
 0x7b5   : > { %2953 = vmatpush.msrb.mxu3 %v9576_v11 }
 0x7b6   : > { %2934 = vmatpush.msrb.mxu2 %v9578_v13 }
 0x7b7   : > { %2954 = vmatpush.msrb.mxu3 %v9583_v14 }
 0x7b8   : > { %2935 = vmatpush.msrb.mxu2 %v9587_v3 }
 0x7b9   : > { %2955 = vmatpush.msrb.mxu3 %v9592_v16 }
 0x7ba   : > { %2936 = vmatpush.msrb.mxu2 %v9599_v7 }
 0x7bb   : > { %2956 = vmatpush.msrb.mxu3 %v9604_v17  ;;  %v2619_v17 = vld [vmem:[%s2618_s26] sm:$0xf]  ;;  %s3215_s26 = scalar_select %p10256_p1, 1, 0 }
 0x7bc   : > { %2937 = vmatpush.msrb.mxu2 %v9610_v31 }
 0x7bd   : > { %2957 = vmatpush.msrb.mxu3 %v9616_v54 }
 0x7be   : > { %2938 = vmatpush.msrb.mxu2 %v9622_v63 }
 0x7bf   : > { %2958 = vmatpush.msrb.mxu3 %v9627_v4  ;;  %v2620_v4 = vadd.f32 %v9594_v35, %v2619_v17  ;;  %v10006_v17 = vld [vmem:[#allocation15 + $0xe0] sm:$0xff] }
 0x7c0   : > { %2939 = vmatpush.msrb.mxu2 %v9634_v30 }
 0x7c1   : > { %2959 = vmatpush.msrb.mxu3 %v9639_v55 }
 0x7c2   : > { %2940 = vmatpush.msrb.mxu2 %v9644_v44 }
 0x7c3   : > { %2960 = vmatpush.msrb.mxu3 %v9649_v24 }
 0x7c4   : > { %2941 = vmatpush.msrb.mxu2 %v9653_v46 }
 0x7c5   : > { %2961 = vmatpush.msrb.mxu3 %v9658_v57 }
 0x7c6   : > { %2942 = vmatpush.msrb.mxu2 %v9662_v58 }
 0x7c7   : > { %2962 = vmatpush.msrb.mxu3 %v9667_v42 }
 0x7f3   : > { %v2520_v52 = vpop.f32.mrf.mxu1  ;;  %v2500_v15 = vpop.f32.mrf.mxu0 }
 0x7f4   : > { %v2567_v19 = vrot.slane %v2520_v52, 7  ;;  %v9822_v52 = vld [vmem:[#allocation15 + $0x48] sm:$0xff] }
 0x7f5   : > { %2718 = vmatpush.msrb.mxu1 %v9822_v52 }
 0x7f6   : > { %v2570_v47 = vsel %vm749_vm6, %v2500_v15, %v2567_v19 }
 0x7f7   : > { %2719 = vmatpush.msrb.mxu1 %v9618_v60 }
 0x7f9   : > { %2720 = vmatpush.msrb.mxu1 %v9630_v10 }
 0x7fa   : > { %v2540_v38 = vpop.f32.mrf.mxu2  ;;  %v2560_v9 = vpop.f32.mrf.mxu3 }
 0x7fb   : > { %v2568_v36 = vrot.slane %v2540_v38, 6  ;;  %v2569_v59 = vrot.slane %v2560_v9, 5  ;;  %2907 = vmatpush.msra.mxu1 %v9735_v62 }
 0x7fd   : > { %v2571_v2 = vsel %vm751_vm5, %v2568_v36, %v2569_v59  ;;  %2908 = vmatpush.msra.mxu1 %v9744_v23 }
 0x7fe   : > { %v2572_v20 = vsel %vm753_vm7, %v2570_v47, %v2571_v2 }
 0x7ff   : > { %v2574_v28 = vadd.f32 %v2572_v20, %v2418_v26  ;;  %2909 = vmatpush.msra.mxu1 %v9754_v1 }
 0x801   : > { %v7390_v40 = vmul.f32 -1.442695, %v2574_v28  ;;  %v2595_v36 = vrot.slane %v2574_v28, 2  ;;  %2910 = vmatpush.msra.mxu1 %v9763_v22 }
 0x803   : > { %7632 = vpow2.f32 %v7390_v40  ;;  %2911 = vmatpush.msra.mxu1 %v9771_v0 }
 0x805   : > { %2912 = vmatpush.msra.mxu1 %v9778_v12 }
 0x807   : > { %2913 = vmatpush.msra.mxu1 %v9783_v56 }
 0x809   : > { %v7633_v25 = vpop.eup %7632  ;;  %2914 = vmatpush.msra.mxu1 %v9788_v49 }
 0x80a   : > { %v2578_v19 = vadd.f32 1.0, %v7633_v25 }
 0x80b   : > { %2915 = vmatpush.msra.mxu1 %v9794_v34 }
 0x80c   : > { %7634 = vrcp.f32 %v2578_v19  ;;  %v2590_v59 = vand.u32 2147483648, %v2578_v19  ;;  %v2588_v47 = vand.u32 2147483647, %v2578_v19  ;;  %vm2584_vm15 = vweird.f32 %v2578_v19 }
 0x80d   : > { %7636 = vtanh.f32 %v2595_v36  ;;  %2916 = vmatpush.msra.mxu1 %v9802_v27  ;;  %v9972_v36 = vld [vmem:[#allocation15 + $0x150] sm:$0xff] }
 0x80e   : > { %v2591_v20 = vor.u32 1.1754944e-38, %v2590_v59  ;;  %vm2589_vm1 = vcmp.eq.f32.partialorder %v2588_v47, 8.507059e+37  ;;  %v9974_v59 = vld [vmem:[#allocation15 + $0x140] sm:$0xff]  ;;  %v9979_v47 = vld [vmem:[#allocation15 + $0x130] sm:$0xff] }
 0x80f   : > { %2917 = vmatpush.msra.mxu1 %v9807_v37 }
 0x811   : > { %2918 = vmatpush.msra.mxu1 %v9812_v6 }
 0x812   : > { %v7635_v38 = vpop.eup %7634 }
 0x813   : > { %v2580_v9 = vmul.f32 %v7635_v38, %v2578_v19  ;;  %vm2585_vm14 = vweird.f32 %v7635_v38  ;;  %v2610_v19 = vstv %s2609_s21  ;;  %v7637_v39 = vpop.eup %7636  ;;  %2919 = vmatpush.msra.mxu1 %v9817_v41  ;;  %s10138_s21 = sld [smem:[#allocation7 + %s3019_s0]] }
 0x814   : > { %vm2586_vm0 = vmor %vm2584_vm15, %vm2585_vm14  ;;  %vm2611_vm2 = vcmp.eq.s32.totalorder %v2610_v19, 1 }
 0x815   : > { %v2581_v26 = vsub.f32 1.0, %v2580_v9  ;;  %2920 = vmatpush.msra.mxu1 %v9822_v52  ;;  %v9970_v9 = vld [vmem:[#allocation15 + $0x160] sm:$0xff] }
 0x817   : > { %v2582_v15 = vmul.f32 %v7635_v38, %v2581_v26  ;;  %2921 = vmatpush.msra.mxu1 %v9618_v60 }
 0x819   : > { %v2583_v2 = vadd.f32 %v7635_v38, %v2582_v15  ;;  %2922 = vmatpush.msra.mxu1 %v9630_v10  ;;  %v9977_v15 = vld [vmem:[#allocation15 + $0x158] sm:$0xff]  ;;  %s7395_s29 = sshll.u32 %s10138_s21, 2 }
 0x81a   : > { %s3022_s20 = scalar_lea.vmem [#allocation12], %s7395_s29  ;;  %s4029_s29 = sadd.s32 17, %s8665_s5 }
 0x81b   : > { %v2587_v28 = vsel %vm2586_vm0, %v7635_v38, %v2583_v2  ;;  %v9983_v2 = vld [vmem:[#allocation15 + $0x138] sm:$0xff]  ;;  %p10903_p9 = scmp.lt.s32.totalorder %s4029_s29, %s8674_s25 }
 0x81c   : > { %v2592_v40 = vsel %vm2589_vm1, %v2591_v20, %v2587_v28  ;;  %v9985_v20 = vld [vmem:[#allocation15 + $0x110] sm:$0xff]  ;;  %v2821_v28 = vld [vmem:[%s2820_s17] sm:$0xf]  ;;  %s3417_s17 = scalar_select %p10344_p3, 1, 0 }
 0x81d   : > { %v2599_v25 = vrot.slane %v2592_v40, 1  ;;  %v2602_v38 = vmul.f32 %v7637_v39, %v2592_v40  ;;  %v2605_v13 = vrot.slane %v2592_v40, 3  ;;  %v9987_v40 = vld [vmem:[#allocation15 + $0x120] sm:$0xff]  ;;  %v9994_v39 = vld [vmem:[#allocation15 + $0xf0] sm:$0xff] }
 0x81f   : > { %v2601_v5 = vmul.f32 %v2599_v25, %v9699_v61  ;;  %v9990_v25 = vld [vmem:[#allocation15 + $0x118] sm:$0xff] }
 0x821   : > { %v2603_v53 = vadd.f32 %v2602_v38, %v2601_v5 }
 0x823   : > { %7638 = vtanh.f32 %v2603_v53  ;;  %v9879_v11 = vsel %vm2611_vm2, %v2603_v53, %v9699_v61  ;;  %v9996_v53 = vld [vmem:[#allocation15 + $0x100] sm:$0xff] }
 0x829   : > { %v7639_v14 = vpop.eup %7638 }
 0x82a   : > { %v2607_v3 = vmul.f32 %v7639_v14, %v2605_v13  ;;  %v2822_v14 = vadd.f32 %v9594_v35, %v2821_v28  ;;  %v10015_v35 = vld [vmem:[#allocation15 + $0xb0] sm:$0xff] }
 0x82c   : > { %v9897_v16 = vsel %vm2611_vm2, %v2607_v3, %v9706_v33 }
 0x82d   : > { %2614 = vst [vmem:[#allocation5 + $0x9] sm:$0x1] %v9897_v16  ;;  %2701 = vmatmul.f32.vlgmr.msrb.gmra.mxu0 %v9897_v16  ;;  %2721 = vmatmul.f32.vlgmr.msrb.gmra.mxu1 %v9897_v16 }
 0x82e   : > { %2741 = vmatmul.f32.vlgmr.msra.gmra.mxu2 %v9897_v16  ;;  %2761 = vmatmul.f32.vlgmr.msra.gmra.mxu3 %v9897_v16 }
 0x82f   : > { %3109 = vmatpush.msrb.mxu1 %v9735_v62  ;;  %3129 = vmatpush.msra.mxu2 %v9737_v8 }
 0x830   : > { %3149 = vmatpush.msra.mxu3 %v9739_v50 }
 0x831   : > { %3110 = vmatpush.msrb.mxu1 %v9744_v23  ;;  %3130 = vmatpush.msra.mxu2 %v9746_v48 }
 0x832   : > { %3150 = vmatpush.msra.mxu3 %v9748_v18 }
 0x833   : > { %3111 = vmatpush.msrb.mxu1 %v9754_v1  ;;  %3131 = vmatpush.msra.mxu2 %v9756_v32 }
 0x834   : > { %3151 = vmatpush.msra.mxu3 %v9758_v51 }
 0x835   : > { %3112 = vmatpush.msrb.mxu1 %v9763_v22  ;;  %3132 = vmatpush.msra.mxu2 %v9765_v45  ;;  %v2812_v45 = vstv %s2811_s16  ;;  %s3222_s16 = sld [smem:[#allocation7 + %s3221_s28]] }
 0x836   : > { %3152 = vmatpush.msra.mxu3 %v9767_v43  ;;  %vm2813_vm10 = vcmp.eq.s32.totalorder %v2812_v45, 1 }
 0x837   : > { %3113 = vmatpush.msrb.mxu1 %v9771_v0  ;;  %3133 = vmatpush.msra.mxu2 %v9773_v29 }
 0x838   : > { %3153 = vmatpush.msra.mxu3 %v9775_v21 }
 0x839   : > { %3114 = vmatpush.msrb.mxu1 %v9778_v12  ;;  %3134 = vmatpush.msra.mxu2 %v9972_v36 }
 0x83a   : > { %3154 = vmatpush.msra.mxu3 %v9977_v15 }
 0x83b   : > { %3115 = vmatpush.msrb.mxu1 %v9783_v56  ;;  %3135 = vmatpush.msra.mxu2 %v9979_v47  ;;  %s7397_s23 = sshll.u32 %s3222_s16, 2 }
 0x83c   : > { %3155 = vmatpush.msra.mxu3 %v9983_v2  ;;  %s3224_s24 = scalar_lea.vmem [#allocation12], %s7397_s23  ;;  %s4231_s23 = sadd.s32 18, %s8665_s5 }
 0x83d   : > { %3116 = vmatpush.msrb.mxu1 %v9788_v49  ;;  %3136 = vmatpush.msra.mxu2 %v9985_v20  ;;  %p11068_p10 = scmp.lt.s32.totalorder %s4231_s23, %s8674_s25 }
 0x83e   : > { %3156 = vmatpush.msra.mxu3 %v9990_v25 }
 0x83f   : > { %3117 = vmatpush.msrb.mxu1 %v9794_v34  ;;  %3137 = vmatpush.msra.mxu2 %v9994_v39 }
 0x841   : > { %3118 = vmatpush.msrb.mxu1 %v9802_v27 }
 0x843   : > { %3119 = vmatpush.msrb.mxu1 %v9807_v37  ;;  %v9958_v37 = vld [vmem:[#allocation15 + $0x1e0] sm:$0xff] }
 0x844   : > { %3089 = vmatpush.msrb.mxu0 %v9958_v37 }
 0x845   : > { %3120 = vmatpush.msrb.mxu1 %v9812_v6  ;;  %v9961_v6 = vld [vmem:[#allocation15 + $0x1c0] sm:$0xff] }
 0x846   : > { %3090 = vmatpush.msrb.mxu0 %v9961_v6 }
 0x847   : > { %3121 = vmatpush.msrb.mxu1 %v9817_v41  ;;  %v9964_v41 = vld [vmem:[#allocation15 + $0x1a0] sm:$0xff] }
 0x848   : > { %3091 = vmatpush.msrb.mxu0 %v9964_v41 }
 0x849   : > { %3122 = vmatpush.msrb.mxu1 %v9822_v52  ;;  %v9967_v52 = vld [vmem:[#allocation15 + $0x180] sm:$0xff] }
 0x84a   : > { %3092 = vmatpush.msrb.mxu0 %v9967_v52 }
 0x84c   : > { %3093 = vmatpush.msrb.mxu0 %v9970_v9 }
 0x84e   : > { %3094 = vmatpush.msrb.mxu0 %v9974_v59 }
 0x850   : > { %3095 = vmatpush.msrb.mxu0 %v9987_v40 }
 0x852   : > { %3096 = vmatpush.msrb.mxu0 %v9996_v53 }
 0x854   : > { %3097 = vmatpush.msrb.mxu0 %v10006_v17 }
 0x8aa   : > { %v2722_v7 = vpop.f32.mrf.mxu1  ;;  %v2702_v30 = vpop.f32.mrf.mxu0 }
 0x8ab   : > { %v2769_v31 = vrot.slane %v2722_v7, 7 }
 0x8ad   : > { %v2772_v55 = vsel %vm749_vm6, %v2702_v30, %v2769_v31  ;;  %v10009_v31 = vld [vmem:[#allocation15 + $0xd8] sm:$0xff]  ;;  %v10023_v30 = vld [vmem:[#allocation15 + $0x28] sm:$0xff] }
 0x8ae   : > { %3123 = vmatpush.msrb.mxu1 %v10023_v30 }
 0x8b1   : > { %v2742_v54 = vpop.f32.mrf.mxu2  ;;  %v2762_v60 = vpop.f32.mrf.mxu3 }
 0x8b2   : > { %v2770_v63 = vrot.slane %v2742_v54, 6  ;;  %v2771_v10 = vrot.slane %v2762_v60, 5 }
 0x8b4   : > { %v2773_v44 = vsel %vm751_vm5, %v2770_v63, %v2771_v10  ;;  %v10021_v10 = vld [vmem:[#allocation15 + $0xb8] sm:$0xff] }
 0x8b5   : > { %v2774_v24 = vsel %vm753_vm7, %v2772_v55, %v2773_v44  ;;  %v10027_v44 = vld [vmem:[#allocation15 + $0x90] sm:$0xff] }
 0x8b6   : > { %v2776_v46 = vadd.f32 %v2774_v24, %v2620_v4  ;;  %v10018_v4 = vld [vmem:[#allocation15 + $0xc0] sm:$0xff] }
 0x8b7   : > { %v10029_v24 = vld [vmem:[#allocation15 + $0xa0] sm:$0xff]  ;;  %3098 = vmatpush.msrb.mxu0 %v10018_v4 }
 0x8b8   : > { %v7392_v57 = vmul.f32 -1.442695, %v2776_v46  ;;  %v2797_v62 = vrot.slane %v2776_v46, 2  ;;  %v10032_v46 = vld [vmem:[#allocation15 + $0x98] sm:$0xff] }
 0x8b9   : > { %3099 = vmatpush.msrb.mxu0 %v10029_v24 }
 0x8ba   : > { %7640 = vpow2.f32 %v7392_v57  ;;  %v10035_v57 = vld [vmem:[#allocation15 + $0x8] sm:$0xff] }
 0x8bb   : > { %3124 = vmatpush.msrb.mxu1 %v10035_v57 }
 0x8c0   : > { %v7641_v58 = vpop.eup %7640 }
 0x8c1   : > { %v2780_v42 = vadd.f32 1.0, %v7641_v58 }
 0x8c3   : > { %7642 = vrcp.f32 %v2780_v42  ;;  %v2792_v50 = vand.u32 2147483648, %v2780_v42  ;;  %v2790_v48 = vand.u32 2147483647, %v2780_v42  ;;  %vm2786_vm4 = vweird.f32 %v2780_v42 }
 0x8c4   : > { %7644 = vtanh.f32 %v2797_v62  ;;  %v10049_v62 = vld [vmem:[#allocation15 + $0x50] sm:$0xff] }
 0x8c5   : > { %v2793_v1 = vor.u32 1.1754944e-38, %v2792_v50  ;;  %vm2791_vm9 = vcmp.eq.f32.partialorder %v2790_v48, 8.507059e+37  ;;  %v10054_v50 = vld [vmem:[#allocation15 + $0x58] sm:$0xff]  ;;  %v10060_v48 = vld [vmem:[#allocation15 + $0x40] sm:$0xff] }
 0x8c9   : > { %v7643_v61 = vpop.eup %7642 }
 0x8ca   : > { %v2782_v33 = vmul.f32 %v7643_v61, %v2780_v42  ;;  %vm2787_vm3 = vweird.f32 %v7643_v61  ;;  %v7645_v43 = vpop.eup %7644  ;;  %v10039_v42 = vld [vmem:[#allocation15 + $0x70] sm:$0xff] }
 0x8cb   : > { %vm2788_vm8 = vmor %vm2786_vm4, %vm2787_vm3 }
 0x8cc   : > { %v2783_v8 = vsub.f32 1.0, %v2782_v33  ;;  %v10044_v33 = vld [vmem:[#allocation15 + $0x78] sm:$0xff] }
 0x8ce   : > { %v2784_v23 = vmul.f32 %v7643_v61, %v2783_v8  ;;  %v10051_v8 = vld [vmem:[#allocation15 + $0x60] sm:$0xff] }
 0x8d0   : > { %v2785_v18 = vadd.f32 %v7643_v61, %v2784_v23  ;;  %v10058_v23 = vld [vmem:[#allocation15 + $0x30] sm:$0xff] }
 0x8d2   : > { %v2789_v32 = vsel %vm2788_vm8, %v7643_v61, %v2785_v18  ;;  %v10041_v61 = vld [vmem:[#allocation15 + $0x80] sm:$0xff]  ;;  %v10063_v18 = vld [vmem:[#allocation15 + $0x38] sm:$0xff] }
 0x8d3   : > { %v2794_v51 = vsel %vm2791_vm9, %v2793_v1, %v2789_v32  ;;  %3100 = vmatpush.msrb.mxu0 %v10041_v61  ;;  %v10067_v1 = vld [vmem:[#allocation15 + $0x10] sm:$0xff]  ;;  %v10069_v32 = vld [vmem:[#allocation15 + $0x20] sm:$0xff] }
 0x8d4   : > { %v2801_v22 = vrot.slane %v2794_v51, 1  ;;  %v2804_v29 = vmul.f32 %v7645_v43, %v2794_v51  ;;  %v2807_v56 = vrot.slane %v2794_v51, 3  ;;  %v10072_v51 = vld [vmem:[#allocation15 + $0x18] sm:$0xff]  ;;  %v10076_v43 = vld [vmem:[#allocation15] sm:$0xff] }
 0x8d5   : > { %3101 = vmatpush.msrb.mxu0 %v10051_v8 }
 0x8d6   : > { %v2803_v0 = vmul.f32 %v2801_v22, %v9879_v11 }
 0x8d7   : > { %3102 = vmatpush.msrb.mxu0 %v10060_v48 }
 0x8d8   : > { %v2805_v21 = vadd.f32 %v2804_v29, %v2803_v0 }
 0x8d9   : > { %3103 = vmatpush.msrb.mxu0 %v10069_v32 }
 0x8da   : > { %7646 = vtanh.f32 %v2805_v21  ;;  %v9945_v12 = vsel %vm2813_vm10, %v2805_v21, %v9879_v11  ;;  %v9999_v11 = vld [vmem:[#allocation15 + $0xf8] sm:$0xff] }
 0x8db   : > { %3157 = vmatpush.msra.mxu3 %v9999_v11  ;;  %3104 = vmatpush.msrb.mxu0 %v10076_v43 }
 0x8dd   : > { %3158 = vmatpush.msra.mxu3 %v10009_v31 }
 0x8df   : > { %3159 = vmatpush.msra.mxu3 %v10021_v10 }
 0x8e0   : > { %v7647_v49 = vpop.eup %7646 }
 0x8e1   : > { %v2809_v34 = vmul.f32 %v7647_v49, %v2807_v56  ;;  %3160 = vmatpush.msra.mxu3 %v10032_v46 }
 0x8e3   : > { %v9948_v27 = vsel %vm2813_vm10, %v2809_v34, %v9897_v16  ;;  %v10004_v16 = vld [vmem:[#allocation15 + $0xd0] sm:$0xff]  ;;  %3161 = vmatpush.msra.mxu3 %v10044_v33 }
 0x8e4   : > { %2816 = vst [vmem:[#allocation5 + $0xa] sm:$0x1] %v9948_v27  ;;  %2903 = vmatmul.f32.vlgmr.msra.gmra.mxu0 %v9948_v27  ;;  %2923 = vmatmul.f32.vlgmr.msra.gmra.mxu1 %v9948_v27 }
 0x8e5   : > { %2943 = vmatmul.f32.vlgmr.msrb.gmra.mxu2 %v9948_v27  ;;  %2963 = vmatmul.f32.vlgmr.msrb.gmra.mxu3 %v9948_v27 }
 0x8e6   : > { %3138 = vmatpush.msra.mxu2 %v10004_v16  ;;  %3162 = vmatpush.msra.mxu3 %v10054_v50 }
 0x8e7   : > { %3291 = vmatpush.msra.mxu0 %v9958_v37 }
 0x8e8   : > { %3139 = vmatpush.msra.mxu2 %v10015_v35  ;;  %3163 = vmatpush.msra.mxu3 %v10063_v18 }
 0x8e9   : > { %3292 = vmatpush.msra.mxu0 %v9961_v6 }
 0x8ea   : > { %3140 = vmatpush.msra.mxu2 %v10027_v44  ;;  %3164 = vmatpush.msra.mxu3 %v10072_v51 }
 0x8eb   : > { %3293 = vmatpush.msra.mxu0 %v9964_v41 }
 0x8ec   : > { %3141 = vmatpush.msra.mxu2 %v10039_v42 }
 0x8ed   : > { %3294 = vmatpush.msra.mxu0 %v9967_v52 }
 0x8ee   : > { %3142 = vmatpush.msra.mxu2 %v10049_v62 }
 0x8ef   : > { %3295 = vmatpush.msra.mxu0 %v9970_v9 }
 0x8f0   : > { %3143 = vmatpush.msra.mxu2 %v10058_v23 }
 0x8f1   : > { %3296 = vmatpush.msra.mxu0 %v9974_v59 }
 0x8f2   : > { %3144 = vmatpush.msra.mxu2 %v10067_v1 }
 0x8f3   : > { %3297 = vmatpush.msra.mxu0 %v9987_v40 }
 0x8f5   : > { %3298 = vmatpush.msra.mxu0 %v9996_v53 }
 0x8f7   : > { %3299 = vmatpush.msra.mxu0 %v10006_v17 }
 0x8f9   : > { %3300 = vmatpush.msra.mxu0 %v10018_v4 }
 0x8fb   : > { %3301 = vmatpush.msra.mxu0 %v10029_v24 }
 0x8fd   : > { %3302 = vmatpush.msra.mxu0 %v10041_v61 }
 0x8ff   : > { %3303 = vmatpush.msra.mxu0 %v10051_v8 }
 0x901   : > { %3304 = vmatpush.msra.mxu0 %v10060_v48 }
 0x903   : > { %3305 = vmatpush.msra.mxu0 %v10069_v32 }
 0x905   : > { %3306 = vmatpush.msra.mxu0 %v10076_v43 }
 0x961   : > { %v2924_v26 = vpop.f32.mrf.mxu1  ;;  %v2904_v7 = vpop.f32.mrf.mxu0 }
 0x962   : > { %v2971_v19 = vrot.slane %v2924_v26, 7 }
 0x964   : > { %v2974_v54 = vsel %vm749_vm6, %v2904_v7, %v2971_v19 }
 0x968   : > { %v2944_v5 = vpop.f32.mrf.mxu2  ;;  %v2964_v38 = vpop.f32.mrf.mxu3 }
 0x969   : > { %v2972_v13 = vrot.slane %v2944_v5, 6  ;;  %v2973_v3 = vrot.slane %v2964_v38, 5 }
 0x96b   : > { %v2975_v60 = vsel %vm751_vm5, %v2972_v13, %v2973_v3 }
 0x96c   : > { %v2976_v63 = vsel %vm753_vm7, %v2974_v54, %v2975_v60 }
 0x96d   : > { %v2978_v55 = vadd.f32 %v2976_v63, %v2822_v14  ;;  %v3014_v14 = vstv %s3013_s27  ;;  %s3424_s27 = sld [smem:[#allocation7 + %s3423_s19]] }
 0x96e   : > { %vm3015_vm15 = vcmp.eq.s32.totalorder %v3014_v14, 1 }
 0x96f   : > { %v7394_v58 = vmul.f32 -1.442695, %v2978_v55  ;;  %v2999_v21 = vrot.slane %v2978_v55, 2 }
 0x971   : > { %7648 = vpow2.f32 %v7394_v58 }
 0x973   : > { %s7399_s0 = sshll.u32 %s3424_s27, 2 }
 0x974   : > { %s3426_s21 = scalar_lea.vmem [#allocation12], %s7399_s0  ;;  %s4433_s0 = sadd.s32 19, %s8665_s5 }
 0x975   : > { %p11156_p11 = scmp.lt.s32.totalorder %s4433_s0, %s8674_s25 }
 0x977   : > { %v7649_v22 = vpop.eup %7648 }
 0x978   : > { %v2982_v45 = vadd.f32 1.0, %v7649_v22 }
 0x97a   : > { %7650 = vrcp.f32 %v2982_v45  ;;  %v2994_v49 = vand.u32 2147483648, %v2982_v45  ;;  %v2992_v26 = vand.u32 2147483647, %v2982_v45  ;;  %vm2988_vm12 = vweird.f32 %v2982_v45 }
 0x97b   : > { %7652 = vtanh.f32 %v2999_v21 }
 0x97c   : > { %v2995_v19 = vor.u32 1.1754944e-38, %v2994_v49  ;;  %vm2993_vm14 = vcmp.eq.f32.partialorder %v2992_v26, 8.507059e+37  ;;  %v10193_v49 = vld [vmem:[#allocation15 + $0x108] sm:$0xff] }
 0x97d   : > { %v10195_v26 = vld [vmem:[#allocation4] sm:$0xf] }
 0x980   : > { %v7651_v0 = vpop.eup %7650 }
 0x981   : > { %v2984_v29 = vmul.f32 %v7651_v0, %v2982_v45  ;;  %vm2989_vm11 = vweird.f32 %v7651_v0  ;;  %v7653_v3 = vpop.eup %7652 }
 0x982   : > { %vm2990_vm13 = vmor %vm2988_vm12, %vm2989_vm11 }
 0x983   : > { %v2985_v56 = vsub.f32 1.0, %v2984_v29 }
 0x985   : > { %v2986_v34 = vmul.f32 %v7651_v0, %v2985_v56 }
 0x987   : > { %v2987_v28 = vadd.f32 %v7651_v0, %v2986_v34 }
 0x989   : > { %v2991_v5 = vsel %vm2990_vm13, %v7651_v0, %v2987_v28  ;;  %v10188_v0 = vld [vmem:[#allocation15 + $0x128] sm:$0xff] }
 0x98a   : > { %v2996_v38 = vsel %vm2993_vm14, %v2995_v19, %v2991_v5 }
 0x98b   : > { %v3003_v13 = vrot.slane %v2996_v38, 1  ;;  %v3006_v54 = vmul.f32 %v7653_v3, %v2996_v38  ;;  %v3009_v55 = vrot.slane %v2996_v38, 3  ;;  %v10201_v38 = vld [vmem:[#allocation15 + $0xe8] sm:$0xff] }
 0x98d   : > { %v3005_v7 = vmul.f32 %v3003_v13, %v9945_v12 }
 0x98f   : > { %v3007_v60 = vadd.f32 %v3006_v54, %v3005_v7  ;;  %v10209_v7 = vld [vmem:[#allocation15 + $0xc8] sm:$0xff] }
 0x991   : > { %7654 = vtanh.f32 %v3007_v60  ;;  %v10104_v63 = vsel %vm3015_vm15, %v3007_v60, %v9945_v12  ;;  %v10140_v12 = vld [vmem:[#allocation15 + $0x1e8] sm:$0xff] }
 0x992   : > { %3311 = vmatpush.msra.mxu1 %v10140_v12  ;;  %v10214_v60 = vld [vmem:[#allocation15 + $0xa8] sm:$0xff] }
 0x997   : > { %v7655_v58 = vpop.eup %7654 }
 0x998   : > { %v3011_v22 = vmul.f32 %v7655_v58, %v3009_v55  ;;  %v10219_v58 = vld [vmem:[#allocation15 + $0x88] sm:$0xff] }
 0x99a   : > { %v10111_v45 = vsel %vm3015_vm15, %v3011_v22, %v9948_v27  ;;  %v10142_v27 = vld [vmem:[#allocation15 + $0x1f0] sm:$0xff]  ;;  %v10224_v22 = vld [vmem:[#allocation15 + $0x68] sm:$0xff] }
 0x99b   : > { %3018 = vst [vmem:[#allocation5 + $0xb] sm:$0x1] %v10111_v45  ;;  %3105 = vmatmul.f32.vlgmr.msrb.gmra.mxu0 %v10111_v45  ;;  %3125 = vmatmul.f32.vlgmr.msrb.gmra.mxu1 %v10111_v45 }
 0x99c   : > { %3145 = vmatmul.f32.vlgmr.msra.gmra.mxu2 %v10111_v45  ;;  %3165 = vmatmul.f32.vlgmr.msra.gmra.mxu3 %v10111_v45 }
 0x99d   : > { %3493 = vmatpush.msrb.mxu0 %v9958_v37  ;;  %v10144_v37 = vld [vmem:[#allocation15 + $0x1f8] sm:$0xff]  ;;  %3331 = vmatpush.msrb.mxu2 %v10142_v27 }
 0x99e   : > { %3351 = vmatpush.msrb.mxu3 %v10144_v37 }
 0x99f   : > { %3494 = vmatpush.msrb.mxu0 %v9961_v6  ;;  %v10149_v6 = vld [vmem:[#allocation15 + $0x1c8] sm:$0xff] }
 0x9a0   : > { %3312 = vmatpush.msra.mxu1 %v10149_v6 }
 0x9a1   : > { %3495 = vmatpush.msrb.mxu0 %v9964_v41  ;;  %v10151_v41 = vld [vmem:[#allocation15 + $0x1d0] sm:$0xff] }
 0x9a2   : > { %3332 = vmatpush.msrb.mxu2 %v10151_v41 }
 0x9a3   : > { %3496 = vmatpush.msrb.mxu0 %v9967_v52  ;;  %v10153_v52 = vld [vmem:[#allocation15 + $0x1d8] sm:$0xff] }
 0x9a4   : > { %3352 = vmatpush.msrb.mxu3 %v10153_v52 }
 0x9a5   : > { %3497 = vmatpush.msrb.mxu0 %v9970_v9  ;;  %v10159_v9 = vld [vmem:[#allocation15 + $0x1a8] sm:$0xff] }
 0x9a6   : > { %3313 = vmatpush.msra.mxu1 %v10159_v9 }
 0x9a7   : > { %3498 = vmatpush.msrb.mxu0 %v9974_v59  ;;  %v10161_v59 = vld [vmem:[#allocation15 + $0x1b0] sm:$0xff] }
 0x9a8   : > { %3333 = vmatpush.msrb.mxu2 %v10161_v59 }
 0x9a9   : > { %3499 = vmatpush.msrb.mxu0 %v9987_v40  ;;  %v10163_v40 = vld [vmem:[#allocation15 + $0x1b8] sm:$0xff] }
 0x9aa   : > { %3353 = vmatpush.msrb.mxu3 %v10163_v40 }
 0x9ab   : > { %3500 = vmatpush.msrb.mxu0 %v9996_v53  ;;  %v10168_v53 = vld [vmem:[#allocation15 + $0x188] sm:$0xff] }
 0x9ac   : > { %3314 = vmatpush.msra.mxu1 %v10168_v53 }
 0x9ad   : > { %3501 = vmatpush.msrb.mxu0 %v10006_v17  ;;  %v10170_v17 = vld [vmem:[#allocation15 + $0x190] sm:$0xff] }
 0x9ae   : > { %3334 = vmatpush.msrb.mxu2 %v10170_v17 }
 0x9af   : > { %3502 = vmatpush.msrb.mxu0 %v10018_v4  ;;  %v10172_v4 = vld [vmem:[#allocation15 + $0x198] sm:$0xff] }
 0x9b0   : > { %3354 = vmatpush.msrb.mxu3 %v10172_v4 }
 0x9b1   : > { %3503 = vmatpush.msrb.mxu0 %v10029_v24  ;;  %v10176_v24 = vld [vmem:[#allocation15 + $0x168] sm:$0xff] }
 0x9b2   : > { %3315 = vmatpush.msra.mxu1 %v10176_v24 }
 0x9b3   : > { %3504 = vmatpush.msrb.mxu0 %v10041_v61  ;;  %v10178_v61 = vld [vmem:[#allocation15 + $0x170] sm:$0xff] }
 0x9b4   : > { %3335 = vmatpush.msrb.mxu2 %v10178_v61 }
 0x9b5   : > { %3505 = vmatpush.msrb.mxu0 %v10051_v8  ;;  %v10180_v8 = vld [vmem:[#allocation15 + $0x178] sm:$0xff] }
 0x9b6   : > { %3355 = vmatpush.msrb.mxu3 %v10180_v8  ;;  %3336 = vmatpush.msrb.mxu2 %v9972_v36 }
 0x9b7   : > { %3506 = vmatpush.msrb.mxu0 %v10060_v48 }
 0x9b8   : > { %3356 = vmatpush.msrb.mxu3 %v9977_v15  ;;  %3337 = vmatpush.msrb.mxu2 %v9979_v47 }
 0x9b9   : > { %3507 = vmatpush.msrb.mxu0 %v10069_v32  ;;  %v10183_v32 = vld [vmem:[#allocation15 + $0x148] sm:$0xff] }
 0x9ba   : > { %3316 = vmatpush.msra.mxu1 %v10183_v32  ;;  %3357 = vmatpush.msrb.mxu3 %v9983_v2 }
 0x9bb   : > { %3508 = vmatpush.msrb.mxu0 %v10076_v43  ;;  %v3023_v43 = vld [vmem:[%s3022_s20] sm:$0xf]  ;;  %3338 = vmatpush.msrb.mxu2 %v9985_v20  ;;  %s3619_s20 = scalar_select %p10496_p4, 1, 0 }
 0x9bc   : > { %v3024_v28 = vadd.f32 %v10195_v26, %v3023_v43  ;;  %3317 = vmatpush.msra.mxu1 %v10188_v0  ;;  %3358 = vmatpush.msrb.mxu3 %v9990_v25 }
 0x9bd   : > { %3339 = vmatpush.msrb.mxu2 %v9994_v39 }
 0x9be   : > { %3318 = vmatpush.msra.mxu1 %v10193_v49  ;;  %3359 = vmatpush.msrb.mxu3 %v9999_v11 }
 0x9bf   : > { %3340 = vmatpush.msrb.mxu2 %v10004_v16 }
 0x9c0   : > { %3319 = vmatpush.msra.mxu1 %v10201_v38  ;;  %3360 = vmatpush.msrb.mxu3 %v10009_v31 }
 0x9c1   : > { %3341 = vmatpush.msrb.mxu2 %v10015_v35 }
 0x9c2   : > { %3320 = vmatpush.msra.mxu1 %v10209_v7  ;;  %3361 = vmatpush.msrb.mxu3 %v10021_v10 }
 0x9c3   : > { %3342 = vmatpush.msrb.mxu2 %v10027_v44 }
 0x9c4   : > { %3321 = vmatpush.msra.mxu1 %v10214_v60  ;;  %3362 = vmatpush.msrb.mxu3 %v10032_v46 }
 0x9c5   : > { %3343 = vmatpush.msrb.mxu2 %v10039_v42 }
 0x9c6   : > { %3322 = vmatpush.msra.mxu1 %v10219_v58  ;;  %3363 = vmatpush.msrb.mxu3 %v10044_v33 }
 0x9c7   : > { %3344 = vmatpush.msrb.mxu2 %v10049_v62 }
 0x9c8   : > { %3323 = vmatpush.msra.mxu1 %v10224_v22  ;;  %3364 = vmatpush.msrb.mxu3 %v10054_v50 }
 0x9c9   : > { %3345 = vmatpush.msrb.mxu2 %v10058_v23 }
 0x9ca   : > { %3365 = vmatpush.msrb.mxu3 %v10063_v18 }
 0x9cb   : > { %3346 = vmatpush.msrb.mxu2 %v10067_v1 }
 0x9cc   : > { %3366 = vmatpush.msrb.mxu3 %v10072_v51 }
 0x9cd   : > { %3533 = vmatpush.msra.mxu2 %v10142_v27 }
 0x9ce   : > { %3553 = vmatpush.msra.mxu3 %v10144_v37 }
 0x9cf   : > { %3534 = vmatpush.msra.mxu2 %v10151_v41 }
 0x9d0   : > { %3554 = vmatpush.msra.mxu3 %v10153_v52 }
 0x9d1   : > { %3535 = vmatpush.msra.mxu2 %v10161_v59 }
 0x9d2   : > { %3555 = vmatpush.msra.mxu3 %v10163_v40 }
 0x9d3   : > { %3536 = vmatpush.msra.mxu2 %v10170_v17 }
 0x9d4   : > { %3556 = vmatpush.msra.mxu3 %v10172_v4 }
 0x9d5   : > { %3537 = vmatpush.msra.mxu2 %v10178_v61 }
 0x9d6   : > { %3557 = vmatpush.msra.mxu3 %v10180_v8 }
 0x9d7   : > { %3538 = vmatpush.msra.mxu2 %v9972_v36 }
 0x9d8   : > { %3558 = vmatpush.msra.mxu3 %v9977_v15 }
 0x9d9   : > { %3539 = vmatpush.msra.mxu2 %v9979_v47 }
 0x9da   : > { %3559 = vmatpush.msra.mxu3 %v9983_v2 }
 0x9db   : > { %3540 = vmatpush.msra.mxu2 %v9985_v20 }
 0x9dc   : > { %3560 = vmatpush.msra.mxu3 %v9990_v25 }
 0x9dd   : > { %3541 = vmatpush.msra.mxu2 %v9994_v39 }
 0x9de   : > { %3561 = vmatpush.msra.mxu3 %v9999_v11 }
 0x9df   : > { %3542 = vmatpush.msra.mxu2 %v10004_v16 }
 0x9e0   : > { %3562 = vmatpush.msra.mxu3 %v10009_v31  ;;  %v3225_v31 = vld [vmem:[%s3224_s24] sm:$0xf]  ;;  %s3821_s24 = scalar_select %p10661_p7, 1, 0 }
 0x9e1   : > { %3543 = vmatpush.msra.mxu2 %v10015_v35 }
 0x9e2   : > { %3563 = vmatpush.msra.mxu3 %v10021_v10 }
 0x9e3   : > { %3544 = vmatpush.msra.mxu2 %v10027_v44 }
 0x9e4   : > { %3564 = vmatpush.msra.mxu3 %v10032_v46  ;;  %v3226_v46 = vadd.f32 %v10195_v26, %v3225_v31  ;;  %v10413_v31 = vld [vmem:[#allocation15 + $0xe0] sm:$0xff] }
 0x9e5   : > { %3545 = vmatpush.msra.mxu2 %v10039_v42 }
 0x9e6   : > { %3565 = vmatpush.msra.mxu3 %v10044_v33 }
 0x9e7   : > { %3546 = vmatpush.msra.mxu2 %v10049_v62 }
 0x9e8   : > { %3566 = vmatpush.msra.mxu3 %v10054_v50 }
 0x9e9   : > { %3547 = vmatpush.msra.mxu2 %v10058_v23 }
 0x9ea   : > { %3567 = vmatpush.msra.mxu3 %v10063_v18 }
 0x9eb   : > { %3548 = vmatpush.msra.mxu2 %v10067_v1 }
 0x9ec   : > { %3568 = vmatpush.msra.mxu3 %v10072_v51 }
 0xa18   : > { %v3126_v48 = vpop.f32.mrf.mxu1  ;;  %v3106_v5 = vpop.f32.mrf.mxu0 }
 0xa19   : > { %v3173_v29 = vrot.slane %v3126_v48, 7  ;;  %v10229_v48 = vld [vmem:[#allocation15 + $0x48] sm:$0xff] }
 0xa1a   : > { %3324 = vmatpush.msra.mxu1 %v10229_v48 }
 0xa1b   : > { %v3176_v13 = vsel %vm749_vm6, %v3106_v5, %v3173_v29 }
 0xa1c   : > { %3325 = vmatpush.msra.mxu1 %v10023_v30 }
 0xa1e   : > { %3326 = vmatpush.msra.mxu1 %v10035_v57 }
 0xa1f   : > { %v3146_v21 = vpop.f32.mrf.mxu2  ;;  %v3166_v56 = vpop.f32.mrf.mxu3 }
 0xa20   : > { %v3174_v34 = vrot.slane %v3146_v21, 6  ;;  %v3175_v19 = vrot.slane %v3166_v56, 5  ;;  %3513 = vmatpush.msrb.mxu1 %v10140_v12 }
 0xa22   : > { %v3177_v14 = vsel %vm751_vm5, %v3174_v34, %v3175_v19  ;;  %3514 = vmatpush.msrb.mxu1 %v10149_v6 }
 0xa23   : > { %v3178_v3 = vsel %vm753_vm7, %v3176_v13, %v3177_v14 }
 0xa24   : > { %v3180_v54 = vadd.f32 %v3178_v3, %v3024_v28  ;;  %3515 = vmatpush.msrb.mxu1 %v10159_v9 }
 0xa26   : > { %v7396_v55 = vmul.f32 -1.442695, %v3180_v54  ;;  %v3201_v34 = vrot.slane %v3180_v54, 2  ;;  %3516 = vmatpush.msrb.mxu1 %v10168_v53 }
 0xa28   : > { %7656 = vpow2.f32 %v7396_v55  ;;  %3517 = vmatpush.msrb.mxu1 %v10176_v24 }
 0xa2a   : > { %3518 = vmatpush.msrb.mxu1 %v10183_v32 }
 0xa2c   : > { %3519 = vmatpush.msrb.mxu1 %v10188_v0 }
 0xa2e   : > { %v7657_v43 = vpop.eup %7656  ;;  %3520 = vmatpush.msrb.mxu1 %v10193_v49 }
 0xa2f   : > { %v3184_v29 = vadd.f32 1.0, %v7657_v43 }
 0xa30   : > { %3521 = vmatpush.msrb.mxu1 %v10201_v38 }
 0xa31   : > { %7658 = vrcp.f32 %v3184_v29  ;;  %v3196_v19 = vand.u32 2147483648, %v3184_v29  ;;  %v3194_v13 = vand.u32 2147483647, %v3184_v29  ;;  %vm3190_vm1 = vweird.f32 %v3184_v29 }
 0xa32   : > { %7660 = vtanh.f32 %v3201_v34  ;;  %3522 = vmatpush.msrb.mxu1 %v10209_v7  ;;  %v10379_v34 = vld [vmem:[#allocation15 + $0x150] sm:$0xff] }
 0xa33   : > { %v3197_v3 = vor.u32 1.1754944e-38, %v3196_v19  ;;  %vm3195_vm3 = vcmp.eq.f32.partialorder %v3194_v13, 8.507059e+37  ;;  %v10381_v19 = vld [vmem:[#allocation15 + $0x140] sm:$0xff]  ;;  %v10386_v13 = vld [vmem:[#allocation15 + $0x130] sm:$0xff] }
 0xa34   : > { %3523 = vmatpush.msrb.mxu1 %v10214_v60 }
 0xa36   : > { %3524 = vmatpush.msrb.mxu1 %v10219_v58 }
 0xa37   : > { %v7659_v21 = vpop.eup %7658 }
 0xa38   : > { %v3186_v56 = vmul.f32 %v7659_v21, %v3184_v29  ;;  %vm3191_vm0 = vweird.f32 %v7659_v21  ;;  %v3216_v29 = vstv %s3215_s26  ;;  %v7661_v36 = vpop.eup %7660  ;;  %3525 = vmatpush.msrb.mxu1 %v10224_v22  ;;  %s10545_s26 = sld [smem:[#allocation7 + %s3625_s7]] }
 0xa39   : > { %vm3192_vm2 = vmor %vm3190_vm1, %vm3191_vm0  ;;  %vm3217_vm4 = vcmp.eq.s32.totalorder %v3216_v29, 1 }
 0xa3a   : > { %v3187_v28 = vsub.f32 1.0, %v3186_v56  ;;  %3526 = vmatpush.msrb.mxu1 %v10229_v48  ;;  %v10377_v56 = vld [vmem:[#allocation15 + $0x160] sm:$0xff] }
 0xa3c   : > { %v3188_v5 = vmul.f32 %v7659_v21, %v3187_v28  ;;  %3527 = vmatpush.msrb.mxu1 %v10023_v30 }
 0xa3e   : > { %v3189_v14 = vadd.f32 %v7659_v21, %v3188_v5  ;;  %3528 = vmatpush.msrb.mxu1 %v10035_v57  ;;  %v10384_v5 = vld [vmem:[#allocation15 + $0x158] sm:$0xff]  ;;  %s7401_s28 = sshll.u32 %s10545_s26, 2 }
 0xa3f   : > { %s3628_s16 = scalar_lea.vmem [#allocation12], %s7401_s28  ;;  %s4635_s28 = sadd.s32 20, %s8665_s5 }
 0xa40   : > { %v3193_v54 = vsel %vm3192_vm2, %v7659_v21, %v3189_v14  ;;  %v10390_v14 = vld [vmem:[#allocation15 + $0x138] sm:$0xff]  ;;  %p11310_p12 = scmp.lt.s32.totalorder %s4635_s28, %s8674_s25 }
 0xa41   : > { %v3198_v55 = vsel %vm3195_vm3, %v3197_v3, %v3193_v54  ;;  %v10392_v3 = vld [vmem:[#allocation15 + $0x110] sm:$0xff]  ;;  %v3427_v54 = vld [vmem:[%s3426_s21] sm:$0xf]  ;;  %s4023_s21 = scalar_select %p10751_p8, 1, 0 }
 0xa42   : > { %v3205_v43 = vrot.slane %v3198_v55, 1  ;;  %v3208_v21 = vmul.f32 %v7661_v36, %v3198_v55  ;;  %v3211_v20 = vrot.slane %v3198_v55, 3  ;;  %v10394_v55 = vld [vmem:[#allocation15 + $0x120] sm:$0xff]  ;;  %v10401_v36 = vld [vmem:[#allocation15 + $0xf0] sm:$0xff] }
 0xa44   : > { %v3207_v15 = vmul.f32 %v3205_v43, %v10104_v63  ;;  %v10397_v43 = vld [vmem:[#allocation15 + $0x118] sm:$0xff] }
 0xa46   : > { %v3209_v47 = vadd.f32 %v3208_v21, %v3207_v15 }
 0xa48   : > { %7662 = vtanh.f32 %v3209_v47  ;;  %v10286_v2 = vsel %vm3217_vm4, %v3209_v47, %v10104_v63  ;;  %v10403_v47 = vld [vmem:[#allocation15 + $0x100] sm:$0xff] }
 0xa4e   : > { %v7663_v25 = vpop.eup %7662 }
 0xa4f   : > { %v3213_v39 = vmul.f32 %v7663_v25, %v3211_v20  ;;  %v3428_v25 = vadd.f32 %v10195_v26, %v3427_v54 }
 0xa51   : > { %v10304_v11 = vsel %vm3217_vm4, %v3213_v39, %v10111_v45 }
 0xa52   : > { %3220 = vst [vmem:[#allocation5 + $0xc] sm:$0x1] %v10304_v11  ;;  %3307 = vmatmul.f32.vlgmr.msra.gmra.mxu0 %v10304_v11  ;;  %3327 = vmatmul.f32.vlgmr.msra.gmra.mxu1 %v10304_v11 }
 0xa53   : > { %3347 = vmatmul.f32.vlgmr.msrb.gmra.mxu2 %v10304_v11  ;;  %3367 = vmatmul.f32.vlgmr.msrb.gmra.mxu3 %v10304_v11 }
 0xa54   : > { %3715 = vmatpush.msra.mxu1 %v10140_v12  ;;  %3735 = vmatpush.msrb.mxu2 %v10142_v27 }
 0xa55   : > { %3755 = vmatpush.msrb.mxu3 %v10144_v37 }
 0xa56   : > { %3716 = vmatpush.msra.mxu1 %v10149_v6  ;;  %3736 = vmatpush.msrb.mxu2 %v10151_v41 }
 0xa57   : > { %3756 = vmatpush.msrb.mxu3 %v10153_v52 }
 0xa58   : > { %3717 = vmatpush.msra.mxu1 %v10159_v9  ;;  %3737 = vmatpush.msrb.mxu2 %v10161_v59 }
 0xa59   : > { %3757 = vmatpush.msrb.mxu3 %v10163_v40 }
 0xa5a   : > { %3718 = vmatpush.msra.mxu1 %v10168_v53  ;;  %3738 = vmatpush.msrb.mxu2 %v10170_v17  ;;  %v3418_v17 = vstv %s3417_s17  ;;  %s3828_s17 = sld [smem:[#allocation7 + %s3827_s30]] }
 0xa5b   : > { %3758 = vmatpush.msrb.mxu3 %v10172_v4  ;;  %vm3419_vm12 = vcmp.eq.s32.totalorder %v3418_v17, 1 }
 0xa5c   : > { %3719 = vmatpush.msra.mxu1 %v10176_v24  ;;  %3739 = vmatpush.msrb.mxu2 %v10178_v61 }
 0xa5d   : > { %3759 = vmatpush.msrb.mxu3 %v10180_v8 }
 0xa5e   : > { %3720 = vmatpush.msra.mxu1 %v10183_v32  ;;  %3740 = vmatpush.msrb.mxu2 %v10379_v34 }
 0xa5f   : > { %3760 = vmatpush.msrb.mxu3 %v10384_v5 }
 0xa60   : > { %3721 = vmatpush.msra.mxu1 %v10188_v0  ;;  %3741 = vmatpush.msrb.mxu2 %v10386_v13  ;;  %s7403_s19 = sshll.u32 %s3828_s17, 2 }
 0xa61   : > { %3761 = vmatpush.msrb.mxu3 %v10390_v14  ;;  %s3830_s27 = scalar_lea.vmem [#allocation12], %s7403_s19  ;;  %s4837_s19 = sadd.s32 21, %s8665_s5 }
 0xa62   : > { %3722 = vmatpush.msra.mxu1 %v10193_v49  ;;  %3742 = vmatpush.msrb.mxu2 %v10392_v3  ;;  %p11475_p13 = scmp.lt.s32.totalorder %s4837_s19, %s8674_s25 }
 0xa63   : > { %3762 = vmatpush.msrb.mxu3 %v10397_v43 }
 0xa64   : > { %3723 = vmatpush.msra.mxu1 %v10201_v38  ;;  %3743 = vmatpush.msrb.mxu2 %v10401_v36 }
 0xa66   : > { %3724 = vmatpush.msra.mxu1 %v10209_v7 }
 0xa68   : > { %3725 = vmatpush.msra.mxu1 %v10214_v60  ;;  %v10365_v60 = vld [vmem:[#allocation15 + $0x1e0] sm:$0xff] }
 0xa69   : > { %3695 = vmatpush.msra.mxu0 %v10365_v60 }
 0xa6a   : > { %3726 = vmatpush.msra.mxu1 %v10219_v58  ;;  %v10368_v58 = vld [vmem:[#allocation15 + $0x1c0] sm:$0xff] }
 0xa6b   : > { %3696 = vmatpush.msra.mxu0 %v10368_v58 }
 0xa6c   : > { %3727 = vmatpush.msra.mxu1 %v10224_v22  ;;  %v10371_v22 = vld [vmem:[#allocation15 + $0x1a0] sm:$0xff] }
 0xa6d   : > { %3697 = vmatpush.msra.mxu0 %v10371_v22 }
 0xa6e   : > { %3728 = vmatpush.msra.mxu1 %v10229_v48  ;;  %v10374_v48 = vld [vmem:[#allocation15 + $0x180] sm:$0xff] }
 0xa6f   : > { %3698 = vmatpush.msra.mxu0 %v10374_v48 }
 0xa71   : > { %3699 = vmatpush.msra.mxu0 %v10377_v56 }
 0xa73   : > { %3700 = vmatpush.msra.mxu0 %v10381_v19 }
 0xa75   : > { %3701 = vmatpush.msra.mxu0 %v10394_v55 }
 0xa77   : > { %3702 = vmatpush.msra.mxu0 %v10403_v47 }
 0xa79   : > { %3703 = vmatpush.msra.mxu0 %v10413_v31 }
 0xacf   : > { %v3328_v16 = vpop.f32.mrf.mxu1  ;;  %v3308_v42 = vpop.f32.mrf.mxu0 }
 0xad0   : > { %v3375_v35 = vrot.slane %v3328_v16, 7 }
 0xad2   : > { %v3378_v33 = vsel %vm749_vm6, %v3308_v42, %v3375_v35  ;;  %v10416_v35 = vld [vmem:[#allocation15 + $0xd8] sm:$0xff] }
 0xad3   : > { %v10428_v42 = vld [vmem:[#allocation15 + $0xb8] sm:$0xff] }
 0xad6   : > { %v3348_v10 = vpop.f32.mrf.mxu2  ;;  %v3368_v30 = vpop.f32.mrf.mxu3 }
 0xad7   : > { %v3376_v44 = vrot.slane %v3348_v10, 6  ;;  %v3377_v57 = vrot.slane %v3368_v30, 5 }
 0xad9   : > { %v3379_v62 = vsel %vm751_vm5, %v3376_v44, %v3377_v57  ;;  %v10422_v44 = vld [vmem:[#allocation15 + $0xb0] sm:$0xff]  ;;  %v10425_v57 = vld [vmem:[#allocation15 + $0xc0] sm:$0xff] }
 0xada   : > { %v3380_v50 = vsel %vm753_vm7, %v3378_v33, %v3379_v62  ;;  %v10430_v33 = vld [vmem:[#allocation15 + $0x28] sm:$0xff]  ;;  %3704 = vmatpush.msra.mxu0 %v10425_v57 }
 0xadb   : > { %v3382_v23 = vadd.f32 %v3380_v50, %v3226_v46  ;;  %v10434_v50 = vld [vmem:[#allocation15 + $0x90] sm:$0xff]  ;;  %3729 = vmatpush.msra.mxu1 %v10430_v33 }
 0xadd   : > { %v7398_v18 = vmul.f32 -1.442695, %v3382_v23  ;;  %v3403_v12 = vrot.slane %v3382_v23, 2  ;;  %v10436_v23 = vld [vmem:[#allocation15 + $0xa0] sm:$0xff] }
 0xade   : > { %3705 = vmatpush.msra.mxu0 %v10436_v23 }
 0xadf   : > { %7664 = vpow2.f32 %v7398_v18  ;;  %v10439_v18 = vld [vmem:[#allocation15 + $0x98] sm:$0xff] }
 0xae5   : > { %v7665_v1 = vpop.eup %7664 }
 0xae6   : > { %v3386_v51 = vadd.f32 1.0, %v7665_v1  ;;  %v10442_v1 = vld [vmem:[#allocation15 + $0x8] sm:$0xff] }
 0xae7   : > { %3730 = vmatpush.msra.mxu1 %v10442_v1 }
 0xae8   : > { %7666 = vrcp.f32 %v3386_v51  ;;  %v3398_v37 = vand.u32 2147483648, %v3386_v51  ;;  %v3396_v41 = vand.u32 2147483647, %v3386_v51  ;;  %vm3392_vm9 = vweird.f32 %v3386_v51 }
 0xae9   : > { %7668 = vtanh.f32 %v3403_v12  ;;  %v10451_v12 = vld [vmem:[#allocation15 + $0x78] sm:$0xff] }
 0xaea   : > { %v3399_v9 = vor.u32 1.1754944e-38, %v3398_v37  ;;  %vm3397_vm11 = vcmp.eq.f32.partialorder %v3396_v41, 8.507059e+37  ;;  %v10458_v37 = vld [vmem:[#allocation15 + $0x60] sm:$0xff]  ;;  %v10465_v41 = vld [vmem:[#allocation15 + $0x30] sm:$0xff] }
 0xaee   : > { %v7667_v63 = vpop.eup %7666 }
 0xaef   : > { %v3388_v45 = vmul.f32 %v7667_v63, %v3386_v51  ;;  %vm3393_vm8 = vweird.f32 %v7667_v63  ;;  %v7669_v4 = vpop.eup %7668 }
 0xaf0   : > { %vm3394_vm10 = vmor %vm3392_vm9, %vm3393_vm8 }
 0xaf1   : > { %v3389_v27 = vsub.f32 1.0, %v3388_v45  ;;  %v10448_v45 = vld [vmem:[#allocation15 + $0x80] sm:$0xff] }
 0xaf2   : > { %3706 = vmatpush.msra.mxu0 %v10448_v45 }
 0xaf3   : > { %v3390_v6 = vmul.f32 %v7667_v63, %v3389_v27  ;;  %v10456_v27 = vld [vmem:[#allocation15 + $0x50] sm:$0xff] }
 0xaf4   : > { %3707 = vmatpush.msra.mxu0 %v10458_v37 }
 0xaf5   : > { %v3391_v52 = vadd.f32 %v7667_v63, %v3390_v6  ;;  %v10461_v6 = vld [vmem:[#allocation15 + $0x58] sm:$0xff] }
 0xaf7   : > { %v3395_v59 = vsel %vm3394_vm10, %v7667_v63, %v3391_v52  ;;  %v10446_v63 = vld [vmem:[#allocation15 + $0x70] sm:$0xff]  ;;  %v10467_v52 = vld [vmem:[#allocation15 + $0x40] sm:$0xff] }
 0xaf8   : > { %v3400_v40 = vsel %vm3397_vm11, %v3399_v9, %v3395_v59  ;;  %v10470_v9 = vld [vmem:[#allocation15 + $0x38] sm:$0xff]  ;;  %v10474_v59 = vld [vmem:[#allocation15 + $0x10] sm:$0xff]  ;;  %3708 = vmatpush.msra.mxu0 %v10467_v52 }
 0xaf9   : > { %v3407_v53 = vrot.slane %v3400_v40, 1  ;;  %v3410_v61 = vmul.f32 %v7669_v4, %v3400_v40  ;;  %v3413_v0 = vrot.slane %v3400_v40, 3  ;;  %v10476_v40 = vld [vmem:[#allocation15 + $0x20] sm:$0xff] }
 0xafa   : > { %3709 = vmatpush.msra.mxu0 %v10476_v40 }
 0xafb   : > { %v3409_v24 = vmul.f32 %v3407_v53, %v10286_v2  ;;  %v10479_v53 = vld [vmem:[#allocation15 + $0x18] sm:$0xff] }
 0xafd   : > { %v3411_v8 = vadd.f32 %v3410_v61, %v3409_v24  ;;  %v10483_v24 = vld [vmem:[#allocation15] sm:$0xff] }
 0xafe   : > { %3710 = vmatpush.msra.mxu0 %v10483_v24 }
 0xaff   : > { %7670 = vtanh.f32 %v3411_v8  ;;  %v10352_v32 = vsel %vm3419_vm12, %v3411_v8, %v10286_v2  ;;  %v10406_v2 = vld [vmem:[#allocation15 + $0xf8] sm:$0xff] }
 0xb00   : > { %3763 = vmatpush.msrb.mxu3 %v10406_v2 }
 0xb02   : > { %3764 = vmatpush.msrb.mxu3 %v10416_v35 }
 0xb04   : > { %3765 = vmatpush.msrb.mxu3 %v10428_v42 }
 0xb05   : > { %v7671_v49 = vpop.eup %7670 }
 0xb06   : > { %v3415_v38 = vmul.f32 %v7671_v49, %v3413_v0  ;;  %3766 = vmatpush.msrb.mxu3 %v10439_v18 }
 0xb08   : > { %v10355_v7 = vsel %vm3419_vm12, %v3415_v38, %v10304_v11  ;;  %v10411_v11 = vld [vmem:[#allocation15 + $0xd0] sm:$0xff]  ;;  %3767 = vmatpush.msrb.mxu3 %v10451_v12 }
 0xb09   : > { %3422 = vst [vmem:[#allocation5 + $0xd] sm:$0x1] %v10355_v7  ;;  %3509 = vmatmul.f32.vlgmr.msrb.gmra.mxu0 %v10355_v7  ;;  %3529 = vmatmul.f32.vlgmr.msrb.gmra.mxu1 %v10355_v7 }
 0xb0a   : > { %3549 = vmatmul.f32.vlgmr.msra.gmra.mxu2 %v10355_v7  ;;  %3569 = vmatmul.f32.vlgmr.msra.gmra.mxu3 %v10355_v7 }
 0xb0b   : > { %3744 = vmatpush.msrb.mxu2 %v10411_v11  ;;  %3768 = vmatpush.msrb.mxu3 %v10461_v6 }
 0xb0c   : > { %3897 = vmatpush.msrb.mxu0 %v10365_v60 }
 0xb0d   : > { %3745 = vmatpush.msrb.mxu2 %v10422_v44  ;;  %3769 = vmatpush.msrb.mxu3 %v10470_v9 }
 0xb0e   : > { %3898 = vmatpush.msrb.mxu0 %v10368_v58 }
 0xb0f   : > { %3746 = vmatpush.msrb.mxu2 %v10434_v50  ;;  %3770 = vmatpush.msrb.mxu3 %v10479_v53 }
 0xb10   : > { %3899 = vmatpush.msrb.mxu0 %v10371_v22 }
 0xb11   : > { %3747 = vmatpush.msrb.mxu2 %v10446_v63 }
 0xb12   : > { %3900 = vmatpush.msrb.mxu0 %v10374_v48 }
 0xb13   : > { %3748 = vmatpush.msrb.mxu2 %v10456_v27 }
 0xb14   : > { %3901 = vmatpush.msrb.mxu0 %v10377_v56 }
 0xb15   : > { %3749 = vmatpush.msrb.mxu2 %v10465_v41 }
 0xb16   : > { %3902 = vmatpush.msrb.mxu0 %v10381_v19 }
 0xb17   : > { %3750 = vmatpush.msrb.mxu2 %v10474_v59 }
 0xb18   : > { %3903 = vmatpush.msrb.mxu0 %v10394_v55 }
 0xb1a   : > { %3904 = vmatpush.msrb.mxu0 %v10403_v47 }
 0xb1c   : > { %3905 = vmatpush.msrb.mxu0 %v10413_v31 }
 0xb1e   : > { %3906 = vmatpush.msrb.mxu0 %v10425_v57 }
 0xb20   : > { %3907 = vmatpush.msrb.mxu0 %v10436_v23 }
 0xb22   : > { %3908 = vmatpush.msrb.mxu0 %v10448_v45 }
 0xb24   : > { %3909 = vmatpush.msrb.mxu0 %v10458_v37 }
 0xb26   : > { %3910 = vmatpush.msrb.mxu0 %v10467_v52 }
 0xb28   : > { %3911 = vmatpush.msrb.mxu0 %v10476_v40 }
 0xb2a   : > { %3912 = vmatpush.msrb.mxu0 %v10483_v24 }
 0xb86   : > { %v3530_v28 = vpop.f32.mrf.mxu1  ;;  %v3510_v16 = vpop.f32.mrf.mxu0 }
 0xb87   : > { %v3577_v29 = vrot.slane %v3530_v28, 7 }
 0xb89   : > { %v3580_v10 = vsel %vm749_vm6, %v3510_v16, %v3577_v29 }
 0xb8d   : > { %v3550_v15 = vpop.f32.mrf.mxu2  ;;  %v3570_v21 = vpop.f32.mrf.mxu3 }
 0xb8e   : > { %v3578_v20 = vrot.slane %v3550_v15, 6  ;;  %v3579_v39 = vrot.slane %v3570_v21, 5 }
 0xb90   : > { %v3581_v30 = vsel %vm751_vm5, %v3578_v20, %v3579_v39  ;;  %v3620_v39 = vstv %s3619_s20  ;;  %s4030_s20 = sld [smem:[#allocation7 + %s4029_s29]] }
 0xb91   : > { %v3582_v46 = vsel %vm753_vm7, %v3580_v10, %v3581_v30  ;;  %vm3621_vm1 = vcmp.eq.s32.totalorder %v3620_v39, 1 }
 0xb92   : > { %v3584_v62 = vadd.f32 %v3582_v46, %v3428_v25 }
 0xb94   : > { %v7400_v51 = vmul.f32 -1.442695, %v3584_v62  ;;  %v3605_v0 = vrot.slane %v3584_v62, 2 }
 0xb96   : > { %7672 = vpow2.f32 %v7400_v51  ;;  %s7405_s7 = sshll.u32 %s4030_s20, 2 }
 0xb97   : > { %s4032_s26 = scalar_lea.vmem [#allocation12], %s7405_s7  ;;  %s5039_s7 = sadd.s32 22, %s8665_s5 }
 0xb98   : > { %p11563_p0 = scmp.lt.s32.totalorder %s5039_s7, %s8674_s25 }
 0xb9c   : > { %v7673_v17 = vpop.eup %7672 }
 0xb9d   : > { %v3588_v4 = vadd.f32 1.0, %v7673_v17 }
 0xb9f   : > { %7674 = vrcp.f32 %v3588_v4  ;;  %v3600_v38 = vand.u32 2147483648, %v3588_v4  ;;  %v3598_v54 = vand.u32 2147483647, %v3588_v4  ;;  %vm3594_vm14 = vweird.f32 %v3588_v4 }
 0xba0   : > { %7676 = vtanh.f32 %v3605_v0 }
 0xba1   : > { %v3601_v15 = vor.u32 1.1754944e-38, %v3600_v38  ;;  %vm3599_vm0 = vcmp.eq.f32.partialorder %v3598_v54, 8.507059e+37 }
 0xba5   : > { %v7675_v61 = vpop.eup %7674 }
 0xba6   : > { %v3590_v8 = vmul.f32 %v7675_v61, %v3588_v4  ;;  %vm3595_vm13 = vweird.f32 %v7675_v61  ;;  %v7677_v16 = vpop.eup %7676 }
 0xba7   : > { %vm3596_vm15 = vmor %vm3594_vm14, %vm3595_vm13 }
 0xba8   : > { %v3591_v49 = vsub.f32 1.0, %v3590_v8  ;;  %v10595_v8 = vld [vmem:[#allocation15 + $0x128] sm:$0xff] }
 0xbaa   : > { %v3592_v28 = vmul.f32 %v7675_v61, %v3591_v49 }
 0xbac   : > { %v3593_v29 = vadd.f32 %v7675_v61, %v3592_v28  ;;  %v10600_v28 = vld [vmem:[#allocation15 + $0x108] sm:$0xff] }
 0xbae   : > { %v3597_v21 = vsel %vm3596_vm15, %v7675_v61, %v3593_v29 }
 0xbaf   : > { %v3602_v20 = vsel %vm3599_vm0, %v3601_v15, %v3597_v21 }
 0xbb0   : > { %v3609_v25 = vrot.slane %v3602_v20, 1  ;;  %v3612_v30 = vmul.f32 %v7677_v16, %v3602_v20  ;;  %v3615_v51 = vrot.slane %v3602_v20, 3  ;;  %v10606_v20 = vld [vmem:[#allocation15 + $0xe8] sm:$0xff] }
 0xbb1   : > { %v10614_v16 = vld [vmem:[#allocation15 + $0xc8] sm:$0xff] }
 0xbb2   : > { %v3611_v10 = vmul.f32 %v3609_v25, %v10352_v32 }
 0xbb4   : > { %v3613_v46 = vadd.f32 %v3612_v30, %v3611_v10  ;;  %v10619_v30 = vld [vmem:[#allocation15 + $0xa8] sm:$0xff] }
 0xbb6   : > { %7678 = vtanh.f32 %v3613_v46  ;;  %v10511_v62 = vsel %vm3621_vm1, %v3613_v46, %v10352_v32  ;;  %v10547_v32 = vld [vmem:[#allocation15 + $0x1e8] sm:$0xff] }
 0xbb7   : > { %3917 = vmatpush.msrb.mxu1 %v10547_v32 }
 0xbbc   : > { %v7679_v17 = vpop.eup %7678 }
 0xbbd   : > { %v3617_v4 = vmul.f32 %v7679_v17, %v3615_v51  ;;  %v10624_v51 = vld [vmem:[#allocation15 + $0x88] sm:$0xff] }
 0xbbe   : > { %v10629_v17 = vld [vmem:[#allocation15 + $0x68] sm:$0xff] }
 0xbbf   : > { %v10518_v61 = vsel %vm3621_vm1, %v3617_v4, %v10355_v7  ;;  %v10549_v7 = vld [vmem:[#allocation15 + $0x1f0] sm:$0xff]  ;;  %v10634_v4 = vld [vmem:[#allocation15 + $0x48] sm:$0xff] }
 0xbc0   : > { %3624 = vst [vmem:[#allocation5 + $0xe] sm:$0x1] %v10518_v61  ;;  %3711 = vmatmul.f32.vlgmr.msra.gmra.mxu0 %v10518_v61  ;;  %3731 = vmatmul.f32.vlgmr.msra.gmra.mxu1 %v10518_v61 }
 0xbc1   : > { %3751 = vmatmul.f32.vlgmr.msrb.gmra.mxu2 %v10518_v61  ;;  %3771 = vmatmul.f32.vlgmr.msrb.gmra.mxu3 %v10518_v61 }
 0xbc2   : > { %4099 = vmatpush.msra.mxu0 %v10365_v60  ;;  %v10551_v60 = vld [vmem:[#allocation15 + $0x1f8] sm:$0xff]  ;;  %3937 = vmatpush.msra.mxu2 %v10549_v7 }
 0xbc3   : > { %3957 = vmatpush.msra.mxu3 %v10551_v60 }
 0xbc4   : > { %4100 = vmatpush.msra.mxu0 %v10368_v58  ;;  %v10556_v58 = vld [vmem:[#allocation15 + $0x1c8] sm:$0xff] }
 0xbc5   : > { %3918 = vmatpush.msrb.mxu1 %v10556_v58 }
 0xbc6   : > { %4101 = vmatpush.msra.mxu0 %v10371_v22  ;;  %v10558_v22 = vld [vmem:[#allocation15 + $0x1d0] sm:$0xff] }
 0xbc7   : > { %3938 = vmatpush.msra.mxu2 %v10558_v22 }
 0xbc8   : > { %4102 = vmatpush.msra.mxu0 %v10374_v48  ;;  %v10560_v48 = vld [vmem:[#allocation15 + $0x1d8] sm:$0xff] }
 0xbc9   : > { %3958 = vmatpush.msra.mxu3 %v10560_v48 }
 0xbca   : > { %4103 = vmatpush.msra.mxu0 %v10377_v56  ;;  %v10566_v56 = vld [vmem:[#allocation15 + $0x1a8] sm:$0xff] }
 0xbcb   : > { %3919 = vmatpush.msrb.mxu1 %v10566_v56 }
 0xbcc   : > { %4104 = vmatpush.msra.mxu0 %v10381_v19  ;;  %v10568_v19 = vld [vmem:[#allocation15 + $0x1b0] sm:$0xff] }
 0xbcd   : > { %3939 = vmatpush.msra.mxu2 %v10568_v19 }
 0xbce   : > { %4105 = vmatpush.msra.mxu0 %v10394_v55  ;;  %v10570_v55 = vld [vmem:[#allocation15 + $0x1b8] sm:$0xff] }
 0xbcf   : > { %3959 = vmatpush.msra.mxu3 %v10570_v55 }
 0xbd0   : > { %4106 = vmatpush.msra.mxu0 %v10403_v47  ;;  %v10575_v47 = vld [vmem:[#allocation15 + $0x188] sm:$0xff] }
 0xbd1   : > { %3920 = vmatpush.msrb.mxu1 %v10575_v47 }
 0xbd2   : > { %4107 = vmatpush.msra.mxu0 %v10413_v31  ;;  %v10577_v31 = vld [vmem:[#allocation15 + $0x190] sm:$0xff] }
 0xbd3   : > { %3940 = vmatpush.msra.mxu2 %v10577_v31 }
 0xbd4   : > { %4108 = vmatpush.msra.mxu0 %v10425_v57  ;;  %v10579_v57 = vld [vmem:[#allocation15 + $0x198] sm:$0xff] }
 0xbd5   : > { %3960 = vmatpush.msra.mxu3 %v10579_v57 }
 0xbd6   : > { %4109 = vmatpush.msra.mxu0 %v10436_v23  ;;  %v10583_v23 = vld [vmem:[#allocation15 + $0x168] sm:$0xff] }
 0xbd7   : > { %3921 = vmatpush.msrb.mxu1 %v10583_v23 }
 0xbd8   : > { %4110 = vmatpush.msra.mxu0 %v10448_v45  ;;  %v10585_v45 = vld [vmem:[#allocation15 + $0x170] sm:$0xff] }
 0xbd9   : > { %3941 = vmatpush.msra.mxu2 %v10585_v45 }
 0xbda   : > { %4111 = vmatpush.msra.mxu0 %v10458_v37  ;;  %v10587_v37 = vld [vmem:[#allocation15 + $0x178] sm:$0xff] }
 0xbdb   : > { %3961 = vmatpush.msra.mxu3 %v10587_v37  ;;  %3942 = vmatpush.msra.mxu2 %v10379_v34 }
 0xbdc   : > { %4112 = vmatpush.msra.mxu0 %v10467_v52 }
 0xbdd   : > { %3962 = vmatpush.msra.mxu3 %v10384_v5  ;;  %3943 = vmatpush.msra.mxu2 %v10386_v13 }
 0xbde   : > { %4113 = vmatpush.msra.mxu0 %v10476_v40  ;;  %v10590_v40 = vld [vmem:[#allocation15 + $0x148] sm:$0xff] }
 0xbdf   : > { %3922 = vmatpush.msrb.mxu1 %v10590_v40  ;;  %3963 = vmatpush.msra.mxu3 %v10390_v14 }
 0xbe0   : > { %4114 = vmatpush.msra.mxu0 %v10483_v24  ;;  %v3629_v24 = vld [vmem:[%s3628_s16] sm:$0xf]  ;;  %3944 = vmatpush.msra.mxu2 %v10392_v3  ;;  %s4225_s16 = scalar_select %p10903_p9, 1, 0 }
 0xbe1   : > { %v3630_v29 = vadd.f32 %v10195_v26, %v3629_v24  ;;  %3923 = vmatpush.msrb.mxu1 %v10595_v8  ;;  %3964 = vmatpush.msra.mxu3 %v10397_v43 }
 0xbe2   : > { %3945 = vmatpush.msra.mxu2 %v10401_v36 }
 0xbe3   : > { %3924 = vmatpush.msrb.mxu1 %v10600_v28  ;;  %3965 = vmatpush.msra.mxu3 %v10406_v2 }
 0xbe4   : > { %3946 = vmatpush.msra.mxu2 %v10411_v11 }
 0xbe5   : > { %3925 = vmatpush.msrb.mxu1 %v10606_v20  ;;  %3966 = vmatpush.msra.mxu3 %v10416_v35 }
 0xbe6   : > { %3947 = vmatpush.msra.mxu2 %v10422_v44 }
 0xbe7   : > { %3926 = vmatpush.msrb.mxu1 %v10614_v16  ;;  %3967 = vmatpush.msra.mxu3 %v10428_v42 }
 0xbe8   : > { %3948 = vmatpush.msra.mxu2 %v10434_v50 }
 0xbe9   : > { %3927 = vmatpush.msrb.mxu1 %v10619_v30  ;;  %3968 = vmatpush.msra.mxu3 %v10439_v18 }
 0xbea   : > { %3949 = vmatpush.msra.mxu2 %v10446_v63 }
 0xbeb   : > { %3928 = vmatpush.msrb.mxu1 %v10624_v51  ;;  %3969 = vmatpush.msra.mxu3 %v10451_v12 }
 0xbec   : > { %3950 = vmatpush.msra.mxu2 %v10456_v27 }
 0xbed   : > { %3929 = vmatpush.msrb.mxu1 %v10629_v17  ;;  %3970 = vmatpush.msra.mxu3 %v10461_v6 }
 0xbee   : > { %3951 = vmatpush.msra.mxu2 %v10465_v41 }
 0xbef   : > { %3930 = vmatpush.msrb.mxu1 %v10634_v4  ;;  %3971 = vmatpush.msra.mxu3 %v10470_v9 }
 0xbf0   : > { %3952 = vmatpush.msra.mxu2 %v10474_v59 }
 0xbf1   : > { %3931 = vmatpush.msrb.mxu1 %v10430_v33  ;;  %3972 = vmatpush.msra.mxu3 %v10479_v53 }
 0xbf2   : > { %4139 = vmatpush.msrb.mxu2 %v10549_v7 }
 0xbf3   : > { %3932 = vmatpush.msrb.mxu1 %v10442_v1  ;;  %4159 = vmatpush.msrb.mxu3 %v10551_v60 }
 0xbf4   : > { %4140 = vmatpush.msrb.mxu2 %v10558_v22 }
 0xbf5   : > { %4119 = vmatpush.msra.mxu1 %v10547_v32  ;;  %4160 = vmatpush.msrb.mxu3 %v10560_v48 }
 0xbf6   : > { %4141 = vmatpush.msrb.mxu2 %v10568_v19 }
 0xbf7   : > { %4120 = vmatpush.msra.mxu1 %v10556_v58  ;;  %4161 = vmatpush.msrb.mxu3 %v10570_v55 }
 0xbf8   : > { %4142 = vmatpush.msrb.mxu2 %v10577_v31 }
 0xbf9   : > { %4121 = vmatpush.msra.mxu1 %v10566_v56  ;;  %4162 = vmatpush.msrb.mxu3 %v10579_v57 }
 0xbfa   : > { %4143 = vmatpush.msrb.mxu2 %v10585_v45 }
 0xbfb   : > { %4122 = vmatpush.msra.mxu1 %v10575_v47  ;;  %4163 = vmatpush.msrb.mxu3 %v10587_v37 }
 0xbfc   : > { %4144 = vmatpush.msrb.mxu2 %v10379_v34 }
 0xbfd   : > { %4123 = vmatpush.msra.mxu1 %v10583_v23  ;;  %4164 = vmatpush.msrb.mxu3 %v10384_v5 }
 0xbfe   : > { %4145 = vmatpush.msrb.mxu2 %v10386_v13 }
 0xbff   : > { %4124 = vmatpush.msra.mxu1 %v10590_v40  ;;  %4165 = vmatpush.msrb.mxu3 %v10390_v14 }
 0xc00   : > { %4146 = vmatpush.msrb.mxu2 %v10392_v3 }
 0xc01   : > { %4125 = vmatpush.msra.mxu1 %v10595_v8  ;;  %4166 = vmatpush.msrb.mxu3 %v10397_v43 }
 0xc02   : > { %4147 = vmatpush.msrb.mxu2 %v10401_v36 }
 0xc03   : > { %4126 = vmatpush.msra.mxu1 %v10600_v28  ;;  %4167 = vmatpush.msrb.mxu3 %v10406_v2 }
 0xc04   : > { %4148 = vmatpush.msrb.mxu2 %v10411_v11 }
 0xc05   : > { %4127 = vmatpush.msra.mxu1 %v10606_v20  ;;  %4168 = vmatpush.msrb.mxu3 %v10416_v35  ;;  %v3831_v35 = vld [vmem:[%s3830_s27] sm:$0xf]  ;;  %s4427_s27 = scalar_select %p11068_p10, 1, 0 }
 0xc06   : > { %4149 = vmatpush.msrb.mxu2 %v10422_v44 }
 0xc07   : > { %4128 = vmatpush.msra.mxu1 %v10614_v16  ;;  %4169 = vmatpush.msrb.mxu3 %v10428_v42 }
 0xc08   : > { %4150 = vmatpush.msrb.mxu2 %v10434_v50 }
 0xc09   : > { %4129 = vmatpush.msra.mxu1 %v10619_v30  ;;  %4170 = vmatpush.msrb.mxu3 %v10439_v18  ;;  %v10744_v18 = vld [vmem:[#allocation4] sm:$0xf] }
 0xc0a   : > { %4151 = vmatpush.msrb.mxu2 %v10446_v63 }
 0xc0b   : > { %4130 = vmatpush.msra.mxu1 %v10624_v51  ;;  %4171 = vmatpush.msrb.mxu3 %v10451_v12 }
 0xc0c   : > { %4152 = vmatpush.msrb.mxu2 %v10456_v27 }
 0xc0d   : > { %4131 = vmatpush.msra.mxu1 %v10629_v17  ;;  %4172 = vmatpush.msrb.mxu3 %v10461_v6 }
 0xc0e   : > { %4153 = vmatpush.msrb.mxu2 %v10465_v41 }
 0xc0f   : > { %4132 = vmatpush.msra.mxu1 %v10634_v4  ;;  %4173 = vmatpush.msrb.mxu3 %v10470_v9 }
 0xc10   : > { %4154 = vmatpush.msrb.mxu2 %v10474_v59 }
 0xc11   : > { %4133 = vmatpush.msra.mxu1 %v10430_v33  ;;  %4174 = vmatpush.msrb.mxu3 %v10479_v53 }
 0xc13   : > { %4134 = vmatpush.msra.mxu1 %v10442_v1  ;;  %v3832_v1 = vadd.f32 %v10744_v18, %v3831_v35  ;;  %v10820_v35 = vld [vmem:[#allocation15 + $0xe0] sm:$0xff] }
 0xc3d   : > { %v3732_v52 = vpop.f32.mrf.mxu1  ;;  %v3712_v21 = vpop.f32.mrf.mxu0 }
 0xc3e   : > { %v3779_v0 = vrot.slane %v3732_v52, 7 }
 0xc40   : > { %v3782_v25 = vsel %vm749_vm6, %v3712_v21, %v3779_v0 }
 0xc44   : > { %v3752_v49 = vpop.f32.mrf.mxu2  ;;  %v3772_v38 = vpop.f32.mrf.mxu3 }
 0xc45   : > { %v3780_v54 = vrot.slane %v3752_v49, 6  ;;  %v3781_v15 = vrot.slane %v3772_v38, 5 }
 0xc47   : > { %v3783_v39 = vsel %vm751_vm5, %v3780_v54, %v3781_v15 }
 0xc48   : > { %v3784_v26 = vsel %vm753_vm7, %v3782_v25, %v3783_v39 }
 0xc49   : > { %v3786_v10 = vadd.f32 %v3784_v26, %v3630_v29 }
 0xc4b   : > { %v7402_v46 = vmul.f32 -1.442695, %v3786_v10  ;;  %v3807_v38 = vrot.slane %v3786_v10, 2 }
 0xc4d   : > { %7680 = vpow2.f32 %v7402_v46 }
 0xc53   : > { %v7681_v52 = vpop.eup %7680 }
 0xc54   : > { %v3790_v24 = vadd.f32 1.0, %v7681_v52  ;;  %v3822_v52 = vstv %s3821_s24  ;;  %s10952_s24 = sld [smem:[#allocation7 + %s4231_s23]] }
 0xc55   : > { %vm3823_vm9 = vcmp.eq.s32.totalorder %v3822_v52, 1 }
 0xc56   : > { %7682 = vrcp.f32 %v3790_v24  ;;  %v3802_v29 = vand.u32 2147483648, %v3790_v24  ;;  %v3800_v21 = vand.u32 2147483647, %v3790_v24  ;;  %vm3796_vm3 = vweird.f32 %v3790_v24 }
 0xc57   : > { %7684 = vtanh.f32 %v3807_v38  ;;  %v10786_v38 = vld [vmem:[#allocation15 + $0x150] sm:$0xff] }
 0xc58   : > { %v3803_v39 = vor.u32 1.1754944e-38, %v3802_v29  ;;  %vm3801_vm8 = vcmp.eq.f32.partialorder %v3800_v21, 8.507059e+37  ;;  %v10788_v29 = vld [vmem:[#allocation15 + $0x140] sm:$0xff]  ;;  %v10793_v21 = vld [vmem:[#allocation15 + $0x130] sm:$0xff] }
 0xc5a   : > { %s7407_s30 = sshll.u32 %s10952_s24, 2 }
 0xc5b   : > { %s4234_s17 = scalar_lea.vmem [#allocation12], %s7407_s30  ;;  %s5241_s30 = sadd.s32 23, %s8665_s5 }
 0xc5c   : > { %v7683_v0 = vpop.eup %7682  ;;  %p11715_p1 = scmp.lt.s32.totalorder %s5241_s30, %s8674_s25 }
 0xc5d   : > { %v3792_v49 = vmul.f32 %v7683_v0, %v3790_v24  ;;  %vm3797_vm2 = vweird.f32 %v7683_v0  ;;  %v7685_v34 = vpop.eup %7684 }
 0xc5e   : > { %vm3798_vm4 = vmor %vm3796_vm3, %vm3797_vm2 }
 0xc5f   : > { %v3793_v54 = vsub.f32 1.0, %v3792_v49  ;;  %v10784_v49 = vld [vmem:[#allocation15 + $0x160] sm:$0xff] }
 0xc61   : > { %v3794_v15 = vmul.f32 %v7683_v0, %v3793_v54 }
 0xc63   : > { %v3795_v25 = vadd.f32 %v7683_v0, %v3794_v15  ;;  %v10791_v15 = vld [vmem:[#allocation15 + $0x158] sm:$0xff] }
 0xc65   : > { %v3799_v26 = vsel %vm3798_vm4, %v7683_v0, %v3795_v25  ;;  %v10781_v0 = vld [vmem:[#allocation15 + $0x180] sm:$0xff]  ;;  %v10797_v25 = vld [vmem:[#allocation15 + $0x138] sm:$0xff] }
 0xc66   : > { %v3804_v10 = vsel %vm3801_vm8, %v3803_v39, %v3799_v26  ;;  %v10799_v39 = vld [vmem:[#allocation15 + $0x110] sm:$0xff]  ;;  %v4033_v26 = vld [vmem:[%s4032_s26] sm:$0xf]  ;;  %s4629_s26 = scalar_select %p11156_p11, 1, 0 }
 0xc67   : > { %v3811_v46 = vrot.slane %v3804_v10, 1  ;;  %v3814_v24 = vmul.f32 %v7685_v34, %v3804_v10  ;;  %v3817_v3 = vrot.slane %v3804_v10, 3  ;;  %v10801_v10 = vld [vmem:[#allocation15 + $0x120] sm:$0xff]  ;;  %v10808_v34 = vld [vmem:[#allocation15 + $0xf0] sm:$0xff] }
 0xc69   : > { %v3813_v5 = vmul.f32 %v3811_v46, %v10511_v62  ;;  %v10804_v46 = vld [vmem:[#allocation15 + $0x118] sm:$0xff] }
 0xc6b   : > { %v3815_v13 = vadd.f32 %v3814_v24, %v3813_v5 }
 0xc6d   : > { %7686 = vtanh.f32 %v3815_v13  ;;  %v10691_v14 = vsel %vm3823_vm9, %v3815_v13, %v10511_v62  ;;  %v10810_v13 = vld [vmem:[#allocation15 + $0x100] sm:$0xff] }
 0xc73   : > { %v7687_v43 = vpop.eup %7686 }
 0xc74   : > { %v3819_v36 = vmul.f32 %v7687_v43, %v3817_v3  ;;  %v4034_v43 = vadd.f32 %v10744_v18, %v4033_v26 }
 0xc76   : > { %v10709_v2 = vsel %vm3823_vm9, %v3819_v36, %v10518_v61 }
 0xc77   : > { %3826 = vst [vmem:[#allocation5 + $0xf] sm:$0x1] %v10709_v2  ;;  %3913 = vmatmul.f32.vlgmr.msrb.gmra.mxu0 %v10709_v2  ;;  %3933 = vmatmul.f32.vlgmr.msrb.gmra.mxu1 %v10709_v2 }
 0xc78   : > { %3953 = vmatmul.f32.vlgmr.msra.gmra.mxu2 %v10709_v2  ;;  %3973 = vmatmul.f32.vlgmr.msra.gmra.mxu3 %v10709_v2 }
 0xc79   : > { %4321 = vmatpush.msrb.mxu1 %v10547_v32  ;;  %4341 = vmatpush.msra.mxu2 %v10549_v7 }
 0xc7a   : > { %4361 = vmatpush.msra.mxu3 %v10551_v60 }
 0xc7b   : > { %4322 = vmatpush.msrb.mxu1 %v10556_v58  ;;  %4342 = vmatpush.msra.mxu2 %v10558_v22 }
 0xc7c   : > { %4362 = vmatpush.msra.mxu3 %v10560_v48 }
 0xc7d   : > { %4323 = vmatpush.msrb.mxu1 %v10566_v56  ;;  %4343 = vmatpush.msra.mxu2 %v10568_v19 }
 0xc7e   : > { %4363 = vmatpush.msra.mxu3 %v10570_v55 }
 0xc7f   : > { %4324 = vmatpush.msrb.mxu1 %v10575_v47  ;;  %4344 = vmatpush.msra.mxu2 %v10577_v31 }
 0xc80   : > { %4364 = vmatpush.msra.mxu3 %v10579_v57  ;;  %v4024_v57 = vstv %s4023_s21  ;;  %s4434_s21 = sld [smem:[#allocation7 + %s4433_s0]] }
 0xc81   : > { %4325 = vmatpush.msrb.mxu1 %v10583_v23  ;;  %4345 = vmatpush.msra.mxu2 %v10585_v45  ;;  %vm4025_vm14 = vcmp.eq.s32.totalorder %v4024_v57, 1 }
 0xc82   : > { %4365 = vmatpush.msra.mxu3 %v10587_v37 }
 0xc83   : > { %4326 = vmatpush.msrb.mxu1 %v10590_v40  ;;  %4346 = vmatpush.msra.mxu2 %v10786_v38 }
 0xc84   : > { %4366 = vmatpush.msra.mxu3 %v10791_v15 }
 0xc85   : > { %4327 = vmatpush.msrb.mxu1 %v10595_v8  ;;  %4347 = vmatpush.msra.mxu2 %v10793_v21 }
 0xc86   : > { %4367 = vmatpush.msra.mxu3 %v10797_v25  ;;  %s7409_s29 = sshll.u32 %s4434_s21, 2 }
 0xc87   : > { %4328 = vmatpush.msrb.mxu1 %v10600_v28  ;;  %4348 = vmatpush.msra.mxu2 %v10799_v39  ;;  %s4436_s20 = scalar_lea.vmem [#allocation12], %s7409_s29  ;;  %s5443_s29 = sadd.s32 24, %s8665_s5 }
 0xc88   : > { %4368 = vmatpush.msra.mxu3 %v10804_v46  ;;  %p11882_p3 = scmp.lt.s32.totalorder %s5443_s29, %s8674_s25 }
 0xc89   : > { %4329 = vmatpush.msrb.mxu1 %v10606_v20  ;;  %4349 = vmatpush.msra.mxu2 %v10808_v34 }
 0xc8b   : > { %4330 = vmatpush.msrb.mxu1 %v10614_v16 }
 0xc8d   : > { %4331 = vmatpush.msrb.mxu1 %v10619_v30 }
 0xc8f   : > { %4332 = vmatpush.msrb.mxu1 %v10624_v51  ;;  %v10772_v51 = vld [vmem:[#allocation15 + $0x1e0] sm:$0xff] }
 0xc90   : > { %4301 = vmatpush.msrb.mxu0 %v10772_v51 }
 0xc91   : > { %4333 = vmatpush.msrb.mxu1 %v10629_v17  ;;  %v10775_v17 = vld [vmem:[#allocation15 + $0x1c0] sm:$0xff] }
 0xc92   : > { %4302 = vmatpush.msrb.mxu0 %v10775_v17 }
 0xc93   : > { %4334 = vmatpush.msrb.mxu1 %v10634_v4  ;;  %v10778_v4 = vld [vmem:[#allocation15 + $0x1a0] sm:$0xff] }
 0xc94   : > { %4303 = vmatpush.msrb.mxu0 %v10778_v4 }
 0xc96   : > { %4304 = vmatpush.msrb.mxu0 %v10781_v0 }
 0xc98   : > { %4305 = vmatpush.msrb.mxu0 %v10784_v49 }
 0xc9a   : > { %4306 = vmatpush.msrb.mxu0 %v10788_v29 }
 0xc9c   : > { %4307 = vmatpush.msrb.mxu0 %v10801_v10 }
 0xc9e   : > { %4308 = vmatpush.msrb.mxu0 %v10810_v13 }
 0xca0   : > { %4309 = vmatpush.msrb.mxu0 %v10820_v35 }
 0xcf4   : > { %v3934_v11 = vpop.f32.mrf.mxu1  ;;  %v3914_v12 = vpop.f32.mrf.mxu0 }
 0xcf5   : > { %v3981_v44 = vrot.slane %v3934_v11, 7 }
 0xcf7   : > { %v3984_v27 = vsel %vm749_vm6, %v3914_v12, %v3981_v44  ;;  %v10823_v44 = vld [vmem:[#allocation15 + $0xd8] sm:$0xff] }
 0xcf8   : > { %v10835_v12 = vld [vmem:[#allocation15 + $0xb8] sm:$0xff] }
 0xcfb   : > { %v3954_v42 = vpop.f32.mrf.mxu2  ;;  %v3974_v33 = vpop.f32.mrf.mxu3 }
 0xcfc   : > { %v3982_v50 = vrot.slane %v3954_v42, 6  ;;  %v3983_v63 = vrot.slane %v3974_v33, 5 }
 0xcfe   : > { %v3985_v6 = vsel %vm751_vm5, %v3982_v50, %v3983_v63  ;;  %v10829_v50 = vld [vmem:[#allocation15 + $0xb0] sm:$0xff]  ;;  %v10832_v63 = vld [vmem:[#allocation15 + $0xc0] sm:$0xff] }
 0xcff   : > { %v3986_v41 = vsel %vm753_vm7, %v3984_v27, %v3985_v6  ;;  %v10837_v27 = vld [vmem:[#allocation15 + $0x28] sm:$0xff]  ;;  %4310 = vmatpush.msrb.mxu0 %v10832_v63 }
 0xd00   : > { %v3988_v9 = vadd.f32 %v3986_v41, %v3832_v1  ;;  %v10841_v41 = vld [vmem:[#allocation15 + $0x90] sm:$0xff]  ;;  %4335 = vmatpush.msrb.mxu1 %v10837_v27 }
 0xd02   : > { %v7404_v59 = vmul.f32 -1.442695, %v3988_v9  ;;  %v4009_v7 = vrot.slane %v3988_v9, 2  ;;  %v10843_v9 = vld [vmem:[#allocation15 + $0xa0] sm:$0xff] }
 0xd03   : > { %4311 = vmatpush.msrb.mxu0 %v10843_v9 }
 0xd04   : > { %7688 = vpow2.f32 %v7404_v59  ;;  %v10846_v59 = vld [vmem:[#allocation15 + $0x98] sm:$0xff] }
 0xd0a   : > { %v7689_v53 = vpop.eup %7688 }
 0xd0b   : > { %v3992_v62 = vadd.f32 1.0, %v7689_v53  ;;  %v10849_v53 = vld [vmem:[#allocation15 + $0x8] sm:$0xff] }
 0xd0c   : > { %4336 = vmatpush.msrb.mxu1 %v10849_v53 }
 0xd0d   : > { %7690 = vrcp.f32 %v3992_v62  ;;  %v4004_v58 = vand.u32 2147483648, %v3992_v62  ;;  %v4002_v48 = vand.u32 2147483647, %v3992_v62  ;;  %vm3998_vm11 = vweird.f32 %v3992_v62 }
 0xd0e   : > { %7692 = vtanh.f32 %v4009_v7  ;;  %v10858_v7 = vld [vmem:[#allocation15 + $0x78] sm:$0xff] }
 0xd0f   : > { %v4005_v19 = vor.u32 1.1754944e-38, %v4004_v58  ;;  %vm4003_vm13 = vcmp.eq.f32.partialorder %v4002_v48, 8.507059e+37  ;;  %v10865_v58 = vld [vmem:[#allocation15 + $0x60] sm:$0xff]  ;;  %v10872_v48 = vld [vmem:[#allocation15 + $0x30] sm:$0xff] }
 0xd13   : > { %v7691_v61 = vpop.eup %7690 }
 0xd14   : > { %v3994_v32 = vmul.f32 %v7691_v61, %v3992_v62  ;;  %vm3999_vm10 = vweird.f32 %v7691_v61  ;;  %v7693_v23 = vpop.eup %7692 }
 0xd15   : > { %vm4000_vm12 = vmor %vm3998_vm11, %vm3999_vm10 }
 0xd16   : > { %v3995_v60 = vsub.f32 1.0, %v3994_v32  ;;  %v10855_v32 = vld [vmem:[#allocation15 + $0x80] sm:$0xff] }
 0xd17   : > { %4312 = vmatpush.msrb.mxu0 %v10855_v32 }
 0xd18   : > { %v3996_v22 = vmul.f32 %v7691_v61, %v3995_v60  ;;  %v10863_v60 = vld [vmem:[#allocation15 + $0x50] sm:$0xff] }
 0xd19   : > { %4313 = vmatpush.msrb.mxu0 %v10865_v58 }
 0xd1a   : > { %v3997_v56 = vadd.f32 %v7691_v61, %v3996_v22  ;;  %v10868_v22 = vld [vmem:[#allocation15 + $0x58] sm:$0xff] }
 0xd1c   : > { %v4001_v55 = vsel %vm4000_vm12, %v7691_v61, %v3997_v56  ;;  %v10853_v61 = vld [vmem:[#allocation15 + $0x70] sm:$0xff]  ;;  %v10874_v56 = vld [vmem:[#allocation15 + $0x40] sm:$0xff] }
 0xd1d   : > { %v4006_v47 = vsel %vm4003_vm13, %v4005_v19, %v4001_v55  ;;  %v10877_v19 = vld [vmem:[#allocation15 + $0x38] sm:$0xff]  ;;  %v10881_v55 = vld [vmem:[#allocation15 + $0x10] sm:$0xff]  ;;  %4314 = vmatpush.msrb.mxu0 %v10874_v56 }
 0xd1e   : > { %v4013_v31 = vrot.slane %v4006_v47, 1  ;;  %v4016_v37 = vmul.f32 %v7693_v23, %v4006_v47  ;;  %v4019_v28 = vrot.slane %v4006_v47, 3  ;;  %v10883_v47 = vld [vmem:[#allocation15 + $0x20] sm:$0xff] }
 0xd1f   : > { %4315 = vmatpush.msrb.mxu0 %v10883_v47 }
 0xd20   : > { %v4015_v45 = vmul.f32 %v4013_v31, %v10691_v14  ;;  %v10886_v31 = vld [vmem:[#allocation15 + $0x18] sm:$0xff] }
 0xd22   : > { %v4017_v40 = vadd.f32 %v4016_v37, %v4015_v45  ;;  %v10890_v45 = vld [vmem:[#allocation15] sm:$0xff] }
 0xd23   : > { %4316 = vmatpush.msrb.mxu0 %v10890_v45 }
 0xd24   : > { %7694 = vtanh.f32 %v4017_v40  ;;  %v10759_v8 = vsel %vm4025_vm14, %v4017_v40, %v10691_v14  ;;  %v10813_v14 = vld [vmem:[#allocation15 + $0xf8] sm:$0xff] }
 0xd25   : > { %4369 = vmatpush.msra.mxu3 %v10813_v14 }
 0xd27   : > { %4370 = vmatpush.msra.mxu3 %v10823_v44 }
 0xd29   : > { %4371 = vmatpush.msra.mxu3 %v10835_v12 }
 0xd2a   : > { %v7695_v20 = vpop.eup %7694 }
 0xd2b   : > { %v4021_v16 = vmul.f32 %v7695_v20, %v4019_v28  ;;  %4372 = vmatpush.msra.mxu3 %v10846_v59 }
 0xd2d   : > { %v10762_v30 = vsel %vm4025_vm14, %v4021_v16, %v10709_v2  ;;  %v10818_v2 = vld [vmem:[#allocation15 + $0xd0] sm:$0xff]  ;;  %4373 = vmatpush.msra.mxu3 %v10858_v7 }
 0xd2e   : > { %4028 = vst [vmem:[#allocation5 + $0x10] sm:$0x1] %v10762_v30  ;;  %4115 = vmatmul.f32.vlgmr.msra.gmra.mxu0 %v10762_v30  ;;  %4135 = vmatmul.f32.vlgmr.msra.gmra.mxu1 %v10762_v30 }
 0xd2f   : > { %4155 = vmatmul.f32.vlgmr.msrb.gmra.mxu2 %v10762_v30  ;;  %4175 = vmatmul.f32.vlgmr.msrb.gmra.mxu3 %v10762_v30 }
 0xd30   : > { %4350 = vmatpush.msra.mxu2 %v10818_v2  ;;  %4374 = vmatpush.msra.mxu3 %v10868_v22 }
 0xd31   : > { %4503 = vmatpush.msra.mxu0 %v10772_v51 }
 0xd32   : > { %4351 = vmatpush.msra.mxu2 %v10829_v50  ;;  %4375 = vmatpush.msra.mxu3 %v10877_v19 }
 0xd33   : > { %4504 = vmatpush.msra.mxu0 %v10775_v17 }
 0xd34   : > { %4352 = vmatpush.msra.mxu2 %v10841_v41  ;;  %4376 = vmatpush.msra.mxu3 %v10886_v31 }
 0xd35   : > { %4505 = vmatpush.msra.mxu0 %v10778_v4 }
 0xd36   : > { %4353 = vmatpush.msra.mxu2 %v10853_v61 }
 0xd37   : > { %4506 = vmatpush.msra.mxu0 %v10781_v0 }
 0xd38   : > { %4354 = vmatpush.msra.mxu2 %v10863_v60 }
 0xd39   : > { %4507 = vmatpush.msra.mxu0 %v10784_v49 }
 0xd3a   : > { %4355 = vmatpush.msra.mxu2 %v10872_v48 }
 0xd3b   : > { %4508 = vmatpush.msra.mxu0 %v10788_v29 }
 0xd3c   : > { %4356 = vmatpush.msra.mxu2 %v10881_v55 }
 0xd3d   : > { %4509 = vmatpush.msra.mxu0 %v10801_v10 }
 0xd3f   : > { %4510 = vmatpush.msra.mxu0 %v10810_v13 }
 0xd41   : > { %4511 = vmatpush.msra.mxu0 %v10820_v35 }
 0xd43   : > { %4512 = vmatpush.msra.mxu0 %v10832_v63 }
 0xd45   : > { %4513 = vmatpush.msra.mxu0 %v10843_v9 }
 0xd47   : > { %4514 = vmatpush.msra.mxu0 %v10855_v32 }
 0xd49   : > { %4515 = vmatpush.msra.mxu0 %v10865_v58 }
 0xd4b   : > { %4516 = vmatpush.msra.mxu0 %v10874_v56 }
 0xd4d   : > { %4517 = vmatpush.msra.mxu0 %v10883_v47 }
 0xd4f   : > { %4518 = vmatpush.msra.mxu0 %v10890_v45 }
 0xdab   : > { %v4136_v54 = vpop.f32.mrf.mxu1  ;;  %v4116_v11 = vpop.f32.mrf.mxu0 }
 0xdac   : > { %v4183_v52 = vrot.slane %v4136_v54, 7 }
 0xdae   : > { %v4186_v42 = vsel %vm749_vm6, %v4116_v11, %v4183_v52 }
 0xdb2   : > { %v4156_v5 = vpop.f32.mrf.mxu2  ;;  %v4176_v24 = vpop.f32.mrf.mxu3 }
 0xdb3   : > { %v4184_v3 = vrot.slane %v4156_v5, 6  ;;  %v4185_v36 = vrot.slane %v4176_v24, 5 }
 0xdb5   : > { %v4187_v33 = vsel %vm751_vm5, %v4184_v3, %v4185_v36  ;;  %v4226_v36 = vstv %s4225_s16  ;;  %s4636_s16 = sld [smem:[#allocation7 + %s4635_s28]] }
 0xdb6   : > { %v4188_v1 = vsel %vm753_vm7, %v4186_v42, %v4187_v33  ;;  %vm4227_vm3 = vcmp.eq.s32.totalorder %v4226_v36, 1 }
 0xdb7   : > { %v4190_v6 = vadd.f32 %v4188_v1, %v4034_v43 }
 0xdb9   : > { %v7406_v62 = vmul.f32 -1.442695, %v4190_v6  ;;  %v4211_v28 = vrot.slane %v4190_v6, 2 }
 0xdbb   : > { %7696 = vpow2.f32 %v7406_v62  ;;  %s7411_s23 = sshll.u32 %s4636_s16, 2 }
 0xdbc   : > { %s4638_s24 = scalar_lea.vmem [#allocation12], %s7411_s23  ;;  %s5645_s23 = sadd.s32 25, %s8665_s5 }
 0xdbd   : > { %p11970_p4 = scmp.lt.s32.totalorder %s5645_s23, %s8674_s25 }
 0xdc1   : > { %v7697_v57 = vpop.eup %7696 }
 0xdc2   : > { %v4194_v23 = vadd.f32 1.0, %v7697_v57 }
 0xdc4   : > { %7698 = vrcp.f32 %v4194_v23  ;;  %v4206_v16 = vand.u32 2147483648, %v4194_v23  ;;  %v4204_v26 = vand.u32 2147483647, %v4194_v23  ;;  %vm4200_vm0 = vweird.f32 %v4194_v23 }
 0xdc5   : > { %7700 = vtanh.f32 %v4211_v28 }
 0xdc6   : > { %v4207_v5 = vor.u32 1.1754944e-38, %v4206_v16  ;;  %vm4205_vm2 = vcmp.eq.f32.partialorder %v4204_v26, 8.507059e+37 }
 0xdca   : > { %v7699_v37 = vpop.eup %7698 }
 0xdcb   : > { %v4196_v40 = vmul.f32 %v7699_v37, %v4194_v23  ;;  %vm4201_vm15 = vweird.f32 %v7699_v37  ;;  %v7701_v11 = vpop.eup %7700 }
 0xdcc   : > { %vm4202_vm1 = vmor %vm4200_vm0, %vm4201_vm15 }
 0xdcd   : > { %v4197_v20 = vsub.f32 1.0, %v4196_v40  ;;  %v11002_v40 = vld [vmem:[#allocation15 + $0x128] sm:$0xff] }
 0xdcf   : > { %v4198_v54 = vmul.f32 %v7699_v37, %v4197_v20 }
 0xdd1   : > { %v4199_v52 = vadd.f32 %v7699_v37, %v4198_v54  ;;  %v11007_v54 = vld [vmem:[#allocation15 + $0x108] sm:$0xff] }
 0xdd3   : > { %v4203_v24 = vsel %vm4202_vm1, %v7699_v37, %v4199_v52 }
 0xdd4   : > { %v4208_v3 = vsel %vm4205_vm2, %v4207_v5, %v4203_v24 }
 0xdd5   : > { %v4215_v43 = vrot.slane %v4208_v3, 1  ;;  %v4218_v33 = vmul.f32 %v7701_v11, %v4208_v3  ;;  %v4221_v62 = vrot.slane %v4208_v3, 3  ;;  %v11013_v3 = vld [vmem:[#allocation15 + $0xe8] sm:$0xff] }
 0xdd7   : > { %v4217_v42 = vmul.f32 %v4215_v43, %v10759_v8 }
 0xdd9   : > { %v4219_v1 = vadd.f32 %v4218_v33, %v4217_v42  ;;  %v11021_v42 = vld [vmem:[#allocation15 + $0xc8] sm:$0xff] }
 0xddb   : > { %7702 = vtanh.f32 %v4219_v1  ;;  %v10918_v6 = vsel %vm4227_vm3, %v4219_v1, %v10759_v8  ;;  %v10954_v8 = vld [vmem:[#allocation15 + $0x1e8] sm:$0xff] }
 0xddc   : > { %4523 = vmatpush.msra.mxu1 %v10954_v8  ;;  %v11026_v1 = vld [vmem:[#allocation15 + $0xa8] sm:$0xff] }
 0xde1   : > { %v7703_v57 = vpop.eup %7702 }
 0xde2   : > { %v4223_v23 = vmul.f32 %v7703_v57, %v4221_v62  ;;  %v11031_v57 = vld [vmem:[#allocation15 + $0x88] sm:$0xff] }
 0xde4   : > { %v10925_v37 = vsel %vm4227_vm3, %v4223_v23, %v10762_v30  ;;  %v10956_v30 = vld [vmem:[#allocation15 + $0x1f0] sm:$0xff]  ;;  %v11036_v23 = vld [vmem:[#allocation15 + $0x68] sm:$0xff] }
 0xde5   : > { %4230 = vst [vmem:[#allocation5 + $0x11] sm:$0x1] %v10925_v37  ;;  %4317 = vmatmul.f32.vlgmr.msrb.gmra.mxu0 %v10925_v37  ;;  %4337 = vmatmul.f32.vlgmr.msrb.gmra.mxu1 %v10925_v37 }
 0xde6   : > { %4357 = vmatmul.f32.vlgmr.msra.gmra.mxu2 %v10925_v37  ;;  %4377 = vmatmul.f32.vlgmr.msra.gmra.mxu3 %v10925_v37 }
 0xde7   : > { %4705 = vmatpush.msrb.mxu0 %v10772_v51  ;;  %v10958_v51 = vld [vmem:[#allocation15 + $0x1f8] sm:$0xff]  ;;  %4543 = vmatpush.msrb.mxu2 %v10956_v30 }
 0xde8   : > { %4563 = vmatpush.msrb.mxu3 %v10958_v51 }
 0xde9   : > { %4706 = vmatpush.msrb.mxu0 %v10775_v17  ;;  %v10963_v17 = vld [vmem:[#allocation15 + $0x1c8] sm:$0xff] }
 0xdea   : > { %4524 = vmatpush.msra.mxu1 %v10963_v17 }
 0xdeb   : > { %4707 = vmatpush.msrb.mxu0 %v10778_v4  ;;  %v10965_v4 = vld [vmem:[#allocation15 + $0x1d0] sm:$0xff] }
 0xdec   : > { %4544 = vmatpush.msrb.mxu2 %v10965_v4 }
 0xded   : > { %4708 = vmatpush.msrb.mxu0 %v10781_v0  ;;  %v10967_v0 = vld [vmem:[#allocation15 + $0x1d8] sm:$0xff] }
 0xdee   : > { %4564 = vmatpush.msrb.mxu3 %v10967_v0 }
 0xdef   : > { %4709 = vmatpush.msrb.mxu0 %v10784_v49  ;;  %v10973_v49 = vld [vmem:[#allocation15 + $0x1a8] sm:$0xff] }
 0xdf0   : > { %4525 = vmatpush.msra.mxu1 %v10973_v49 }
 0xdf1   : > { %4710 = vmatpush.msrb.mxu0 %v10788_v29  ;;  %v10975_v29 = vld [vmem:[#allocation15 + $0x1b0] sm:$0xff] }
 0xdf2   : > { %4545 = vmatpush.msrb.mxu2 %v10975_v29 }
 0xdf3   : > { %4711 = vmatpush.msrb.mxu0 %v10801_v10  ;;  %v10977_v10 = vld [vmem:[#allocation15 + $0x1b8] sm:$0xff] }
 0xdf4   : > { %4565 = vmatpush.msrb.mxu3 %v10977_v10 }
 0xdf5   : > { %4712 = vmatpush.msrb.mxu0 %v10810_v13  ;;  %v10982_v13 = vld [vmem:[#allocation15 + $0x188] sm:$0xff] }
 0xdf6   : > { %4526 = vmatpush.msra.mxu1 %v10982_v13 }
 0xdf7   : > { %4713 = vmatpush.msrb.mxu0 %v10820_v35  ;;  %v10984_v35 = vld [vmem:[#allocation15 + $0x190] sm:$0xff] }
 0xdf8   : > { %4546 = vmatpush.msrb.mxu2 %v10984_v35 }
 0xdf9   : > { %4714 = vmatpush.msrb.mxu0 %v10832_v63  ;;  %v10986_v63 = vld [vmem:[#allocation15 + $0x198] sm:$0xff] }
 0xdfa   : > { %4566 = vmatpush.msrb.mxu3 %v10986_v63 }
 0xdfb   : > { %4715 = vmatpush.msrb.mxu0 %v10843_v9  ;;  %v10990_v9 = vld [vmem:[#allocation15 + $0x168] sm:$0xff] }
 0xdfc   : > { %4527 = vmatpush.msra.mxu1 %v10990_v9 }
 0xdfd   : > { %4716 = vmatpush.msrb.mxu0 %v10855_v32  ;;  %v10992_v32 = vld [vmem:[#allocation15 + $0x170] sm:$0xff] }
 0xdfe   : > { %4547 = vmatpush.msrb.mxu2 %v10992_v32 }
 0xdff   : > { %4717 = vmatpush.msrb.mxu0 %v10865_v58  ;;  %v10994_v58 = vld [vmem:[#allocation15 + $0x178] sm:$0xff] }
 0xe00   : > { %4567 = vmatpush.msrb.mxu3 %v10994_v58  ;;  %4548 = vmatpush.msrb.mxu2 %v10786_v38 }
 0xe01   : > { %4718 = vmatpush.msrb.mxu0 %v10874_v56 }
 0xe02   : > { %4568 = vmatpush.msrb.mxu3 %v10791_v15  ;;  %4549 = vmatpush.msrb.mxu2 %v10793_v21 }
 0xe03   : > { %4719 = vmatpush.msrb.mxu0 %v10883_v47  ;;  %v10997_v47 = vld [vmem:[#allocation15 + $0x148] sm:$0xff] }
 0xe04   : > { %4528 = vmatpush.msra.mxu1 %v10997_v47  ;;  %4569 = vmatpush.msrb.mxu3 %v10797_v25 }
 0xe05   : > { %4720 = vmatpush.msrb.mxu0 %v10890_v45  ;;  %v4235_v45 = vld [vmem:[%s4234_s17] sm:$0xf]  ;;  %4550 = vmatpush.msrb.mxu2 %v10799_v39  ;;  %s4831_s17 = scalar_select %p11310_p12, 1, 0 }
 0xe06   : > { %v4236_v52 = vadd.f32 %v10744_v18, %v4235_v45  ;;  %4529 = vmatpush.msra.mxu1 %v11002_v40  ;;  %4570 = vmatpush.msrb.mxu3 %v10804_v46 }
 0xe07   : > { %4551 = vmatpush.msrb.mxu2 %v10808_v34 }
 0xe08   : > { %4530 = vmatpush.msra.mxu1 %v11007_v54  ;;  %4571 = vmatpush.msrb.mxu3 %v10813_v14 }
 0xe09   : > { %4552 = vmatpush.msrb.mxu2 %v10818_v2 }
 0xe0a   : > { %4531 = vmatpush.msra.mxu1 %v11013_v3  ;;  %4572 = vmatpush.msrb.mxu3 %v10823_v44 }
 0xe0b   : > { %4553 = vmatpush.msrb.mxu2 %v10829_v50 }
 0xe0c   : > { %4532 = vmatpush.msra.mxu1 %v11021_v42  ;;  %4573 = vmatpush.msrb.mxu3 %v10835_v12 }
 0xe0d   : > { %4554 = vmatpush.msrb.mxu2 %v10841_v41 }
 0xe0e   : > { %4533 = vmatpush.msra.mxu1 %v11026_v1  ;;  %4574 = vmatpush.msrb.mxu3 %v10846_v59 }
 0xe0f   : > { %4555 = vmatpush.msrb.mxu2 %v10853_v61 }
 0xe10   : > { %4534 = vmatpush.msra.mxu1 %v11031_v57  ;;  %4575 = vmatpush.msrb.mxu3 %v10858_v7 }
 0xe11   : > { %4556 = vmatpush.msrb.mxu2 %v10863_v60 }
 0xe12   : > { %4535 = vmatpush.msra.mxu1 %v11036_v23  ;;  %4576 = vmatpush.msrb.mxu3 %v10868_v22 }
 0xe13   : > { %4557 = vmatpush.msrb.mxu2 %v10872_v48 }
 0xe14   : > { %4577 = vmatpush.msrb.mxu3 %v10877_v19 }
 0xe15   : > { %4558 = vmatpush.msrb.mxu2 %v10881_v55 }
 0xe16   : > { %4578 = vmatpush.msrb.mxu3 %v10886_v31 }
 0xe17   : > { %4745 = vmatpush.msra.mxu2 %v10956_v30 }
 0xe18   : > { %4765 = vmatpush.msra.mxu3 %v10958_v51 }
 0xe19   : > { %4746 = vmatpush.msra.mxu2 %v10965_v4 }
 0xe1a   : > { %4766 = vmatpush.msra.mxu3 %v10967_v0 }
 0xe1b   : > { %4747 = vmatpush.msra.mxu2 %v10975_v29 }
 0xe1c   : > { %4767 = vmatpush.msra.mxu3 %v10977_v10 }
 0xe1d   : > { %4748 = vmatpush.msra.mxu2 %v10984_v35 }
 0xe1e   : > { %4768 = vmatpush.msra.mxu3 %v10986_v63 }
 0xe1f   : > { %4749 = vmatpush.msra.mxu2 %v10992_v32 }
 0xe20   : > { %4769 = vmatpush.msra.mxu3 %v10994_v58 }
 0xe21   : > { %4750 = vmatpush.msra.mxu2 %v10786_v38 }
 0xe22   : > { %4770 = vmatpush.msra.mxu3 %v10791_v15 }
 0xe23   : > { %4751 = vmatpush.msra.mxu2 %v10793_v21 }
 0xe24   : > { %4771 = vmatpush.msra.mxu3 %v10797_v25 }
 0xe25   : > { %4752 = vmatpush.msra.mxu2 %v10799_v39 }
 0xe26   : > { %4772 = vmatpush.msra.mxu3 %v10804_v46 }
 0xe27   : > { %4753 = vmatpush.msra.mxu2 %v10808_v34 }
 0xe28   : > { %4773 = vmatpush.msra.mxu3 %v10813_v14 }
 0xe29   : > { %4754 = vmatpush.msra.mxu2 %v10818_v2 }
 0xe2a   : > { %4774 = vmatpush.msra.mxu3 %v10823_v44  ;;  %v4437_v44 = vld [vmem:[%s4436_s20] sm:$0xf]  ;;  %s5033_s20 = scalar_select %p11475_p13, 1, 0 }
 0xe2b   : > { %4755 = vmatpush.msra.mxu2 %v10829_v50  ;;  %p7435_p13 = scmp.ne.s32.totalorder %s8236_s1, 1 }
 0xe2c   : > { %4775 = vmatpush.msra.mxu3 %v10835_v12 }
 0xe2d   : > { %4756 = vmatpush.msra.mxu2 %v10841_v41 }
 0xe2e   : > { %4776 = vmatpush.msra.mxu3 %v10846_v59  ;;  %v4438_v59 = vadd.f32 %v10744_v18, %v4437_v44  ;;  %v11227_v44 = vld [vmem:[#allocation15 + $0xe0] sm:$0xff] }
 0xe2f   : > { %4757 = vmatpush.msra.mxu2 %v10853_v61 }
 0xe30   : > { %4777 = vmatpush.msra.mxu3 %v10858_v7 }
 0xe31   : > { %4758 = vmatpush.msra.mxu2 %v10863_v60 }
 0xe32   : > { %4778 = vmatpush.msra.mxu3 %v10868_v22 }
 0xe33   : > { %4759 = vmatpush.msra.mxu2 %v10872_v48 }
 0xe34   : > { %4779 = vmatpush.msra.mxu3 %v10877_v19 }
 0xe35   : > { %4760 = vmatpush.msra.mxu2 %v10881_v55 }
 0xe36   : > { %4780 = vmatpush.msra.mxu3 %v10886_v31 }
 0xe62   : > { %v4338_v56 = vpop.f32.mrf.mxu1  ;;  %v4318_v24 = vpop.f32.mrf.mxu0 }
 0xe63   : > { %v4385_v28 = vrot.slane %v4338_v56, 7  ;;  %v11041_v56 = vld [vmem:[#allocation15 + $0x48] sm:$0xff] }
 0xe64   : > { %4536 = vmatpush.msra.mxu1 %v11041_v56 }
 0xe65   : > { %v4388_v43 = vsel %vm749_vm6, %v4318_v24, %v4385_v28 }
 0xe66   : > { %4537 = vmatpush.msra.mxu1 %v10837_v27 }
 0xe68   : > { %4538 = vmatpush.msra.mxu1 %v10849_v53 }
 0xe69   : > { %v4358_v20 = vpop.f32.mrf.mxu2  ;;  %v4378_v16 = vpop.f32.mrf.mxu3 }
 0xe6a   : > { %v4386_v26 = vrot.slane %v4358_v20, 6  ;;  %v4387_v5 = vrot.slane %v4378_v16, 5  ;;  %4725 = vmatpush.msrb.mxu1 %v10954_v8 }
 0xe6c   : > { %v4389_v36 = vsel %vm751_vm5, %v4386_v26, %v4387_v5  ;;  %4726 = vmatpush.msrb.mxu1 %v10963_v17 }
 0xe6d   : > { %v4390_v11 = vsel %vm753_vm7, %v4388_v43, %v4389_v36 }
 0xe6e   : > { %v4392_v33 = vadd.f32 %v4390_v11, %v4236_v52  ;;  %4727 = vmatpush.msrb.mxu1 %v10973_v49 }
 0xe70   : > { %v7408_v62 = vmul.f32 -1.442695, %v4392_v33  ;;  %v4413_v26 = vrot.slane %v4392_v33, 2  ;;  %4728 = vmatpush.msrb.mxu1 %v10982_v13 }
 0xe72   : > { %7704 = vpow2.f32 %v7408_v62  ;;  %4729 = vmatpush.msrb.mxu1 %v10990_v9 }
 0xe74   : > { %4730 = vmatpush.msrb.mxu1 %v10997_v47 }
 0xe76   : > { %4731 = vmatpush.msrb.mxu1 %v11002_v40 }
 0xe78   : > { %v7705_v45 = vpop.eup %7704  ;;  %4732 = vmatpush.msrb.mxu1 %v11007_v54 }
 0xe79   : > { %v4396_v28 = vadd.f32 1.0, %v7705_v45 }
 0xe7a   : > { %4733 = vmatpush.msrb.mxu1 %v11013_v3 }
 0xe7b   : > { %7706 = vrcp.f32 %v4396_v28  ;;  %v4408_v5 = vand.u32 2147483648, %v4396_v28  ;;  %v4406_v43 = vand.u32 2147483647, %v4396_v28  ;;  %vm4402_vm8 = vweird.f32 %v4396_v28 }
 0xe7c   : > { %7708 = vtanh.f32 %v4413_v26  ;;  %4734 = vmatpush.msrb.mxu1 %v11021_v42 }
 0xe7d   : > { %v4409_v11 = vor.u32 1.1754944e-38, %v4408_v5  ;;  %vm4407_vm10 = vcmp.eq.f32.partialorder %v4406_v43, 8.507059e+37  ;;  %v11196_v5 = vld [vmem:[#allocation15 + $0x158] sm:$0xff] }
 0xe7e   : > { %4735 = vmatpush.msrb.mxu1 %v11026_v1  ;;  %v11202_v43 = vld [vmem:[#allocation15 + $0x138] sm:$0xff] }
 0xe80   : > { %4736 = vmatpush.msrb.mxu1 %v11031_v57 }
 0xe81   : > { %v7707_v20 = vpop.eup %7706 }
 0xe82   : > { %v4398_v16 = vmul.f32 %v7707_v20, %v4396_v28  ;;  %vm4403_vm4 = vweird.f32 %v7707_v20  ;;  %v4428_v28 = vstv %s4427_s27  ;;  %v7709_v38 = vpop.eup %7708  ;;  %4737 = vmatpush.msrb.mxu1 %v11036_v23  ;;  %s11359_s27 = sld [smem:[#allocation7 + %s4837_s19]] }
 0xe83   : > { %vm4404_vm9 = vmor %vm4402_vm8, %vm4403_vm4  ;;  %vm4429_vm11 = vcmp.eq.s32.totalorder %v4428_v28, 1  ;;  %v11213_v28 = vld [vmem:[#allocation15 + $0xf0] sm:$0xff] }
 0xe84   : > { %v4399_v52 = vsub.f32 1.0, %v4398_v16  ;;  %4738 = vmatpush.msrb.mxu1 %v11041_v56  ;;  %v11191_v16 = vld [vmem:[#allocation15 + $0x150] sm:$0xff] }
 0xe86   : > { %v4400_v24 = vmul.f32 %v7707_v20, %v4399_v52  ;;  %4739 = vmatpush.msrb.mxu1 %v10837_v27  ;;  %v11193_v52 = vld [vmem:[#allocation15 + $0x140] sm:$0xff] }
 0xe88   : > { %v4401_v36 = vadd.f32 %v7707_v20, %v4400_v24  ;;  %4740 = vmatpush.msrb.mxu1 %v10849_v53  ;;  %v11198_v24 = vld [vmem:[#allocation15 + $0x130] sm:$0xff]  ;;  %s7413_s0 = sshll.u32 %s11359_s27, 2 }
 0xe89   : > { %s4840_s21 = scalar_lea.vmem [#allocation12], %s7413_s0  ;;  %s5847_s0 = sadd.s32 26, %s8665_s5 }
 0xe8a   : > { %v4405_v33 = vsel %vm4404_vm9, %v7707_v20, %v4401_v36  ;;  %v11204_v36 = vld [vmem:[#allocation15 + $0x110] sm:$0xff]  ;;  %p12122_p7 = scmp.lt.s32.totalorder %s5847_s0, %s8674_s25 }
 0xe8b   : > { %v4410_v62 = vsel %vm4407_vm10, %v4409_v11, %v4405_v33  ;;  %v4639_v11 = vld [vmem:[%s4638_s24] sm:$0xf]  ;;  %v11206_v33 = vld [vmem:[#allocation15 + $0x120] sm:$0xff]  ;;  %s5235_s24 = scalar_select %p11563_p0, 1, 0 }
 0xe8c   : > { %v4417_v45 = vrot.slane %v4410_v62, 1  ;;  %v4420_v20 = vmul.f32 %v7709_v38, %v4410_v62  ;;  %v4423_v39 = vrot.slane %v4410_v62, 3  ;;  %v11209_v62 = vld [vmem:[#allocation15 + $0x118] sm:$0xff] }
 0xe8e   : > { %v4419_v15 = vmul.f32 %v4417_v45, %v10918_v6 }
 0xe90   : > { %v4421_v21 = vadd.f32 %v4420_v20, %v4419_v15  ;;  %v11215_v20 = vld [vmem:[#allocation15 + $0x100] sm:$0xff] }
 0xe92   : > { %7710 = vtanh.f32 %v4421_v21  ;;  %v11098_v25 = vsel %vm4429_vm11, %v4421_v21, %v10918_v6  ;;  %v11218_v21 = vld [vmem:[#allocation15 + $0xf8] sm:$0xff] }
 0xe98   : > { %v7711_v46 = vpop.eup %7710 }
 0xe99   : > { %v4425_v34 = vmul.f32 %v7711_v46, %v4423_v39  ;;  %v11220_v39 = vld [vmem:[#allocation4] sm:$0xf] }
 0xe9a   : > { %v4640_v46 = vadd.f32 %v11220_v39, %v4639_v11 }
 0xe9b   : > { %v11116_v14 = vsel %vm4429_vm11, %v4425_v34, %v10925_v37 }
 0xe9c   : > { %4432 = vst [vmem:[#allocation5 + $0x12] sm:$0x1] %v11116_v14  ;;  %4519 = vmatmul.f32.vlgmr.msra.gmra.mxu0 %v11116_v14  ;;  %4539 = vmatmul.f32.vlgmr.msra.gmra.mxu1 %v11116_v14 }
 0xe9d   : > { %4559 = vmatmul.f32.vlgmr.msrb.gmra.mxu2 %v11116_v14  ;;  %4579 = vmatmul.f32.vlgmr.msrb.gmra.mxu3 %v11116_v14 }
 0xe9e   : > { %4927 = vmatpush.msra.mxu1 %v10954_v8  ;;  %4947 = vmatpush.msrb.mxu2 %v10956_v30 }
 0xe9f   : > { %4967 = vmatpush.msrb.mxu3 %v10958_v51 }
 0xea0   : > { %4928 = vmatpush.msra.mxu1 %v10963_v17  ;;  %4948 = vmatpush.msrb.mxu2 %v10965_v4 }
 0xea1   : > { %4968 = vmatpush.msrb.mxu3 %v10967_v0 }
 0xea2   : > { %4929 = vmatpush.msra.mxu1 %v10973_v49  ;;  %4949 = vmatpush.msrb.mxu2 %v10975_v29 }
 0xea3   : > { %4969 = vmatpush.msrb.mxu3 %v10977_v10 }
 0xea4   : > { %4930 = vmatpush.msra.mxu1 %v10982_v13  ;;  %4950 = vmatpush.msrb.mxu2 %v10984_v35  ;;  %v4630_v13 = vstv %s4629_s26  ;;  %s5040_s26 = sld [smem:[#allocation7 + %s5039_s7]] }
 0xea5   : > { %4970 = vmatpush.msrb.mxu3 %v10986_v63  ;;  %vm4631_vm0 = vcmp.eq.s32.totalorder %v4630_v13, 1 }
 0xea6   : > { %4931 = vmatpush.msra.mxu1 %v10990_v9  ;;  %4951 = vmatpush.msrb.mxu2 %v10992_v32 }
 0xea7   : > { %4971 = vmatpush.msrb.mxu3 %v10994_v58 }
 0xea8   : > { %4932 = vmatpush.msra.mxu1 %v10997_v47  ;;  %4952 = vmatpush.msrb.mxu2 %v11191_v16 }
 0xea9   : > { %4972 = vmatpush.msrb.mxu3 %v11196_v5 }
 0xeaa   : > { %4933 = vmatpush.msra.mxu1 %v11002_v40  ;;  %4953 = vmatpush.msrb.mxu2 %v11198_v24  ;;  %s7415_s28 = sshll.u32 %s5040_s26, 2 }
 0xeab   : > { %4973 = vmatpush.msrb.mxu3 %v11202_v43  ;;  %s5042_s16 = scalar_lea.vmem [#allocation12], %s7415_s28  ;;  %s6049_s28 = sadd.s32 27, %s8665_s5 }
 0xeac   : > { %4934 = vmatpush.msra.mxu1 %v11007_v54  ;;  %4954 = vmatpush.msrb.mxu2 %v11204_v36  ;;  %p12287_p8 = scmp.lt.s32.totalorder %s6049_s28, %s8674_s25 }
 0xead   : > { %4974 = vmatpush.msrb.mxu3 %v11209_v62 }
 0xeae   : > { %4935 = vmatpush.msra.mxu1 %v11013_v3  ;;  %4955 = vmatpush.msrb.mxu2 %v11213_v28 }
 0xeaf   : > { %4975 = vmatpush.msrb.mxu3 %v11218_v21 }
 0xeb0   : > { %4936 = vmatpush.msra.mxu1 %v11021_v42  ;;  %v11177_v42 = vld [vmem:[#allocation15 + $0x1e0] sm:$0xff] }
 0xeb1   : > { %4907 = vmatpush.msra.mxu0 %v11177_v42 }
 0xeb2   : > { %4937 = vmatpush.msra.mxu1 %v11026_v1  ;;  %v11180_v1 = vld [vmem:[#allocation15 + $0x1c0] sm:$0xff] }
 0xeb3   : > { %4908 = vmatpush.msra.mxu0 %v11180_v1 }
 0xeb4   : > { %4938 = vmatpush.msra.mxu1 %v11031_v57  ;;  %v11183_v57 = vld [vmem:[#allocation15 + $0x1a0] sm:$0xff] }
 0xeb5   : > { %4909 = vmatpush.msra.mxu0 %v11183_v57 }
 0xeb6   : > { %4939 = vmatpush.msra.mxu1 %v11036_v23  ;;  %v11186_v23 = vld [vmem:[#allocation15 + $0x180] sm:$0xff] }
 0xeb7   : > { %4910 = vmatpush.msra.mxu0 %v11186_v23 }
 0xeb8   : > { %4940 = vmatpush.msra.mxu1 %v11041_v56  ;;  %v11189_v56 = vld [vmem:[#allocation15 + $0x160] sm:$0xff] }
 0xeb9   : > { %4911 = vmatpush.msra.mxu0 %v11189_v56 }
 0xebb   : > { %4912 = vmatpush.msra.mxu0 %v11193_v52 }
 0xebd   : > { %4913 = vmatpush.msra.mxu0 %v11206_v33 }
 0xebf   : > { %4914 = vmatpush.msra.mxu0 %v11215_v20 }
 0xec1   : > { %4915 = vmatpush.msra.mxu0 %v11227_v44 }
 0xf19   : > { %v4540_v2 = vpop.f32.mrf.mxu1  ;;  %v4520_v61 = vpop.f32.mrf.mxu0 }
 0xf1a   : > { %v4587_v50 = vrot.slane %v4540_v2, 7 }
 0xf1c   : > { %v4590_v7 = vsel %vm749_vm6, %v4520_v61, %v4587_v50  ;;  %v11230_v50 = vld [vmem:[#allocation15 + $0xd8] sm:$0xff] }
 0xf1d   : > { %v11242_v61 = vld [vmem:[#allocation15 + $0xb8] sm:$0xff]  ;;  %4976 = vmatpush.msrb.mxu3 %v11230_v50 }
 0xf1f   : > { %4977 = vmatpush.msrb.mxu3 %v11242_v61 }
 0xf20   : > { %v4560_v12 = vpop.f32.mrf.mxu2  ;;  %v4580_v27 = vpop.f32.mrf.mxu3 }
 0xf21   : > { %v4588_v41 = vrot.slane %v4560_v12, 6  ;;  %v4589_v53 = vrot.slane %v4580_v27, 5 }
 0xf23   : > { %v4591_v60 = vsel %vm751_vm5, %v4588_v41, %v4589_v53  ;;  %v11236_v41 = vld [vmem:[#allocation15 + $0xb0] sm:$0xff]  ;;  %v11239_v53 = vld [vmem:[#allocation15 + $0xc0] sm:$0xff] }
 0xf24   : > { %v4592_v22 = vsel %vm753_vm7, %v4590_v7, %v4591_v60  ;;  %v11244_v7 = vld [vmem:[#allocation15 + $0x28] sm:$0xff]  ;;  %4916 = vmatpush.msra.mxu0 %v11239_v53 }
 0xf25   : > { %v4594_v48 = vadd.f32 %v4592_v22, %v4438_v59  ;;  %v11248_v22 = vld [vmem:[#allocation15 + $0x90] sm:$0xff]  ;;  %4941 = vmatpush.msra.mxu1 %v11244_v7 }
 0xf27   : > { %v7410_v19 = vmul.f32 -1.442695, %v4594_v48  ;;  %v4615_v8 = vrot.slane %v4594_v48, 2  ;;  %v11250_v48 = vld [vmem:[#allocation15 + $0xa0] sm:$0xff] }
 0xf28   : > { %4917 = vmatpush.msra.mxu0 %v11250_v48 }
 0xf29   : > { %7712 = vpow2.f32 %v7410_v19  ;;  %v11253_v19 = vld [vmem:[#allocation15 + $0x98] sm:$0xff] }
 0xf2a   : > { %4978 = vmatpush.msrb.mxu3 %v11253_v19 }
 0xf2f   : > { %v7713_v55 = vpop.eup %7712 }
 0xf30   : > { %v4598_v31 = vadd.f32 1.0, %v7713_v55  ;;  %v11256_v55 = vld [vmem:[#allocation15 + $0x8] sm:$0xff] }
 0xf31   : > { %4942 = vmatpush.msra.mxu1 %v11256_v55 }
 0xf32   : > { %7714 = vrcp.f32 %v4598_v31  ;;  %v4610_v18 = vand.u32 2147483648, %v4598_v31  ;;  %v4608_v17 = vand.u32 2147483647, %v4598_v31  ;;  %vm4604_vm13 = vweird.f32 %v4598_v31 }
 0xf33   : > { %7716 = vtanh.f32 %v4615_v8  ;;  %v11265_v8 = vld [vmem:[#allocation15 + $0x78] sm:$0xff] }
 0xf34   : > { %v4611_v0 = vor.u32 1.1754944e-38, %v4610_v18  ;;  %vm4609_vm15 = vcmp.eq.f32.partialorder %v4608_v17, 8.507059e+37  ;;  %v11272_v18 = vld [vmem:[#allocation15 + $0x60] sm:$0xff]  ;;  %4979 = vmatpush.msrb.mxu3 %v11265_v8  ;;  %v11279_v17 = vld [vmem:[#allocation15 + $0x30] sm:$0xff] }
 0xf38   : > { %v7715_v6 = vpop.eup %7714 }
 0xf39   : > { %v4600_v37 = vmul.f32 %v7715_v6, %v4598_v31  ;;  %vm4605_vm12 = vweird.f32 %v7715_v6  ;;  %v7717_v35 = vpop.eup %7716 }
 0xf3a   : > { %vm4606_vm14 = vmor %vm4604_vm13, %vm4605_vm12 }
 0xf3b   : > { %v4601_v30 = vsub.f32 1.0, %v4600_v37  ;;  %v11262_v37 = vld [vmem:[#allocation15 + $0x80] sm:$0xff] }
 0xf3c   : > { %4918 = vmatpush.msra.mxu0 %v11262_v37 }
 0xf3d   : > { %v4602_v51 = vmul.f32 %v7715_v6, %v4601_v30  ;;  %v11270_v30 = vld [vmem:[#allocation15 + $0x50] sm:$0xff] }
 0xf3e   : > { %4919 = vmatpush.msra.mxu0 %v11272_v18 }
 0xf3f   : > { %v4603_v4 = vadd.f32 %v7715_v6, %v4602_v51  ;;  %v11275_v51 = vld [vmem:[#allocation15 + $0x58] sm:$0xff] }
 0xf40   : > { %4980 = vmatpush.msrb.mxu3 %v11275_v51 }
 0xf41   : > { %v4607_v49 = vsel %vm4606_vm14, %v7715_v6, %v4603_v4  ;;  %v11260_v6 = vld [vmem:[#allocation15 + $0x70] sm:$0xff]  ;;  %v11281_v4 = vld [vmem:[#allocation15 + $0x40] sm:$0xff] }
 0xf42   : > { %v4612_v29 = vsel %vm4609_vm15, %v4611_v0, %v4607_v49  ;;  %v11284_v0 = vld [vmem:[#allocation15 + $0x38] sm:$0xff]  ;;  %v11288_v49 = vld [vmem:[#allocation15 + $0x10] sm:$0xff]  ;;  %4920 = vmatpush.msra.mxu0 %v11281_v4 }
 0xf43   : > { %v4619_v10 = vrot.slane %v4612_v29, 1  ;;  %v4622_v9 = vmul.f32 %v7717_v35, %v4612_v29  ;;  %v4625_v47 = vrot.slane %v4612_v29, 3  ;;  %v11290_v29 = vld [vmem:[#allocation15 + $0x20] sm:$0xff]  ;;  %4981 = vmatpush.msrb.mxu3 %v11284_v0 }
 0xf44   : > { %4921 = vmatpush.msra.mxu0 %v11290_v29 }
 0xf45   : > { %v4621_v63 = vmul.f32 %v4619_v10, %v11098_v25  ;;  %v11293_v10 = vld [vmem:[#allocation15 + $0x18] sm:$0xff] }
 0xf46   : > { %4982 = vmatpush.msrb.mxu3 %v11293_v10 }
 0xf47   : > { %v4623_v32 = vadd.f32 %v4622_v9, %v4621_v63  ;;  %v11297_v63 = vld [vmem:[#allocation15] sm:$0xff] }
 0xf48   : > { %4922 = vmatpush.msra.mxu0 %v11297_v63 }
 0xf49   : > { %7718 = vtanh.f32 %v4623_v32  ;;  %v11164_v58 = vsel %vm4631_vm0, %v4623_v32, %v11098_v25 }
 0xf4f   : > { %v7719_v40 = vpop.eup %7718 }
 0xf50   : > { %v4627_v54 = vmul.f32 %v7719_v40, %v4625_v47 }
 0xf52   : > { %v11167_v3 = vsel %vm4631_vm0, %v4627_v54, %v11116_v14  ;;  %v11225_v14 = vld [vmem:[#allocation15 + $0xd0] sm:$0xff] }
 0xf53   : > { %4634 = vst [vmem:[#allocation5 + $0x13] sm:$0x1] %v11167_v3  ;;  %4721 = vmatmul.f32.vlgmr.msrb.gmra.mxu0 %v11167_v3  ;;  %4741 = vmatmul.f32.vlgmr.msrb.gmra.mxu1 %v11167_v3 }
 0xf54   : > { %4761 = vmatmul.f32.vlgmr.msra.gmra.mxu2 %v11167_v3  ;;  %4781 = vmatmul.f32.vlgmr.msra.gmra.mxu3 %v11167_v3 }
 0xf55   : > { %4956 = vmatpush.msrb.mxu2 %v11225_v14  ;;  %5109 = vmatpush.msrb.mxu0 %v11177_v42 }
 0xf57   : > { %4957 = vmatpush.msrb.mxu2 %v11236_v41  ;;  %5110 = vmatpush.msrb.mxu0 %v11180_v1 }
 0xf59   : > { %4958 = vmatpush.msrb.mxu2 %v11248_v22  ;;  %5111 = vmatpush.msrb.mxu0 %v11183_v57 }
 0xf5b   : > { %4959 = vmatpush.msrb.mxu2 %v11260_v6  ;;  %5112 = vmatpush.msrb.mxu0 %v11186_v23 }
 0xf5d   : > { %4960 = vmatpush.msrb.mxu2 %v11270_v30  ;;  %5113 = vmatpush.msrb.mxu0 %v11189_v56 }
 0xf5f   : > { %4961 = vmatpush.msrb.mxu2 %v11279_v17  ;;  %5114 = vmatpush.msrb.mxu0 %v11193_v52 }
 0xf61   : > { %4962 = vmatpush.msrb.mxu2 %v11288_v49  ;;  %5115 = vmatpush.msrb.mxu0 %v11206_v33 }
 0xf63   : > { %5116 = vmatpush.msrb.mxu0 %v11215_v20 }
 0xf65   : > { %5117 = vmatpush.msrb.mxu0 %v11227_v44 }
 0xf67   : > { %5118 = vmatpush.msrb.mxu0 %v11239_v53 }
 0xf69   : > { %5119 = vmatpush.msrb.mxu0 %v11250_v48 }
 0xf6b   : > { %5120 = vmatpush.msrb.mxu0 %v11262_v37 }
 0xf6d   : > { %5121 = vmatpush.msrb.mxu0 %v11272_v18 }
 0xf6f   : > { %5122 = vmatpush.msrb.mxu0 %v11281_v4 }
 0xf71   : > { %5123 = vmatpush.msrb.mxu0 %v11290_v29 }
 0xf73   : > { %5124 = vmatpush.msrb.mxu0 %v11297_v63 }
 0xfd0   : > { %v4742_v26 = vpop.f32.mrf.mxu1  ;;  %v4722_v2 = vpop.f32.mrf.mxu0 }
 0xfd1   : > { %v4789_v45 = vrot.slane %v4742_v26, 7 }
 0xfd3   : > { %v4792_v12 = vsel %vm749_vm6, %v4722_v2, %v4789_v45 }
 0xfd7   : > { %v4762_v38 = vpop.f32.mrf.mxu2  ;;  %v4782_v15 = vpop.f32.mrf.mxu3 }
 0xfd8   : > { %v4790_v25 = vrot.slane %v4762_v38, 6  ;;  %v4791_v34 = vrot.slane %v4782_v15, 5 }
 0xfda   : > { %v4793_v27 = vsel %vm751_vm5, %v4790_v25, %v4791_v34  ;;  %v4832_v34 = vstv %s4831_s17  ;;  %s5242_s17 = sld [smem:[#allocation7 + %s5241_s30]] }
 0xfdb   : > { %v4794_v59 = vsel %vm753_vm7, %v4792_v12, %v4793_v27  ;;  %vm4833_vm8 = vcmp.eq.s32.totalorder %v4832_v34, 1 }
 0xfdc   : > { %v4796_v60 = vadd.f32 %v4794_v59, %v4640_v46 }
 0xfde   : > { %v7412_v31 = vmul.f32 -1.442695, %v4796_v60  ;;  %v4817_v47 = vrot.slane %v4796_v60, 2 }
 0xfe0   : > { %7720 = vpow2.f32 %v7412_v31  ;;  %s7417_s19 = sshll.u32 %s5242_s17, 2 }
 0xfe1   : > { %s5244_s27 = scalar_lea.vmem [#allocation12], %s7417_s19  ;;  %s6251_s19 = sadd.s32 28, %s8665_s5 }
 0xfe2   : > { %p12377_p9 = scmp.lt.s32.totalorder %s6251_s19, %s8674_s25 }
 0xfe6   : > { %v7721_v13 = vpop.eup %7720 }
 0xfe7   : > { %v4800_v35 = vadd.f32 1.0, %v7721_v13 }
 0xfe9   : > { %7722 = vrcp.f32 %v4800_v35  ;;  %v4812_v54 = vand.u32 2147483648, %v4800_v35  ;;  %v4810_v11 = vand.u32 2147483647, %v4800_v35  ;;  %vm4806_vm2 = vweird.f32 %v4800_v35 }
 0xfea   : > { %7724 = vtanh.f32 %v4817_v47 }
 0xfeb   : > { %v4813_v38 = vor.u32 1.1754944e-38, %v4812_v54  ;;  %vm4811_vm4 = vcmp.eq.f32.partialorder %v4810_v11, 8.507059e+37 }
 0xfef   : > { %v7723_v9 = vpop.eup %7722 }
 0xff0   : > { %v4802_v32 = vmul.f32 %v7723_v9, %v4800_v35  ;;  %vm4807_vm1 = vweird.f32 %v7723_v9  ;;  %v7725_v2 = vpop.eup %7724 }
 0xff1   : > { %vm4808_vm3 = vmor %vm4806_vm2, %vm4807_vm1 }
 0xff2   : > { %v4803_v40 = vsub.f32 1.0, %v4802_v32  ;;  %v11409_v32 = vld [vmem:[#allocation15 + $0x128] sm:$0xff] }
 0xff4   : > { %v4804_v26 = vmul.f32 %v7723_v9, %v4803_v40 }
 0xff6   : > { %v4805_v45 = vadd.f32 %v7723_v9, %v4804_v26  ;;  %v11414_v26 = vld [vmem:[#allocation15 + $0x108] sm:$0xff] }
 0xff8   : > { %v4809_v15 = vsel %vm4808_vm3, %v7723_v9, %v4805_v45 }
 0xff9   : > { %v4814_v25 = vsel %vm4811_vm4, %v4813_v38, %v4809_v15 }
 0xffa   : > { %v4821_v46 = vrot.slane %v4814_v25, 1  ;;  %v4824_v27 = vmul.f32 %v7725_v2, %v4814_v25  ;;  %v4827_v31 = vrot.slane %v4814_v25, 3  ;;  %v11420_v25 = vld [vmem:[#allocation15 + $0xe8] sm:$0xff] }
 0xffc   : > { %v4823_v12 = vmul.f32 %v4821_v46, %v11164_v58 }
 0xffe   : > { %v4825_v59 = vadd.f32 %v4824_v27, %v4823_v12  ;;  %v11428_v12 = vld [vmem:[#allocation15 + $0xc8] sm:$0xff] }
0x1000   : > { %7726 = vtanh.f32 %v4825_v59  ;;  %v11325_v60 = vsel %vm4833_vm8, %v4825_v59, %v11164_v58  ;;  %v11361_v58 = vld [vmem:[#allocation15 + $0x1e8] sm:$0xff] }
0x1001   : > { %5129 = vmatpush.msrb.mxu1 %v11361_v58  ;;  %v11433_v59 = vld [vmem:[#allocation15 + $0xa8] sm:$0xff] }
0x1006   : > { %v7727_v13 = vpop.eup %7726 }
0x1007   : > { %v4829_v35 = vmul.f32 %v7727_v13, %v4827_v31  ;;  %v11438_v13 = vld [vmem:[#allocation15 + $0x88] sm:$0xff] }
0x1009   : > { %v11332_v9 = vsel %vm4833_vm8, %v4829_v35, %v11167_v3  ;;  %v11363_v3 = vld [vmem:[#allocation15 + $0x1f0] sm:$0xff]  ;;  %v11443_v35 = vld [vmem:[#allocation15 + $0x68] sm:$0xff] }
0x100a   : > { %4836 = vst [vmem:[#allocation5 + $0x14] sm:$0x1] %v11332_v9  ;;  %4923 = vmatmul.f32.vlgmr.msra.gmra.mxu0 %v11332_v9  ;;  %4943 = vmatmul.f32.vlgmr.msra.gmra.mxu1 %v11332_v9 }
0x100b   : > { %4963 = vmatmul.f32.vlgmr.msrb.gmra.mxu2 %v11332_v9  ;;  %4983 = vmatmul.f32.vlgmr.msrb.gmra.mxu3 %v11332_v9 }
0x100c   : > { %5311 = vmatpush.msra.mxu0 %v11177_v42  ;;  %v11365_v42 = vld [vmem:[#allocation15 + $0x1f8] sm:$0xff]  ;;  %5149 = vmatpush.msra.mxu2 %v11363_v3 }
0x100d   : > { %5169 = vmatpush.msra.mxu3 %v11365_v42 }
0x100e   : > { %5312 = vmatpush.msra.mxu0 %v11180_v1  ;;  %v11370_v1 = vld [vmem:[#allocation15 + $0x1c8] sm:$0xff] }
0x100f   : > { %5130 = vmatpush.msrb.mxu1 %v11370_v1 }
0x1010   : > { %5313 = vmatpush.msra.mxu0 %v11183_v57  ;;  %v11372_v57 = vld [vmem:[#allocation15 + $0x1d0] sm:$0xff] }
0x1011   : > { %5150 = vmatpush.msra.mxu2 %v11372_v57 }
0x1012   : > { %5314 = vmatpush.msra.mxu0 %v11186_v23  ;;  %v11374_v23 = vld [vmem:[#allocation15 + $0x1d8] sm:$0xff] }
0x1013   : > { %5170 = vmatpush.msra.mxu3 %v11374_v23 }
0x1014   : > { %5315 = vmatpush.msra.mxu0 %v11189_v56  ;;  %v11380_v56 = vld [vmem:[#allocation15 + $0x1a8] sm:$0xff] }
0x1015   : > { %5131 = vmatpush.msrb.mxu1 %v11380_v56 }
0x1016   : > { %5316 = vmatpush.msra.mxu0 %v11193_v52  ;;  %v11382_v52 = vld [vmem:[#allocation15 + $0x1b0] sm:$0xff] }
0x1017   : > { %5151 = vmatpush.msra.mxu2 %v11382_v52 }
0x1018   : > { %5317 = vmatpush.msra.mxu0 %v11206_v33  ;;  %v11384_v33 = vld [vmem:[#allocation15 + $0x1b8] sm:$0xff] }
0x1019   : > { %5171 = vmatpush.msra.mxu3 %v11384_v33 }
0x101a   : > { %5318 = vmatpush.msra.mxu0 %v11215_v20  ;;  %v11389_v20 = vld [vmem:[#allocation15 + $0x188] sm:$0xff] }
0x101b   : > { %5132 = vmatpush.msrb.mxu1 %v11389_v20 }
0x101c   : > { %5319 = vmatpush.msra.mxu0 %v11227_v44  ;;  %v11391_v44 = vld [vmem:[#allocation15 + $0x190] sm:$0xff] }
0x101d   : > { %5152 = vmatpush.msra.mxu2 %v11391_v44 }
0x101e   : > { %5320 = vmatpush.msra.mxu0 %v11239_v53  ;;  %v11393_v53 = vld [vmem:[#allocation15 + $0x198] sm:$0xff] }
0x101f   : > { %5172 = vmatpush.msra.mxu3 %v11393_v53 }
0x1020   : > { %5321 = vmatpush.msra.mxu0 %v11250_v48  ;;  %v11397_v48 = vld [vmem:[#allocation15 + $0x168] sm:$0xff] }
0x1021   : > { %5133 = vmatpush.msrb.mxu1 %v11397_v48 }
0x1022   : > { %5322 = vmatpush.msra.mxu0 %v11262_v37  ;;  %v11399_v37 = vld [vmem:[#allocation15 + $0x170] sm:$0xff] }
0x1023   : > { %5153 = vmatpush.msra.mxu2 %v11399_v37 }
0x1024   : > { %5323 = vmatpush.msra.mxu0 %v11272_v18  ;;  %v11401_v18 = vld [vmem:[#allocation15 + $0x178] sm:$0xff] }
0x1025   : > { %5173 = vmatpush.msra.mxu3 %v11401_v18  ;;  %5154 = vmatpush.msra.mxu2 %v11191_v16 }
0x1026   : > { %5324 = vmatpush.msra.mxu0 %v11281_v4 }
0x1027   : > { %5174 = vmatpush.msra.mxu3 %v11196_v5  ;;  %5155 = vmatpush.msra.mxu2 %v11198_v24 }
0x1028   : > { %5325 = vmatpush.msra.mxu0 %v11290_v29  ;;  %v11404_v29 = vld [vmem:[#allocation15 + $0x148] sm:$0xff] }
0x1029   : > { %5134 = vmatpush.msrb.mxu1 %v11404_v29  ;;  %5175 = vmatpush.msra.mxu3 %v11202_v43 }
0x102a   : > { %5326 = vmatpush.msra.mxu0 %v11297_v63  ;;  %v4841_v63 = vld [vmem:[%s4840_s21] sm:$0xf]  ;;  %5156 = vmatpush.msra.mxu2 %v11204_v36  ;;  %s5437_s21 = scalar_select %p11715_p1, 1, 0 }
0x102b   : > { %v4842_v45 = vadd.f32 %v11220_v39, %v4841_v63  ;;  %5135 = vmatpush.msrb.mxu1 %v11409_v32  ;;  %5176 = vmatpush.msra.mxu3 %v11209_v62 }
0x102c   : > { %5157 = vmatpush.msra.mxu2 %v11213_v28 }
0x102d   : > { %5136 = vmatpush.msrb.mxu1 %v11414_v26  ;;  %5177 = vmatpush.msra.mxu3 %v11218_v21 }
0x102e   : > { %5158 = vmatpush.msra.mxu2 %v11225_v14 }
0x102f   : > { %5137 = vmatpush.msrb.mxu1 %v11420_v25  ;;  %5178 = vmatpush.msra.mxu3 %v11230_v50 }
0x1030   : > { %5159 = vmatpush.msra.mxu2 %v11236_v41 }
0x1031   : > { %5138 = vmatpush.msrb.mxu1 %v11428_v12  ;;  %5179 = vmatpush.msra.mxu3 %v11242_v61 }
0x1032   : > { %5160 = vmatpush.msra.mxu2 %v11248_v22 }
0x1033   : > { %5139 = vmatpush.msrb.mxu1 %v11433_v59  ;;  %5180 = vmatpush.msra.mxu3 %v11253_v19 }
0x1034   : > { %5161 = vmatpush.msra.mxu2 %v11260_v6 }
0x1035   : > { %5140 = vmatpush.msrb.mxu1 %v11438_v13  ;;  %5181 = vmatpush.msra.mxu3 %v11265_v8 }
0x1036   : > { %5162 = vmatpush.msra.mxu2 %v11270_v30 }
0x1037   : > { %5141 = vmatpush.msrb.mxu1 %v11443_v35  ;;  %5182 = vmatpush.msra.mxu3 %v11275_v51 }
0x1038   : > { %5163 = vmatpush.msra.mxu2 %v11279_v17 }
0x1039   : > { %5183 = vmatpush.msra.mxu3 %v11284_v0 }
0x103a   : > { %5164 = vmatpush.msra.mxu2 %v11288_v49 }
0x103b   : > { %5184 = vmatpush.msra.mxu3 %v11293_v10 }
0x103c   : > { %5351 = vmatpush.msrb.mxu2 %v11363_v3 }
0x103d   : > { %5371 = vmatpush.msrb.mxu3 %v11365_v42 }
0x103e   : > { %5352 = vmatpush.msrb.mxu2 %v11372_v57 }
0x103f   : > { %5372 = vmatpush.msrb.mxu3 %v11374_v23 }
0x1040   : > { %5353 = vmatpush.msrb.mxu2 %v11382_v52 }
0x1041   : > { %5373 = vmatpush.msrb.mxu3 %v11384_v33 }
0x1042   : > { %5354 = vmatpush.msrb.mxu2 %v11391_v44 }
0x1043   : > { %5374 = vmatpush.msrb.mxu3 %v11393_v53 }
0x1044   : > { %5355 = vmatpush.msrb.mxu2 %v11399_v37 }
0x1045   : > { %5375 = vmatpush.msrb.mxu3 %v11401_v18 }
0x1046   : > { %5356 = vmatpush.msrb.mxu2 %v11191_v16 }
0x1047   : > { %5376 = vmatpush.msrb.mxu3 %v11196_v5 }
0x1048   : > { %5357 = vmatpush.msrb.mxu2 %v11198_v24 }
0x1049   : > { %5377 = vmatpush.msrb.mxu3 %v11202_v43 }
0x104a   : > { %5358 = vmatpush.msrb.mxu2 %v11204_v36 }
0x104b   : > { %5378 = vmatpush.msrb.mxu3 %v11209_v62 }
0x104c   : > { %5359 = vmatpush.msrb.mxu2 %v11213_v28 }
0x104d   : > { %5379 = vmatpush.msrb.mxu3 %v11218_v21 }
0x104e   : > { %5360 = vmatpush.msrb.mxu2 %v11225_v14 }
0x104f   : > { %5380 = vmatpush.msrb.mxu3 %v11230_v50  ;;  %v5043_v50 = vld [vmem:[%s5042_s16] sm:$0xf]  ;;  %s5639_s16 = scalar_select %p11882_p3, 1, 0 }
0x1050   : > { %5361 = vmatpush.msrb.mxu2 %v11236_v41 }
0x1051   : > { %5381 = vmatpush.msrb.mxu3 %v11242_v61 }
0x1052   : > { %5362 = vmatpush.msrb.mxu2 %v11248_v22 }
0x1053   : > { %5382 = vmatpush.msrb.mxu3 %v11253_v19  ;;  %v5044_v19 = vadd.f32 %v11220_v39, %v5043_v50  ;;  %v11632_v50 = vld [vmem:[#allocation15 + $0xe0] sm:$0xff] }
0x1054   : > { %5363 = vmatpush.msrb.mxu2 %v11260_v6 }
0x1055   : > { %5383 = vmatpush.msrb.mxu3 %v11265_v8 }
0x1056   : > { %5364 = vmatpush.msrb.mxu2 %v11270_v30 }
0x1057   : > { %5384 = vmatpush.msrb.mxu3 %v11275_v51 }
0x1058   : > { %5365 = vmatpush.msrb.mxu2 %v11279_v17 }
0x1059   : > { %5385 = vmatpush.msrb.mxu3 %v11284_v0 }
0x105a   : > { %5366 = vmatpush.msrb.mxu2 %v11288_v49 }
0x105b   : > { %5386 = vmatpush.msrb.mxu3 %v11293_v10 }
0x1087   : > { %v4944_v4 = vpop.f32.mrf.mxu1  ;;  %v4924_v15 = vpop.f32.mrf.mxu0 }
0x1088   : > { %v4991_v47 = vrot.slane %v4944_v4, 7  ;;  %v11448_v4 = vld [vmem:[#allocation15 + $0x48] sm:$0xff] }
0x1089   : > { %5142 = vmatpush.msrb.mxu1 %v11448_v4 }
0x108a   : > { %v4994_v46 = vsel %vm749_vm6, %v4924_v15, %v4991_v47 }
0x108b   : > { %5143 = vmatpush.msrb.mxu1 %v11244_v7 }
0x108d   : > { %5144 = vmatpush.msrb.mxu1 %v11256_v55 }
0x108e   : > { %v4964_v40 = vpop.f32.mrf.mxu2  ;;  %v4984_v54 = vpop.f32.mrf.mxu3 }
0x108f   : > { %v4992_v11 = vrot.slane %v4964_v40, 6  ;;  %v4993_v38 = vrot.slane %v4984_v54, 5  ;;  %5331 = vmatpush.msra.mxu1 %v11361_v58 }
0x1091   : > { %v4995_v34 = vsel %vm751_vm5, %v4992_v11, %v4993_v38  ;;  %5332 = vmatpush.msra.mxu1 %v11370_v1 }
0x1092   : > { %v4996_v2 = vsel %vm753_vm7, %v4994_v46, %v4995_v34 }
0x1093   : > { %v4998_v27 = vadd.f32 %v4996_v2, %v4842_v45  ;;  %5333 = vmatpush.msra.mxu1 %v11380_v56 }
0x1095   : > { %v7414_v31 = vmul.f32 -1.442695, %v4998_v27  ;;  %v5019_v11 = vrot.slane %v4998_v27, 2  ;;  %5334 = vmatpush.msra.mxu1 %v11389_v20 }
0x1097   : > { %7728 = vpow2.f32 %v7414_v31  ;;  %5335 = vmatpush.msra.mxu1 %v11397_v48 }
0x1099   : > { %5336 = vmatpush.msra.mxu1 %v11404_v29 }
0x109b   : > { %5337 = vmatpush.msra.mxu1 %v11409_v32 }
0x109d   : > { %v7729_v63 = vpop.eup %7728  ;;  %5338 = vmatpush.msra.mxu1 %v11414_v26 }
0x109e   : > { %v5002_v47 = vadd.f32 1.0, %v7729_v63 }
0x109f   : > { %5339 = vmatpush.msra.mxu1 %v11420_v25 }
0x10a0   : > { %7730 = vrcp.f32 %v5002_v47  ;;  %v5014_v38 = vand.u32 2147483648, %v5002_v47  ;;  %v5012_v46 = vand.u32 2147483647, %v5002_v47  ;;  %vm5008_vm10 = vweird.f32 %v5002_v47 }
0x10a1   : > { %7732 = vtanh.f32 %v5019_v11  ;;  %5340 = vmatpush.msra.mxu1 %v11428_v12  ;;  %v11598_v11 = vld [vmem:[#allocation15 + $0x150] sm:$0xff] }
0x10a2   : > { %v5015_v2 = vor.u32 1.1754944e-38, %v5014_v38  ;;  %vm5013_vm12 = vcmp.eq.f32.partialorder %v5012_v46, 8.507059e+37  ;;  %v11600_v38 = vld [vmem:[#allocation15 + $0x140] sm:$0xff]  ;;  %v11605_v46 = vld [vmem:[#allocation15 + $0x130] sm:$0xff] }
0x10a3   : > { %5341 = vmatpush.msra.mxu1 %v11433_v59 }
0x10a5   : > { %5342 = vmatpush.msra.mxu1 %v11438_v13 }
0x10a6   : > { %v7731_v40 = vpop.eup %7730 }
0x10a7   : > { %v5004_v54 = vmul.f32 %v7731_v40, %v5002_v47  ;;  %vm5009_vm9 = vweird.f32 %v7731_v40  ;;  %v5034_v47 = vstv %s5033_s20  ;;  %v7733_v16 = vpop.eup %7732  ;;  %5343 = vmatpush.msra.mxu1 %v11443_v35  ;;  %s11764_s20 = sld [smem:[#allocation7 + %s5443_s29]] }
0x10a8   : > { %vm5010_vm11 = vmor %vm5008_vm10, %vm5009_vm9  ;;  %vm5035_vm13 = vcmp.eq.s32.totalorder %v5034_v47, 1 }
0x10a9   : > { %v5005_v45 = vsub.f32 1.0, %v5004_v54  ;;  %5344 = vmatpush.msra.mxu1 %v11448_v4  ;;  %v11596_v54 = vld [vmem:[#allocation15 + $0x160] sm:$0xff] }
0x10ab   : > { %v5006_v15 = vmul.f32 %v7731_v40, %v5005_v45  ;;  %5345 = vmatpush.msra.mxu1 %v11244_v7 }
0x10ad   : > { %v5007_v34 = vadd.f32 %v7731_v40, %v5006_v15  ;;  %5346 = vmatpush.msra.mxu1 %v11256_v55  ;;  %v11603_v15 = vld [vmem:[#allocation15 + $0x158] sm:$0xff]  ;;  %s7419_s7 = sshll.u32 %s11764_s20, 2 }
0x10ae   : > { %s5446_s26 = scalar_lea.vmem [#allocation12], %s7419_s7  ;;  %s6453_s7 = sadd.s32 29, %s8665_s5 }
0x10af   : > { %v5011_v27 = vsel %vm5010_vm11, %v7731_v40, %v5007_v34  ;;  %v11609_v34 = vld [vmem:[#allocation15 + $0x138] sm:$0xff]  ;;  %p12520_p10 = scmp.lt.s32.totalorder %s6453_s7, %s8674_s25 }
0x10b0   : > { %v5016_v31 = vsel %vm5013_vm12, %v5015_v2, %v5011_v27  ;;  %v11611_v2 = vld [vmem:[#allocation15 + $0x110] sm:$0xff]  ;;  %v5245_v27 = vld [vmem:[%s5244_s27] sm:$0xf]  ;;  %s5841_s27 = scalar_select %p11970_p4, 1, 0 }
0x10b1   : > { %v5023_v63 = vrot.slane %v5016_v31, 1  ;;  %v5026_v40 = vmul.f32 %v7733_v16, %v5016_v31  ;;  %v5029_v36 = vrot.slane %v5016_v31, 3  ;;  %v11613_v31 = vld [vmem:[#allocation15 + $0x120] sm:$0xff]  ;;  %v11620_v16 = vld [vmem:[#allocation15 + $0xf0] sm:$0xff] }
0x10b3   : > { %v5025_v5 = vmul.f32 %v5023_v63, %v11325_v60  ;;  %v11616_v63 = vld [vmem:[#allocation15 + $0x118] sm:$0xff] }
0x10b5   : > { %v5027_v24 = vadd.f32 %v5026_v40, %v5025_v5 }
0x10b7   : > { %7734 = vtanh.f32 %v5027_v24  ;;  %v11505_v43 = vsel %vm5035_vm13, %v5027_v24, %v11325_v60  ;;  %v11622_v24 = vld [vmem:[#allocation15 + $0x100] sm:$0xff] }
0x10bd   : > { %v7735_v62 = vpop.eup %7734 }
0x10be   : > { %v5031_v28 = vmul.f32 %v7735_v62, %v5029_v36  ;;  %v5246_v62 = vadd.f32 %v11220_v39, %v5245_v27  ;;  %v11641_v39 = vld [vmem:[#allocation15 + $0xb0] sm:$0xff] }
0x10c0   : > { %v11523_v21 = vsel %vm5035_vm13, %v5031_v28, %v11332_v9 }
0x10c1   : > { %5038 = vst [vmem:[#allocation5 + $0x15] sm:$0x1] %v11523_v21  ;;  %5125 = vmatmul.f32.vlgmr.msrb.gmra.mxu0 %v11523_v21  ;;  %5145 = vmatmul.f32.vlgmr.msrb.gmra.mxu1 %v11523_v21 }
0x10c2   : > { %5165 = vmatmul.f32.vlgmr.msra.gmra.mxu2 %v11523_v21  ;;  %5185 = vmatmul.f32.vlgmr.msra.gmra.mxu3 %v11523_v21 }
0x10c3   : > { %5533 = vmatpush.msrb.mxu1 %v11361_v58  ;;  %5553 = vmatpush.msra.mxu2 %v11363_v3 }
0x10c4   : > { %5573 = vmatpush.msra.mxu3 %v11365_v42 }
0x10c5   : > { %5534 = vmatpush.msrb.mxu1 %v11370_v1  ;;  %5554 = vmatpush.msra.mxu2 %v11372_v57 }
0x10c6   : > { %5574 = vmatpush.msra.mxu3 %v11374_v23 }
0x10c7   : > { %5535 = vmatpush.msrb.mxu1 %v11380_v56  ;;  %5555 = vmatpush.msra.mxu2 %v11382_v52 }
0x10c8   : > { %5575 = vmatpush.msra.mxu3 %v11384_v33 }
0x10c9   : > { %5536 = vmatpush.msrb.mxu1 %v11389_v20  ;;  %5556 = vmatpush.msra.mxu2 %v11391_v44  ;;  %v5236_v44 = vstv %s5235_s24  ;;  %s5646_s24 = sld [smem:[#allocation7 + %s5645_s23]] }
0x10ca   : > { %5576 = vmatpush.msra.mxu3 %v11393_v53  ;;  %vm5237_vm2 = vcmp.eq.s32.totalorder %v5236_v44, 1 }
0x10cb   : > { %5537 = vmatpush.msrb.mxu1 %v11397_v48  ;;  %5557 = vmatpush.msra.mxu2 %v11399_v37 }
0x10cc   : > { %5577 = vmatpush.msra.mxu3 %v11401_v18 }
0x10cd   : > { %5538 = vmatpush.msrb.mxu1 %v11404_v29  ;;  %5558 = vmatpush.msra.mxu2 %v11598_v11 }
0x10ce   : > { %5578 = vmatpush.msra.mxu3 %v11603_v15 }
0x10cf   : > { %5539 = vmatpush.msrb.mxu1 %v11409_v32  ;;  %5559 = vmatpush.msra.mxu2 %v11605_v46  ;;  %s7421_s30 = sshll.u32 %s5646_s24, 2 }
0x10d0   : > { %5579 = vmatpush.msra.mxu3 %v11609_v34  ;;  %s5648_s17 = scalar_lea.vmem [#allocation12], %s7421_s30  ;;  %s6655_s30 = sadd.s32 30, %s8665_s5 }
0x10d1   : > { %5540 = vmatpush.msrb.mxu1 %v11414_v26  ;;  %5560 = vmatpush.msra.mxu2 %v11611_v2  ;;  %p12588_p11 = scmp.lt.s32.totalorder %s6655_s30, %s8674_s25 }
0x10d2   : > { %5580 = vmatpush.msra.mxu3 %v11616_v63 }
0x10d3   : > { %5541 = vmatpush.msrb.mxu1 %v11420_v25  ;;  %5561 = vmatpush.msra.mxu2 %v11620_v16 }
0x10d5   : > { %5542 = vmatpush.msrb.mxu1 %v11428_v12 }
0x10d7   : > { %5543 = vmatpush.msrb.mxu1 %v11433_v59  ;;  %v11584_v59 = vld [vmem:[#allocation15 + $0x1e0] sm:$0xff] }
0x10d8   : > { %5513 = vmatpush.msrb.mxu0 %v11584_v59 }
0x10d9   : > { %5544 = vmatpush.msrb.mxu1 %v11438_v13  ;;  %v11587_v13 = vld [vmem:[#allocation15 + $0x1c0] sm:$0xff] }
0x10da   : > { %5514 = vmatpush.msrb.mxu0 %v11587_v13 }
0x10db   : > { %5545 = vmatpush.msrb.mxu1 %v11443_v35  ;;  %v11590_v35 = vld [vmem:[#allocation15 + $0x1a0] sm:$0xff] }
0x10dc   : > { %5515 = vmatpush.msrb.mxu0 %v11590_v35 }
0x10dd   : > { %5546 = vmatpush.msrb.mxu1 %v11448_v4  ;;  %v11593_v4 = vld [vmem:[#allocation15 + $0x180] sm:$0xff] }
0x10de   : > { %5516 = vmatpush.msrb.mxu0 %v11593_v4 }
0x10e0   : > { %5517 = vmatpush.msrb.mxu0 %v11596_v54 }
0x10e2   : > { %5518 = vmatpush.msrb.mxu0 %v11600_v38 }
0x10e4   : > { %5519 = vmatpush.msrb.mxu0 %v11613_v31 }
0x10e6   : > { %5520 = vmatpush.msrb.mxu0 %v11622_v24 }
0x10e8   : > { %5521 = vmatpush.msrb.mxu0 %v11632_v50 }
0x113e   : > { %v5146_v14 = vpop.f32.mrf.mxu1  ;;  %v5126_v6 = vpop.f32.mrf.mxu0 }
0x113f   : > { %v5193_v41 = vrot.slane %v5146_v14, 7 }
0x1141   : > { %v5196_v8 = vsel %vm749_vm6, %v5126_v6, %v5193_v41  ;;  %v11635_v41 = vld [vmem:[#allocation15 + $0xd8] sm:$0xff]  ;;  %v11649_v6 = vld [vmem:[#allocation15 + $0x28] sm:$0xff] }
0x1142   : > { %5547 = vmatpush.msrb.mxu1 %v11649_v6 }
0x1145   : > { %v5166_v61 = vpop.f32.mrf.mxu2  ;;  %v5186_v7 = vpop.f32.mrf.mxu3 }
0x1146   : > { %v5194_v22 = vrot.slane %v5166_v61, 6  ;;  %v5195_v55 = vrot.slane %v5186_v7, 5 }
0x1148   : > { %v5197_v30 = vsel %vm751_vm5, %v5194_v22, %v5195_v55  ;;  %v11647_v55 = vld [vmem:[#allocation15 + $0xb8] sm:$0xff] }
0x1149   : > { %v5198_v51 = vsel %vm753_vm7, %v5196_v8, %v5197_v30  ;;  %v11653_v30 = vld [vmem:[#allocation15 + $0x90] sm:$0xff] }
0x114a   : > { %v5200_v17 = vadd.f32 %v5198_v51, %v5044_v19  ;;  %v11644_v19 = vld [vmem:[#allocation15 + $0xc0] sm:$0xff] }
0x114b   : > { %v11655_v51 = vld [vmem:[#allocation15 + $0xa0] sm:$0xff]  ;;  %5522 = vmatpush.msrb.mxu0 %v11644_v19 }
0x114c   : > { %v7416_v0 = vmul.f32 -1.442695, %v5200_v17  ;;  %v5221_v58 = vrot.slane %v5200_v17, 2  ;;  %v11658_v17 = vld [vmem:[#allocation15 + $0x98] sm:$0xff] }
0x114d   : > { %5523 = vmatpush.msrb.mxu0 %v11655_v51 }
0x114e   : > { %7736 = vpow2.f32 %v7416_v0  ;;  %v11661_v0 = vld [vmem:[#allocation15 + $0x8] sm:$0xff] }
0x114f   : > { %5548 = vmatpush.msrb.mxu1 %v11661_v0 }
0x1154   : > { %v7737_v49 = vpop.eup %7736 }
0x1155   : > { %v5204_v10 = vadd.f32 1.0, %v7737_v49 }
0x1157   : > { %7738 = vrcp.f32 %v5204_v10  ;;  %v5216_v42 = vand.u32 2147483648, %v5204_v10  ;;  %v5214_v57 = vand.u32 2147483647, %v5204_v10  ;;  %vm5210_vm15 = vweird.f32 %v5204_v10 }
0x1158   : > { %7740 = vtanh.f32 %v5221_v58  ;;  %v11675_v58 = vld [vmem:[#allocation15 + $0x50] sm:$0xff] }
0x1159   : > { %v5217_v56 = vor.u32 1.1754944e-38, %v5216_v42  ;;  %vm5215_vm1 = vcmp.eq.f32.partialorder %v5214_v57, 8.507059e+37  ;;  %v11680_v42 = vld [vmem:[#allocation15 + $0x58] sm:$0xff]  ;;  %v11686_v57 = vld [vmem:[#allocation15 + $0x40] sm:$0xff] }
0x115d   : > { %v7739_v60 = vpop.eup %7738 }
0x115e   : > { %v5206_v9 = vmul.f32 %v7739_v60, %v5204_v10  ;;  %vm5211_vm14 = vweird.f32 %v7739_v60  ;;  %v7741_v53 = vpop.eup %7740  ;;  %v11665_v10 = vld [vmem:[#allocation15 + $0x70] sm:$0xff] }
0x115f   : > { %vm5212_vm0 = vmor %vm5210_vm15, %vm5211_vm14 }
0x1160   : > { %v5207_v3 = vsub.f32 1.0, %v5206_v9  ;;  %v11670_v9 = vld [vmem:[#allocation15 + $0x78] sm:$0xff] }
0x1162   : > { %v5208_v1 = vmul.f32 %v7739_v60, %v5207_v3  ;;  %v11677_v3 = vld [vmem:[#allocation15 + $0x60] sm:$0xff] }
0x1164   : > { %v5209_v23 = vadd.f32 %v7739_v60, %v5208_v1  ;;  %v11684_v1 = vld [vmem:[#allocation15 + $0x30] sm:$0xff] }
0x1166   : > { %v5213_v52 = vsel %vm5212_vm0, %v7739_v60, %v5209_v23  ;;  %v11667_v60 = vld [vmem:[#allocation15 + $0x80] sm:$0xff]  ;;  %v11689_v23 = vld [vmem:[#allocation15 + $0x38] sm:$0xff] }
0x1167   : > { %v5218_v33 = vsel %vm5215_vm1, %v5217_v56, %v5213_v52  ;;  %5524 = vmatpush.msrb.mxu0 %v11667_v60  ;;  %v11693_v56 = vld [vmem:[#allocation15 + $0x10] sm:$0xff]  ;;  %v11695_v52 = vld [vmem:[#allocation15 + $0x20] sm:$0xff] }
0x1168   : > { %v5225_v20 = vrot.slane %v5218_v33, 1  ;;  %v5228_v37 = vmul.f32 %v7741_v53, %v5218_v33  ;;  %v5231_v32 = vrot.slane %v5218_v33, 3  ;;  %v11698_v33 = vld [vmem:[#allocation15 + $0x18] sm:$0xff]  ;;  %v11702_v53 = vld [vmem:[#allocation15] sm:$0xff] }
0x1169   : > { %5525 = vmatpush.msrb.mxu0 %v11677_v3 }
0x116a   : > { %v5227_v48 = vmul.f32 %v5225_v20, %v11505_v43 }
0x116b   : > { %5526 = vmatpush.msrb.mxu0 %v11686_v57 }
0x116c   : > { %v5229_v18 = vadd.f32 %v5228_v37, %v5227_v48 }
0x116d   : > { %5527 = vmatpush.msrb.mxu0 %v11695_v52 }
0x116e   : > { %7742 = vtanh.f32 %v5229_v18  ;;  %v11571_v29 = vsel %vm5237_vm2, %v5229_v18, %v11505_v43  ;;  %v11625_v43 = vld [vmem:[#allocation15 + $0xf8] sm:$0xff] }
0x116f   : > { %5581 = vmatpush.msra.mxu3 %v11625_v43  ;;  %5528 = vmatpush.msrb.mxu0 %v11702_v53 }
0x1171   : > { %5582 = vmatpush.msra.mxu3 %v11635_v41 }
0x1173   : > { %5583 = vmatpush.msra.mxu3 %v11647_v55 }
0x1174   : > { %v7743_v26 = vpop.eup %7742 }
0x1175   : > { %v5233_v25 = vmul.f32 %v7743_v26, %v5231_v32  ;;  %5584 = vmatpush.msra.mxu3 %v11658_v17 }
0x1177   : > { %v11574_v12 = vsel %vm5237_vm2, %v5233_v25, %v11523_v21  ;;  %v11630_v21 = vld [vmem:[#allocation15 + $0xd0] sm:$0xff]  ;;  %5585 = vmatpush.msra.mxu3 %v11670_v9 }
0x1178   : > { %5240 = vst [vmem:[#allocation5 + $0x16] sm:$0x1] %v11574_v12  ;;  %5327 = vmatmul.f32.vlgmr.msra.gmra.mxu0 %v11574_v12  ;;  %5347 = vmatmul.f32.vlgmr.msra.gmra.mxu1 %v11574_v12 }
0x1179   : > { %5367 = vmatmul.f32.vlgmr.msrb.gmra.mxu2 %v11574_v12  ;;  %5387 = vmatmul.f32.vlgmr.msrb.gmra.mxu3 %v11574_v12 }
0x117a   : > { %5562 = vmatpush.msra.mxu2 %v11630_v21  ;;  %5586 = vmatpush.msra.mxu3 %v11680_v42 }
0x117b   : > { %5715 = vmatpush.msra.mxu0 %v11584_v59 }
0x117c   : > { %5563 = vmatpush.msra.mxu2 %v11641_v39  ;;  %5587 = vmatpush.msra.mxu3 %v11689_v23 }
0x117d   : > { %5716 = vmatpush.msra.mxu0 %v11587_v13 }
0x117e   : > { %5564 = vmatpush.msra.mxu2 %v11653_v30  ;;  %5588 = vmatpush.msra.mxu3 %v11698_v33 }
0x117f   : > { %5717 = vmatpush.msra.mxu0 %v11590_v35 }
0x1180   : > { %5565 = vmatpush.msra.mxu2 %v11665_v10 }
0x1181   : > { %5718 = vmatpush.msra.mxu0 %v11593_v4 }
0x1182   : > { %5566 = vmatpush.msra.mxu2 %v11675_v58 }
0x1183   : > { %5719 = vmatpush.msra.mxu0 %v11596_v54 }
0x1184   : > { %5567 = vmatpush.msra.mxu2 %v11684_v1 }
0x1185   : > { %5720 = vmatpush.msra.mxu0 %v11600_v38 }
0x1186   : > { %5568 = vmatpush.msra.mxu2 %v11693_v56 }
0x1187   : > { %5721 = vmatpush.msra.mxu0 %v11613_v31 }
0x1189   : > { %5722 = vmatpush.msra.mxu0 %v11622_v24 }
0x118b   : > { %5723 = vmatpush.msra.mxu0 %v11632_v50 }
0x118d   : > { %5724 = vmatpush.msra.mxu0 %v11644_v19 }
0x118f   : > { %5725 = vmatpush.msra.mxu0 %v11655_v51 }
0x1191   : > { %5726 = vmatpush.msra.mxu0 %v11667_v60 }
0x1193   : > { %5727 = vmatpush.msra.mxu0 %v11677_v3 }
0x1195   : > { %5728 = vmatpush.msra.mxu0 %v11686_v57 }
0x1197   : > { %5729 = vmatpush.msra.mxu0 %v11695_v52 }
0x1199   : > { %5730 = vmatpush.msra.mxu0 %v11702_v53 }
0x11f5   : > { %v5348_v45 = vpop.f32.mrf.mxu1  ;;  %v5328_v14 = vpop.f32.mrf.mxu0 }
0x11f6   : > { %v5395_v47 = vrot.slane %v5348_v45, 7 }
0x11f8   : > { %v5398_v61 = vsel %vm749_vm6, %v5328_v14, %v5395_v47 }
0x11fc   : > { %v5368_v5 = vpop.f32.mrf.mxu2  ;;  %v5388_v40 = vpop.f32.mrf.mxu3 }
0x11fd   : > { %v5396_v36 = vrot.slane %v5368_v5, 6  ;;  %v5397_v28 = vrot.slane %v5388_v40, 5 }
0x11ff   : > { %v5399_v7 = vsel %vm751_vm5, %v5396_v36, %v5397_v28 }
0x1200   : > { %v5400_v22 = vsel %vm753_vm7, %v5398_v61, %v5399_v7 }
0x1201   : > { %v5402_v8 = vadd.f32 %v5400_v22, %v5246_v62  ;;  %v5438_v62 = vstv %s5437_s21  ;;  %s5848_s21 = sld [smem:[#allocation7 + %s5847_s0]] }
0x1202   : > { %vm5439_vm10 = vcmp.eq.s32.totalorder %v5438_v62, 1 }
0x1203   : > { %v7418_v49 = vmul.f32 -1.442695, %v5402_v8  ;;  %v5423_v18 = vrot.slane %v5402_v8, 2 }
0x1205   : > { %7744 = vpow2.f32 %v7418_v49 }
0x1207   : > { %s7423_s29 = sshll.u32 %s5848_s21, 2 }
0x1208   : > { %s5850_s20 = scalar_lea.vmem [#allocation12], %s7423_s29  ;;  %s6857_s29 = sadd.s32 31, %s8665_s5 }
0x1209   : > { %p12622_p12 = scmp.lt.s32.totalorder %s6857_s29, %s8674_s25 }
0x120b   : > { %v7745_v20 = vpop.eup %7744 }
0x120c   : > { %v5406_v44 = vadd.f32 1.0, %v7745_v20 }
0x120e   : > { %7746 = vrcp.f32 %v5406_v44  ;;  %v5418_v26 = vand.u32 2147483648, %v5406_v44  ;;  %v5416_v45 = vand.u32 2147483647, %v5406_v44  ;;  %vm5412_vm4 = vweird.f32 %v5406_v44 }
0x120f   : > { %7748 = vtanh.f32 %v5423_v18 }
0x1210   : > { %v5419_v47 = vor.u32 1.1754944e-38, %v5418_v26  ;;  %vm5417_vm9 = vcmp.eq.f32.partialorder %v5416_v45, 8.507059e+37  ;;  %v11819_v26 = vld [vmem:[#allocation15 + $0x108] sm:$0xff] }
0x1211   : > { %v11821_v45 = vld [vmem:[#allocation4] sm:$0xf] }
0x1214   : > { %v7747_v48 = vpop.eup %7746 }
0x1215   : > { %v5408_v37 = vmul.f32 %v7747_v48, %v5406_v44  ;;  %vm5413_vm3 = vweird.f32 %v7747_v48  ;;  %v7749_v28 = vpop.eup %7748 }
0x1216   : > { %vm5414_vm8 = vmor %vm5412_vm4, %vm5413_vm3 }
0x1217   : > { %v5409_v32 = vsub.f32 1.0, %v5408_v37 }
0x1219   : > { %v5410_v25 = vmul.f32 %v7747_v48, %v5409_v32 }
0x121b   : > { %v5411_v27 = vadd.f32 %v7747_v48, %v5410_v25 }
0x121d   : > { %v5415_v5 = vsel %vm5414_vm8, %v7747_v48, %v5411_v27  ;;  %v11814_v48 = vld [vmem:[#allocation15 + $0x128] sm:$0xff] }
0x121e   : > { %v5420_v40 = vsel %vm5417_vm9, %v5419_v47, %v5415_v5 }
0x121f   : > { %v5427_v36 = vrot.slane %v5420_v40, 1  ;;  %v5430_v61 = vmul.f32 %v7749_v28, %v5420_v40  ;;  %v5433_v8 = vrot.slane %v5420_v40, 3  ;;  %v11827_v40 = vld [vmem:[#allocation15 + $0xe8] sm:$0xff] }
0x1221   : > { %v5429_v14 = vmul.f32 %v5427_v36, %v11571_v29 }
0x1223   : > { %v5431_v7 = vadd.f32 %v5430_v61, %v5429_v14  ;;  %v11835_v14 = vld [vmem:[#allocation15 + $0xc8] sm:$0xff] }
0x1225   : > { %7750 = vtanh.f32 %v5431_v7  ;;  %v11730_v22 = vsel %vm5439_vm10, %v5431_v7, %v11571_v29  ;;  %v11766_v29 = vld [vmem:[#allocation15 + $0x1e8] sm:$0xff] }
0x1226   : > { %5735 = vmatpush.msra.mxu1 %v11766_v29  ;;  %v11840_v7 = vld [vmem:[#allocation15 + $0xa8] sm:$0xff] }
0x122b   : > { %v7751_v49 = vpop.eup %7750 }
0x122c   : > { %v5435_v20 = vmul.f32 %v7751_v49, %v5433_v8  ;;  %v11845_v49 = vld [vmem:[#allocation15 + $0x88] sm:$0xff] }
0x122e   : > { %v11737_v44 = vsel %vm5439_vm10, %v5435_v20, %v11574_v12  ;;  %v11768_v12 = vld [vmem:[#allocation15 + $0x1f0] sm:$0xff]  ;;  %v11850_v20 = vld [vmem:[#allocation15 + $0x68] sm:$0xff] }
0x122f   : > { %5442 = vst [vmem:[#allocation5 + $0x17] sm:$0x1] %v11737_v44  ;;  %5529 = vmatmul.f32.vlgmr.msrb.gmra.mxu0 %v11737_v44  ;;  %5549 = vmatmul.f32.vlgmr.msrb.gmra.mxu1 %v11737_v44 }
0x1230   : > { %5569 = vmatmul.f32.vlgmr.msra.gmra.mxu2 %v11737_v44  ;;  %5589 = vmatmul.f32.vlgmr.msra.gmra.mxu3 %v11737_v44 }
0x1231   : > { %5917 = vmatpush.msrb.mxu0 %v11584_v59  ;;  %v11770_v59 = vld [vmem:[#allocation15 + $0x1f8] sm:$0xff]  ;;  %5755 = vmatpush.msrb.mxu2 %v11768_v12 }
0x1232   : > { %5775 = vmatpush.msrb.mxu3 %v11770_v59 }
0x1233   : > { %5918 = vmatpush.msrb.mxu0 %v11587_v13  ;;  %v11775_v13 = vld [vmem:[#allocation15 + $0x1c8] sm:$0xff] }
0x1234   : > { %5736 = vmatpush.msra.mxu1 %v11775_v13 }
0x1235   : > { %5919 = vmatpush.msrb.mxu0 %v11590_v35  ;;  %v11777_v35 = vld [vmem:[#allocation15 + $0x1d0] sm:$0xff] }
0x1236   : > { %5756 = vmatpush.msrb.mxu2 %v11777_v35 }
0x1237   : > { %5920 = vmatpush.msrb.mxu0 %v11593_v4  ;;  %v11779_v4 = vld [vmem:[#allocation15 + $0x1d8] sm:$0xff] }
0x1238   : > { %5776 = vmatpush.msrb.mxu3 %v11779_v4 }
0x1239   : > { %5921 = vmatpush.msrb.mxu0 %v11596_v54  ;;  %v11785_v54 = vld [vmem:[#allocation15 + $0x1a8] sm:$0xff] }
0x123a   : > { %5737 = vmatpush.msra.mxu1 %v11785_v54 }
0x123b   : > { %5922 = vmatpush.msrb.mxu0 %v11600_v38  ;;  %v11787_v38 = vld [vmem:[#allocation15 + $0x1b0] sm:$0xff] }
0x123c   : > { %5757 = vmatpush.msrb.mxu2 %v11787_v38 }
0x123d   : > { %5923 = vmatpush.msrb.mxu0 %v11613_v31  ;;  %v11789_v31 = vld [vmem:[#allocation15 + $0x1b8] sm:$0xff] }
0x123e   : > { %5777 = vmatpush.msrb.mxu3 %v11789_v31 }
0x123f   : > { %5924 = vmatpush.msrb.mxu0 %v11622_v24  ;;  %v11794_v24 = vld [vmem:[#allocation15 + $0x188] sm:$0xff] }
0x1240   : > { %5738 = vmatpush.msra.mxu1 %v11794_v24 }
0x1241   : > { %5925 = vmatpush.msrb.mxu0 %v11632_v50  ;;  %v11796_v50 = vld [vmem:[#allocation15 + $0x190] sm:$0xff] }
0x1242   : > { %5758 = vmatpush.msrb.mxu2 %v11796_v50 }
0x1243   : > { %5926 = vmatpush.msrb.mxu0 %v11644_v19  ;;  %v11798_v19 = vld [vmem:[#allocation15 + $0x198] sm:$0xff] }
0x1244   : > { %5778 = vmatpush.msrb.mxu3 %v11798_v19 }
0x1245   : > { %5927 = vmatpush.msrb.mxu0 %v11655_v51  ;;  %v11802_v51 = vld [vmem:[#allocation15 + $0x168] sm:$0xff] }
0x1246   : > { %5739 = vmatpush.msra.mxu1 %v11802_v51 }
0x1247   : > { %5928 = vmatpush.msrb.mxu0 %v11667_v60  ;;  %v11804_v60 = vld [vmem:[#allocation15 + $0x170] sm:$0xff] }
0x1248   : > { %5759 = vmatpush.msrb.mxu2 %v11804_v60 }
0x1249   : > { %5929 = vmatpush.msrb.mxu0 %v11677_v3  ;;  %v11806_v3 = vld [vmem:[#allocation15 + $0x178] sm:$0xff] }
0x124a   : > { %5779 = vmatpush.msrb.mxu3 %v11806_v3  ;;  %5760 = vmatpush.msrb.mxu2 %v11598_v11 }
0x124b   : > { %5930 = vmatpush.msrb.mxu0 %v11686_v57 }
0x124c   : > { %5780 = vmatpush.msrb.mxu3 %v11603_v15  ;;  %5761 = vmatpush.msrb.mxu2 %v11605_v46 }
0x124d   : > { %5931 = vmatpush.msrb.mxu0 %v11695_v52  ;;  %v11809_v52 = vld [vmem:[#allocation15 + $0x148] sm:$0xff] }
0x124e   : > { %5740 = vmatpush.msra.mxu1 %v11809_v52  ;;  %5781 = vmatpush.msrb.mxu3 %v11609_v34 }
0x124f   : > { %5932 = vmatpush.msrb.mxu0 %v11702_v53  ;;  %v5447_v53 = vld [vmem:[%s5446_s26] sm:$0xf]  ;;  %5762 = vmatpush.msrb.mxu2 %v11611_v2  ;;  %s6043_s26 = scalar_select %p12122_p7, 1, 0 }
0x1250   : > { %v5448_v27 = vadd.f32 %v11821_v45, %v5447_v53  ;;  %5741 = vmatpush.msra.mxu1 %v11814_v48  ;;  %5782 = vmatpush.msrb.mxu3 %v11616_v63 }
0x1251   : > { %5763 = vmatpush.msrb.mxu2 %v11620_v16 }
0x1252   : > { %5742 = vmatpush.msra.mxu1 %v11819_v26  ;;  %5783 = vmatpush.msrb.mxu3 %v11625_v43 }
0x1253   : > { %5764 = vmatpush.msrb.mxu2 %v11630_v21 }
0x1254   : > { %5743 = vmatpush.msra.mxu1 %v11827_v40  ;;  %5784 = vmatpush.msrb.mxu3 %v11635_v41 }
0x1255   : > { %5765 = vmatpush.msrb.mxu2 %v11641_v39 }
0x1256   : > { %5744 = vmatpush.msra.mxu1 %v11835_v14  ;;  %5785 = vmatpush.msrb.mxu3 %v11647_v55 }
0x1257   : > { %5766 = vmatpush.msrb.mxu2 %v11653_v30 }
0x1258   : > { %5745 = vmatpush.msra.mxu1 %v11840_v7  ;;  %5786 = vmatpush.msrb.mxu3 %v11658_v17 }
0x1259   : > { %5767 = vmatpush.msrb.mxu2 %v11665_v10 }
0x125a   : > { %5746 = vmatpush.msra.mxu1 %v11845_v49  ;;  %5787 = vmatpush.msrb.mxu3 %v11670_v9 }
0x125b   : > { %5768 = vmatpush.msrb.mxu2 %v11675_v58 }
0x125c   : > { %5747 = vmatpush.msra.mxu1 %v11850_v20  ;;  %5788 = vmatpush.msrb.mxu3 %v11680_v42 }
0x125d   : > { %5769 = vmatpush.msrb.mxu2 %v11684_v1 }
0x125e   : > { %5789 = vmatpush.msrb.mxu3 %v11689_v23 }
0x125f   : > { %5770 = vmatpush.msrb.mxu2 %v11693_v56 }
0x1260   : > { %5790 = vmatpush.msrb.mxu3 %v11698_v33 }
0x1261   : > { %5957 = vmatpush.msra.mxu2 %v11768_v12 }
0x1262   : > { %5977 = vmatpush.msra.mxu3 %v11770_v59 }
0x1263   : > { %5958 = vmatpush.msra.mxu2 %v11777_v35 }
0x1264   : > { %5978 = vmatpush.msra.mxu3 %v11779_v4 }
0x1265   : > { %5959 = vmatpush.msra.mxu2 %v11787_v38 }
0x1266   : > { %5979 = vmatpush.msra.mxu3 %v11789_v31 }
0x1267   : > { %5960 = vmatpush.msra.mxu2 %v11796_v50 }
0x1268   : > { %5980 = vmatpush.msra.mxu3 %v11798_v19 }
0x1269   : > { %5961 = vmatpush.msra.mxu2 %v11804_v60 }
0x126a   : > { %5981 = vmatpush.msra.mxu3 %v11806_v3 }
0x126b   : > { %5962 = vmatpush.msra.mxu2 %v11598_v11 }
0x126c   : > { %5982 = vmatpush.msra.mxu3 %v11603_v15 }
0x126d   : > { %5963 = vmatpush.msra.mxu2 %v11605_v46 }
0x126e   : > { %5983 = vmatpush.msra.mxu3 %v11609_v34 }
0x126f   : > { %5964 = vmatpush.msra.mxu2 %v11611_v2 }
0x1270   : > { %5984 = vmatpush.msra.mxu3 %v11616_v63 }
0x1271   : > { %5965 = vmatpush.msra.mxu2 %v11620_v16 }
0x1272   : > { %5985 = vmatpush.msra.mxu3 %v11625_v43 }
0x1273   : > { %5966 = vmatpush.msra.mxu2 %v11630_v21 }
0x1274   : > { %5986 = vmatpush.msra.mxu3 %v11635_v41  ;;  %v5649_v41 = vld [vmem:[%s5648_s17] sm:$0xf]  ;;  %s6245_s17 = scalar_select %p12287_p8, 1, 0 }
0x1275   : > { %5967 = vmatpush.msra.mxu2 %v11641_v39 }
0x1276   : > { %5987 = vmatpush.msra.mxu3 %v11647_v55 }
0x1277   : > { %5968 = vmatpush.msra.mxu2 %v11653_v30 }
0x1278   : > { %5988 = vmatpush.msra.mxu3 %v11658_v17  ;;  %v5650_v17 = vadd.f32 %v11821_v45, %v5649_v41  ;;  %v12039_v41 = vld [vmem:[#allocation15 + $0xe0] sm:$0xff] }
0x1279   : > { %5969 = vmatpush.msra.mxu2 %v11665_v10 }
0x127a   : > { %5989 = vmatpush.msra.mxu3 %v11670_v9 }
0x127b   : > { %5970 = vmatpush.msra.mxu2 %v11675_v58 }
0x127c   : > { %5990 = vmatpush.msra.mxu3 %v11680_v42 }
0x127d   : > { %5971 = vmatpush.msra.mxu2 %v11684_v1 }
0x127e   : > { %5991 = vmatpush.msra.mxu3 %v11689_v23 }
0x127f   : > { %5972 = vmatpush.msra.mxu2 %v11693_v56 }
0x1280   : > { %5992 = vmatpush.msra.mxu3 %v11698_v33 }
0x12ac   : > { %v5550_v57 = vpop.f32.mrf.mxu1  ;;  %v5530_v5 = vpop.f32.mrf.mxu0 }
0x12ad   : > { %v5597_v37 = vrot.slane %v5550_v57, 7  ;;  %v11855_v57 = vld [vmem:[#allocation15 + $0x48] sm:$0xff] }
0x12ae   : > { %5748 = vmatpush.msra.mxu1 %v11855_v57 }
0x12af   : > { %v5600_v36 = vsel %vm749_vm6, %v5530_v5, %v5597_v37 }
0x12b0   : > { %5749 = vmatpush.msra.mxu1 %v11649_v6 }
0x12b2   : > { %5750 = vmatpush.msra.mxu1 %v11661_v0 }
0x12b3   : > { %v5570_v18 = vpop.f32.mrf.mxu2  ;;  %v5590_v32 = vpop.f32.mrf.mxu3 }
0x12b4   : > { %v5598_v25 = vrot.slane %v5570_v18, 6  ;;  %v5599_v47 = vrot.slane %v5590_v32, 5  ;;  %5937 = vmatpush.msrb.mxu1 %v11766_v29 }
0x12b6   : > { %v5601_v62 = vsel %vm751_vm5, %v5598_v25, %v5599_v47  ;;  %5938 = vmatpush.msrb.mxu1 %v11775_v13 }
0x12b7   : > { %v5602_v28 = vsel %vm753_vm7, %v5600_v36, %v5601_v62 }
0x12b8   : > { %v5604_v61 = vadd.f32 %v5602_v28, %v5448_v27  ;;  %5939 = vmatpush.msrb.mxu1 %v11785_v54 }
0x12ba   : > { %v7420_v8 = vmul.f32 -1.442695, %v5604_v61  ;;  %v5625_v25 = vrot.slane %v5604_v61, 2  ;;  %5940 = vmatpush.msrb.mxu1 %v11794_v24 }
0x12bc   : > { %7752 = vpow2.f32 %v7420_v8  ;;  %5941 = vmatpush.msrb.mxu1 %v11802_v51 }
0x12be   : > { %5942 = vmatpush.msrb.mxu1 %v11809_v52 }
0x12c0   : > { %5943 = vmatpush.msrb.mxu1 %v11814_v48 }
0x12c2   : > { %v7753_v53 = vpop.eup %7752  ;;  %5944 = vmatpush.msrb.mxu1 %v11819_v26 }
0x12c3   : > { %v5608_v37 = vadd.f32 1.0, %v7753_v53 }
0x12c4   : > { %5945 = vmatpush.msrb.mxu1 %v11827_v40 }
0x12c5   : > { %7754 = vrcp.f32 %v5608_v37  ;;  %v5620_v47 = vand.u32 2147483648, %v5608_v37  ;;  %v5618_v36 = vand.u32 2147483647, %v5608_v37  ;;  %vm5614_vm12 = vweird.f32 %v5608_v37 }
0x12c6   : > { %7756 = vtanh.f32 %v5625_v25  ;;  %5946 = vmatpush.msrb.mxu1 %v11835_v14  ;;  %v12005_v25 = vld [vmem:[#allocation15 + $0x150] sm:$0xff] }
0x12c7   : > { %v5621_v28 = vor.u32 1.1754944e-38, %v5620_v47  ;;  %vm5619_vm14 = vcmp.eq.f32.partialorder %v5618_v36, 8.507059e+37  ;;  %v12007_v47 = vld [vmem:[#allocation15 + $0x140] sm:$0xff]  ;;  %v12012_v36 = vld [vmem:[#allocation15 + $0x130] sm:$0xff] }
0x12c8   : > { %5947 = vmatpush.msrb.mxu1 %v11840_v7 }
0x12ca   : > { %5948 = vmatpush.msrb.mxu1 %v11845_v49 }
0x12cb   : > { %v7755_v18 = vpop.eup %7754 }
0x12cc   : > { %v5610_v32 = vmul.f32 %v7755_v18, %v5608_v37  ;;  %vm5615_vm11 = vweird.f32 %v7755_v18  ;;  %v5640_v37 = vstv %s5639_s16  ;;  %v7757_v11 = vpop.eup %7756  ;;  %5949 = vmatpush.msrb.mxu1 %v11850_v20  ;;  %s12171_s16 = sld [smem:[#allocation7 + %s6049_s28]] }
0x12cd   : > { %vm5616_vm13 = vmor %vm5614_vm12, %vm5615_vm11  ;;  %vm5641_vm15 = vcmp.eq.s32.totalorder %v5640_v37, 1 }
0x12ce   : > { %v5611_v27 = vsub.f32 1.0, %v5610_v32  ;;  %5950 = vmatpush.msrb.mxu1 %v11855_v57  ;;  %v12003_v32 = vld [vmem:[#allocation15 + $0x160] sm:$0xff] }
0x12d0   : > { %v5612_v5 = vmul.f32 %v7755_v18, %v5611_v27  ;;  %5951 = vmatpush.msrb.mxu1 %v11649_v6 }
0x12d2   : > { %v5613_v62 = vadd.f32 %v7755_v18, %v5612_v5  ;;  %5952 = vmatpush.msrb.mxu1 %v11661_v0  ;;  %v12010_v5 = vld [vmem:[#allocation15 + $0x158] sm:$0xff]  ;;  %s7425_s23 = sshll.u32 %s12171_s16, 2 }
0x12d3   : > { %s6052_s24 = scalar_lea.vmem [#allocation12], %s7425_s23 }
0x12d4   : > { %v5617_v61 = vsel %vm5616_vm13, %v7755_v18, %v5613_v62  ;;  %v12016_v62 = vld [vmem:[#allocation15 + $0x138] sm:$0xff] }
0x12d5   : > { %v5622_v8 = vsel %vm5619_vm14, %v5621_v28, %v5617_v61  ;;  %v12018_v28 = vld [vmem:[#allocation15 + $0x110] sm:$0xff]  ;;  %v5851_v61 = vld [vmem:[%s5850_s20] sm:$0xf]  ;;  %s6447_s20 = scalar_select %p12377_p9, 1, 0 }
0x12d6   : > { %v5629_v53 = vrot.slane %v5622_v8, 1  ;;  %v5632_v18 = vmul.f32 %v7757_v11, %v5622_v8  ;;  %v5635_v2 = vrot.slane %v5622_v8, 3  ;;  %v12020_v8 = vld [vmem:[#allocation15 + $0x120] sm:$0xff]  ;;  %v12027_v11 = vld [vmem:[#allocation15 + $0xf0] sm:$0xff] }
0x12d8   : > { %v5631_v15 = vmul.f32 %v5629_v53, %v11730_v22  ;;  %v12023_v53 = vld [vmem:[#allocation15 + $0x118] sm:$0xff] }
0x12da   : > { %v5633_v46 = vadd.f32 %v5632_v18, %v5631_v15 }
0x12dc   : > { %7758 = vtanh.f32 %v5633_v46  ;;  %v11912_v34 = vsel %vm5641_vm15, %v5633_v46, %v11730_v22  ;;  %v12029_v46 = vld [vmem:[#allocation15 + $0x100] sm:$0xff] }
0x12e2   : > { %v7759_v63 = vpop.eup %7758 }
0x12e3   : > { %v5637_v16 = vmul.f32 %v7759_v63, %v5635_v2  ;;  %v5852_v63 = vadd.f32 %v11821_v45, %v5851_v61 }
0x12e5   : > { %v11930_v43 = vsel %vm5641_vm15, %v5637_v16, %v11737_v44 }
0x12e6   : > { %5644 = vst [vmem:[#allocation5 + $0x18] sm:$0x1] %v11930_v43  ;;  %5731 = vmatmul.f32.vlgmr.msra.gmra.mxu0 %v11930_v43  ;;  %5751 = vmatmul.f32.vlgmr.msra.gmra.mxu1 %v11930_v43 }
0x12e7   : > { %5771 = vmatmul.f32.vlgmr.msrb.gmra.mxu2 %v11930_v43  ;;  %5791 = vmatmul.f32.vlgmr.msrb.gmra.mxu3 %v11930_v43 }
0x12e8   : > { %6139 = vmatpush.msra.mxu1 %v11766_v29  ;;  %6159 = vmatpush.msrb.mxu2 %v11768_v12 }
0x12e9   : > { %6179 = vmatpush.msrb.mxu3 %v11770_v59 }
0x12ea   : > { %6140 = vmatpush.msra.mxu1 %v11775_v13  ;;  %6160 = vmatpush.msrb.mxu2 %v11777_v35 }
0x12eb   : > { %6180 = vmatpush.msrb.mxu3 %v11779_v4 }
0x12ec   : > { %6141 = vmatpush.msra.mxu1 %v11785_v54  ;;  %6161 = vmatpush.msrb.mxu2 %v11787_v38 }
0x12ed   : > { %6181 = vmatpush.msrb.mxu3 %v11789_v31 }
0x12ee   : > { %6142 = vmatpush.msra.mxu1 %v11794_v24  ;;  %6162 = vmatpush.msrb.mxu2 %v11796_v50  ;;  %v5842_v50 = vstv %s5841_s27  ;;  %s6252_s27 = sld [smem:[#allocation7 + %s6251_s19]] }
0x12ef   : > { %6182 = vmatpush.msrb.mxu3 %v11798_v19  ;;  %vm5843_vm4 = vcmp.eq.s32.totalorder %v5842_v50, 1 }
0x12f0   : > { %6143 = vmatpush.msra.mxu1 %v11802_v51  ;;  %6163 = vmatpush.msrb.mxu2 %v11804_v60 }
0x12f1   : > { %6183 = vmatpush.msrb.mxu3 %v11806_v3 }
0x12f2   : > { %6144 = vmatpush.msra.mxu1 %v11809_v52  ;;  %6164 = vmatpush.msrb.mxu2 %v12005_v25 }
0x12f3   : > { %6184 = vmatpush.msrb.mxu3 %v12010_v5 }
0x12f4   : > { %6145 = vmatpush.msra.mxu1 %v11814_v48  ;;  %6165 = vmatpush.msrb.mxu2 %v12012_v36  ;;  %s7427_s0 = sshll.u32 %s6252_s27, 2 }
0x12f5   : > { %6185 = vmatpush.msrb.mxu3 %v12016_v62  ;;  %s6254_s21 = scalar_lea.vmem [#allocation12], %s7427_s0 }
0x12f6   : > { %6146 = vmatpush.msra.mxu1 %v11819_v26  ;;  %6166 = vmatpush.msrb.mxu2 %v12018_v28 }
0x12f7   : > { %6186 = vmatpush.msrb.mxu3 %v12023_v53 }
0x12f8   : > { %6147 = vmatpush.msra.mxu1 %v11827_v40  ;;  %6167 = vmatpush.msrb.mxu2 %v12027_v11 }
0x12fa   : > { %6148 = vmatpush.msra.mxu1 %v11835_v14 }
0x12fc   : > { %6149 = vmatpush.msra.mxu1 %v11840_v7  ;;  %v11991_v7 = vld [vmem:[#allocation15 + $0x1e0] sm:$0xff] }
0x12fd   : > { %6119 = vmatpush.msra.mxu0 %v11991_v7 }
0x12fe   : > { %6150 = vmatpush.msra.mxu1 %v11845_v49  ;;  %v11994_v49 = vld [vmem:[#allocation15 + $0x1c0] sm:$0xff] }
0x12ff   : > { %6120 = vmatpush.msra.mxu0 %v11994_v49 }
0x1300   : > { %6151 = vmatpush.msra.mxu1 %v11850_v20  ;;  %v11997_v20 = vld [vmem:[#allocation15 + $0x1a0] sm:$0xff] }
0x1301   : > { %6121 = vmatpush.msra.mxu0 %v11997_v20 }
0x1302   : > { %6152 = vmatpush.msra.mxu1 %v11855_v57  ;;  %v12000_v57 = vld [vmem:[#allocation15 + $0x180] sm:$0xff] }
0x1303   : > { %6122 = vmatpush.msra.mxu0 %v12000_v57 }
0x1305   : > { %6123 = vmatpush.msra.mxu0 %v12003_v32 }
0x1307   : > { %6124 = vmatpush.msra.mxu0 %v12007_v47 }
0x1309   : > { %6125 = vmatpush.msra.mxu0 %v12020_v8 }
0x130b   : > { %6126 = vmatpush.msra.mxu0 %v12029_v46 }
0x130d   : > { %6127 = vmatpush.msra.mxu0 %v12039_v41 }
0x1363   : > { %v5752_v21 = vpop.f32.mrf.mxu1  ;;  %v5732_v10 = vpop.f32.mrf.mxu0 }
0x1364   : > { %v5799_v39 = vrot.slane %v5752_v21, 7 }
0x1366   : > { %v5802_v9 = vsel %vm749_vm6, %v5732_v10, %v5799_v39  ;;  %v12042_v39 = vld [vmem:[#allocation15 + $0xd8] sm:$0xff] }
0x1367   : > { %v12054_v10 = vld [vmem:[#allocation15 + $0xb8] sm:$0xff] }
0x136a   : > { %v5772_v55 = vpop.f32.mrf.mxu2  ;;  %v5792_v6 = vpop.f32.mrf.mxu3 }
0x136b   : > { %v5800_v30 = vrot.slane %v5772_v55, 6  ;;  %v5801_v0 = vrot.slane %v5792_v6, 5 }
0x136d   : > { %v5803_v58 = vsel %vm751_vm5, %v5800_v30, %v5801_v0  ;;  %v12048_v30 = vld [vmem:[#allocation15 + $0xb0] sm:$0xff]  ;;  %v12051_v0 = vld [vmem:[#allocation15 + $0xc0] sm:$0xff] }
0x136e   : > { %v5804_v42 = vsel %vm753_vm7, %v5802_v9, %v5803_v58  ;;  %v12056_v9 = vld [vmem:[#allocation15 + $0x28] sm:$0xff]  ;;  %6128 = vmatpush.msra.mxu0 %v12051_v0 }
0x136f   : > { %v5806_v1 = vadd.f32 %v5804_v42, %v5650_v17  ;;  %v12060_v42 = vld [vmem:[#allocation15 + $0x90] sm:$0xff]  ;;  %6153 = vmatpush.msra.mxu1 %v12056_v9 }
0x1371   : > { %v7422_v23 = vmul.f32 -1.442695, %v5806_v1  ;;  %v5827_v29 = vrot.slane %v5806_v1, 2  ;;  %v12062_v1 = vld [vmem:[#allocation15 + $0xa0] sm:$0xff] }
0x1372   : > { %6129 = vmatpush.msra.mxu0 %v12062_v1 }
0x1373   : > { %7760 = vpow2.f32 %v7422_v23  ;;  %v12065_v23 = vld [vmem:[#allocation15 + $0x98] sm:$0xff] }
0x1379   : > { %v7761_v56 = vpop.eup %7760 }
0x137a   : > { %v5810_v33 = vadd.f32 1.0, %v7761_v56  ;;  %v12068_v56 = vld [vmem:[#allocation15 + $0x8] sm:$0xff] }
0x137b   : > { %6154 = vmatpush.msra.mxu1 %v12068_v56 }
0x137c   : > { %7762 = vrcp.f32 %v5810_v33  ;;  %v5822_v59 = vand.u32 2147483648, %v5810_v33  ;;  %v5820_v35 = vand.u32 2147483647, %v5810_v33  ;;  %vm5816_vm1 = vweird.f32 %v5810_v33 }
0x137d   : > { %7764 = vtanh.f32 %v5827_v29  ;;  %v12077_v29 = vld [vmem:[#allocation15 + $0x78] sm:$0xff] }
0x137e   : > { %v5823_v54 = vor.u32 1.1754944e-38, %v5822_v59  ;;  %vm5821_vm3 = vcmp.eq.f32.partialorder %v5820_v35, 8.507059e+37  ;;  %v12084_v59 = vld [vmem:[#allocation15 + $0x60] sm:$0xff]  ;;  %v12091_v35 = vld [vmem:[#allocation15 + $0x30] sm:$0xff] }
0x1382   : > { %v7763_v22 = vpop.eup %7762 }
0x1383   : > { %v5812_v44 = vmul.f32 %v7763_v22, %v5810_v33  ;;  %vm5817_vm0 = vweird.f32 %v7763_v22  ;;  %v7765_v19 = vpop.eup %7764 }
0x1384   : > { %vm5818_vm2 = vmor %vm5816_vm1, %vm5817_vm0 }
0x1385   : > { %v5813_v12 = vsub.f32 1.0, %v5812_v44  ;;  %v12074_v44 = vld [vmem:[#allocation15 + $0x80] sm:$0xff] }
0x1386   : > { %6130 = vmatpush.msra.mxu0 %v12074_v44 }
0x1387   : > { %v5814_v13 = vmul.f32 %v7763_v22, %v5813_v12  ;;  %v12082_v12 = vld [vmem:[#allocation15 + $0x50] sm:$0xff] }
0x1388   : > { %6131 = vmatpush.msra.mxu0 %v12084_v59 }
0x1389   : > { %v5815_v4 = vadd.f32 %v7763_v22, %v5814_v13  ;;  %v12087_v13 = vld [vmem:[#allocation15 + $0x58] sm:$0xff] }
0x138b   : > { %v5819_v38 = vsel %vm5818_vm2, %v7763_v22, %v5815_v4  ;;  %v12072_v22 = vld [vmem:[#allocation15 + $0x70] sm:$0xff]  ;;  %v12093_v4 = vld [vmem:[#allocation15 + $0x40] sm:$0xff] }
0x138c   : > { %v5824_v31 = vsel %vm5821_vm3, %v5823_v54, %v5819_v38  ;;  %v12096_v54 = vld [vmem:[#allocation15 + $0x38] sm:$0xff]  ;;  %v12100_v38 = vld [vmem:[#allocation15 + $0x10] sm:$0xff]  ;;  %6132 = vmatpush.msra.mxu0 %v12093_v4 }
0x138d   : > { %v5831_v24 = vrot.slane %v5824_v31, 1  ;;  %v5834_v60 = vmul.f32 %v7765_v19, %v5824_v31  ;;  %v5837_v48 = vrot.slane %v5824_v31, 3  ;;  %v12102_v31 = vld [vmem:[#allocation15 + $0x20] sm:$0xff] }
0x138e   : > { %6133 = vmatpush.msra.mxu0 %v12102_v31 }
0x138f   : > { %v5833_v51 = vmul.f32 %v5831_v24, %v11912_v34  ;;  %v12105_v24 = vld [vmem:[#allocation15 + $0x18] sm:$0xff] }
0x1391   : > { %v5835_v3 = vadd.f32 %v5834_v60, %v5833_v51  ;;  %v12109_v51 = vld [vmem:[#allocation15] sm:$0xff] }
0x1392   : > { %6134 = vmatpush.msra.mxu0 %v12109_v51 }
0x1393   : > { %7766 = vtanh.f32 %v5835_v3  ;;  %v11978_v52 = vsel %vm5843_vm4, %v5835_v3, %v11912_v34  ;;  %v12032_v34 = vld [vmem:[#allocation15 + $0xf8] sm:$0xff] }
0x1394   : > { %6187 = vmatpush.msrb.mxu3 %v12032_v34 }
0x1396   : > { %6188 = vmatpush.msrb.mxu3 %v12042_v39 }
0x1398   : > { %6189 = vmatpush.msrb.mxu3 %v12054_v10 }
0x1399   : > { %v7767_v26 = vpop.eup %7766 }
0x139a   : > { %v5839_v40 = vmul.f32 %v7767_v26, %v5837_v48  ;;  %6190 = vmatpush.msrb.mxu3 %v12065_v23 }
0x139c   : > { %v11981_v14 = vsel %vm5843_vm4, %v5839_v40, %v11930_v43  ;;  %v12037_v43 = vld [vmem:[#allocation15 + $0xd0] sm:$0xff]  ;;  %6191 = vmatpush.msrb.mxu3 %v12077_v29 }
0x139d   : > { %5846 = vst [vmem:[#allocation5 + $0x19] sm:$0x1] %v11981_v14  ;;  %5933 = vmatmul.f32.vlgmr.msrb.gmra.mxu0 %v11981_v14  ;;  %5953 = vmatmul.f32.vlgmr.msrb.gmra.mxu1 %v11981_v14 }
0x139e   : > { %5973 = vmatmul.f32.vlgmr.msra.gmra.mxu2 %v11981_v14  ;;  %5993 = vmatmul.f32.vlgmr.msra.gmra.mxu3 %v11981_v14 }
0x139f   : > { %6168 = vmatpush.msrb.mxu2 %v12037_v43  ;;  %6192 = vmatpush.msrb.mxu3 %v12087_v13 }
0x13a0   : > { %6321 = vmatpush.msrb.mxu0 %v11991_v7 }
0x13a1   : > { %6169 = vmatpush.msrb.mxu2 %v12048_v30  ;;  %6193 = vmatpush.msrb.mxu3 %v12096_v54 }
0x13a2   : > { %6322 = vmatpush.msrb.mxu0 %v11994_v49 }
0x13a3   : > { %6170 = vmatpush.msrb.mxu2 %v12060_v42  ;;  %6194 = vmatpush.msrb.mxu3 %v12105_v24 }
0x13a4   : > { %6323 = vmatpush.msrb.mxu0 %v11997_v20 }
0x13a5   : > { %6171 = vmatpush.msrb.mxu2 %v12072_v22 }
0x13a6   : > { %6324 = vmatpush.msrb.mxu0 %v12000_v57 }
0x13a7   : > { %6172 = vmatpush.msrb.mxu2 %v12082_v12 }
0x13a8   : > { %6325 = vmatpush.msrb.mxu0 %v12003_v32 }
0x13a9   : > { %6173 = vmatpush.msrb.mxu2 %v12091_v35 }
0x13aa   : > { %6326 = vmatpush.msrb.mxu0 %v12007_v47 }
0x13ab   : > { %6174 = vmatpush.msrb.mxu2 %v12100_v38 }
0x13ac   : > { %6327 = vmatpush.msrb.mxu0 %v12020_v8 }
0x13ae   : > { %6328 = vmatpush.msrb.mxu0 %v12029_v46 }
0x13b0   : > { %6329 = vmatpush.msrb.mxu0 %v12039_v41 }
0x13b2   : > { %6330 = vmatpush.msrb.mxu0 %v12051_v0 }
0x13b4   : > { %6331 = vmatpush.msrb.mxu0 %v12062_v1 }
0x13b6   : > { %6332 = vmatpush.msrb.mxu0 %v12074_v44 }
0x13b8   : > { %6333 = vmatpush.msrb.mxu0 %v12084_v59 }
0x13ba   : > { %6334 = vmatpush.msrb.mxu0 %v12093_v4 }
0x13bc   : > { %6335 = vmatpush.msrb.mxu0 %v12102_v31 }
0x13be   : > { %6336 = vmatpush.msrb.mxu0 %v12109_v51 }
0x141a   : > { %v5954_v27 = vpop.f32.mrf.mxu1  ;;  %v5934_v21 = vpop.f32.mrf.mxu0 }
0x141b   : > { %v6001_v37 = vrot.slane %v5954_v27, 7 }
0x141d   : > { %v6004_v55 = vsel %vm749_vm6, %v5934_v21, %v6001_v37 }
0x1421   : > { %v5974_v15 = vpop.f32.mrf.mxu2  ;;  %v5994_v18 = vpop.f32.mrf.mxu3 }
0x1422   : > { %v6002_v2 = vrot.slane %v5974_v15, 6  ;;  %v6003_v16 = vrot.slane %v5994_v18, 5 }
0x1424   : > { %v6005_v6 = vsel %vm751_vm5, %v6002_v2, %v6003_v16  ;;  %v6044_v16 = vstv %s6043_s26  ;;  %s6454_s26 = sld [smem:[#allocation7 + %s6453_s7]] }
0x1425   : > { %v6006_v17 = vsel %vm753_vm7, %v6004_v55, %v6005_v6  ;;  %vm6045_vm12 = vcmp.eq.s32.totalorder %v6044_v16, 1 }
0x1426   : > { %v6008_v58 = vadd.f32 %v6006_v17, %v5852_v63 }
0x1428   : > { %v7424_v33 = vmul.f32 -1.442695, %v6008_v58  ;;  %v6029_v48 = vrot.slane %v6008_v58, 2 }
0x142a   : > { %7768 = vpow2.f32 %v7424_v33  ;;  %s7429_s28 = sshll.u32 %s6454_s26, 2 }
0x142b   : > { %s6456_s16 = scalar_lea.vmem [#allocation12], %s7429_s28 }
0x1430   : > { %v7769_v50 = vpop.eup %7768 }
0x1431   : > { %v6012_v19 = vadd.f32 1.0, %v7769_v50 }
0x1433   : > { %7770 = vrcp.f32 %v6012_v19  ;;  %v6024_v40 = vand.u32 2147483648, %v6012_v19  ;;  %v6022_v61 = vand.u32 2147483647, %v6012_v19  ;;  %vm6018_vm9 = vweird.f32 %v6012_v19 }
0x1434   : > { %7772 = vtanh.f32 %v6029_v48 }
0x1435   : > { %v6025_v15 = vor.u32 1.1754944e-38, %v6024_v40  ;;  %vm6023_vm11 = vcmp.eq.f32.partialorder %v6022_v61, 8.507059e+37 }
0x1439   : > { %v7771_v60 = vpop.eup %7770 }
0x143a   : > { %v6014_v3 = vmul.f32 %v7771_v60, %v6012_v19  ;;  %vm6019_vm8 = vweird.f32 %v7771_v60  ;;  %v7773_v21 = vpop.eup %7772 }
0x143b   : > { %vm6020_vm10 = vmor %vm6018_vm9, %vm6019_vm8 }
0x143c   : > { %v6015_v26 = vsub.f32 1.0, %v6014_v3  ;;  %v12221_v3 = vld [vmem:[#allocation15 + $0x128] sm:$0xff] }
0x143e   : > { %v6016_v27 = vmul.f32 %v7771_v60, %v6015_v26 }
0x1440   : > { %v6017_v37 = vadd.f32 %v7771_v60, %v6016_v27  ;;  %v12226_v27 = vld [vmem:[#allocation15 + $0x108] sm:$0xff] }
0x1442   : > { %v6021_v18 = vsel %vm6020_vm10, %v7771_v60, %v6017_v37 }
0x1443   : > { %v6026_v2 = vsel %vm6023_vm11, %v6025_v15, %v6021_v18 }
0x1444   : > { %v6033_v63 = vrot.slane %v6026_v2, 1  ;;  %v6036_v6 = vmul.f32 %v7773_v21, %v6026_v2  ;;  %v6039_v33 = vrot.slane %v6026_v2, 3  ;;  %v12232_v2 = vld [vmem:[#allocation15 + $0xe8] sm:$0xff] }
0x1445   : > { %v12240_v21 = vld [vmem:[#allocation15 + $0xc8] sm:$0xff] }
0x1446   : > { %v6035_v55 = vmul.f32 %v6033_v63, %v11978_v52 }
0x1448   : > { %v6037_v17 = vadd.f32 %v6036_v6, %v6035_v55  ;;  %v12245_v6 = vld [vmem:[#allocation15 + $0xa8] sm:$0xff] }
0x144a   : > { %7774 = vtanh.f32 %v6037_v17  ;;  %v12137_v58 = vsel %vm6045_vm12, %v6037_v17, %v11978_v52  ;;  %v12173_v52 = vld [vmem:[#allocation15 + $0x1e8] sm:$0xff] }
0x144b   : > { %6341 = vmatpush.msrb.mxu1 %v12173_v52 }
0x1450   : > { %v7775_v50 = vpop.eup %7774 }
0x1451   : > { %v6041_v19 = vmul.f32 %v7775_v50, %v6039_v33  ;;  %v12250_v33 = vld [vmem:[#allocation15 + $0x88] sm:$0xff] }
0x1452   : > { %v12255_v50 = vld [vmem:[#allocation15 + $0x68] sm:$0xff] }
0x1453   : > { %v12144_v60 = vsel %vm6045_vm12, %v6041_v19, %v11981_v14  ;;  %v12175_v14 = vld [vmem:[#allocation15 + $0x1f0] sm:$0xff]  ;;  %v12260_v19 = vld [vmem:[#allocation15 + $0x48] sm:$0xff] }
0x1454   : > { %6048 = vst [vmem:[#allocation5 + $0x1a] sm:$0x1] %v12144_v60  ;;  %6135 = vmatmul.f32.vlgmr.msra.gmra.mxu0 %v12144_v60  ;;  %6155 = vmatmul.f32.vlgmr.msra.gmra.mxu1 %v12144_v60 }
0x1455   : > { %6175 = vmatmul.f32.vlgmr.msrb.gmra.mxu2 %v12144_v60  ;;  %6195 = vmatmul.f32.vlgmr.msrb.gmra.mxu3 %v12144_v60 }
0x1456   : > { %6523 = vmatpush.msra.mxu0 %v11991_v7  ;;  %v12177_v7 = vld [vmem:[#allocation15 + $0x1f8] sm:$0xff]  ;;  %6361 = vmatpush.msra.mxu2 %v12175_v14 }
0x1457   : > { %6381 = vmatpush.msra.mxu3 %v12177_v7 }
0x1458   : > { %6524 = vmatpush.msra.mxu0 %v11994_v49  ;;  %v12182_v49 = vld [vmem:[#allocation15 + $0x1c8] sm:$0xff] }
0x1459   : > { %6342 = vmatpush.msrb.mxu1 %v12182_v49 }
0x145a   : > { %6525 = vmatpush.msra.mxu0 %v11997_v20  ;;  %v12184_v20 = vld [vmem:[#allocation15 + $0x1d0] sm:$0xff] }
0x145b   : > { %6362 = vmatpush.msra.mxu2 %v12184_v20 }
0x145c   : > { %6526 = vmatpush.msra.mxu0 %v12000_v57  ;;  %v12186_v57 = vld [vmem:[#allocation15 + $0x1d8] sm:$0xff] }
0x145d   : > { %6382 = vmatpush.msra.mxu3 %v12186_v57 }
0x145e   : > { %6527 = vmatpush.msra.mxu0 %v12003_v32  ;;  %v12192_v32 = vld [vmem:[#allocation15 + $0x1a8] sm:$0xff] }
0x145f   : > { %6343 = vmatpush.msrb.mxu1 %v12192_v32 }
0x1460   : > { %6528 = vmatpush.msra.mxu0 %v12007_v47  ;;  %v12194_v47 = vld [vmem:[#allocation15 + $0x1b0] sm:$0xff] }
0x1461   : > { %6363 = vmatpush.msra.mxu2 %v12194_v47 }
0x1462   : > { %6529 = vmatpush.msra.mxu0 %v12020_v8  ;;  %v12196_v8 = vld [vmem:[#allocation15 + $0x1b8] sm:$0xff] }
0x1463   : > { %6383 = vmatpush.msra.mxu3 %v12196_v8 }
0x1464   : > { %6530 = vmatpush.msra.mxu0 %v12029_v46  ;;  %v12201_v46 = vld [vmem:[#allocation15 + $0x188] sm:$0xff] }
0x1465   : > { %6344 = vmatpush.msrb.mxu1 %v12201_v46 }
0x1466   : > { %6531 = vmatpush.msra.mxu0 %v12039_v41  ;;  %v12203_v41 = vld [vmem:[#allocation15 + $0x190] sm:$0xff] }
0x1467   : > { %6364 = vmatpush.msra.mxu2 %v12203_v41 }
0x1468   : > { %6532 = vmatpush.msra.mxu0 %v12051_v0  ;;  %v12205_v0 = vld [vmem:[#allocation15 + $0x198] sm:$0xff] }
0x1469   : > { %6384 = vmatpush.msra.mxu3 %v12205_v0 }
0x146a   : > { %6533 = vmatpush.msra.mxu0 %v12062_v1  ;;  %v12209_v1 = vld [vmem:[#allocation15 + $0x168] sm:$0xff] }
0x146b   : > { %6345 = vmatpush.msrb.mxu1 %v12209_v1 }
0x146c   : > { %6534 = vmatpush.msra.mxu0 %v12074_v44  ;;  %v12211_v44 = vld [vmem:[#allocation15 + $0x170] sm:$0xff] }
0x146d   : > { %6365 = vmatpush.msra.mxu2 %v12211_v44 }
0x146e   : > { %6535 = vmatpush.msra.mxu0 %v12084_v59  ;;  %v12213_v59 = vld [vmem:[#allocation15 + $0x178] sm:$0xff] }
0x146f   : > { %6385 = vmatpush.msra.mxu3 %v12213_v59  ;;  %6366 = vmatpush.msra.mxu2 %v12005_v25 }
0x1470   : > { %6536 = vmatpush.msra.mxu0 %v12093_v4 }
0x1471   : > { %6386 = vmatpush.msra.mxu3 %v12010_v5  ;;  %6367 = vmatpush.msra.mxu2 %v12012_v36 }
0x1472   : > { %6537 = vmatpush.msra.mxu0 %v12102_v31  ;;  %v12216_v31 = vld [vmem:[#allocation15 + $0x148] sm:$0xff] }
0x1473   : > { %6346 = vmatpush.msrb.mxu1 %v12216_v31  ;;  %6387 = vmatpush.msra.mxu3 %v12016_v62 }
0x1474   : > { %6538 = vmatpush.msra.mxu0 %v12109_v51  ;;  %v6053_v51 = vld [vmem:[%s6052_s24] sm:$0xf]  ;;  %6368 = vmatpush.msra.mxu2 %v12018_v28  ;;  %s6649_s24 = scalar_select %p12520_p10, 1, 0 }
0x1475   : > { %v6054_v37 = vadd.f32 %v11821_v45, %v6053_v51  ;;  %6347 = vmatpush.msrb.mxu1 %v12221_v3  ;;  %6388 = vmatpush.msra.mxu3 %v12023_v53 }
0x1476   : > { %6369 = vmatpush.msra.mxu2 %v12027_v11 }
0x1477   : > { %6348 = vmatpush.msrb.mxu1 %v12226_v27  ;;  %6389 = vmatpush.msra.mxu3 %v12032_v34 }
0x1478   : > { %6370 = vmatpush.msra.mxu2 %v12037_v43 }
0x1479   : > { %6349 = vmatpush.msrb.mxu1 %v12232_v2  ;;  %6390 = vmatpush.msra.mxu3 %v12042_v39 }
0x147a   : > { %6371 = vmatpush.msra.mxu2 %v12048_v30 }
0x147b   : > { %6350 = vmatpush.msrb.mxu1 %v12240_v21  ;;  %6391 = vmatpush.msra.mxu3 %v12054_v10 }
0x147c   : > { %6372 = vmatpush.msra.mxu2 %v12060_v42 }
0x147d   : > { %6351 = vmatpush.msrb.mxu1 %v12245_v6  ;;  %6392 = vmatpush.msra.mxu3 %v12065_v23 }
0x147e   : > { %6373 = vmatpush.msra.mxu2 %v12072_v22 }
0x147f   : > { %6352 = vmatpush.msrb.mxu1 %v12250_v33  ;;  %6393 = vmatpush.msra.mxu3 %v12077_v29 }
0x1480   : > { %6374 = vmatpush.msra.mxu2 %v12082_v12 }
0x1481   : > { %6353 = vmatpush.msrb.mxu1 %v12255_v50  ;;  %6394 = vmatpush.msra.mxu3 %v12087_v13 }
0x1482   : > { %6375 = vmatpush.msra.mxu2 %v12091_v35 }
0x1483   : > { %6354 = vmatpush.msrb.mxu1 %v12260_v19  ;;  %6395 = vmatpush.msra.mxu3 %v12096_v54 }
0x1484   : > { %6376 = vmatpush.msra.mxu2 %v12100_v38 }
0x1485   : > { %6355 = vmatpush.msrb.mxu1 %v12056_v9  ;;  %6396 = vmatpush.msra.mxu3 %v12105_v24 }
0x1486   : > { %6563 = vmatpush.msrb.mxu2 %v12175_v14 }
0x1487   : > { %6356 = vmatpush.msrb.mxu1 %v12068_v56  ;;  %6583 = vmatpush.msrb.mxu3 %v12177_v7 }
0x1488   : > { %6564 = vmatpush.msrb.mxu2 %v12184_v20 }
0x1489   : > { %6543 = vmatpush.msra.mxu1 %v12173_v52  ;;  %6584 = vmatpush.msrb.mxu3 %v12186_v57 }
0x148a   : > { %6565 = vmatpush.msrb.mxu2 %v12194_v47 }
0x148b   : > { %6544 = vmatpush.msra.mxu1 %v12182_v49  ;;  %6585 = vmatpush.msrb.mxu3 %v12196_v8 }
0x148c   : > { %6566 = vmatpush.msrb.mxu2 %v12203_v41 }
0x148d   : > { %6545 = vmatpush.msra.mxu1 %v12192_v32  ;;  %6586 = vmatpush.msrb.mxu3 %v12205_v0 }
0x148e   : > { %6567 = vmatpush.msrb.mxu2 %v12211_v44 }
0x148f   : > { %6546 = vmatpush.msra.mxu1 %v12201_v46  ;;  %6587 = vmatpush.msrb.mxu3 %v12213_v59 }
0x1490   : > { %6568 = vmatpush.msrb.mxu2 %v12005_v25 }
0x1491   : > { %6547 = vmatpush.msra.mxu1 %v12209_v1  ;;  %6588 = vmatpush.msrb.mxu3 %v12010_v5 }
0x1492   : > { %6569 = vmatpush.msrb.mxu2 %v12012_v36 }
0x1493   : > { %6548 = vmatpush.msra.mxu1 %v12216_v31  ;;  %6589 = vmatpush.msrb.mxu3 %v12016_v62 }
0x1494   : > { %6570 = vmatpush.msrb.mxu2 %v12018_v28 }
0x1495   : > { %6549 = vmatpush.msra.mxu1 %v12221_v3  ;;  %6590 = vmatpush.msrb.mxu3 %v12023_v53 }
0x1496   : > { %6571 = vmatpush.msrb.mxu2 %v12027_v11 }
0x1497   : > { %6550 = vmatpush.msra.mxu1 %v12226_v27  ;;  %6591 = vmatpush.msrb.mxu3 %v12032_v34 }
0x1498   : > { %6572 = vmatpush.msrb.mxu2 %v12037_v43 }
0x1499   : > { %6551 = vmatpush.msra.mxu1 %v12232_v2  ;;  %6592 = vmatpush.msrb.mxu3 %v12042_v39  ;;  %v6255_v39 = vld [vmem:[%s6254_s21] sm:$0xf]  ;;  %s6851_s21 = scalar_select %p12588_p11, 1, 0 }
0x149a   : > { %6573 = vmatpush.msrb.mxu2 %v12048_v30 }
0x149b   : > { %6552 = vmatpush.msra.mxu1 %v12240_v21  ;;  %6593 = vmatpush.msrb.mxu3 %v12054_v10 }
0x149c   : > { %6574 = vmatpush.msrb.mxu2 %v12060_v42 }
0x149d   : > { %6553 = vmatpush.msra.mxu1 %v12245_v6  ;;  %6594 = vmatpush.msrb.mxu3 %v12065_v23  ;;  %v12370_v23 = vld [vmem:[#allocation4] sm:$0xf] }
0x149e   : > { %6575 = vmatpush.msrb.mxu2 %v12072_v22 }
0x149f   : > { %6554 = vmatpush.msra.mxu1 %v12250_v33  ;;  %6595 = vmatpush.msrb.mxu3 %v12077_v29 }
0x14a0   : > { %6576 = vmatpush.msrb.mxu2 %v12082_v12 }
0x14a1   : > { %6555 = vmatpush.msra.mxu1 %v12255_v50  ;;  %6596 = vmatpush.msrb.mxu3 %v12087_v13 }
0x14a2   : > { %6577 = vmatpush.msrb.mxu2 %v12091_v35 }
0x14a3   : > { %6556 = vmatpush.msra.mxu1 %v12260_v19  ;;  %6597 = vmatpush.msrb.mxu3 %v12096_v54 }
0x14a4   : > { %6578 = vmatpush.msrb.mxu2 %v12100_v38 }
0x14a5   : > { %6557 = vmatpush.msra.mxu1 %v12056_v9  ;;  %6598 = vmatpush.msrb.mxu3 %v12105_v24 }
0x14a7   : > { %6558 = vmatpush.msra.mxu1 %v12068_v56  ;;  %v6256_v56 = vadd.f32 %v12370_v23, %v6255_v39  ;;  %v12446_v39 = vld [vmem:[#allocation15 + $0xe0] sm:$0xff] }
0x14d1   : > { %v6156_v4 = vpop.f32.mrf.mxu1  ;;  %v6136_v18 = vpop.f32.mrf.mxu0 }
0x14d2   : > { %v6203_v48 = vrot.slane %v6156_v4, 7 }
0x14d4   : > { %v6206_v63 = vsel %vm749_vm6, %v6136_v18, %v6203_v48 }
0x14d8   : > { %v6176_v26 = vpop.f32.mrf.mxu2  ;;  %v6196_v40 = vpop.f32.mrf.mxu3 }
0x14d9   : > { %v6204_v61 = vrot.slane %v6176_v26, 6  ;;  %v6205_v15 = vrot.slane %v6196_v40, 5 }
0x14db   : > { %v6207_v16 = vsel %vm751_vm5, %v6204_v61, %v6205_v15 }
0x14dc   : > { %v6208_v45 = vsel %vm753_vm7, %v6206_v63, %v6207_v16 }
0x14dd   : > { %v6210_v55 = vadd.f32 %v6208_v45, %v6054_v37 }
0x14df   : > { %v7426_v17 = vmul.f32 -1.442695, %v6210_v55  ;;  %v6231_v40 = vrot.slane %v6210_v55, 2 }
0x14e1   : > { %7776 = vpow2.f32 %v7426_v17 }
0x14e7   : > { %v7777_v4 = vpop.eup %7776 }
0x14e8   : > { %v6214_v51 = vadd.f32 1.0, %v7777_v4  ;;  %v6246_v4 = vstv %s6245_s17  ;;  %s12550_s17 = sld [smem:[#allocation7 + %s6655_s30]] }
0x14e9   : > { %vm6247_vm1 = vcmp.eq.s32.totalorder %v6246_v4, 1 }
0x14ea   : > { %7778 = vrcp.f32 %v6214_v51  ;;  %v6226_v37 = vand.u32 2147483648, %v6214_v51  ;;  %v6224_v18 = vand.u32 2147483647, %v6214_v51  ;;  %vm6220_vm14 = vweird.f32 %v6214_v51 }
0x14eb   : > { %7780 = vtanh.f32 %v6231_v40  ;;  %v12412_v40 = vld [vmem:[#allocation15 + $0x150] sm:$0xff] }
0x14ec   : > { %v6227_v16 = vor.u32 1.1754944e-38, %v6226_v37  ;;  %vm6225_vm0 = vcmp.eq.f32.partialorder %v6224_v18, 8.507059e+37  ;;  %v12414_v37 = vld [vmem:[#allocation15 + $0x140] sm:$0xff]  ;;  %v12419_v18 = vld [vmem:[#allocation15 + $0x130] sm:$0xff] }
0x14ee   : > { %s7431_s19 = sshll.u32 %s12550_s17, 2 }
0x14ef   : > { %s6658_s27 = scalar_lea.vmem [#allocation12], %s7431_s19 }
0x14f0   : > { %v7779_v48 = vpop.eup %7778 }
0x14f1   : > { %v6216_v26 = vmul.f32 %v7779_v48, %v6214_v51  ;;  %vm6221_vm13 = vweird.f32 %v7779_v48  ;;  %v7781_v25 = vpop.eup %7780 }
0x14f2   : > { %vm6222_vm15 = vmor %vm6220_vm14, %vm6221_vm13 }
0x14f3   : > { %v6217_v61 = vsub.f32 1.0, %v6216_v26  ;;  %v12410_v26 = vld [vmem:[#allocation15 + $0x160] sm:$0xff] }
0x14f5   : > { %v6218_v15 = vmul.f32 %v7779_v48, %v6217_v61 }
0x14f7   : > { %v6219_v63 = vadd.f32 %v7779_v48, %v6218_v15  ;;  %v12417_v15 = vld [vmem:[#allocation15 + $0x158] sm:$0xff] }
0x14f9   : > { %v6223_v45 = vsel %vm6222_vm15, %v7779_v48, %v6219_v63  ;;  %v12407_v48 = vld [vmem:[#allocation15 + $0x180] sm:$0xff]  ;;  %v12423_v63 = vld [vmem:[#allocation15 + $0x138] sm:$0xff] }
0x14fa   : > { %v6228_v55 = vsel %vm6225_vm0, %v6227_v16, %v6223_v45  ;;  %v12425_v16 = vld [vmem:[#allocation15 + $0x110] sm:$0xff]  ;;  %v6457_v45 = vld [vmem:[%s6456_s16] sm:$0xf] }
0x14fb   : > { %v6235_v17 = vrot.slane %v6228_v55, 1  ;;  %v6238_v51 = vmul.f32 %v7781_v25, %v6228_v55  ;;  %v6241_v28 = vrot.slane %v6228_v55, 3  ;;  %v12427_v55 = vld [vmem:[#allocation15 + $0x120] sm:$0xff]  ;;  %v12434_v25 = vld [vmem:[#allocation15 + $0xf0] sm:$0xff] }
0x14fd   : > { %v6237_v5 = vmul.f32 %v6235_v17, %v12137_v58  ;;  %v12430_v17 = vld [vmem:[#allocation15 + $0x118] sm:$0xff] }
0x14ff   : > { %v6239_v36 = vadd.f32 %v6238_v51, %v6237_v5 }
0x1501   : > { %7782 = vtanh.f32 %v6239_v36  ;;  %v12317_v62 = vsel %vm6247_vm1, %v6239_v36, %v12137_v58  ;;  %v12436_v36 = vld [vmem:[#allocation15 + $0x100] sm:$0xff] }
0x1507   : > { %v7783_v53 = vpop.eup %7782 }
0x1508   : > { %v6243_v11 = vmul.f32 %v7783_v53, %v6241_v28  ;;  %v6458_v53 = vadd.f32 %v12370_v23, %v6457_v45 }
0x150a   : > { %v12335_v34 = vsel %vm6247_vm1, %v6243_v11, %v12144_v60 }
0x150b   : > { %6250 = vst [vmem:[#allocation5 + $0x1b] sm:$0x1] %v12335_v34  ;;  %6337 = vmatmul.f32.vlgmr.msrb.gmra.mxu0 %v12335_v34  ;;  %6357 = vmatmul.f32.vlgmr.msrb.gmra.mxu1 %v12335_v34 }
0x150c   : > { %6377 = vmatmul.f32.vlgmr.msra.gmra.mxu2 %v12335_v34  ;;  %6397 = vmatmul.f32.vlgmr.msra.gmra.mxu3 %v12335_v34 }
0x150d   : > { %6745 = vmatpush.msrb.mxu1 %v12173_v52  ;;  %6765 = vmatpush.msra.mxu2 %v12175_v14 }
0x150e   : > { %6785 = vmatpush.msra.mxu3 %v12177_v7 }
0x150f   : > { %6746 = vmatpush.msrb.mxu1 %v12182_v49  ;;  %6766 = vmatpush.msra.mxu2 %v12184_v20 }
0x1510   : > { %6786 = vmatpush.msra.mxu3 %v12186_v57 }
0x1511   : > { %6747 = vmatpush.msrb.mxu1 %v12192_v32  ;;  %6767 = vmatpush.msra.mxu2 %v12194_v47 }
0x1512   : > { %6787 = vmatpush.msra.mxu3 %v12196_v8 }
0x1513   : > { %6748 = vmatpush.msrb.mxu1 %v12201_v46  ;;  %6768 = vmatpush.msra.mxu2 %v12203_v41 }
0x1514   : > { %6788 = vmatpush.msra.mxu3 %v12205_v0  ;;  %v6448_v0 = vstv %s6447_s20  ;;  %s6858_s20 = sld [smem:[#allocation7 + %s6857_s29]] }
0x1515   : > { %6749 = vmatpush.msrb.mxu1 %v12209_v1  ;;  %6769 = vmatpush.msra.mxu2 %v12211_v44  ;;  %vm6449_vm9 = vcmp.eq.s32.totalorder %v6448_v0, 1 }
0x1516   : > { %6789 = vmatpush.msra.mxu3 %v12213_v59 }
0x1517   : > { %6750 = vmatpush.msrb.mxu1 %v12216_v31  ;;  %6770 = vmatpush.msra.mxu2 %v12412_v40 }
0x1518   : > { %6790 = vmatpush.msra.mxu3 %v12417_v15 }
0x1519   : > { %6751 = vmatpush.msrb.mxu1 %v12221_v3  ;;  %6771 = vmatpush.msra.mxu2 %v12419_v18 }
0x151a   : > { %6791 = vmatpush.msra.mxu3 %v12423_v63  ;;  %s7433_s7 = sshll.u32 %s6858_s20, 2 }
0x151b   : > { %6752 = vmatpush.msrb.mxu1 %v12226_v27  ;;  %6772 = vmatpush.msra.mxu2 %v12425_v16  ;;  %s6860_s26 = scalar_lea.vmem [#allocation12], %s7433_s7 }
0x151c   : > { %6792 = vmatpush.msra.mxu3 %v12430_v17 }
0x151d   : > { %6753 = vmatpush.msrb.mxu1 %v12232_v2  ;;  %6773 = vmatpush.msra.mxu2 %v12434_v25 }
0x151f   : > { %6754 = vmatpush.msrb.mxu1 %v12240_v21 }
0x1521   : > { %6755 = vmatpush.msrb.mxu1 %v12245_v6 }
0x1523   : > { %6756 = vmatpush.msrb.mxu1 %v12250_v33  ;;  %v12398_v33 = vld [vmem:[#allocation15 + $0x1e0] sm:$0xff] }
0x1524   : > { %6725 = vmatpush.msrb.mxu0 %v12398_v33 }
0x1525   : > { %6757 = vmatpush.msrb.mxu1 %v12255_v50  ;;  %v12401_v50 = vld [vmem:[#allocation15 + $0x1c0] sm:$0xff] }
0x1526   : > { %6726 = vmatpush.msrb.mxu0 %v12401_v50 }
0x1527   : > { %6758 = vmatpush.msrb.mxu1 %v12260_v19  ;;  %v12404_v19 = vld [vmem:[#allocation15 + $0x1a0] sm:$0xff] }
0x1528   : > { %6727 = vmatpush.msrb.mxu0 %v12404_v19 }
0x152a   : > { %6728 = vmatpush.msrb.mxu0 %v12407_v48 }
0x152c   : > { %6729 = vmatpush.msrb.mxu0 %v12410_v26 }
0x152e   : > { %6730 = vmatpush.msrb.mxu0 %v12414_v37 }
0x1530   : > { %6731 = vmatpush.msrb.mxu0 %v12427_v55 }
0x1532   : > { %6732 = vmatpush.msrb.mxu0 %v12436_v36 }
0x1534   : > { %6733 = vmatpush.msrb.mxu0 %v12446_v39 }
0x1588   : > { %v6358_v43 = vpop.f32.mrf.mxu1  ;;  %v6338_v29 = vpop.f32.mrf.mxu0 }
0x1589   : > { %v6405_v30 = vrot.slane %v6358_v43, 7 }
0x158b   : > { %v6408_v12 = vsel %vm749_vm6, %v6338_v29, %v6405_v30  ;;  %v12449_v30 = vld [vmem:[#allocation15 + $0xd8] sm:$0xff] }
0x158c   : > { %v12461_v29 = vld [vmem:[#allocation15 + $0xb8] sm:$0xff] }
0x158f   : > { %v6378_v10 = vpop.f32.mrf.mxu2  ;;  %v6398_v9 = vpop.f32.mrf.mxu3 }
0x1590   : > { %v6406_v42 = vrot.slane %v6378_v10, 6  ;;  %v6407_v22 = vrot.slane %v6398_v9, 5 }
0x1592   : > { %v6409_v13 = vsel %vm751_vm5, %v6406_v42, %v6407_v22  ;;  %v12455_v42 = vld [vmem:[#allocation15 + $0xb0] sm:$0xff]  ;;  %v12458_v22 = vld [vmem:[#allocation15 + $0xc0] sm:$0xff] }
0x1593   : > { %v6410_v35 = vsel %vm753_vm7, %v6408_v12, %v6409_v13  ;;  %v12463_v12 = vld [vmem:[#allocation15 + $0x28] sm:$0xff]  ;;  %6734 = vmatpush.msrb.mxu0 %v12458_v22 }
0x1594   : > { %v6412_v54 = vadd.f32 %v6410_v35, %v6256_v56  ;;  %v12467_v35 = vld [vmem:[#allocation15 + $0x90] sm:$0xff]  ;;  %6759 = vmatpush.msrb.mxu1 %v12463_v12 }
0x1596   : > { %v7428_v38 = vmul.f32 -1.442695, %v6412_v54  ;;  %v6433_v14 = vrot.slane %v6412_v54, 2  ;;  %v12469_v54 = vld [vmem:[#allocation15 + $0xa0] sm:$0xff] }
0x1597   : > { %6735 = vmatpush.msrb.mxu0 %v12469_v54 }
0x1598   : > { %7784 = vpow2.f32 %v7428_v38  ;;  %v12472_v38 = vld [vmem:[#allocation15 + $0x98] sm:$0xff] }
0x159e   : > { %v7785_v24 = vpop.eup %7784 }
0x159f   : > { %v6416_v58 = vadd.f32 1.0, %v7785_v24  ;;  %v12475_v24 = vld [vmem:[#allocation15 + $0x8] sm:$0xff] }
0x15a0   : > { %6760 = vmatpush.msrb.mxu1 %v12475_v24 }
0x15a1   : > { %7786 = vrcp.f32 %v6416_v58  ;;  %v6428_v49 = vand.u32 2147483648, %v6416_v58  ;;  %v6426_v57 = vand.u32 2147483647, %v6416_v58  ;;  %vm6422_vm3 = vweird.f32 %v6416_v58 }
0x15a2   : > { %7788 = vtanh.f32 %v6433_v14  ;;  %v12484_v14 = vld [vmem:[#allocation15 + $0x78] sm:$0xff] }
0x15a3   : > { %v6429_v47 = vor.u32 1.1754944e-38, %v6428_v49  ;;  %vm6427_vm8 = vcmp.eq.f32.partialorder %v6426_v57, 8.507059e+37  ;;  %v12491_v49 = vld [vmem:[#allocation15 + $0x60] sm:$0xff]  ;;  %v12498_v57 = vld [vmem:[#allocation15 + $0x30] sm:$0xff] }
0x15a7   : > { %v7787_v60 = vpop.eup %7786 }
0x15a8   : > { %v6418_v52 = vmul.f32 %v7787_v60, %v6416_v58  ;;  %vm6423_vm2 = vweird.f32 %v7787_v60  ;;  %v7789_v1 = vpop.eup %7788 }
0x15a9   : > { %vm6424_vm4 = vmor %vm6422_vm3, %vm6423_vm2 }
0x15aa   : > { %v6419_v7 = vsub.f32 1.0, %v6418_v52  ;;  %v12481_v52 = vld [vmem:[#allocation15 + $0x80] sm:$0xff] }
0x15ab   : > { %6736 = vmatpush.msrb.mxu0 %v12481_v52 }
0x15ac   : > { %v6420_v20 = vmul.f32 %v7787_v60, %v6419_v7  ;;  %v12489_v7 = vld [vmem:[#allocation15 + $0x50] sm:$0xff] }
0x15ad   : > { %6737 = vmatpush.msrb.mxu0 %v12491_v49 }
0x15ae   : > { %v6421_v32 = vadd.f32 %v7787_v60, %v6420_v20  ;;  %v12494_v20 = vld [vmem:[#allocation15 + $0x58] sm:$0xff] }
0x15b0   : > { %v6425_v8 = vsel %vm6424_vm4, %v7787_v60, %v6421_v32  ;;  %v12479_v60 = vld [vmem:[#allocation15 + $0x70] sm:$0xff]  ;;  %v6669_v32 = vld [vmem:[#allocation15 + $0x40] sm:$0xff] }
0x15b1   : > { %v6430_v46 = vsel %vm6427_vm8, %v6429_v47, %v6425_v8  ;;  %v12501_v47 = vld [vmem:[#allocation15 + $0x38] sm:$0xff]  ;;  %v12505_v8 = vld [vmem:[#allocation15 + $0x10] sm:$0xff]  ;;  %6738 = vmatpush.msrb.mxu0 %v6669_v32 }
0x15b2   : > { %v6437_v41 = vrot.slane %v6430_v46, 1  ;;  %v6440_v59 = vmul.f32 %v7789_v1, %v6430_v46  ;;  %v6443_v27 = vrot.slane %v6430_v46, 3  ;;  %v6665_v46 = vld [vmem:[#allocation15 + $0x20] sm:$0xff] }
0x15b3   : > { %6739 = vmatpush.msrb.mxu0 %v6665_v46 }
0x15b4   : > { %v6439_v44 = vmul.f32 %v6437_v41, %v12317_v62  ;;  %v12508_v41 = vld [vmem:[#allocation15 + $0x18] sm:$0xff] }
0x15b6   : > { %v6441_v31 = vadd.f32 %v6440_v59, %v6439_v44  ;;  %v6661_v44 = vld [vmem:[#allocation15] sm:$0xff] }
0x15b7   : > { %6740 = vmatpush.msrb.mxu0 %v6661_v44 }
0x15b8   : > { %7790 = vtanh.f32 %v6441_v31  ;;  %v12385_v3 = vsel %vm6449_vm9, %v6441_v31, %v12317_v62  ;;  %v12439_v62 = vld [vmem:[#allocation15 + $0xf8] sm:$0xff] }
0x15b9   : > { %6793 = vmatpush.msra.mxu3 %v12439_v62 }
0x15bb   : > { %6794 = vmatpush.msra.mxu3 %v12449_v30 }
0x15bd   : > { %6795 = vmatpush.msra.mxu3 %v12461_v29 }
0x15be   : > { %v7791_v2 = vpop.eup %7790 }
0x15bf   : > { %v6445_v21 = vmul.f32 %v7791_v2, %v6443_v27  ;;  %6796 = vmatpush.msra.mxu3 %v12472_v38 }
0x15c1   : > { %v12388_v6 = vsel %vm6449_vm9, %v6445_v21, %v12335_v34  ;;  %v12444_v34 = vld [vmem:[#allocation15 + $0xd0] sm:$0xff]  ;;  %6797 = vmatpush.msra.mxu3 %v12484_v14 }
0x15c2   : > { %6452 = vst [vmem:[#allocation5 + $0x1c] sm:$0x1] %v12388_v6  ;;  %6539 = vmatmul.f32.vlgmr.msra.gmra.mxu0 %v12388_v6  ;;  %6559 = vmatmul.f32.vlgmr.msra.gmra.mxu1 %v12388_v6 }
0x15c3   : > { %6579 = vmatmul.f32.vlgmr.msrb.gmra.mxu2 %v12388_v6  ;;  %6599 = vmatmul.f32.vlgmr.msrb.gmra.mxu3 %v12388_v6 }
0x15c4   : > { %6774 = vmatpush.msra.mxu2 %v12444_v34  ;;  %6798 = vmatpush.msra.mxu3 %v12494_v20 }
0x15c5   : > { %6927 = vmatpush.msra.mxu0 %v12398_v33 }
0x15c6   : > { %6775 = vmatpush.msra.mxu2 %v12455_v42  ;;  %6799 = vmatpush.msra.mxu3 %v12501_v47 }
0x15c7   : > { %6928 = vmatpush.msra.mxu0 %v12401_v50 }
0x15c8   : > { %6776 = vmatpush.msra.mxu2 %v12467_v35  ;;  %6800 = vmatpush.msra.mxu3 %v12508_v41 }
0x15c9   : > { %6929 = vmatpush.msra.mxu0 %v12404_v19 }
0x15ca   : > { %6777 = vmatpush.msra.mxu2 %v12479_v60 }
0x15cb   : > { %6930 = vmatpush.msra.mxu0 %v12407_v48 }
0x15cc   : > { %6778 = vmatpush.msra.mxu2 %v12489_v7 }
0x15cd   : > { %6931 = vmatpush.msra.mxu0 %v12410_v26 }
0x15ce   : > { %6779 = vmatpush.msra.mxu2 %v12498_v57 }
0x15cf   : > { %6932 = vmatpush.msra.mxu0 %v12414_v37 }
0x15d0   : > { %6780 = vmatpush.msra.mxu2 %v12505_v8 }
0x15d1   : > { %6933 = vmatpush.msra.mxu0 %v12427_v55 }
0x15d3   : > { %6934 = vmatpush.msra.mxu0 %v12436_v36 }
0x15d5   : > { %6935 = vmatpush.msra.mxu0 %v12446_v39  ;;  %v6925_v39 = vld [vmem:[#allocation15 + $0x1f0] sm:$0xff] }
0x15d6   : > { %6967 = vmatpush.msrb.mxu2 %v6925_v39 }
0x15d7   : > { %6936 = vmatpush.msra.mxu0 %v12458_v22  ;;  %v6916_v22 = vld [vmem:[#allocation15 + $0x1a8] sm:$0xff] }
0x15d9   : > { %6937 = vmatpush.msra.mxu0 %v12469_v54  ;;  %v6918_v54 = vld [vmem:[#allocation15 + $0x1b8] sm:$0xff] }
0x15db   : > { %6938 = vmatpush.msra.mxu0 %v12481_v52  ;;  %v6913_v52 = vld [vmem:[#allocation15 + $0x190] sm:$0xff] }
0x15dd   : > { %6939 = vmatpush.msra.mxu0 %v12491_v49  ;;  %v6914_v49 = vld [vmem:[#allocation15 + $0x198] sm:$0xff] }
0x15df   : > { %6940 = vmatpush.msra.mxu0 %v6669_v32  ;;  %v6908_v32 = vld [vmem:[#allocation15 + $0x168] sm:$0xff] }
0x15e1   : > { %6941 = vmatpush.msra.mxu0 %v6665_v46  ;;  %v6909_v46 = vld [vmem:[#allocation15 + $0x170] sm:$0xff] }
0x15e3   : > { %6942 = vmatpush.msra.mxu0 %v6661_v44  ;;  %v7080_v44 = vld [vmem:[#allocation17 + $0x78] sm:$0xff] }
0x163f   : > { %v6560_v61 = vpop.f32.mrf.mxu1  ;;  %v6540_v43 = vpop.f32.mrf.mxu0 }
0x1640   : > { %v6607_v4 = vrot.slane %v6560_v61, 7 }
0x1642   : > { %v6610_v10 = vsel %vm749_vm6, %v6540_v43, %v6607_v4  ;;  %v6650_v4 = vstv %s6649_s24  ;;  %s7053_s24 = scalar_select %p12622_p12, 1, 0 }
0x1643   : > { %vm6651_vm14 = vcmp.eq.s32.totalorder %v6650_v4, 1  ;;  %v7077_v4 = vld [vmem:[#allocation17 + $0x60] sm:$0xff] }
0x1646   : > { %v6580_v5 = vpop.f32.mrf.mxu2  ;;  %v6600_v51 = vpop.f32.mrf.mxu3 }
0x1647   : > { %v6608_v28 = vrot.slane %v6580_v5, 6  ;;  %v6609_v11 = vrot.slane %v6600_v51, 5 }
0x1649   : > { %v6611_v9 = vsel %vm751_vm5, %v6608_v28, %v6609_v11 }
0x164a   : > { %v6612_v56 = vsel %vm753_vm7, %v6610_v10, %v6611_v9  ;;  %v6920_v10 = vld [vmem:[#allocation15 + $0x1c8] sm:$0xff]  ;;  %v6921_v9 = vld [vmem:[#allocation15 + $0x1d0] sm:$0xff] }
0x164b   : > { %v6614_v13 = vadd.f32 %v6612_v56, %v6458_v53  ;;  %v6922_v56 = vld [vmem:[#allocation15 + $0x1d8] sm:$0xff]  ;;  %6968 = vmatpush.msrb.mxu2 %v6921_v9 }
0x164d   : > { %v7430_v58 = vmul.f32 -1.442695, %v6614_v13  ;;  %v6635_v27 = vrot.slane %v6614_v13, 2  ;;  %v6917_v13 = vld [vmem:[#allocation15 + $0x1b0] sm:$0xff] }
0x164e   : > { %6969 = vmatpush.msrb.mxu2 %v6917_v13  ;;  %v6852_v13 = vstv %s6851_s21 }
0x164f   : > { %7792 = vpow2.f32 %v7430_v58  ;;  %v6912_v58 = vld [vmem:[#allocation15 + $0x188] sm:$0xff]  ;;  %vm6853_vm3 = vcmp.eq.s32.totalorder %v6852_v13, 1 }
0x1650   : > { %6970 = vmatpush.msrb.mxu2 %v6913_v52 }
0x1652   : > { %6971 = vmatpush.msrb.mxu2 %v6909_v46 }
0x1654   : > { %6972 = vmatpush.msrb.mxu2 %v12412_v40  ;;  %v6892_v40 = vld [vmem:[#allocation15 + $0xe8] sm:$0xff] }
0x1655   : > { %v7793_v0 = vpop.eup %7792 }
0x1656   : > { %v6618_v1 = vadd.f32 1.0, %v7793_v0  ;;  %v6910_v0 = vld [vmem:[#allocation15 + $0x178] sm:$0xff]  ;;  %6973 = vmatpush.msrb.mxu2 %v12419_v18  ;;  %v6888_v18 = vld [vmem:[#allocation15 + $0xc8] sm:$0xff] }
0x1658   : > { %7794 = vrcp.f32 %v6618_v1  ;;  %v6630_v21 = vand.u32 2147483648, %v6618_v1  ;;  %v6628_v50 = vand.u32 2147483647, %v6618_v1  ;;  %vm6624_vm11 = vweird.f32 %v6618_v1  ;;  %6974 = vmatpush.msrb.mxu2 %v12425_v16  ;;  %v7074_v16 = vld [vmem:[#allocation17 + $0x48] sm:$0xff] }
0x1659   : > { %7796 = vtanh.f32 %v6635_v27  ;;  %v6659_v27 = vld [vmem:[%s6658_s27] sm:$0xf] }
0x165a   : > { %v6631_v48 = vor.u32 1.1754944e-38, %v6630_v21  ;;  %vm6629_vm13 = vcmp.eq.f32.partialorder %v6628_v50, 8.507059e+37  ;;  %6975 = vmatpush.msrb.mxu2 %v12434_v25  ;;  %v7073_v25 = vld [vmem:[#allocation17 + $0x40] sm:$0xff] }
0x165c   : > { %6976 = vmatpush.msrb.mxu2 %v12444_v34  ;;  %v6872_v34 = vld [vmem:[#allocation15 + $0x48] sm:$0xff] }
0x165e   : > { %v7795_v59 = vpop.eup %7794  ;;  %6977 = vmatpush.msrb.mxu2 %v12455_v42 }
0x165f   : > { %v6620_v31 = vmul.f32 %v7795_v59, %v6618_v1  ;;  %vm6625_vm10 = vweird.f32 %v7795_v59  ;;  %v7797_v5 = vpop.eup %7796 }
0x1660   : > { %vm6626_vm12 = vmor %vm6624_vm11, %vm6625_vm10  ;;  %6978 = vmatpush.msrb.mxu2 %v12467_v35  ;;  %v7069_v35 = vld [vmem:[#allocation17 + $0x20] sm:$0xff] }
0x1661   : > { %v6621_v2 = vsub.f32 1.0, %v6620_v31  ;;  %v7079_v31 = vld [vmem:[#allocation17 + $0x70] sm:$0xff] }
0x1662   : > { %6979 = vmatpush.msrb.mxu2 %v12479_v60  ;;  %v7067_v60 = vld [vmem:[#allocation17 + $0x10] sm:$0xff] }
0x1663   : > { %v6622_v33 = vmul.f32 %v7795_v59, %v6621_v2  ;;  %v6900_v2 = vld [vmem:[#allocation15 + $0x128] sm:$0xff] }
0x1664   : > { %6980 = vmatpush.msrb.mxu2 %v12489_v7 }
0x1665   : > { %v6623_v19 = vadd.f32 %v7795_v59, %v6622_v33  ;;  %v7078_v33 = vld [vmem:[#allocation17 + $0x68] sm:$0xff] }
0x1666   : > { %6981 = vmatpush.msrb.mxu2 %v12498_v57 }
0x1667   : > { %v6627_v61 = vsel %vm6626_vm12, %v7795_v59, %v6623_v19  ;;  %v6904_v59 = vld [vmem:[#allocation15 + $0x148] sm:$0xff] }
0x1668   : > { %v6632_v45 = vsel %vm6629_vm13, %v6631_v48, %v6627_v61  ;;  %v6896_v48 = vld [vmem:[#allocation15 + $0x108] sm:$0xff]  ;;  %6982 = vmatpush.msrb.mxu2 %v12505_v8 }
0x1669   : > { %v6639_v26 = vrot.slane %v6632_v45, 1  ;;  %v6642_v51 = vmul.f32 %v7797_v5, %v6632_v45  ;;  %v6645_v36 = vrot.slane %v6632_v45, 3  ;;  %v6660_v45 = vadd.f32 %v12370_v23, %v6659_v27 }
0x166b   : > { %v6641_v37 = vmul.f32 %v6639_v26, %v12385_v3 }
0x166d   : > { %v6643_v28 = vadd.f32 %v6642_v51, %v6641_v37 }
0x166f   : > { %7798 = vtanh.f32 %v6643_v28  ;;  %v12535_v55 = vsel %vm6651_vm14, %v6643_v28, %v12385_v3  ;;  %v6924_v3 = vld [vmem:[#allocation15 + $0x1e8] sm:$0xff] }
0x1670   : > { %6947 = vmatpush.msra.mxu1 %v6924_v3  ;;  %v7072_v3 = vld [vmem:[#allocation17 + $0x38] sm:$0xff] }
0x1672   : > { %6948 = vmatpush.msra.mxu1 %v6920_v10 }
0x1674   : > { %6949 = vmatpush.msra.mxu1 %v6916_v22 }
0x1675   : > { %v7799_v53 = vpop.eup %7798 }
0x1676   : > { %v6647_v11 = vmul.f32 %v7799_v53, %v6645_v36  ;;  %6950 = vmatpush.msra.mxu1 %v6912_v58  ;;  %v6884_v53 = vld [vmem:[#allocation15 + $0xa8] sm:$0xff] }
0x1678   : > { %v12540_v43 = vsel %vm6651_vm14, %v6647_v11, %v12388_v6  ;;  %v6926_v6 = vld [vmem:[#allocation15 + $0x1f8] sm:$0xff]  ;;  %6951 = vmatpush.msra.mxu1 %v6908_v32 }
0x1679   : > { %6654 = vst [vmem:[#allocation5 + $0x1d] sm:$0x1] %v12540_v43  ;;  %6741 = vmatmul.f32.vlgmr.msrb.gmra.mxu0 %v12540_v43  ;;  %6761 = vmatmul.f32.vlgmr.msrb.gmra.mxu1 %v12540_v43 }
0x167a   : > { %6781 = vmatmul.f32.vlgmr.msra.gmra.mxu2 %v12540_v43  ;;  %6801 = vmatmul.f32.vlgmr.msra.gmra.mxu3 %v12540_v43 }
0x167b   : > { %6987 = vmatpush.msrb.mxu3 %v6926_v6  ;;  %7085 = vmatpush.msrb.mxu0 %v7080_v44 }
0x167c   : > { %6952 = vmatpush.msra.mxu1 %v6904_v59  ;;  %v7062_v59 = vld [vmem:[#allocation5 + $0x8] sm:$0xff] }
0x167d   : > { %6988 = vmatpush.msrb.mxu3 %v6922_v56  ;;  %7086 = vmatpush.msrb.mxu0 %v7079_v31  ;;  %v7063_v31 = vld [vmem:[#allocation5 + $0x10] sm:$0xff] }
0x167e   : > { %6953 = vmatpush.msra.mxu1 %v6900_v2  ;;  %v6861_v2 = vld [vmem:[%s6860_s26] sm:$0xf] }
0x167f   : > { %6989 = vmatpush.msrb.mxu3 %v6918_v54  ;;  %7087 = vmatpush.msrb.mxu0 %v7078_v33 }
0x1680   : > { %6954 = vmatpush.msra.mxu1 %v6896_v48 }
0x1681   : > { %6990 = vmatpush.msrb.mxu3 %v6914_v49  ;;  %7088 = vmatpush.msrb.mxu0 %v7077_v4 }
0x1682   : > { %6955 = vmatpush.msra.mxu1 %v6892_v40 }
0x1683   : > { %6991 = vmatpush.msrb.mxu3 %v6910_v0 }
0x1684   : > { %6956 = vmatpush.msra.mxu1 %v6888_v18 }
0x1685   : > { %6992 = vmatpush.msrb.mxu3 %v12417_v15  ;;  %v7076_v15 = vld [vmem:[#allocation17 + $0x58] sm:$0xff] }
0x1686   : > { %7089 = vmatpush.msrb.mxu0 %v7076_v15  ;;  %6957 = vmatpush.msra.mxu1 %v6884_v53 }
0x1687   : > { %6993 = vmatpush.msrb.mxu3 %v12423_v63  ;;  %v7075_v63 = vld [vmem:[#allocation17 + $0x50] sm:$0xff] }
0x1688   : > { %7090 = vmatpush.msrb.mxu0 %v7075_v63 }
0x1689   : > { %6994 = vmatpush.msrb.mxu3 %v12430_v17  ;;  %v6880_v17 = vld [vmem:[#allocation15 + $0x88] sm:$0xff] }
0x168a   : > { %7091 = vmatpush.msrb.mxu0 %v7074_v16  ;;  %6958 = vmatpush.msra.mxu1 %v6880_v17 }
0x168b   : > { %6995 = vmatpush.msrb.mxu3 %v12439_v62  ;;  %v6876_v62 = vld [vmem:[#allocation15 + $0x68] sm:$0xff] }
0x168c   : > { %7092 = vmatpush.msrb.mxu0 %v7073_v25  ;;  %6959 = vmatpush.msra.mxu1 %v6876_v62 }
0x168d   : > { %6996 = vmatpush.msrb.mxu3 %v12449_v30  ;;  %v7071_v30 = vld [vmem:[#allocation17 + $0x30] sm:$0xff] }
0x168e   : > { %7093 = vmatpush.msrb.mxu0 %v7072_v3  ;;  %6960 = vmatpush.msra.mxu1 %v6872_v34 }
0x168f   : > { %6997 = vmatpush.msrb.mxu3 %v12461_v29  ;;  %v7070_v29 = vld [vmem:[#allocation17 + $0x28] sm:$0xff] }
0x1690   : > { %7094 = vmatpush.msrb.mxu0 %v7071_v30  ;;  %6961 = vmatpush.msra.mxu1 %v12463_v12  ;;  %v7066_v12 = vld [vmem:[#allocation17 + $0x8] sm:$0xff] }
0x1691   : > { %6998 = vmatpush.msrb.mxu3 %v12472_v38  ;;  %v7068_v38 = vld [vmem:[#allocation17 + $0x18] sm:$0xff] }
0x1692   : > { %7095 = vmatpush.msrb.mxu0 %v7070_v29  ;;  %6962 = vmatpush.msra.mxu1 %v12475_v24 }
0x1693   : > { %6999 = vmatpush.msrb.mxu3 %v12484_v14 }
0x1694   : > { %7096 = vmatpush.msrb.mxu0 %v7069_v35 }
0x1695   : > { %7000 = vmatpush.msrb.mxu3 %v12494_v20  ;;  %v7065_v20 = vld [vmem:[#allocation17] sm:$0xff] }
0x1696   : > { %7097 = vmatpush.msrb.mxu0 %v7068_v38  ;;  %v7054_v38 = vstv %s7053_s24 }
0x1697   : > { %7001 = vmatpush.msrb.mxu3 %v12501_v47  ;;  %vm7055_vm8 = vcmp.eq.s32.totalorder %v7054_v38, 1 }
0x1698   : > { %7098 = vmatpush.msrb.mxu0 %v7067_v60 }
0x1699   : > { %7002 = vmatpush.msrb.mxu3 %v12508_v41 }
0x169a   : > { %7099 = vmatpush.msrb.mxu0 %v7066_v12 }
0x169c   : > { %7100 = vmatpush.msrb.mxu0 %v7065_v20 }
0x16f6   : > { %v6762_v1 = vpop.f32.mrf.mxu1  ;;  %v6742_v5 = vpop.f32.mrf.mxu0 }
0x16f7   : > { %v6809_v21 = vrot.slane %v6762_v1, 7 }
0x16f9   : > { %v6812_v37 = vsel %vm749_vm6, %v6742_v5, %v6809_v21  ;;  %v7559_v21 = vld [vmem:[%s12691_s10] ss:$0 sm:$0xff] }
0x16fd   : > { %v6782_v50 = vpop.f32.mrf.mxu2  ;;  %v6802_v19 = vpop.f32.mrf.mxu3 }
0x16fe   : > { %v6810_v61 = vrot.slane %v6782_v50, 6  ;;  %v6811_v26 = vrot.slane %v6802_v19, 5 }
0x1700   : > { %v6813_v51 = vsel %vm751_vm5, %v6810_v61, %v6811_v26  ;;  %v6862_v61 = vadd.f32 %v12370_v23, %v6861_v2 }
0x1701   : > { %v6814_v28 = vsel %vm753_vm7, %v6812_v37, %v6813_v51 }
0x1702   : > { %v12563_v36 = vadd.f32 %v6814_v28, %v6660_v45 }
0x1704   : > { %v7432_v11 = vmul.f32 -1.442695, %v12563_v36  ;;  %v6837_v57 = vrot.slane %v12563_v36, 2 }
0x1706   : > { %7800 = vpow2.f32 %v7432_v11 }
0x170c   : > { %v7801_v42 = vpop.eup %7800 }
0x170d   : > { %v6820_v39 = vadd.f32 1.0, %v7801_v42 }
0x170f   : > { %7802 = vrcp.f32 %v6820_v39  ;;  %v6832_v24 = vand.u32 2147483648, %v6820_v39  ;;  %v6830_v41 = vand.u32 2147483647, %v6820_v39  ;;  %vm6826_vm0 = vweird.f32 %v6820_v39 }
0x1710   : > { %7804 = vtanh.f32 %v6837_v57 }
0x1711   : > { %v6833_v10 = vor.u32 1.1754944e-38, %v6832_v24  ;;  %vm6831_vm2 = vcmp.eq.f32.partialorder %v6830_v41, 8.507059e+37 }
0x1715   : > { %v7803_v14 = vpop.eup %7802 }
0x1716   : > { %v6822_v7 = vmul.f32 %v7803_v14, %v6820_v39  ;;  %vm6827_vm15 = vweird.f32 %v7803_v14  ;;  %v7805_v54 = vpop.eup %7804 }
0x1717   : > { %vm6828_vm1 = vmor %vm6826_vm0, %vm6827_vm15 }
0x1718   : > { %v6823_v47 = vsub.f32 1.0, %v6822_v7 }
0x171a   : > { %v6824_v8 = vmul.f32 %v7803_v14, %v6823_v47 }
0x171c   : > { %v6825_v6 = vadd.f32 %v7803_v14, %v6824_v8 }
0x171e   : > { %v6829_v9 = vsel %vm6828_vm1, %v7803_v14, %v6825_v6 }
0x171f   : > { %v6834_v56 = vsel %vm6831_vm2, %v6833_v10, %v6829_v9 }
0x1720   : > { %v6841_v22 = vrot.slane %v6834_v56, 1  ;;  %v6844_v52 = vmul.f32 %v7805_v54, %v6834_v56  ;;  %v6847_v46 = vrot.slane %v6834_v56, 3 }
0x1722   : > { %v6843_v58 = vmul.f32 %v6841_v22, %v12535_v55 }
0x1724   : > { %v6845_v49 = vadd.f32 %v6844_v52, %v6843_v58 }
0x1726   : > { %7806 = vtanh.f32 %v6845_v49  ;;  %v12596_v32 = vsel %vm6853_vm3, %v6845_v49, %v12535_v55  ;;  %v7061_v55 = vld [vmem:[#allocation5] sm:$0xff] }
0x172c   : > { %v7807_v0 = vpop.eup %7806 }
0x172d   : > { %v6849_v1 = vmul.f32 %v7807_v0, %v6847_v46 }
0x172f   : > { %v12599_v44 = vsel %vm6853_vm3, %v6849_v1, %v12540_v43 }
0x1730   : > { %6856 = vst [vmem:[#allocation5 + $0x1e] sm:$0x1] %v12599_v44  ;;  %6943 = vmatmul.f32.vlgmr.msra.gmra.mxu0 %v12599_v44  ;;  %6963 = vmatmul.f32.vlgmr.msra.gmra.mxu1 %v12599_v44 }
0x1731   : > { %6983 = vmatmul.f32.vlgmr.msrb.gmra.mxu2 %v12599_v44  ;;  %7003 = vmatmul.f32.vlgmr.msrb.gmra.mxu3 %v12599_v44 }
0x1738   : > { %7101 = vmatmul.f32.vlgmr.msrb.gmra.mxu0 %v7061_v55 }
0x1740   : > { %7104 = vmatmul.f32.gmra.mxu0 %v7062_v59 }
0x1748   : > { %7107 = vmatmul.f32.gmra.mxu0 %v7063_v31 }
0x17ad   : > { %v6944_v43 = vpop.f32.mrf.mxu0  ;;  %v6964_v27 = vpop.f32.mrf.mxu1 }
0x17ae   : > { %v7011_v33 = vrot.slane %v6964_v27, 7 }
0x17b0   : > { %v7014_v5 = vsel %vm749_vm6, %v6944_v43, %v7011_v33 }
0x17b4   : > { %v6984_v50 = vpop.f32.mrf.mxu2  ;;  %v7004_v19 = vpop.f32.mrf.mxu3 }
0x17b5   : > { %v7012_v48 = vrot.slane %v6984_v50, 6  ;;  %v7013_v45 = vrot.slane %v7004_v19, 5  ;;  %v7102_v26 = vpop.f32.mrf.mxu0 }
0x17b6   : > { %v7103_v4 = vadd.f32 %v7559_v21, %v7102_v26 }
0x17b7   : > { %v7015_v40 = vsel %vm751_vm5, %v7012_v48, %v7013_v45 }
0x17b8   : > { %v7016_v37 = vsel %vm753_vm7, %v7014_v5, %v7015_v40  ;;  %7114 = vst [vmem:[%s8321_s18] sm:$0xff] %v7103_v4 }
0x17b9   : > { %v7018_v51 = vadd.f32 %v7016_v37, %v6862_v61 }
0x17bb   : > { %v7434_v15 = vmul.f32 -1.442695, %v7018_v51  ;;  %v7039_v17 = vrot.slane %v7018_v51, 2 }
0x17bd   : > { %7808 = vpow2.f32 %v7434_v15  ;;  %v7105_v28 = vpop.f32.mrf.mxu0 }
0x17be   : > { %v7106_v18 = vadd.f32 %v7559_v21, %v7105_v28 }
0x17c0   : > { %7115 = vst [vmem:[%s8321_s18 + $0x8] sm:$0xff] %v7106_v18 }
0x17c3   : > { %v7809_v23 = vpop.eup %7808 }
0x17c4   : > { %v7022_v36 = vadd.f32 1.0, %v7809_v23 }
0x17c5   : > { %v7108_v63 = vpop.f32.mrf.mxu0 }
0x17c6   : > { %7810 = vrcp.f32 %v7022_v36  ;;  %v7109_v53 = vadd.f32 %v7559_v21, %v7108_v63  ;;  %v7034_v62 = vand.u32 2147483648, %v7022_v36  ;;  %v7032_v34 = vand.u32 2147483647, %v7022_v36 }
0x17c7   : > { %7812 = vtanh.f32 %v7039_v17  ;;  %vm7028_vm6 = vweird.f32 %v7022_v36 }
0x17c8   : > { %7116 = vst [vmem:[%s8321_s18 + $0x10] sm:$0xff] %v7109_v53  ;;  %v7035_v42 = vor.u32 1.1754944e-38, %v7034_v62  ;;  %vm7033_vm4 = vcmp.eq.f32.partialorder %v7032_v34, 8.507059e+37 }
0x17cc   : > { %v7811_v11 = vpop.eup %7810 }
0x17cd   : > { %v7024_v16 = vmul.f32 %v7811_v11, %v7022_v36  ;;  %vm7029_vm5 = vweird.f32 %v7811_v11  ;;  %v7813_v60 = vpop.eup %7812 }
0x17ce   : > { %vm7030_vm7 = vmor %vm7028_vm6, %vm7029_vm5 }
0x17cf   : > { %v7025_v25 = vsub.f32 1.0, %v7024_v16 }
0x17d1   : > { %v7026_v3 = vmul.f32 %v7811_v11, %v7025_v25 }
0x17d3   : > { %v7027_v30 = vadd.f32 %v7811_v11, %v7026_v3 }
0x17d5   : > { %v7031_v29 = vsel %vm7030_vm7, %v7811_v11, %v7027_v30 }
0x17d6   : > { %v7036_v39 = vsel %vm7033_vm4, %v7035_v42, %v7031_v29 }
0x17d7   : > { %v7043_v35 = vrot.slane %v7036_v39, 1  ;;  %v7046_v14 = vmul.f32 %v7813_v60, %v7036_v39  ;;  %v7049_v57 = vrot.slane %v7036_v39, 3 }
0x17d9   : > { %v7045_v12 = vmul.f32 %v7043_v35, %v12596_v32 }
0x17db   : > { %v7047_v7 = vadd.f32 %v7046_v14, %v7045_v12 }
0x17dd   : > { %7814 = vtanh.f32 %v7047_v7  ;;  %v7057_v20 = vsel %vm7055_vm8, %v7047_v7, %v12596_v32 }
0x17de   : > { %7060 = vst [vmem:[#allocation3] sm:$0x1] %v7057_v20 }
0x17e3   : > { %v7815_v47 = vpop.eup %7814 }
0x17e4   : > { %v7051_v24 = vmul.f32 %v7815_v47, %v7049_v57 }
0x17e6   : > { %v7056_v8 = vsel %vm7055_vm8, %v7051_v24, %v12599_v44 }
0x17e7   : > { %7058 = vst [vmem:[#allocation5 + $0x1f] sm:$0x1] %v7056_v8 }
0x17e8   : > { %7059 = vst [vmem:[#allocation2] sm:$0x1] %v7056_v8 }
0x17ee   : > { %v7064_v41 = vld [vmem:[#allocation5 + $0x18] sm:$0xff] }
0x17ef   : > { %7110 = vmatmul.f32.gmra.mxu0 %v7064_v41 }
0x186b   : > { %7121 = sbr.rel (%p7435_p13) target bundleno = 6258 (0x1872), region = 84 }
0x186c   : > { %v7111_v6 = vpop.f32.mrf.mxu0 }
0x186d   : > { %v7112_v10 = vadd.f32 %v7559_v21, %v7111_v6 }
0x186f   : > { %7117 = vst [vmem:[%s8321_s18 + $0x18] sm:$0xff] %v7112_v10 }
0x1870   : > { %7122 = vst [vmem:[#allocation19] sm:$0x1] %v7056_v8 }
0x1871   : > { %7123 = vst [vmem:[#allocation21] sm:$0x1] %v7057_v20 }
0x1872 PF: > { %s7154_s17 = sshll.u32 %s12693_s12, 4  ;;  %s8135_s19 = smov [#allocation19]   ;;  %s7155_s17 = int_to_ptr.hbm [resolvable:$true] %s7154_s17 }
0x1873   : > { %s7152_s27 = sshll.u32 %s8135_s19, 4  ;;  %s7136_s29 = scalar_lea.hbm %s12692_s11, %s8665_s5  ;;  %s7153_s27 = int_to_ptr.vmem [resolvable:$true] %s7152_s27 }
0x1874   : > { %7468 = dma.vmem_to_hbm [thread:$0]  (%p247_p2), %s7153_s27, 16, %s7155_s17, [#allocation20]  }
0x1875   : > { %s7137_s20 = sshll.u32 %s8321_s18, 4  ;;  %s7139_s7 = sshll.u32 %s7136_s29, 4  ;;  %s7138_s20 = int_to_ptr.vmem [resolvable:$true] %s7137_s20  ;;  %s7140_s7 = int_to_ptr.hbm [resolvable:$true] %s7139_s7 }
0x1876   : > { %s7125_s26 = scalar_lea.sflag [#allocation11], %s446_s14  ;;  %s8027_s28 = sshra.s32 %s7140_s7, 4  ;;  %s8028_s28 = int_to_ptr.hbm [resolvable:$true] %s8027_s28 }
0x1877   : > { %s8029_s16 = scalar_lea.hbm %s8028_s28, 32  ;;  %s8033_s25 = scalar_lea.hbm %s12692_s11, 64 }
0x1878   : > { %p8030_p0 = scmp.ne.s32.totalorder %s8028_s28, %s8029_s16  ;;  %p8034_p4 = scmp.lt.s32.totalorder %s8028_s28, %s12692_s11 }
0x1879   : > { %p8035_p7 = scmp.lt.s32.totalorder %s8033_s25, %s8029_s16 }
0x187a   : > { %p8031_p1 = pnand %p8030_p0, %p8255_p5 }
0x187b   : > { %p8036_p8 = por %p8035_p7, %p8034_p4 }
0x187c   : > { %p8032_p3 = pneg %p8031_p1 }
0x187e   : > { %p8037_p9 = pnand %p8036_p8, %p8032_p3 }
0x1880   : > { %8040 = shalt.err (!%p8037_p9)
}
0x1881   : > { %s8136_s14 = smov 128   ;;  %s8137_s18 = smov 8  }
0x1882   : > { %7466 = dma.vmem_to_hbm [thread:$0]  (%p8255_p5), %s7138_s20, 512, %s7140_s7, %s7125_s26, %s8136_s14, %s8136_s14, %s8137_s18  }
0x1883   : > { %s8138_s5 = smov [#allocation21]   ;;  %s7166_s21 = sshll.u32 %s12694_s13, 4  ;;  %s7167_s21 = int_to_ptr.hbm [resolvable:$true] %s7166_s21 }
0x1884   : > { %s7164_s19 = sshll.u32 %s8138_s5, 4  ;;  %s7165_s19 = int_to_ptr.vmem [resolvable:$true] %s7164_s19 }
0x1885   : > { %7470 = dma.vmem_to_hbm [thread:$0]  (%p247_p2), %s7165_s19, 16, %s7167_s21, [#allocation20]  }
0x1886   : > { %8100 = dma.done.wait (%p247_p2), [#allocation20], 32  }
0x1887   : > { %8102 = vsyncadd (%p247_p2), [#allocation20], 4294967264 }
0x1888 PF: > { %s12746_s29 = sld [smem:[#allocation30_spill]] }
0x1889   : > { %s12747_s28 = sld [smem:[#allocation28_spill]] }
0x188e   : > { %p7510_p5 = scmp.ge.s32.totalorder %s12746_s29, 2 }
0x188f   : > { %s7188_s20 = sand.u32 1, %s12747_s28  }
0x1890   : > { %p7493_p10 = pnand %p7510_p5, %p8259_p6  ;;  %s7189_s7 = scalar_lea.sflag [#allocation11], %s7188_s20 }
0x1892   : > { %p7494_p11 = pneg %p7493_p10 }
0x1894   : > { %8104 = dma.done.wait (%p7494_p11), %s7189_s7, 512  }
0x1895   : > { %8106 = vsyncadd (%p7494_p11), %s7189_s7, 4294966784  ;;  %s12749_s16 = sld [smem:[#allocation31_spill]]  ;;  %s12752_s14 = smov %s8113_s15 }
0x1896   : > { %s12750_s26 = sld [smem:[#allocation29_spill]] }
0x1897   : > { %s12751_s0 = sld [smem:[#allocation32_spill]] }
0x189b   : > { %p37_p12 = scmp.ge.s32.totalorder %s12749_s16, 4  }
0x189c   : > { %s12753_s15 = smov %s12750_s26 }
0x189d   :  { %39 = sbr.rel (!%p37_p12) target bundleno = 15 (0xf), region = 165 }
0x18a2   :  { %7195 = vsyncpa [#allocation10], 1 }
0x18a3   :  { %7197 = vsyncpa [#allocation10 + $0x1], 1 }
0x18a4   :  { %7198 = vsyncpa [#allocation13], 1 }
0x18a5   :  { %7199 = vsyncpa [#allocation16], 1 }
0x18a6   :  { %7200 = vsyncpa [#allocation11], 1 }
0x18a7   :  { %7202 = vsyncpa [#allocation11 + $0x1], 1 }
0x18a8   :  { %7203 = vsyncpa [#allocation20], 1 }

</bundles_post_ra>
